<compile_context>
chip_gen: v7x
topology: tpu7x:2x2x1
jax: 0.10.0
libtpu: 0.0.40
codegen_flags: <defaults>
</compile_context>

<pallas_src>
import functools

import jax
import jax.numpy as jnp
from jax import lax
from jax.experimental import pallas as pl
from jax.experimental.pallas import tpu as pltpu

POINTS_DIM = 3
CPAD = 128            # lane-padded channel width -> unmasked, lane-dense stores
GATE_ONE = 123        # RHS lane holding constant 1            (pairs with ||q/r||^2)
GATE_XYZ = 124        # RHS lanes 124..126 hold p_xyz / radius (pair with -2 q/r)
GATE_NORM = 127       # RHS lane holding ||p_xyz/r||^2         (pairs with 1)

# ------------------------- model config (small, deterministic) -------------------------
B = 2                 # batch of clips
L = 4                 # clip_len (temporal length)
N = 16                # points per frame
IN_CHANNELS = 3       # input feature channels (xyz)
MLPS = [[16], [32]]
STRIDES = [1, 2]
RADIUS = [0.9, 0.9]
NSAMPLES = [8, 8]
NUM_CLASSES = 5


# ------------------------------- Pallas kernel ------------------------------------------
def _full_block(shape):
    """Whole-array block on a trivial grid=(1,): single step, operand resident in VMEM."""
    return pl.BlockSpec(shape, lambda i: (0,) * len(shape))


def _stage_max(oh_ref, pw, qgate, shiftq, scale_row, nsample):
    """One SA stage, k-chunked.

    Per neighbor slot k:
        gpw  = onehot_k @ pw                    # ONE lane/K-dense MXU pass (gather+conv fused)
        d2   = sum(gpw * qgate, lanes)          # ||p-q||^2 / r^2 from the stashed gate lanes
        y    = gpw*scale + shift_q              # folded eval-BN (query part folded into shift_q)
        y    = leaky_relu(y, 0.2) * sigmoid(sqrt(d2))
        acc  = max(acc, y)
    Padded lanes (>= cout, incl. gate lanes) have scale=shift_q=0 -> exactly zero output.
    """
    rows = oh_ref.shape[0]
    bm = rows // nsample
    cpad = pw.shape[1]
    scale = jnp.broadcast_to(scale_row, (bm, cpad))       # hoisted out of the unrolled loop
    acc = None
    for k in range(nsample):
        oh_k = oh_ref[k * bm:(k + 1) * bm, :]             # static ref-slice view
        gpw = jnp.dot(oh_k, pw, preferred_element_type=jnp.float32)     # (bm, CPAD)
        d2 = jnp.maximum(jnp.sum(gpw * qgate, axis=-1, keepdims=True), 0.0)
        # TODO(synk): QueryAndGroup's 4th "points" (gate) channel comes from an external CUDA
        #             op in the reference; the normalized neighbor distance is used here.
        gate = jax.nn.sigmoid(jnp.sqrt(d2))
        y = gpw * scale + shiftq
        y = jnp.where(y > 0, y, 0.2 * y)                  # LeakyReLU(0.2)
        y = y * gate
        acc = y if acc is None else jnp.maximum(acc, y)
    return acc


def _fused_motion_kernel(oh0_ref, pw0_ref, qg0_ref, sq0_ref, sc0_ref,
                         oh1_ref, pw1s_ref, wf1_ref, qg1_ref, sq1_ref, sc1_ref,
                         clsw_ref, clsb_ref,
                         feat_ref, logit_ref, *, ns0, ns1, n_clip):
    # ---- stage 0 (gather + conv + BN + LeakyReLU + gate + max over nsample) ----
    acc0 = _stage_max(oh0_ref, pw0_ref[...], qg0_ref[...], sq0_ref[...], sc0_ref[...], ns0)

    # ---- stage 1 RHS: static xyz/gate part (glue) + feature part from stage-0 output ----
    pw1 = pw1s_ref[...] + jnp.dot(acc0, wf1_ref[...], preferred_element_type=jnp.float32)
    acc1 = _stage_max(oh1_ref, pw1, qg1_ref[...], sq1_ref[...], sc1_ref[...], ns1)
    feat_ref[...] = acc1                                   # (Bt*M1, CPAD) lane-dense store

    # ---- classifier head (batched epilogue) ----
    # global max over (L, M1) per clip, Dropout(eval)=identity, single batched Linear.
    rpc = acc1.shape[0] // n_clip
    pooled = jnp.concatenate(
        [jnp.max(acc1[c * rpc:(c + 1) * rpc, :], axis=0, keepdims=True)
         for c in range(n_clip)], axis=0)                  # (n_clip, CPAD)
    logit_ref[...] = (jnp.dot(pooled, clsw_ref[...], preferred_element_type=jnp.float32)
                      + clsb_ref[...])


def _fused_call(args, *, ns0, ns1, n_clip, bm1):
    return pl.pallas_call(
        functools.partial(_fused_motion_kernel, ns0=ns0, ns1=ns1, n_clip=n_clip),
        grid=(1,),     # whole working set (~1.3 MiB of operands) lives in VMEM
        in_specs=[_full_block(a.shape) for a in args],
        out_specs=(_full_block((bm1, CPAD)), _full_block((n_clip, CPAD))),
        out_shape=(jax.ShapeDtypeStruct((bm1, CPAD), jnp.float32),
                   jax.ShapeDtypeStruct((n_clip, CPAD), jnp.float32)),
        compiler_params=pltpu.CompilerParams(dimension_semantics=("arbitrary",)),
    )(*args)


# --------------------------------- JAX glue ---------------------------------------------
def shift_point_neg(pts, clip_len):
    """shift_point(stride=-1): pts (Bt, N, 3)."""
    Bt, Npts, _ = pts.shape
    pts4 = pts.reshape(Bt // clip_len, clip_len, Npts, 3)
    shifted = jnp.roll(pts4, -1, axis=1)
    shift_mean = jnp.mean(shifted[:, :-1] - pts4[:, :-1], axis=1)
    shifted = shifted.at[:, -1].set(pts4[:, -1] + shift_mean)
    return shifted.reshape(Bt, Npts, 3)


def furthest_point_sample(xyz, npoint):
    """xyz (Bt, N, 3) -> (Bt, npoint) int32 indices (standard pointnet2 FPS semantics)."""
    Bt, Npts, _ = xyz.shape
    xyz = xyz.astype(jnp.float32)

    def body(i, state):
        idxs, dists, last = state
        lastp = jnp.take_along_axis(xyz, last[:, None, None], axis=1)   # (Bt, 1, 3)
        d = jnp.sum((xyz - lastp) ** 2, axis=-1)                        # (Bt, N)
        dists = jnp.minimum(dists, d)
        nxt = jnp.argmax(dists, axis=-1).astype(jnp.int32)
        idxs = idxs.at[:, i].set(nxt)
        return idxs, dists, nxt

    idxs = jnp.zeros((Bt, npoint), dtype=jnp.int32)
    dists = jnp.full((Bt, Npts), 1e10, dtype=jnp.float32)
    last = jnp.zeros((Bt,), dtype=jnp.int32)
    idxs, _, _ = lax.fori_loop(1, npoint, body, (idxs, dists, last))
    return idxs


def ball_query_idx(query, support, radius, nsample):
    """query (Bt,M,3), support (Bt,N,3) -> (Bt, M, nsample) indices (CUDA ball_query sem.)."""
    d2 = jnp.sum((query[:, :, None, :] - support[:, None, :, :]) ** 2, axis=-1)  # (Bt,M,N)
    within = d2 < radius * radius
    csum = jnp.cumsum(within.astype(jnp.int32), axis=-1)
    slots = jnp.arange(1, nsample + 1, dtype=jnp.int32)
    match = within[:, :, None, :] & (csum[:, :, None, :] == slots[None, None, :, None])
    idx = jnp.argmax(match, axis=-1).astype(jnp.int32)   # (Bt, M, K)
    has = jnp.any(match, axis=-1)
    first = idx[:, :, 0:1]                                # first found (0 if none)
    return jnp.where(has, idx, first)


def build_onehot(nidx, Bt, n_support_per_batch):
    """nidx (Bt, M, K) local indices -> lane-dense one-hot (K*Bt*M, Bt*n_support) f32.

    Row order is (k, bt, m) so the kernel's per-k chunks are contiguous, sublane-aligned slices.
    """
    K = nidx.shape[2]
    base = (jnp.arange(Bt, dtype=jnp.int32) * n_support_per_batch)[:, None, None]
    gidx = jnp.transpose(nidx + base, (2, 0, 1)).reshape(-1)
    return jax.nn.one_hot(gidx, Bt * n_support_per_batch, dtype=jnp.float32)


def pack_pw_static(xyz_flat, radius, conv_part):
    """RHS for the fused gather+conv matmul: conv columns + gate columns in padded lanes."""
    n = xyz_flat.shape[0]
    cout = conv_part.shape[1]
    xs = xyz_flat / radius
    pw = jnp.zeros((n, CPAD), jnp.float32)
    pw = pw.at[:, :cout].set(conv_part)
    pw = pw.at[:, GATE_ONE].set(1.0)
    pw = pw.at[:, GATE_XYZ:GATE_XYZ + 3].set(xs)
    pw = pw.at[:, GATE_NORM].set(jnp.sum(xs * xs, axis=-1))
    return pw


def pack_query(q_flat, radius, w_xyz, scale, shift):
    """Per-query operands: gate dot-weights, folded BN shift (query conv part folded in), scale."""
    m = q_flat.shape[0]
    cout = scale.shape[0]
    qs = q_flat / radius
    qgate = jnp.zeros((m, CPAD), jnp.float32)
    qgate = qgate.at[:, GATE_ONE].set(jnp.sum(qs * qs, axis=-1))
    qgate = qgate.at[:, GATE_XYZ:GATE_XYZ + 3].set(-2.0 * qs)
    qgate = qgate.at[:, GATE_NORM].set(1.0)
    qw = qs @ w_xyz                                                    # (m, cout) = q @ W_xyz
    shiftq = jnp.zeros((m, CPAD), jnp.float32)
    shiftq = shiftq.at[:, :cout].set(shift[None, :] - qw * scale[None, :])
    scale_p = jnp.zeros((1, CPAD), jnp.float32).at[0, :cout].set(scale)
    return qgate, shiftq, scale_p


def motionnet_forward(inp, params, videoname=None):
    """inp: (B, L, N, dim) point-cloud clip. Returns the torch module's output_dict."""
    assert len(MLPS) == 2, "fused kernel is specialized to the 2-stage config"
    Bb, Ll, Nn, _ = inp.shape
    Bt = Bb * Ll
    flat = inp.reshape(Bt, Nn, -1)
    xyz0 = flat[:, :, :3]
    feat0 = flat[:, :, :IN_CHANNELS]                       # channels-last (Bt, N, Cin)

    r0, r1 = RADIUS
    k0, k1 = NSAMPLES

    # ---------------- stage-0 geometry (coordinate-only -> plain JAX glue) ----------------
    q0 = shift_point_neg(xyz0, Ll)
    if STRIDES[0] > 1:
        idx = furthest_point_sample(q0, Nn // STRIDES[0])
        q0 = jnp.take_along_axis(q0, idx[..., None], axis=1)
    M0 = Nn // STRIDES[0]
    nidx0 = ball_query_idx(q0, xyz0, r0, k0)               # (Bt, M0, K0)
    oh0 = build_onehot(nidx0, Bt, Nn)                      # (K0*Bt*M0, Bt*N)

    # ---------------- stage-1 geometry (support = stage-0 query points) -------------------
    q1 = shift_point_neg(q0, Ll)
    if STRIDES[1] > 1:
        idx = furthest_point_sample(q1, M0 // STRIDES[1])
        q1 = jnp.take_along_axis(q1, idx[..., None], axis=1)
    M1 = M0 // STRIDES[1]
    nidx1 = ball_query_idx(q1, q0, r1, k1)                 # (Bt, M1, K1)
    oh1 = build_onehot(nidx1, Bt, M0)                      # (K1*Bt*M1, Bt*M0)

    # ---------------- pack lane-dense kernel operands -------------------------------------
    p0, p1 = params["stages"]
    cout0 = p0["scale"].shape[0]
    cout1 = p1["scale"].shape[0]

    # Stage 0: pw = [xyz/r | feats] @ W0  (conv input feats for stage 0 are the raw xyz).
    xyz0f = xyz0.reshape(Bt * Nn, 3)
    feat0f = feat0.reshape(Bt * Nn, IN_CHANNELS)
    conv0 = (xyz0f / r0) @ p0["w"][:POINTS_DIM] + feat0f @ p0["w"][POINTS_DIM:]
    pw0 = pack_pw_static(xyz0f, r0, conv0)
    qg0, sq0, sc0 = pack_query(q0.reshape(Bt * M0, 3), r0, p0["w"][:POINTS_DIM],
                               p0["scale"], p0["shift"])

    # Stage 1: static xyz/gate part of the RHS; the feature part (stage-0 output @ W1_feat)
    # is added inside the kernel so stage-0 features never touch HBM.
    xyz1f = q0.reshape(Bt * M0, 3)
    conv1s = (xyz1f / r1) @ p1["w"][:POINTS_DIM]
    pw1s = pack_pw_static(xyz1f, r1, conv1s)
    wf1 = jnp.zeros((CPAD, CPAD), jnp.float32).at[:cout0, :cout1].set(
        p1["w"][POINTS_DIM:POINTS_DIM + cout0])
    qg1, sq1, sc1 = pack_query(q1.reshape(Bt * M1, 3), r1, p1["w"][:POINTS_DIM],
                               p1["scale"], p1["shift"])

    # Head (Dropout eval = identity, Linear).
    clsw = jnp.zeros((CPAD, CPAD), jnp.float32).at[:cout1, :NUM_CLASSES].set(params["head"]["w"])
    clsb = jnp.zeros((1, CPAD), jnp.float32).at[0, :NUM_CLASSES].set(params["head"]["b"])

    # ---------------- one fused kernel for both SA stages + classifier head ---------------
    args = (oh0, pw0, qg0, sq0, sc0, oh1, pw1s, wf1, qg1, sq1, sc1, clsw, clsb)
    feat_pad, logit_pad = _fused_call(args, ns0=k0, ns1=k1, n_clip=Bb, bm1=Bt * M1)

    # unfold(mode=1): (B*L, C, M) -> (B, C, L, M); drop the zero pad lanes.
    feats = feat_pad[:, :cout1]
    temporal_features = feats.reshape(Bb, Ll, M1, cout1).transpose(0, 3, 1, 2)
    logit = logit_pad[:, :NUM_CLASSES]
    return {"pre_loss": 0, "temporal_features": temporal_features, "logit": logit}


def init_params(key):
    ks = jax.random.split(key, 8)

    def bn_fold(kg, kb, c):
        gamma = jax.random.uniform(kg, (c,), minval=0.5, maxval=1.5, dtype=jnp.float32)
        beta = 0.1 * jax.random.normal(kb, (c,), dtype=jnp.float32)
        running_mean = jnp.zeros((c,), jnp.float32)
        running_var = jnp.ones((c,), jnp.float32)
        scale = gamma / jnp.sqrt(running_var + 1e-5)
        shift = beta - running_mean * scale
        return scale, shift

    stages = []
    cin = IN_CHANNELS
    kidx = 0
    for k in range(len(MLPS)):
        cout = MLPS[k][-1]
        ctot = POINTS_DIM + cin
        w = 0.1 * jax.random.normal(ks[kidx], (ctot, cout), dtype=jnp.float32)
        scale, shift = bn_fold(ks[kidx + 1], ks[kidx + 2], cout)
        stages.append({"w": w, "scale": scale, "shift": shift})
        cin = cout
        kidx += 3

    cls_w = 0.1 * jax.random.normal(ks[6], (cin, NUM_CLASSES), dtype=jnp.float32)
    cls_b = 0.1 * jax.random.normal(ks[7], (NUM_CLASSES,), dtype=jnp.float32)
    return {"stages": stages, "head": {"w": cls_w, "b": cls_b}}


if __name__ == "__main__":
    inp = jax.random.uniform(jax.random.PRNGKey(0), (B, L, N, 3), dtype=jnp.float32)
    params = init_params(jax.random.PRNGKey(1))

    fwd = jax.jit(motionnet_forward)
    out = fwd(inp, params)
    jax.block_until_ready(out["logit"])
    jax.block_until_ready(out["temporal_features"])

    final_m = N
    for s in STRIDES:
        final_m //= s
    assert out["temporal_features"].shape == (B, MLPS[-1][-1], L, final_m)
    assert out["logit"].shape == (B, NUM_CLASSES)
    assert bool(jnp.all(jnp.isfinite(out["logit"])))
    assert bool(jnp.all(jnp.isfinite(out["temporal_features"])))
    print("KERNEL_OK")
</pallas_src>

<mosaic_0001>
module attributes {stable_mosaic.version = 11 : i64} {
  func.func @_fused_motion_kernel(%arg0: i32, %arg1: memref<1024x128xf32, #tpu.memory_space<vmem>>, %arg2: memref<128x128xf32, #tpu.memory_space<vmem>>, %arg3: memref<128x128xf32, #tpu.memory_space<vmem>>, %arg4: memref<128x128xf32, #tpu.memory_space<vmem>>, %arg5: memref<1x128xf32, #tpu.memory_space<vmem>>, %arg6: memref<512x128xf32, #tpu.memory_space<vmem>>, %arg7: memref<128x128xf32, #tpu.memory_space<vmem>>, %arg8: memref<128x128xf32, #tpu.memory_space<vmem>>, %arg9: memref<64x128xf32, #tpu.memory_space<vmem>>, %arg10: memref<64x128xf32, #tpu.memory_space<vmem>>, %arg11: memref<1x128xf32, #tpu.memory_space<vmem>>, %arg12: memref<128x128xf32, #tpu.memory_space<vmem>>, %arg13: memref<1x128xf32, #tpu.memory_space<vmem>>, %arg14: memref<64x128xf32, #tpu.memory_space<vmem>>, %arg15: memref<2x128xf32, #tpu.memory_space<vmem>>) attributes {dimension_semantics = [#tpu.dimension_semantics<arbitrary>], iteration_bounds = array<i64: 1>, scalar_prefetch = 0 : i64, scratch_operands = 0 : i64, tpu.core_type = #tpu.core_type<tc>, window_params = [{pipeline_mode = #tpu.pipeline_mode<synchronous>, transform_indices = @transform_0, window_bounds = array<i64: 1024, 128>}, {pipeline_mode = #tpu.pipeline_mode<synchronous>, transform_indices = @transform_1, window_bounds = array<i64: 128, 128>}, {pipeline_mode = #tpu.pipeline_mode<synchronous>, transform_indices = @transform_2, window_bounds = array<i64: 128, 128>}, {pipeline_mode = #tpu.pipeline_mode<synchronous>, transform_indices = @transform_3, window_bounds = array<i64: 128, 128>}, {pipeline_mode = #tpu.pipeline_mode<synchronous>, transform_indices = @transform_4, window_bounds = array<i64: 1, 128>}, {pipeline_mode = #tpu.pipeline_mode<synchronous>, transform_indices = @transform_5, window_bounds = array<i64: 512, 128>}, {pipeline_mode = #tpu.pipeline_mode<synchronous>, transform_indices = @transform_6, window_bounds = array<i64: 128, 128>}, {pipeline_mode = #tpu.pipeline_mode<synchronous>, transform_indices = @transform_7, window_bounds = array<i64: 128, 128>}, {pipeline_mode = #tpu.pipeline_mode<synchronous>, transform_indices = @transform_8, window_bounds = array<i64: 64, 128>}, {pipeline_mode = #tpu.pipeline_mode<synchronous>, transform_indices = @transform_9, window_bounds = array<i64: 64, 128>}, {pipeline_mode = #tpu.pipeline_mode<synchronous>, transform_indices = @transform_10, window_bounds = array<i64: 1, 128>}, {pipeline_mode = #tpu.pipeline_mode<synchronous>, transform_indices = @transform_11, window_bounds = array<i64: 128, 128>}, {pipeline_mode = #tpu.pipeline_mode<synchronous>, transform_indices = @transform_12, window_bounds = array<i64: 1, 128>}, {pipeline_mode = #tpu.pipeline_mode<synchronous>, transform_indices = @transform_13, window_bounds = array<i64: 64, 128>}, {pipeline_mode = #tpu.pipeline_mode<synchronous>, transform_indices = @transform_14, window_bounds = array<i64: 2, 128>}]} {
    %c0 = arith.constant 0 : index
    %c0_0 = arith.constant 0 : index
    %0 = vector.load %arg2[%c0, %c0_0] : memref<128x128xf32, #tpu.memory_space<vmem>>, vector<128x128xf32>
    %c0_1 = arith.constant 0 : index
    %c0_2 = arith.constant 0 : index
    %1 = vector.load %arg3[%c0_1, %c0_2] : memref<128x128xf32, #tpu.memory_space<vmem>>, vector<128x128xf32>
    %c0_3 = arith.constant 0 : index
    %c0_4 = arith.constant 0 : index
    %2 = vector.load %arg4[%c0_3, %c0_4] : memref<128x128xf32, #tpu.memory_space<vmem>>, vector<128x128xf32>
    %c0_5 = arith.constant 0 : index
    %c0_6 = arith.constant 0 : index
    %3 = vector.load %arg5[%c0_5, %c0_6] : memref<1x128xf32, #tpu.memory_space<vmem>>, vector<1x128xf32>
    %4 = vector.shape_cast %3 : vector<1x128xf32> to vector<1x128xf32>
    %5 = vector.broadcast %4 : vector<1x128xf32> to vector<128x128xf32>
    %c0_7 = arith.constant 0 : index
    %c0_8 = arith.constant 0 : index
    %6 = vector.load %arg1[%c0_7, %c0_8] : memref<1024x128xf32, #tpu.memory_space<vmem>>, vector<128x128xf32>
    %cst = arith.constant dense<0.000000e+00> : vector<128x128xf32>
    %7 = tpu.matmul %6, %0, %cst {dimension_numbers = #tpu.dot_dimension_numbers<[1], [0], [0], [1], [0, 0, 1, 1], [], []>} : vector<128x128xf32>, vector<128x128xf32>, vector<128x128xf32> -> vector<128x128xf32>
    %8 = arith.mulf %7, %1 : vector<128x128xf32>
    %cst_9 = arith.constant dense<0.000000e+00> : vector<128xf32>
    %9 = vector.multi_reduction <add>, %8, %cst_9 [1] : vector<128x128xf32> to vector<128xf32>
    %10 = vector.shape_cast %9 : vector<128xf32> to vector<128x1xf32>
    %cst_10 = arith.constant 0.000000e+00 : f32
    %11 = vector.broadcast %cst_10 : f32 to vector<128x1xf32>
    %12 = arith.maximumf %10, %11 : vector<128x1xf32>
    %13 = math.sqrt %12 : vector<128x1xf32>
    %14 = arith.negf %13 : vector<128x1xf32>
    %15 = math.exp %14 : vector<128x1xf32>
    %cst_11 = arith.constant 1.000000e+00 : f32
    %16 = vector.broadcast %cst_11 : f32 to vector<128x1xf32>
    %17 = arith.addf %16, %15 : vector<128x1xf32>
    %18 = arith.divf %16, %17 : vector<128x1xf32>
    %19 = arith.mulf %7, %5 : vector<128x128xf32>
    %20 = arith.addf %19, %2 : vector<128x128xf32>
    %cst_12 = arith.constant 0.000000e+00 : f32
    %21 = vector.broadcast %cst_12 : f32 to vector<128x128xf32>
    %22 = arith.cmpf ogt, %20, %21 : vector<128x128xf32>
    %cst_13 = arith.constant 2.000000e-01 : f32
    %23 = vector.broadcast %cst_13 : f32 to vector<128x128xf32>
    %24 = arith.mulf %23, %20 : vector<128x128xf32>
    %25 = arith.select %22, %20, %24 : vector<128x128xi1>, vector<128x128xf32>
    %26 = vector.broadcast %18 : vector<128x1xf32> to vector<128x128xf32>
    %27 = arith.mulf %25, %26 : vector<128x128xf32>
    %c128 = arith.constant 128 : index
    %c0_14 = arith.constant 0 : index
    %28 = vector.load %arg1[%c128, %c0_14] : memref<1024x128xf32, #tpu.memory_space<vmem>>, vector<128x128xf32>
    %cst_15 = arith.constant dense<0.000000e+00> : vector<128x128xf32>
    %29 = tpu.matmul %28, %0, %cst_15 {dimension_numbers = #tpu.dot_dimension_numbers<[1], [0], [0], [1], [0, 0, 1, 1], [], []>} : vector<128x128xf32>, vector<128x128xf32>, vector<128x128xf32> -> vector<128x128xf32>
    %30 = arith.mulf %29, %1 : vector<128x128xf32>
    %cst_16 = arith.constant dense<0.000000e+00> : vector<128xf32>
    %31 = vector.multi_reduction <add>, %30, %cst_16 [1] : vector<128x128xf32> to vector<128xf32>
    %32 = vector.shape_cast %31 : vector<128xf32> to vector<128x1xf32>
    %cst_17 = arith.constant 0.000000e+00 : f32
    %33 = vector.broadcast %cst_17 : f32 to vector<128x1xf32>
    %34 = arith.maximumf %32, %33 : vector<128x1xf32>
    %35 = math.sqrt %34 : vector<128x1xf32>
    %36 = arith.negf %35 : vector<128x1xf32>
    %37 = math.exp %36 : vector<128x1xf32>
    %cst_18 = arith.constant 1.000000e+00 : f32
    %38 = vector.broadcast %cst_18 : f32 to vector<128x1xf32>
    %39 = arith.addf %38, %37 : vector<128x1xf32>
    %40 = arith.divf %38, %39 : vector<128x1xf32>
    %41 = arith.mulf %29, %5 : vector<128x128xf32>
    %42 = arith.addf %41, %2 : vector<128x128xf32>
    %cst_19 = arith.constant 0.000000e+00 : f32
    %43 = vector.broadcast %cst_19 : f32 to vector<128x128xf32>
    %44 = arith.cmpf ogt, %42, %43 : vector<128x128xf32>
    %cst_20 = arith.constant 2.000000e-01 : f32
    %45 = vector.broadcast %cst_20 : f32 to vector<128x128xf32>
    %46 = arith.mulf %45, %42 : vector<128x128xf32>
    %47 = arith.select %44, %42, %46 : vector<128x128xi1>, vector<128x128xf32>
    %48 = vector.broadcast %40 : vector<128x1xf32> to vector<128x128xf32>
    %49 = arith.mulf %47, %48 : vector<128x128xf32>
    %50 = arith.maximumf %27, %49 : vector<128x128xf32>
    %c256 = arith.constant 256 : index
    %c0_21 = arith.constant 0 : index
    %51 = vector.load %arg1[%c256, %c0_21] : memref<1024x128xf32, #tpu.memory_space<vmem>>, vector<128x128xf32>
    %cst_22 = arith.constant dense<0.000000e+00> : vector<128x128xf32>
    %52 = tpu.matmul %51, %0, %cst_22 {dimension_numbers = #tpu.dot_dimension_numbers<[1], [0], [0], [1], [0, 0, 1, 1], [], []>} : vector<128x128xf32>, vector<128x128xf32>, vector<128x128xf32> -> vector<128x128xf32>
    %53 = arith.mulf %52, %1 : vector<128x128xf32>
    %cst_23 = arith.constant dense<0.000000e+00> : vector<128xf32>
    %54 = vector.multi_reduction <add>, %53, %cst_23 [1] : vector<128x128xf32> to vector<128xf32>
    %55 = vector.shape_cast %54 : vector<128xf32> to vector<128x1xf32>
    %cst_24 = arith.constant 0.000000e+00 : f32
    %56 = vector.broadcast %cst_24 : f32 to vector<128x1xf32>
    %57 = arith.maximumf %55, %56 : vector<128x1xf32>
    %58 = math.sqrt %57 : vector<128x1xf32>
    %59 = arith.negf %58 : vector<128x1xf32>
    %60 = math.exp %59 : vector<128x1xf32>
    %cst_25 = arith.constant 1.000000e+00 : f32
    %61 = vector.broadcast %cst_25 : f32 to vector<128x1xf32>
    %62 = arith.addf %61, %60 : vector<128x1xf32>
    %63 = arith.divf %61, %62 : vector<128x1xf32>
    %64 = arith.mulf %52, %5 : vector<128x128xf32>
    %65 = arith.addf %64, %2 : vector<128x128xf32>
    %cst_26 = arith.constant 0.000000e+00 : f32
    %66 = vector.broadcast %cst_26 : f32 to vector<128x128xf32>
    %67 = arith.cmpf ogt, %65, %66 : vector<128x128xf32>
    %cst_27 = arith.constant 2.000000e-01 : f32
    %68 = vector.broadcast %cst_27 : f32 to vector<128x128xf32>
    %69 = arith.mulf %68, %65 : vector<128x128xf32>
    %70 = arith.select %67, %65, %69 : vector<128x128xi1>, vector<128x128xf32>
    %71 = vector.broadcast %63 : vector<128x1xf32> to vector<128x128xf32>
    %72 = arith.mulf %70, %71 : vector<128x128xf32>
    %73 = arith.maximumf %50, %72 : vector<128x128xf32>
    %c384 = arith.constant 384 : index
    %c0_28 = arith.constant 0 : index
    %74 = vector.load %arg1[%c384, %c0_28] : memref<1024x128xf32, #tpu.memory_space<vmem>>, vector<128x128xf32>
    %cst_29 = arith.constant dense<0.000000e+00> : vector<128x128xf32>
    %75 = tpu.matmul %74, %0, %cst_29 {dimension_numbers = #tpu.dot_dimension_numbers<[1], [0], [0], [1], [0, 0, 1, 1], [], []>} : vector<128x128xf32>, vector<128x128xf32>, vector<128x128xf32> -> vector<128x128xf32>
    %76 = arith.mulf %75, %1 : vector<128x128xf32>
    %cst_30 = arith.constant dense<0.000000e+00> : vector<128xf32>
    %77 = vector.multi_reduction <add>, %76, %cst_30 [1] : vector<128x128xf32> to vector<128xf32>
    %78 = vector.shape_cast %77 : vector<128xf32> to vector<128x1xf32>
    %cst_31 = arith.constant 0.000000e+00 : f32
    %79 = vector.broadcast %cst_31 : f32 to vector<128x1xf32>
    %80 = arith.maximumf %78, %79 : vector<128x1xf32>
    %81 = math.sqrt %80 : vector<128x1xf32>
    %82 = arith.negf %81 : vector<128x1xf32>
    %83 = math.exp %82 : vector<128x1xf32>
    %cst_32 = arith.constant 1.000000e+00 : f32
    %84 = vector.broadcast %cst_32 : f32 to vector<128x1xf32>
    %85 = arith.addf %84, %83 : vector<128x1xf32>
    %86 = arith.divf %84, %85 : vector<128x1xf32>
    %87 = arith.mulf %75, %5 : vector<128x128xf32>
    %88 = arith.addf %87, %2 : vector<128x128xf32>
    %cst_33 = arith.constant 0.000000e+00 : f32
    %89 = vector.broadcast %cst_33 : f32 to vector<128x128xf32>
    %90 = arith.cmpf ogt, %88, %89 : vector<128x128xf32>
    %cst_34 = arith.constant 2.000000e-01 : f32
    %91 = vector.broadcast %cst_34 : f32 to vector<128x128xf32>
    %92 = arith.mulf %91, %88 : vector<128x128xf32>
    %93 = arith.select %90, %88, %92 : vector<128x128xi1>, vector<128x128xf32>
    %94 = vector.broadcast %86 : vector<128x1xf32> to vector<128x128xf32>
    %95 = arith.mulf %93, %94 : vector<128x128xf32>
    %96 = arith.maximumf %73, %95 : vector<128x128xf32>
    %c512 = arith.constant 512 : index
    %c0_35 = arith.constant 0 : index
    %97 = vector.load %arg1[%c512, %c0_35] : memref<1024x128xf32, #tpu.memory_space<vmem>>, vector<128x128xf32>
    %cst_36 = arith.constant dense<0.000000e+00> : vector<128x128xf32>
    %98 = tpu.matmul %97, %0, %cst_36 {dimension_numbers = #tpu.dot_dimension_numbers<[1], [0], [0], [1], [0, 0, 1, 1], [], []>} : vector<128x128xf32>, vector<128x128xf32>, vector<128x128xf32> -> vector<128x128xf32>
    %99 = arith.mulf %98, %1 : vector<128x128xf32>
    %cst_37 = arith.constant dense<0.000000e+00> : vector<128xf32>
    %100 = vector.multi_reduction <add>, %99, %cst_37 [1] : vector<128x128xf32> to vector<128xf32>
    %101 = vector.shape_cast %100 : vector<128xf32> to vector<128x1xf32>
    %cst_38 = arith.constant 0.000000e+00 : f32
    %102 = vector.broadcast %cst_38 : f32 to vector<128x1xf32>
    %103 = arith.maximumf %101, %102 : vector<128x1xf32>
    %104 = math.sqrt %103 : vector<128x1xf32>
    %105 = arith.negf %104 : vector<128x1xf32>
    %106 = math.exp %105 : vector<128x1xf32>
    %cst_39 = arith.constant 1.000000e+00 : f32
    %107 = vector.broadcast %cst_39 : f32 to vector<128x1xf32>
    %108 = arith.addf %107, %106 : vector<128x1xf32>
    %109 = arith.divf %107, %108 : vector<128x1xf32>
    %110 = arith.mulf %98, %5 : vector<128x128xf32>
    %111 = arith.addf %110, %2 : vector<128x128xf32>
    %cst_40 = arith.constant 0.000000e+00 : f32
    %112 = vector.broadcast %cst_40 : f32 to vector<128x128xf32>
    %113 = arith.cmpf ogt, %111, %112 : vector<128x128xf32>
    %cst_41 = arith.constant 2.000000e-01 : f32
    %114 = vector.broadcast %cst_41 : f32 to vector<128x128xf32>
    %115 = arith.mulf %114, %111 : vector<128x128xf32>
    %116 = arith.select %113, %111, %115 : vector<128x128xi1>, vector<128x128xf32>
    %117 = vector.broadcast %109 : vector<128x1xf32> to vector<128x128xf32>
    %118 = arith.mulf %116, %117 : vector<128x128xf32>
    %119 = arith.maximumf %96, %118 : vector<128x128xf32>
    %c640 = arith.constant 640 : index
    %c0_42 = arith.constant 0 : index
    %120 = vector.load %arg1[%c640, %c0_42] : memref<1024x128xf32, #tpu.memory_space<vmem>>, vector<128x128xf32>
    %cst_43 = arith.constant dense<0.000000e+00> : vector<128x128xf32>
    %121 = tpu.matmul %120, %0, %cst_43 {dimension_numbers = #tpu.dot_dimension_numbers<[1], [0], [0], [1], [0, 0, 1, 1], [], []>} : vector<128x128xf32>, vector<128x128xf32>, vector<128x128xf32> -> vector<128x128xf32>
    %122 = arith.mulf %121, %1 : vector<128x128xf32>
    %cst_44 = arith.constant dense<0.000000e+00> : vector<128xf32>
    %123 = vector.multi_reduction <add>, %122, %cst_44 [1] : vector<128x128xf32> to vector<128xf32>
    %124 = vector.shape_cast %123 : vector<128xf32> to vector<128x1xf32>
    %cst_45 = arith.constant 0.000000e+00 : f32
    %125 = vector.broadcast %cst_45 : f32 to vector<128x1xf32>
    %126 = arith.maximumf %124, %125 : vector<128x1xf32>
    %127 = math.sqrt %126 : vector<128x1xf32>
    %128 = arith.negf %127 : vector<128x1xf32>
    %129 = math.exp %128 : vector<128x1xf32>
    %cst_46 = arith.constant 1.000000e+00 : f32
    %130 = vector.broadcast %cst_46 : f32 to vector<128x1xf32>
    %131 = arith.addf %130, %129 : vector<128x1xf32>
    %132 = arith.divf %130, %131 : vector<128x1xf32>
    %133 = arith.mulf %121, %5 : vector<128x128xf32>
    %134 = arith.addf %133, %2 : vector<128x128xf32>
    %cst_47 = arith.constant 0.000000e+00 : f32
    %135 = vector.broadcast %cst_47 : f32 to vector<128x128xf32>
    %136 = arith.cmpf ogt, %134, %135 : vector<128x128xf32>
    %cst_48 = arith.constant 2.000000e-01 : f32
    %137 = vector.broadcast %cst_48 : f32 to vector<128x128xf32>
    %138 = arith.mulf %137, %134 : vector<128x128xf32>
    %139 = arith.select %136, %134, %138 : vector<128x128xi1>, vector<128x128xf32>
    %140 = vector.broadcast %132 : vector<128x1xf32> to vector<128x128xf32>
    %141 = arith.mulf %139, %140 : vector<128x128xf32>
    %142 = arith.maximumf %119, %141 : vector<128x128xf32>
    %c768 = arith.constant 768 : index
    %c0_49 = arith.constant 0 : index
    %143 = vector.load %arg1[%c768, %c0_49] : memref<1024x128xf32, #tpu.memory_space<vmem>>, vector<128x128xf32>
    %cst_50 = arith.constant dense<0.000000e+00> : vector<128x128xf32>
    %144 = tpu.matmul %143, %0, %cst_50 {dimension_numbers = #tpu.dot_dimension_numbers<[1], [0], [0], [1], [0, 0, 1, 1], [], []>} : vector<128x128xf32>, vector<128x128xf32>, vector<128x128xf32> -> vector<128x128xf32>
    %145 = arith.mulf %144, %1 : vector<128x128xf32>
    %cst_51 = arith.constant dense<0.000000e+00> : vector<128xf32>
    %146 = vector.multi_reduction <add>, %145, %cst_51 [1] : vector<128x128xf32> to vector<128xf32>
    %147 = vector.shape_cast %146 : vector<128xf32> to vector<128x1xf32>
    %cst_52 = arith.constant 0.000000e+00 : f32
    %148 = vector.broadcast %cst_52 : f32 to vector<128x1xf32>
    %149 = arith.maximumf %147, %148 : vector<128x1xf32>
    %150 = math.sqrt %149 : vector<128x1xf32>
    %151 = arith.negf %150 : vector<128x1xf32>
    %152 = math.exp %151 : vector<128x1xf32>
    %cst_53 = arith.constant 1.000000e+00 : f32
    %153 = vector.broadcast %cst_53 : f32 to vector<128x1xf32>
    %154 = arith.addf %153, %152 : vector<128x1xf32>
    %155 = arith.divf %153, %154 : vector<128x1xf32>
    %156 = arith.mulf %144, %5 : vector<128x128xf32>
    %157 = arith.addf %156, %2 : vector<128x128xf32>
    %cst_54 = arith.constant 0.000000e+00 : f32
    %158 = vector.broadcast %cst_54 : f32 to vector<128x128xf32>
    %159 = arith.cmpf ogt, %157, %158 : vector<128x128xf32>
    %cst_55 = arith.constant 2.000000e-01 : f32
    %160 = vector.broadcast %cst_55 : f32 to vector<128x128xf32>
    %161 = arith.mulf %160, %157 : vector<128x128xf32>
    %162 = arith.select %159, %157, %161 : vector<128x128xi1>, vector<128x128xf32>
    %163 = vector.broadcast %155 : vector<128x1xf32> to vector<128x128xf32>
    %164 = arith.mulf %162, %163 : vector<128x128xf32>
    %165 = arith.maximumf %142, %164 : vector<128x128xf32>
    %c896 = arith.constant 896 : index
    %c0_56 = arith.constant 0 : index
    %166 = vector.load %arg1[%c896, %c0_56] : memref<1024x128xf32, #tpu.memory_space<vmem>>, vector<128x128xf32>
    %cst_57 = arith.constant dense<0.000000e+00> : vector<128x128xf32>
    %167 = tpu.matmul %166, %0, %cst_57 {dimension_numbers = #tpu.dot_dimension_numbers<[1], [0], [0], [1], [0, 0, 1, 1], [], []>} : vector<128x128xf32>, vector<128x128xf32>, vector<128x128xf32> -> vector<128x128xf32>
    %168 = arith.mulf %167, %1 : vector<128x128xf32>
    %cst_58 = arith.constant dense<0.000000e+00> : vector<128xf32>
    %169 = vector.multi_reduction <add>, %168, %cst_58 [1] : vector<128x128xf32> to vector<128xf32>
    %170 = vector.shape_cast %169 : vector<128xf32> to vector<128x1xf32>
    %cst_59 = arith.constant 0.000000e+00 : f32
    %171 = vector.broadcast %cst_59 : f32 to vector<128x1xf32>
    %172 = arith.maximumf %170, %171 : vector<128x1xf32>
    %173 = math.sqrt %172 : vector<128x1xf32>
    %174 = arith.negf %173 : vector<128x1xf32>
    %175 = math.exp %174 : vector<128x1xf32>
    %cst_60 = arith.constant 1.000000e+00 : f32
    %176 = vector.broadcast %cst_60 : f32 to vector<128x1xf32>
    %177 = arith.addf %176, %175 : vector<128x1xf32>
    %178 = arith.divf %176, %177 : vector<128x1xf32>
    %179 = arith.mulf %167, %5 : vector<128x128xf32>
    %180 = arith.addf %179, %2 : vector<128x128xf32>
    %cst_61 = arith.constant 0.000000e+00 : f32
    %181 = vector.broadcast %cst_61 : f32 to vector<128x128xf32>
    %182 = arith.cmpf ogt, %180, %181 : vector<128x128xf32>
    %cst_62 = arith.constant 2.000000e-01 : f32
    %183 = vector.broadcast %cst_62 : f32 to vector<128x128xf32>
    %184 = arith.mulf %183, %180 : vector<128x128xf32>
    %185 = arith.select %182, %180, %184 : vector<128x128xi1>, vector<128x128xf32>
    %186 = vector.broadcast %178 : vector<128x1xf32> to vector<128x128xf32>
    %187 = arith.mulf %185, %186 : vector<128x128xf32>
    %188 = arith.maximumf %165, %187 : vector<128x128xf32>
    %c0_63 = arith.constant 0 : index
    %c0_64 = arith.constant 0 : index
    %189 = vector.load %arg7[%c0_63, %c0_64] : memref<128x128xf32, #tpu.memory_space<vmem>>, vector<128x128xf32>
    %c0_65 = arith.constant 0 : index
    %c0_66 = arith.constant 0 : index
    %190 = vector.load %arg8[%c0_65, %c0_66] : memref<128x128xf32, #tpu.memory_space<vmem>>, vector<128x128xf32>
    %cst_67 = arith.constant dense<0.000000e+00> : vector<128x128xf32>
    %191 = tpu.matmul %188, %190, %cst_67 {dimension_numbers = #tpu.dot_dimension_numbers<[1], [0], [0], [1], [0, 0, 1, 1], [], []>} : vector<128x128xf32>, vector<128x128xf32>, vector<128x128xf32> -> vector<128x128xf32>
    %192 = arith.addf %189, %191 : vector<128x128xf32>
    %c0_68 = arith.constant 0 : index
    %c0_69 = arith.constant 0 : index
    %193 = vector.load %arg9[%c0_68, %c0_69] : memref<64x128xf32, #tpu.memory_space<vmem>>, vector<64x128xf32>
    %c0_70 = arith.constant 0 : index
    %c0_71 = arith.constant 0 : index
    %194 = vector.load %arg10[%c0_70, %c0_71] : memref<64x128xf32, #tpu.memory_space<vmem>>, vector<64x128xf32>
    %c0_72 = arith.constant 0 : index
    %c0_73 = arith.constant 0 : index
    %195 = vector.load %arg11[%c0_72, %c0_73] : memref<1x128xf32, #tpu.memory_space<vmem>>, vector<1x128xf32>
    %196 = vector.shape_cast %195 : vector<1x128xf32> to vector<1x128xf32>
    %197 = vector.broadcast %196 : vector<1x128xf32> to vector<64x128xf32>
    %c0_74 = arith.constant 0 : index
    %c0_75 = arith.constant 0 : index
    %198 = vector.load %arg6[%c0_74, %c0_75] : memref<512x128xf32, #tpu.memory_space<vmem>>, vector<64x128xf32>
    %cst_76 = arith.constant dense<0.000000e+00> : vector<64x128xf32>
    %199 = tpu.matmul %198, %192, %cst_76 {dimension_numbers = #tpu.dot_dimension_numbers<[1], [0], [0], [1], [0, 0, 1, 1], [], []>} : vector<64x128xf32>, vector<128x128xf32>, vector<64x128xf32> -> vector<64x128xf32>
    %200 = arith.mulf %199, %193 : vector<64x128xf32>
    %cst_77 = arith.constant dense<0.000000e+00> : vector<64xf32>
    %201 = vector.multi_reduction <add>, %200, %cst_77 [1] : vector<64x128xf32> to vector<64xf32>
    %202 = vector.shape_cast %201 : vector<64xf32> to vector<64x1xf32>
    %cst_78 = arith.constant 0.000000e+00 : f32
    %203 = vector.broadcast %cst_78 : f32 to vector<64x1xf32>
    %204 = arith.maximumf %202, %203 : vector<64x1xf32>
    %205 = math.sqrt %204 : vector<64x1xf32>
    %206 = arith.negf %205 : vector<64x1xf32>
    %207 = math.exp %206 : vector<64x1xf32>
    %cst_79 = arith.constant 1.000000e+00 : f32
    %208 = vector.broadcast %cst_79 : f32 to vector<64x1xf32>
    %209 = arith.addf %208, %207 : vector<64x1xf32>
    %210 = arith.divf %208, %209 : vector<64x1xf32>
    %211 = arith.mulf %199, %197 : vector<64x128xf32>
    %212 = arith.addf %211, %194 : vector<64x128xf32>
    %cst_80 = arith.constant 0.000000e+00 : f32
    %213 = vector.broadcast %cst_80 : f32 to vector<64x128xf32>
    %214 = arith.cmpf ogt, %212, %213 : vector<64x128xf32>
    %cst_81 = arith.constant 2.000000e-01 : f32
    %215 = vector.broadcast %cst_81 : f32 to vector<64x128xf32>
    %216 = arith.mulf %215, %212 : vector<64x128xf32>
    %217 = arith.select %214, %212, %216 : vector<64x128xi1>, vector<64x128xf32>
    %218 = vector.broadcast %210 : vector<64x1xf32> to vector<64x128xf32>
    %219 = arith.mulf %217, %218 : vector<64x128xf32>
    %c64 = arith.constant 64 : index
    %c0_82 = arith.constant 0 : index
    %220 = vector.load %arg6[%c64, %c0_82] : memref<512x128xf32, #tpu.memory_space<vmem>>, vector<64x128xf32>
    %cst_83 = arith.constant dense<0.000000e+00> : vector<64x128xf32>
    %221 = tpu.matmul %220, %192, %cst_83 {dimension_numbers = #tpu.dot_dimension_numbers<[1], [0], [0], [1], [0, 0, 1, 1], [], []>} : vector<64x128xf32>, vector<128x128xf32>, vector<64x128xf32> -> vector<64x128xf32>
    %222 = arith.mulf %221, %193 : vector<64x128xf32>
    %cst_84 = arith.constant dense<0.000000e+00> : vector<64xf32>
    %223 = vector.multi_reduction <add>, %222, %cst_84 [1] : vector<64x128xf32> to vector<64xf32>
    %224 = vector.shape_cast %223 : vector<64xf32> to vector<64x1xf32>
    %cst_85 = arith.constant 0.000000e+00 : f32
    %225 = vector.broadcast %cst_85 : f32 to vector<64x1xf32>
    %226 = arith.maximumf %224, %225 : vector<64x1xf32>
    %227 = math.sqrt %226 : vector<64x1xf32>
    %228 = arith.negf %227 : vector<64x1xf32>
    %229 = math.exp %228 : vector<64x1xf32>
    %cst_86 = arith.constant 1.000000e+00 : f32
    %230 = vector.broadcast %cst_86 : f32 to vector<64x1xf32>
    %231 = arith.addf %230, %229 : vector<64x1xf32>
    %232 = arith.divf %230, %231 : vector<64x1xf32>
    %233 = arith.mulf %221, %197 : vector<64x128xf32>
    %234 = arith.addf %233, %194 : vector<64x128xf32>
    %cst_87 = arith.constant 0.000000e+00 : f32
    %235 = vector.broadcast %cst_87 : f32 to vector<64x128xf32>
    %236 = arith.cmpf ogt, %234, %235 : vector<64x128xf32>
    %cst_88 = arith.constant 2.000000e-01 : f32
    %237 = vector.broadcast %cst_88 : f32 to vector<64x128xf32>
    %238 = arith.mulf %237, %234 : vector<64x128xf32>
    %239 = arith.select %236, %234, %238 : vector<64x128xi1>, vector<64x128xf32>
    %240 = vector.broadcast %232 : vector<64x1xf32> to vector<64x128xf32>
    %241 = arith.mulf %239, %240 : vector<64x128xf32>
    %242 = arith.maximumf %219, %241 : vector<64x128xf32>
    %c128_89 = arith.constant 128 : index
    %c0_90 = arith.constant 0 : index
    %243 = vector.load %arg6[%c128_89, %c0_90] : memref<512x128xf32, #tpu.memory_space<vmem>>, vector<64x128xf32>
    %cst_91 = arith.constant dense<0.000000e+00> : vector<64x128xf32>
    %244 = tpu.matmul %243, %192, %cst_91 {dimension_numbers = #tpu.dot_dimension_numbers<[1], [0], [0], [1], [0, 0, 1, 1], [], []>} : vector<64x128xf32>, vector<128x128xf32>, vector<64x128xf32> -> vector<64x128xf32>
    %245 = arith.mulf %244, %193 : vector<64x128xf32>
    %cst_92 = arith.constant dense<0.000000e+00> : vector<64xf32>
    %246 = vector.multi_reduction <add>, %245, %cst_92 [1] : vector<64x128xf32> to vector<64xf32>
    %247 = vector.shape_cast %246 : vector<64xf32> to vector<64x1xf32>
    %cst_93 = arith.constant 0.000000e+00 : f32
    %248 = vector.broadcast %cst_93 : f32 to vector<64x1xf32>
    %249 = arith.maximumf %247, %248 : vector<64x1xf32>
    %250 = math.sqrt %249 : vector<64x1xf32>
    %251 = arith.negf %250 : vector<64x1xf32>
    %252 = math.exp %251 : vector<64x1xf32>
    %cst_94 = arith.constant 1.000000e+00 : f32
    %253 = vector.broadcast %cst_94 : f32 to vector<64x1xf32>
    %254 = arith.addf %253, %252 : vector<64x1xf32>
    %255 = arith.divf %253, %254 : vector<64x1xf32>
    %256 = arith.mulf %244, %197 : vector<64x128xf32>
    %257 = arith.addf %256, %194 : vector<64x128xf32>
    %cst_95 = arith.constant 0.000000e+00 : f32
    %258 = vector.broadcast %cst_95 : f32 to vector<64x128xf32>
    %259 = arith.cmpf ogt, %257, %258 : vector<64x128xf32>
    %cst_96 = arith.constant 2.000000e-01 : f32
    %260 = vector.broadcast %cst_96 : f32 to vector<64x128xf32>
    %261 = arith.mulf %260, %257 : vector<64x128xf32>
    %262 = arith.select %259, %257, %261 : vector<64x128xi1>, vector<64x128xf32>
    %263 = vector.broadcast %255 : vector<64x1xf32> to vector<64x128xf32>
    %264 = arith.mulf %262, %263 : vector<64x128xf32>
    %265 = arith.maximumf %242, %264 : vector<64x128xf32>
    %c192 = arith.constant 192 : index
    %c0_97 = arith.constant 0 : index
    %266 = vector.load %arg6[%c192, %c0_97] : memref<512x128xf32, #tpu.memory_space<vmem>>, vector<64x128xf32>
    %cst_98 = arith.constant dense<0.000000e+00> : vector<64x128xf32>
    %267 = tpu.matmul %266, %192, %cst_98 {dimension_numbers = #tpu.dot_dimension_numbers<[1], [0], [0], [1], [0, 0, 1, 1], [], []>} : vector<64x128xf32>, vector<128x128xf32>, vector<64x128xf32> -> vector<64x128xf32>
    %268 = arith.mulf %267, %193 : vector<64x128xf32>
    %cst_99 = arith.constant dense<0.000000e+00> : vector<64xf32>
    %269 = vector.multi_reduction <add>, %268, %cst_99 [1] : vector<64x128xf32> to vector<64xf32>
    %270 = vector.shape_cast %269 : vector<64xf32> to vector<64x1xf32>
    %cst_100 = arith.constant 0.000000e+00 : f32
    %271 = vector.broadcast %cst_100 : f32 to vector<64x1xf32>
    %272 = arith.maximumf %270, %271 : vector<64x1xf32>
    %273 = math.sqrt %272 : vector<64x1xf32>
    %274 = arith.negf %273 : vector<64x1xf32>
    %275 = math.exp %274 : vector<64x1xf32>
    %cst_101 = arith.constant 1.000000e+00 : f32
    %276 = vector.broadcast %cst_101 : f32 to vector<64x1xf32>
    %277 = arith.addf %276, %275 : vector<64x1xf32>
    %278 = arith.divf %276, %277 : vector<64x1xf32>
    %279 = arith.mulf %267, %197 : vector<64x128xf32>
    %280 = arith.addf %279, %194 : vector<64x128xf32>
    %cst_102 = arith.constant 0.000000e+00 : f32
    %281 = vector.broadcast %cst_102 : f32 to vector<64x128xf32>
    %282 = arith.cmpf ogt, %280, %281 : vector<64x128xf32>
    %cst_103 = arith.constant 2.000000e-01 : f32
    %283 = vector.broadcast %cst_103 : f32 to vector<64x128xf32>
    %284 = arith.mulf %283, %280 : vector<64x128xf32>
    %285 = arith.select %282, %280, %284 : vector<64x128xi1>, vector<64x128xf32>
    %286 = vector.broadcast %278 : vector<64x1xf32> to vector<64x128xf32>
    %287 = arith.mulf %285, %286 : vector<64x128xf32>
    %288 = arith.maximumf %265, %287 : vector<64x128xf32>
    %c256_104 = arith.constant 256 : index
    %c0_105 = arith.constant 0 : index
    %289 = vector.load %arg6[%c256_104, %c0_105] : memref<512x128xf32, #tpu.memory_space<vmem>>, vector<64x128xf32>
    %cst_106 = arith.constant dense<0.000000e+00> : vector<64x128xf32>
    %290 = tpu.matmul %289, %192, %cst_106 {dimension_numbers = #tpu.dot_dimension_numbers<[1], [0], [0], [1], [0, 0, 1, 1], [], []>} : vector<64x128xf32>, vector<128x128xf32>, vector<64x128xf32> -> vector<64x128xf32>
    %291 = arith.mulf %290, %193 : vector<64x128xf32>
    %cst_107 = arith.constant dense<0.000000e+00> : vector<64xf32>
    %292 = vector.multi_reduction <add>, %291, %cst_107 [1] : vector<64x128xf32> to vector<64xf32>
    %293 = vector.shape_cast %292 : vector<64xf32> to vector<64x1xf32>
    %cst_108 = arith.constant 0.000000e+00 : f32
    %294 = vector.broadcast %cst_108 : f32 to vector<64x1xf32>
    %295 = arith.maximumf %293, %294 : vector<64x1xf32>
    %296 = math.sqrt %295 : vector<64x1xf32>
    %297 = arith.negf %296 : vector<64x1xf32>
    %298 = math.exp %297 : vector<64x1xf32>
    %cst_109 = arith.constant 1.000000e+00 : f32
    %299 = vector.broadcast %cst_109 : f32 to vector<64x1xf32>
    %300 = arith.addf %299, %298 : vector<64x1xf32>
    %301 = arith.divf %299, %300 : vector<64x1xf32>
    %302 = arith.mulf %290, %197 : vector<64x128xf32>
    %303 = arith.addf %302, %194 : vector<64x128xf32>
    %cst_110 = arith.constant 0.000000e+00 : f32
    %304 = vector.broadcast %cst_110 : f32 to vector<64x128xf32>
    %305 = arith.cmpf ogt, %303, %304 : vector<64x128xf32>
    %cst_111 = arith.constant 2.000000e-01 : f32
    %306 = vector.broadcast %cst_111 : f32 to vector<64x128xf32>
    %307 = arith.mulf %306, %303 : vector<64x128xf32>
    %308 = arith.select %305, %303, %307 : vector<64x128xi1>, vector<64x128xf32>
    %309 = vector.broadcast %301 : vector<64x1xf32> to vector<64x128xf32>
    %310 = arith.mulf %308, %309 : vector<64x128xf32>
    %311 = arith.maximumf %288, %310 : vector<64x128xf32>
    %c320 = arith.constant 320 : index
    %c0_112 = arith.constant 0 : index
    %312 = vector.load %arg6[%c320, %c0_112] : memref<512x128xf32, #tpu.memory_space<vmem>>, vector<64x128xf32>
    %cst_113 = arith.constant dense<0.000000e+00> : vector<64x128xf32>
    %313 = tpu.matmul %312, %192, %cst_113 {dimension_numbers = #tpu.dot_dimension_numbers<[1], [0], [0], [1], [0, 0, 1, 1], [], []>} : vector<64x128xf32>, vector<128x128xf32>, vector<64x128xf32> -> vector<64x128xf32>
    %314 = arith.mulf %313, %193 : vector<64x128xf32>
    %cst_114 = arith.constant dense<0.000000e+00> : vector<64xf32>
    %315 = vector.multi_reduction <add>, %314, %cst_114 [1] : vector<64x128xf32> to vector<64xf32>
    %316 = vector.shape_cast %315 : vector<64xf32> to vector<64x1xf32>
    %cst_115 = arith.constant 0.000000e+00 : f32
    %317 = vector.broadcast %cst_115 : f32 to vector<64x1xf32>
    %318 = arith.maximumf %316, %317 : vector<64x1xf32>
    %319 = math.sqrt %318 : vector<64x1xf32>
    %320 = arith.negf %319 : vector<64x1xf32>
    %321 = math.exp %320 : vector<64x1xf32>
    %cst_116 = arith.constant 1.000000e+00 : f32
    %322 = vector.broadcast %cst_116 : f32 to vector<64x1xf32>
    %323 = arith.addf %322, %321 : vector<64x1xf32>
    %324 = arith.divf %322, %323 : vector<64x1xf32>
    %325 = arith.mulf %313, %197 : vector<64x128xf32>
    %326 = arith.addf %325, %194 : vector<64x128xf32>
    %cst_117 = arith.constant 0.000000e+00 : f32
    %327 = vector.broadcast %cst_117 : f32 to vector<64x128xf32>
    %328 = arith.cmpf ogt, %326, %327 : vector<64x128xf32>
    %cst_118 = arith.constant 2.000000e-01 : f32
    %329 = vector.broadcast %cst_118 : f32 to vector<64x128xf32>
    %330 = arith.mulf %329, %326 : vector<64x128xf32>
    %331 = arith.select %328, %326, %330 : vector<64x128xi1>, vector<64x128xf32>
    %332 = vector.broadcast %324 : vector<64x1xf32> to vector<64x128xf32>
    %333 = arith.mulf %331, %332 : vector<64x128xf32>
    %334 = arith.maximumf %311, %333 : vector<64x128xf32>
    %c384_119 = arith.constant 384 : index
    %c0_120 = arith.constant 0 : index
    %335 = vector.load %arg6[%c384_119, %c0_120] : memref<512x128xf32, #tpu.memory_space<vmem>>, vector<64x128xf32>
    %cst_121 = arith.constant dense<0.000000e+00> : vector<64x128xf32>
    %336 = tpu.matmul %335, %192, %cst_121 {dimension_numbers = #tpu.dot_dimension_numbers<[1], [0], [0], [1], [0, 0, 1, 1], [], []>} : vector<64x128xf32>, vector<128x128xf32>, vector<64x128xf32> -> vector<64x128xf32>
    %337 = arith.mulf %336, %193 : vector<64x128xf32>
    %cst_122 = arith.constant dense<0.000000e+00> : vector<64xf32>
    %338 = vector.multi_reduction <add>, %337, %cst_122 [1] : vector<64x128xf32> to vector<64xf32>
    %339 = vector.shape_cast %338 : vector<64xf32> to vector<64x1xf32>
    %cst_123 = arith.constant 0.000000e+00 : f32
    %340 = vector.broadcast %cst_123 : f32 to vector<64x1xf32>
    %341 = arith.maximumf %339, %340 : vector<64x1xf32>
    %342 = math.sqrt %341 : vector<64x1xf32>
    %343 = arith.negf %342 : vector<64x1xf32>
    %344 = math.exp %343 : vector<64x1xf32>
    %cst_124 = arith.constant 1.000000e+00 : f32
    %345 = vector.broadcast %cst_124 : f32 to vector<64x1xf32>
    %346 = arith.addf %345, %344 : vector<64x1xf32>
    %347 = arith.divf %345, %346 : vector<64x1xf32>
    %348 = arith.mulf %336, %197 : vector<64x128xf32>
    %349 = arith.addf %348, %194 : vector<64x128xf32>
    %cst_125 = arith.constant 0.000000e+00 : f32
    %350 = vector.broadcast %cst_125 : f32 to vector<64x128xf32>
    %351 = arith.cmpf ogt, %349, %350 : vector<64x128xf32>
    %cst_126 = arith.constant 2.000000e-01 : f32
    %352 = vector.broadcast %cst_126 : f32 to vector<64x128xf32>
    %353 = arith.mulf %352, %349 : vector<64x128xf32>
    %354 = arith.select %351, %349, %353 : vector<64x128xi1>, vector<64x128xf32>
    %355 = vector.broadcast %347 : vector<64x1xf32> to vector<64x128xf32>
    %356 = arith.mulf %354, %355 : vector<64x128xf32>
    %357 = arith.maximumf %334, %356 : vector<64x128xf32>
    %c448 = arith.constant 448 : index
    %c0_127 = arith.constant 0 : index
    %358 = vector.load %arg6[%c448, %c0_127] : memref<512x128xf32, #tpu.memory_space<vmem>>, vector<64x128xf32>
    %cst_128 = arith.constant dense<0.000000e+00> : vector<64x128xf32>
    %359 = tpu.matmul %358, %192, %cst_128 {dimension_numbers = #tpu.dot_dimension_numbers<[1], [0], [0], [1], [0, 0, 1, 1], [], []>} : vector<64x128xf32>, vector<128x128xf32>, vector<64x128xf32> -> vector<64x128xf32>
    %360 = arith.mulf %359, %193 : vector<64x128xf32>
    %cst_129 = arith.constant dense<0.000000e+00> : vector<64xf32>
    %361 = vector.multi_reduction <add>, %360, %cst_129 [1] : vector<64x128xf32> to vector<64xf32>
    %362 = vector.shape_cast %361 : vector<64xf32> to vector<64x1xf32>
    %cst_130 = arith.constant 0.000000e+00 : f32
    %363 = vector.broadcast %cst_130 : f32 to vector<64x1xf32>
    %364 = arith.maximumf %362, %363 : vector<64x1xf32>
    %365 = math.sqrt %364 : vector<64x1xf32>
    %366 = arith.negf %365 : vector<64x1xf32>
    %367 = math.exp %366 : vector<64x1xf32>
    %cst_131 = arith.constant 1.000000e+00 : f32
    %368 = vector.broadcast %cst_131 : f32 to vector<64x1xf32>
    %369 = arith.addf %368, %367 : vector<64x1xf32>
    %370 = arith.divf %368, %369 : vector<64x1xf32>
    %371 = arith.mulf %359, %197 : vector<64x128xf32>
    %372 = arith.addf %371, %194 : vector<64x128xf32>
    %cst_132 = arith.constant 0.000000e+00 : f32
    %373 = vector.broadcast %cst_132 : f32 to vector<64x128xf32>
    %374 = arith.cmpf ogt, %372, %373 : vector<64x128xf32>
    %cst_133 = arith.constant 2.000000e-01 : f32
    %375 = vector.broadcast %cst_133 : f32 to vector<64x128xf32>
    %376 = arith.mulf %375, %372 : vector<64x128xf32>
    %377 = arith.select %374, %372, %376 : vector<64x128xi1>, vector<64x128xf32>
    %378 = vector.broadcast %370 : vector<64x1xf32> to vector<64x128xf32>
    %379 = arith.mulf %377, %378 : vector<64x128xf32>
    %380 = arith.maximumf %357, %379 : vector<64x128xf32>
    %c0_134 = arith.constant 0 : index
    %c0_135 = arith.constant 0 : index
    %381 = vector.load %arg14[%c0_134, %c0_135] : memref<64x128xf32, #tpu.memory_space<vmem>>, vector<64x128xf32>
    tpu.vector_store %arg14[%c0_134, %c0_135], %380 {strides = array<i32>} : memref<64x128xf32, #tpu.memory_space<vmem>>, vector<64x128xf32>,
    %382 = vector.extract_strided_slice %380 {offsets = [0, 0], sizes = [32, 128], strides = [1, 1]} : vector<64x128xf32> to vector<32x128xf32>
    %cst_136 = arith.constant dense<0xFF800000> : vector<128xf32>
    %383 = vector.multi_reduction <maximumf>, %382, %cst_136 [0] : vector<32x128xf32> to vector<128xf32>
    %384 = vector.shape_cast %383 : vector<128xf32> to vector<1x128xf32>
    %385 = vector.extract_strided_slice %380 {offsets = [32, 0], sizes = [32, 128], strides = [1, 1]} : vector<64x128xf32> to vector<32x128xf32>
    %cst_137 = arith.constant dense<0xFF800000> : vector<128xf32>
    %386 = vector.multi_reduction <maximumf>, %385, %cst_137 [0] : vector<32x128xf32> to vector<128xf32>
    %387 = vector.shape_cast %386 : vector<128xf32> to vector<1x128xf32>
    %388 = tpu.concatenate %384, %387 in 0 : vector<1x128xf32>, vector<1x128xf32> -> vector<2x128xf32>
    %c0_138 = arith.constant 0 : index
    %c0_139 = arith.constant 0 : index
    %389 = vector.load %arg12[%c0_138, %c0_139] : memref<128x128xf32, #tpu.memory_space<vmem>>, vector<128x128xf32>
    %cst_140 = arith.constant dense<0.000000e+00> : vector<2x128xf32>
    %390 = tpu.matmul %388, %389, %cst_140 {dimension_numbers = #tpu.dot_dimension_numbers<[1], [0], [0], [1], [0, 0, 1, 1], [], []>} : vector<2x128xf32>, vector<128x128xf32>, vector<2x128xf32> -> vector<2x128xf32>
    %c0_141 = arith.constant 0 : index
    %c0_142 = arith.constant 0 : index
    %391 = vector.load %arg13[%c0_141, %c0_142] : memref<1x128xf32, #tpu.memory_space<vmem>>, vector<1x128xf32>
    %392 = vector.broadcast %391 : vector<1x128xf32> to vector<2x128xf32>
    %393 = arith.addf %390, %392 : vector<2x128xf32>
    %c0_143 = arith.constant 0 : index
    %c0_144 = arith.constant 0 : index
    %394 = vector.load %arg15[%c0_143, %c0_144] : memref<2x128xf32, #tpu.memory_space<vmem>>, vector<2x128xf32>
    tpu.vector_store %arg15[%c0_143, %c0_144], %393 {strides = array<i32>} : memref<2x128xf32, #tpu.memory_space<vmem>>, vector<2x128xf32>,
    return
  }
  func.func @transform_0(%arg0: i32) -> (i32, i32) {
    %c0_i32 = arith.constant 0 : i32
    %c0_i32_0 = arith.constant 0 : i32
    %c0_i32_1 = arith.constant 0 : i32
    return %c0_i32, %c0_i32_0 : i32, i32
  }
  func.func @transform_1(%arg0: i32) -> (i32, i32) {
    %c0_i32 = arith.constant 0 : i32
    %c0_i32_0 = arith.constant 0 : i32
    %c0_i32_1 = arith.constant 0 : i32
    return %c0_i32, %c0_i32_0 : i32, i32
  }
  func.func @transform_2(%arg0: i32) -> (i32, i32) {
    %c0_i32 = arith.constant 0 : i32
    %c0_i32_0 = arith.constant 0 : i32
    %c0_i32_1 = arith.constant 0 : i32
    return %c0_i32, %c0_i32_0 : i32, i32
  }
  func.func @transform_3(%arg0: i32) -> (i32, i32) {
    %c0_i32 = arith.constant 0 : i32
    %c0_i32_0 = arith.constant 0 : i32
    %c0_i32_1 = arith.constant 0 : i32
    return %c0_i32, %c0_i32_0 : i32, i32
  }
  func.func @transform_4(%arg0: i32) -> (i32, i32) {
    %c0_i32 = arith.constant 0 : i32
    %c0_i32_0 = arith.constant 0 : i32
    %c0_i32_1 = arith.constant 0 : i32
    return %c0_i32, %c0_i32_0 : i32, i32
  }
  func.func @transform_5(%arg0: i32) -> (i32, i32) {
    %c0_i32 = arith.constant 0 : i32
    %c0_i32_0 = arith.constant 0 : i32
    %c0_i32_1 = arith.constant 0 : i32
    return %c0_i32, %c0_i32_0 : i32, i32
  }
  func.func @transform_6(%arg0: i32) -> (i32, i32) {
    %c0_i32 = arith.constant 0 : i32
    %c0_i32_0 = arith.constant 0 : i32
    %c0_i32_1 = arith.constant 0 : i32
    return %c0_i32, %c0_i32_0 : i32, i32
  }
  func.func @transform_7(%arg0: i32) -> (i32, i32) {
    %c0_i32 = arith.constant 0 : i32
    %c0_i32_0 = arith.constant 0 : i32
    %c0_i32_1 = arith.constant 0 : i32
    return %c0_i32, %c0_i32_0 : i32, i32
  }
  func.func @transform_8(%arg0: i32) -> (i32, i32) {
    %c0_i32 = arith.constant 0 : i32
    %c0_i32_0 = arith.constant 0 : i32
    %c0_i32_1 = arith.constant 0 : i32
    return %c0_i32, %c0_i32_0 : i32, i32
  }
  func.func @transform_9(%arg0: i32) -> (i32, i32) {
    %c0_i32 = arith.constant 0 : i32
    %c0_i32_0 = arith.constant 0 : i32
    %c0_i32_1 = arith.constant 0 : i32
    return %c0_i32, %c0_i32_0 : i32, i32
  }
  func.func @transform_10(%arg0: i32) -> (i32, i32) {
    %c0_i32 = arith.constant 0 : i32
    %c0_i32_0 = arith.constant 0 : i32
    %c0_i32_1 = arith.constant 0 : i32
    return %c0_i32, %c0_i32_0 : i32, i32
  }
  func.func @transform_11(%arg0: i32) -> (i32, i32) {
    %c0_i32 = arith.constant 0 : i32
    %c0_i32_0 = arith.constant 0 : i32
    %c0_i32_1 = arith.constant 0 : i32
    return %c0_i32, %c0_i32_0 : i32, i32
  }
  func.func @transform_12(%arg0: i32) -> (i32, i32) {
    %c0_i32 = arith.constant 0 : i32
    %c0_i32_0 = arith.constant 0 : i32
    %c0_i32_1 = arith.constant 0 : i32
    return %c0_i32, %c0_i32_0 : i32, i32
  }
  func.func @transform_13(%arg0: i32) -> (i32, i32) {
    %c0_i32 = arith.constant 0 : i32
    %c0_i32_0 = arith.constant 0 : i32
    %c0_i32_1 = arith.constant 0 : i32
    return %c0_i32, %c0_i32_0 : i32, i32
  }
  func.func @transform_14(%arg0: i32) -> (i32, i32) {
    %c0_i32 = arith.constant 0 : i32
    %c0_i32_0 = arith.constant 0 : i32
    %c0_i32_1 = arith.constant 0 : i32
    return %c0_i32, %c0_i32_0 : i32, i32
  }
}

</mosaic_0001>

<bundles_post_ra>
// kernel: custom-call.4
= control target key start
LH: loop header
LB: loop body
LE: loop exit
PB: predicated region body
PF: predicated region fallthrough
CT: control target
= control target key end

     0   :  { %s6_s0 = inlined_call_operand.vmem [shape: f32[8,16], index: 0, kind: output, shape index: {}]  }

// kernel: eq.1
= control target key start
LH: loop header
LB: loop body
LE: loop exit
PB: predicated region body
PF: predicated region fallthrough
CT: control target
= control target key end

     0   :  { %vm4_vm0 = vcmask 1047556   ;;  %s99_s14 = smov 112   ;;  %s100_s19 = smov 80   ;;  %vm6_vm1 = vcmask 130048   ;;  %vm16_vm2 = vcmask 1048448   ;;  %vm26_vm3 = vcmask 917248   ;;  %s196_s0 = inlined_call_operand.vmem [shape: s32[8,8,16], index: 0, kind: input, shape index: {}]   ;;  %s197_s1 = inlined_call_operand.vmem [shape: s32[1024], index: 1, kind: output, shape index: {}]  }
   0x1   :  { %v78_v0 = vld [vmem:[%s196_s0 + $0x7] ss:$8 sm:$0xf]   ;;  %v82_v3 = vld [vmem:[%s196_s0 + $0x5] ss:$8 sm:$0xf]  }
   0x2   :  { %v79_v1 = vld [vmem:[%s196_s0 + $0x7] ss:$8 sm:$0xf0]   ;;  %v83_v4 = vld [vmem:[%s196_s0 + $0x5] ss:$8 sm:$0xf0]  }
   0x3   :  { %v13_v2 = vsel %vm4_vm0, %v79_v1, %v78_v0  ;;  %v33_v5 = vsel %vm4_vm0, %v83_v4, %v82_v3  ;;  %v80_v6 = vld [vmem:[%s196_s0 + $0x6] ss:$8 sm:$0xf]   ;;  %v84_v9 = vld [vmem:[%s196_s0 + $0x4] ss:$8 sm:$0xf]  }
   0x4   :  { %14 = vrot.lane.b32.xlu0 %v13_v2, %s99_s14  ;;  %v81_v7 = vld [vmem:[%s196_s0 + $0x6] ss:$8 sm:$0xf0]   ;;  %34 = vrot.lane.b32.xlu1 %v33_v5, %s100_s19  ;;  %v85_v10 = vld [vmem:[%s196_s0 + $0x4] ss:$8 sm:$0xf0]  }
   0x5   :  { %v23_v8 = vsel %vm4_vm0, %v81_v7, %v80_v6  ;;  %v86_v11 = vld [vmem:[%s196_s0 + $0x3] ss:$8 sm:$0xf]   ;;  %v43_v12 = vsel %vm4_vm0, %v85_v10, %v84_v9  ;;  %s101_s28 = smov 96   ;;  %s102_s4 = smov 64   ;;  %vm36_vm4 = vcmask 786048  }
   0x6   :  { %v87_v13 = vld [vmem:[%s196_s0 + $0x3] ss:$8 sm:$0xf0]   ;;  %v88_v14 = vld [vmem:[%s196_s0 + $0x2] ss:$8 sm:$0xf]  }
   0x7   :  { %v89_v15 = vld [vmem:[%s196_s0 + $0x2] ss:$8 sm:$0xf0]   ;;  %v53_v16 = vsel %vm4_vm0, %v87_v13, %v86_v11  ;;  %v90_v17 = vld [vmem:[%s196_s0 + $0x1] ss:$8 sm:$0xf]  }
   0x8   :  { %24 = vrot.lane.b32.xlu0 %v23_v8, %s101_s28  ;;  %44 = vrot.lane.b32.xlu1 %v43_v12, %s102_s4  ;;  %v63_v18 = vsel %vm4_vm0, %v89_v15, %v88_v14  ;;  %v91_v19 = vld [vmem:[%s196_s0 + $0x1] ss:$8 sm:$0xf0]   ;;  %v2_v20 = vld [vmem:[%s196_s0] ss:$8 sm:$0xf]  }
   0x9   :  { %v3_v21 = vld [vmem:[%s196_s0] ss:$8 sm:$0xf0]   ;;  %s103_s0 = smov 48   ;;  %s104_s13 = smov 32   ;;  %v73_v23 = vsel %vm4_vm0, %v91_v19, %v90_v17  ;;  %vm46_vm5 = vcmask 654848  }
   0xa   :  { %v5_v22 = vsel %vm4_vm0, %v3_v21, %v2_v20  ;;  %s105_s16 = smov 16   ;;  %vm56_vm6 = vcmask 523648   ;;  %vm66_vm7 = vcmask 392448   ;;  %vm76_vm8 = vcmask 261248  }
   0xb   :  { %7 = vst.msk [vmem:[%s197_s1] sm:$0xff] %vm6_vm1, %v5_v22  }
   0xc   :  { %54 = vrot.lane.b32.xlu0 %v53_v16, %s103_s0  ;;  %64 = vrot.lane.b32.xlu1 %v63_v18, %s104_s13 }
  0x10   :  { %74 = vrot.lane.b32.xlu0 %v73_v23, %s105_s16 }
  0x76   :  { %v15_v24 = vpop.permute.xlu0 %14   ;;  %v35_v25 = vpop.permute.xlu1 %34  }
  0x77   :  { %17 = vst.msk [vmem:[%s197_s1] sm:$0xff] %vm16_vm2, %v15_v24  }
  0x7a   :  { %v25_v26 = vpop.permute.xlu0 %24   ;;  %v45_v27 = vpop.permute.xlu1 %44  }
  0x7b   :  { %27 = vst.msk [vmem:[%s197_s1] sm:$0xff] %vm26_vm3, %v25_v26  }
  0x7c   :  { %37 = vst.msk [vmem:[%s197_s1] sm:$0xff] %vm36_vm4, %v35_v25  }
  0x7d   :  { %47 = vst.msk [vmem:[%s197_s1] sm:$0xff] %vm46_vm5, %v45_v27  }
  0x7e   :  { %v55_v28 = vpop.permute.xlu0 %54   ;;  %v65_v29 = vpop.permute.xlu1 %64  }
  0x7f   :  { %57 = vst.msk [vmem:[%s197_s1] sm:$0xff] %vm56_vm6, %v55_v28  }
  0x80   :  { %67 = vst.msk [vmem:[%s197_s1] sm:$0xff] %vm66_vm7, %v65_v29  }
  0x82   :  { %v75_v30 = vpop.permute.xlu0 %74  }
  0x83   :  { %77 = vst.msk [vmem:[%s197_s1] sm:$0xff] %vm76_vm8, %v75_v30  }

// kernel: eq.9
= control target key start
LH: loop header
LB: loop body
LE: loop exit
PB: predicated region body
PF: predicated region fallthrough
CT: control target
= control target key end

     0   :  { %vm6_vm0 = vcmask 1043458   ;;  %s11_s6 = smov 3  ;;  %s14_s7 = smov 12  ;;  %vm8_vm1 = vcmask 64512   ;;  %vm20_vm2 = vcmask 1048512   ;;  %vm32_vm3 = vcmask 982912   ;;  %s381_s0 = inlined_call_operand.vmem [shape: s32[8,8,8], index: 0, kind: input, shape index: {}]   ;;  %s382_s1 = inlined_call_operand.vmem [shape: s32[512], index: 1, kind: output, shape index: {}]  }
   0x1   :  { %v196_v0 = vld [vmem:[%s381_s0 + $0xf] ss:$16 sm:%s11_s6]   ;;  %s35_s12 = smov 3  ;;  %s38_s15 = smov 12  ;;  %vm44_vm4 = vcmask 917312   ;;  %vm56_vm5 = vcmask 851712  }
   0x2   :  { %v197_v1 = vld [vmem:[%s381_s0 + $0xf] ss:$16 sm:%s14_s7]   ;;  %v200_v3 = vld [vmem:[%s381_s0 + $0xd] ss:$16 sm:%s35_s12]   ;;  %s241_s16 = smov 120   ;;  %s23_s19 = smov 3 }
   0x3   :  { %v17_v2 = vsel %vm6_vm0, %v197_v1, %v196_v0  ;;  %v201_v4 = vld [vmem:[%s381_s0 + $0xd] ss:$16 sm:%s38_s15]   ;;  %s26_s20 = smov 12  ;;  %v198_v6 = vld [vmem:[%s381_s0 + $0xe] ss:$16 sm:%s23_s19]   ;;  %s47_s25 = smov 3 }
   0x4   :  { %18 = vrot.lane.b32.xlu0 %v17_v2, %s241_s16  ;;  %v41_v5 = vsel %vm6_vm0, %v201_v4, %v200_v3  ;;  %v199_v7 = vld [vmem:[%s381_s0 + $0xe] ss:$16 sm:%s26_s20]   ;;  %s242_s26 = smov 104   ;;  %s50_s29 = smov 12  ;;  %vm68_vm6 = vcmask 786112   ;;  %vm80_vm7 = vcmask 720512  }
   0x5   :  { %42 = vrot.lane.b32.xlu1 %v41_v5, %s242_s26  ;;  %v29_v8 = vsel %vm6_vm0, %v199_v7, %v198_v6  ;;  %v202_v9 = vld [vmem:[%s381_s0 + $0xc] ss:$16 sm:%s47_s25]   ;;  %s59_s3 = smov 3  ;;  %s62_s4 = smov 12  ;;  %vm92_vm8 = vcmask 654912   ;;  %vm104_vm9 = vcmask 589312  }
   0x6   :  { %v203_v10 = vld [vmem:[%s381_s0 + $0xc] ss:$16 sm:%s50_s29]   ;;  %s243_s5 = smov 112   ;;  %v204_v12 = vld [vmem:[%s381_s0 + $0xb] ss:$16 sm:%s59_s3]   ;;  %s71_s8 = smov 3 }
   0x7   :  { %v53_v11 = vsel %vm6_vm0, %v203_v10, %v202_v9  ;;  %v205_v13 = vld [vmem:[%s381_s0 + $0xb] ss:$16 sm:%s62_s4]   ;;  %v206_v14 = vld [vmem:[%s381_s0 + $0xa] ss:$16 sm:%s71_s8]   ;;  %s74_s13 = smov 12  ;;  %s244_s14 = smov 96  }
   0x8   :  { %30 = vrot.lane.b32.xlu0 %v29_v8, %s243_s5  ;;  %v65_v15 = vsel %vm6_vm0, %v205_v13, %v204_v12  ;;  %v207_v16 = vld [vmem:[%s381_s0 + $0xa] ss:$16 sm:%s74_s13]   ;;  %s83_s17 = smov 3  ;;  %s86_s18 = smov 12  ;;  %vm116_vm10 = vcmask 523712   ;;  %vm128_vm11 = vcmask 458112  }
   0x9   :  { %54 = vrot.lane.b32.xlu1 %v53_v11, %s244_s14  ;;  %v77_v17 = vsel %vm6_vm0, %v207_v16, %v206_v14  ;;  %v208_v18 = vld [vmem:[%s381_s0 + $0x9] ss:$16 sm:%s83_s17]   ;;  %s95_s23 = smov 3  ;;  %s245_s24 = smov 88   ;;  %vm140_vm12 = vcmask 392512   ;;  %vm152_vm13 = vcmask 326912  }
   0xa   :  { %v209_v19 = vld [vmem:[%s381_s0 + $0x9] ss:$16 sm:%s86_s18]   ;;  %v210_v20 = vld [vmem:[%s381_s0 + $0x8] ss:$16 sm:%s95_s23]   ;;  %s98_s27 = smov 12  ;;  %s107_s30 = smov 3 }
   0xb   :  { %v89_v21 = vsel %vm6_vm0, %v209_v19, %v208_v18  ;;  %v211_v22 = vld [vmem:[%s381_s0 + $0x8] ss:$16 sm:%s98_s27]   ;;  %s110_s2 = smov 12  ;;  %s246_s3 = smov 80   ;;  %v212_v23 = vld [vmem:[%s381_s0 + $0x7] ss:$16 sm:%s107_s30]  }
   0xc   :  { %66 = vrot.lane.b32.xlu0 %v65_v15, %s245_s24  ;;  %s119_s6 = smov 3  ;;  %v101_v24 = vsel %vm6_vm0, %v211_v22, %v210_v20  ;;  %v213_v25 = vld [vmem:[%s381_s0 + $0x7] ss:$16 sm:%s110_s2]   ;;  %s122_s11 = smov 12  ;;  %vm164_vm14 = vcmask 261312   ;;  %vm176_vm15 = vcmask 195712  }
   0xd   :  { %78 = vrot.lane.b32.xlu1 %v77_v17, %s246_s3  ;;  %v214_v26 = vld [vmem:[%s381_s0 + $0x6] ss:$16 sm:%s119_s6]   ;;  %s247_s12 = smov 72   ;;  %s131_s15 = smov 3  ;;  %v113_v28 = vsel %vm6_vm0, %v213_v25, %v212_v23 }
   0xe   :  { %v215_v27 = vld [vmem:[%s381_s0 + $0x6] ss:$16 sm:%s122_s11]   ;;  %s134_s16 = smov 12  ;;  %v216_v29 = vld [vmem:[%s381_s0 + $0x5] ss:$16 sm:%s131_s15]   ;;  %s143_s19 = smov 3 }
   0xf   :  { %s248_s20 = smov 64   ;;  %v217_v30 = vld [vmem:[%s381_s0 + $0x5] ss:$16 sm:%s134_s16]   ;;  %s146_s23 = smov 12  ;;  %v125_v31 = vsel %vm6_vm0, %v215_v27, %v214_v26  ;;  %v218_v32 = vld [vmem:[%s381_s0 + $0x4] ss:$16 sm:%s143_s19]  }
  0x10   :  { %90 = vrot.lane.b32.xlu0 %v89_v21, %s247_s12  ;;  %s155_s26 = smov 3  ;;  %s158_s27 = smov 12  ;;  %v219_v33 = vld [vmem:[%s381_s0 + $0x4] ss:$16 sm:%s146_s23]   ;;  %v137_v34 = vsel %vm6_vm0, %v217_v30, %v216_v29 }
  0x11   :  { %102 = vrot.lane.b32.xlu1 %v101_v24, %s248_s20  ;;  %s249_s28 = smov 56   ;;  %s167_s2 = smov 3  ;;  %v220_v35 = vld [vmem:[%s381_s0 + $0x3] ss:$16 sm:%s155_s26]   ;;  %v149_v37 = vsel %vm6_vm0, %v219_v33, %v218_v32 }
  0x12   :  { %s170_s5 = smov 12  ;;  %s250_s6 = smov 48   ;;  %v221_v36 = vld [vmem:[%s381_s0 + $0x3] ss:$16 sm:%s158_s27]   ;;  %v222_v38 = vld [vmem:[%s381_s0 + $0x2] ss:$16 sm:%s167_s2]  }
  0x13   :  { %s179_s9 = smov 3  ;;  %v223_v39 = vld [vmem:[%s381_s0 + $0x2] ss:$16 sm:%s170_s5]   ;;  %s182_s14 = smov 12  ;;  %v161_v41 = vsel %vm6_vm0, %v221_v36, %v220_v35 }
  0x14   :  { %114 = vrot.lane.b32.xlu0 %v113_v28, %s249_s28  ;;  %s2_s15 = smov 3  ;;  %s251_s16 = smov 40   ;;  %v224_v42 = vld [vmem:[%s381_s0 + $0x1] ss:$16 sm:%s179_s9]   ;;  %v173_v46 = vsel %vm6_vm0, %v223_v39, %v222_v38 }
  0x15   :  { %126 = vrot.lane.b32.xlu1 %v125_v31, %s250_s6  ;;  %v3_v40 = vld [vmem:[%s381_s0] ss:$16 sm:%s2_s15]   ;;  %s4_s19 = smov 12  ;;  %s252_s24 = smov 32  }
  0x16   :  { %v5_v43 = vld [vmem:[%s381_s0] ss:$16 sm:%s4_s19]   ;;  %v225_v44 = vld [vmem:[%s381_s0 + $0x1] ss:$16 sm:%s182_s14]   ;;  %s253_s0 = smov 24   ;;  %s254_s27 = smov 16  }
  0x17   :  { %v7_v45 = vsel %vm6_vm0, %v5_v43, %v3_v40  ;;  %v185_v47 = vsel %vm6_vm0, %v225_v44, %v224_v42  ;;  %s255_s28 = smov 8   ;;  %vm188_vm0 = vcmask 130112  }
  0x18   :  { %138 = vrot.lane.b32.xlu0 %v137_v34, %s251_s16  ;;  %9 = vst.msk [vmem:[#allocation0] sm:$0xf] %vm8_vm1, %v7_v45  }
  0x19   :  { %150 = vrot.lane.b32.xlu1 %v149_v37, %s252_s24 }
  0x1c   :  { %162 = vrot.lane.b32.xlu0 %v161_v41, %s253_s0 }
  0x1d   :  { %174 = vrot.lane.b32.xlu1 %v173_v46, %s254_s27 }
  0x20   :  { %186 = vrot.lane.b32.xlu0 %v185_v47, %s255_s28 }
  0x76   :  { %v19_v48 = vpop.permute.xlu0 %18  }
  0x77   :  { %21 = vst.msk [vmem:[#allocation0] sm:$0xf] %vm20_vm2, %v19_v48   ;;  %v43_v49 = vpop.permute.xlu1 %42  }
  0x7a   :  { %v31_v50 = vpop.permute.xlu0 %30  }
  0x7b   :  { %33 = vst.msk [vmem:[#allocation0] sm:$0xf] %vm32_vm3, %v31_v50   ;;  %v55_v51 = vpop.permute.xlu1 %54  }
  0x7c   :  { %45 = vst.msk [vmem:[#allocation0] sm:$0xf] %vm44_vm4, %v43_v49  }
  0x7d   :  { %57 = vst.msk [vmem:[#allocation0] sm:$0xf] %vm56_vm5, %v55_v51  }
  0x7e   :  { %v67_v52 = vpop.permute.xlu0 %66  }
  0x7f   :  { %69 = vst.msk [vmem:[#allocation0] sm:$0xf] %vm68_vm6, %v67_v52   ;;  %v79_v53 = vpop.permute.xlu1 %78  }
  0x80   :  { %81 = vst.msk [vmem:[#allocation0] sm:$0xf] %vm80_vm7, %v79_v53  }
  0x82   :  { %v91_v54 = vpop.permute.xlu0 %90  }
  0x83   :  { %93 = vst.msk [vmem:[#allocation0] sm:$0xf] %vm92_vm8, %v91_v54   ;;  %v103_v55 = vpop.permute.xlu1 %102  }
  0x84   :  { %105 = vst.msk [vmem:[#allocation0] sm:$0xf] %vm104_vm9, %v103_v55  }
  0x86   :  { %v115_v56 = vpop.permute.xlu0 %114  }
  0x87   :  { %117 = vst.msk [vmem:[#allocation0] sm:$0xf] %vm116_vm10, %v115_v56   ;;  %v127_v57 = vpop.permute.xlu1 %126  }
  0x88   :  { %129 = vst.msk [vmem:[#allocation0] sm:$0xf] %vm128_vm11, %v127_v57  }
  0x8a   :  { %v139_v58 = vpop.permute.xlu0 %138  }
  0x8b   :  { %141 = vst.msk [vmem:[#allocation0] sm:$0xf] %vm140_vm12, %v139_v58   ;;  %v151_v59 = vpop.permute.xlu1 %150  }
  0x8c   :  { %153 = vst.msk [vmem:[#allocation0] sm:$0xf] %vm152_vm13, %v151_v59  }
  0x8e   :  { %v163_v60 = vpop.permute.xlu0 %162  }
  0x8f   :  { %165 = vst.msk [vmem:[#allocation0] sm:$0xf] %vm164_vm14, %v163_v60   ;;  %v175_v61 = vpop.permute.xlu1 %174  }
  0x90   :  { %177 = vst.msk [vmem:[#allocation0] sm:$0xf] %vm176_vm15, %v175_v61  }
  0x92   :  { %v187_v62 = vpop.permute.xlu0 %186  }
  0x93   :  { %189 = vst.msk [vmem:[#allocation0] sm:$0xf] %vm188_vm0, %v187_v62  }
  0x9a   :  { %v193_v63 = vld [vmem:[#allocation0] sm:$0xf] }
  0x9b   :  { %195 = vst [vmem:[%s382_s1] sm:$0xf] %v193_v63 }

// kernel: motionnet_forward.1
= control target key start
LH: loop header
LB: loop body
LE: loop exit
PB: predicated region body
PF: predicated region fallthrough
CT: control target
= control target key end

     0   :  { %20 = vsyncpa [#allocation3], 0  ;;  %s18005_s0 = inlined_call_operand.vmem [shape: f32[1024,128], index: 0, kind: input, shape index: {}]   ;;  %s18006_s1 = inlined_call_operand.vmem [shape: f32[128,128], index: 1, kind: input, shape index: {}]   ;;  %s18007_s2 = inlined_call_operand.vmem [shape: f32[128,128], index: 2, kind: input, shape index: {}]   ;;  %s18008_s3 = inlined_call_operand.vmem [shape: f32[128,128], index: 3, kind: input, shape index: {}]   ;;  %s18009_s4 = inlined_call_operand.vmem [shape: f32[1,128], index: 4, kind: input, shape index: {}]   ;;  %s18010_s5 = inlined_call_operand.vmem [shape: f32[512,128], index: 5, kind: input, shape index: {}]   ;;  %s18011_s6 = inlined_call_operand.vmem [shape: f32[128,128], index: 6, kind: input, shape index: {}]   ;;  %s18012_s7 = inlined_call_operand.vmem [shape: f32[128,128], index: 7, kind: input, shape index: {}]   ;;  %s18013_s8 = inlined_call_operand.vmem [shape: f32[64,128], index: 8, kind: input, shape index: {}]   ;;  %s18014_s9 = inlined_call_operand.vmem [shape: f32[64,128], index: 9, kind: input, shape index: {}]   ;;  %s18015_s10 = inlined_call_operand.vmem [shape: f32[1,128], index: 10, kind: input, shape index: {}]   ;;  %s18016_s11 = inlined_call_operand.vmem [shape: f32[128,128], index: 11, kind: input, shape index: {}]   ;;  %s18017_s12 = inlined_call_operand.vmem [shape: f32[1,128], index: 12, kind: input, shape index: {}]   ;;  %s18018_s13 = inlined_call_operand.hbm [shape: f32[64,128], index: 13, kind: output, shape index: {0}]   ;;  %s18019_s14 = inlined_call_operand.hbm [shape: f32[2,128], index: 14, kind: output, shape index: {1}]  }
   0x1   :  { %v48_v0 = vld [vmem:[%s18006_s1] sm:$0xff]  ;;  %v49_v1 = vld [vmem:[%s18006_s1 + $0x8] sm:$0xff]  ;;  %v50_v2 = vld [vmem:[%s18006_s1 + $0x10] sm:$0xff] }
   0x2   :  { %v10770_v3 = vpack.c.bf16 %v49_v1, %v48_v0  ;;  %v51_v4 = vld [vmem:[%s18006_s1 + $0x18] sm:$0xff]  ;;  %v52_v6 = vld [vmem:[%s18006_s1 + $0x20] sm:$0xff]  ;;  %v53_v7 = vld [vmem:[%s18006_s1 + $0x28] sm:$0xff] }
   0x3   :  { %v10775_v5 = vpack.c.bf16 %v51_v4, %v50_v2  ;;  %v10789_v8 = vpack.c.bf16 %v53_v7, %v52_v6  ;;  %v103_v9 = vld [vmem:[%s18005_s0] sm:$0xff]  ;;  %v54_v10 = vld [vmem:[%s18006_s1 + $0x30] sm:$0xff]  ;;  %v55_v11 = vld [vmem:[%s18006_s1 + $0x38] sm:$0xff] }
   0x4   :  { %8831 = vmatprep.subr.bf16.mxu0 %v10770_v3  ;;  %8863 = vmatprep.subr.bf16.mxu1 %v10770_v3  ;;  %v632_v12 = vld [vmem:[%s18005_s0 + $0x80] sm:$0xff]  ;;  %v10807_v13 = vpack.c.bf16 %v55_v11, %v54_v10  ;;  %v57_v15 = vld [vmem:[%s18006_s1 + $0x48] sm:$0xff]  ;;  %v58_v17 = vld [vmem:[%s18006_s1 + $0x50] sm:$0xff] }
   0x5   :  { %8833 = vmatpush3.bf16.msra.mxu0 %v10770_v3  ;;  %8865 = vmatpush3.bf16.msra.mxu1 %v10770_v3  ;;  %v56_v14 = vld [vmem:[%s18006_s1 + $0x40] sm:$0xff]  ;;  %v59_v18 = vld [vmem:[%s18006_s1 + $0x58] sm:$0xff]  ;;  %v61_v21 = vld [vmem:[%s18006_s1 + $0x68] sm:$0xff] }
   0x6   :  { %8835 = vmatprep.subr.bf16.mxu0 %v10775_v5  ;;  %8867 = vmatprep.subr.bf16.mxu1 %v10775_v5  ;;  %v10819_v16 = vpack.c.bf16 %v57_v15, %v56_v14  ;;  %v10831_v19 = vpack.c.bf16 %v59_v18, %v58_v17  ;;  %v60_v20 = vld [vmem:[%s18006_s1 + $0x60] sm:$0xff]  ;;  %v62_v23 = vld [vmem:[%s18006_s1 + $0x70] sm:$0xff]  ;;  %v63_v24 = vld [vmem:[%s18006_s1 + $0x78] sm:$0xff] }
   0x7   :  { %7971 = vmatprep.mubr.f32.mxu0 %v103_v9  ;;  %8027 = vmatprep.mubr.f32.mxu1 %v632_v12  ;;  %v10843_v22 = vpack.c.bf16 %v61_v21, %v60_v20  ;;  %v10855_v25 = vpack.c.bf16 %v63_v24, %v62_v23  ;;  %v104_v26 = vld [vmem:[%s18005_s0 + $0x8] sm:$0xff]  ;;  %v634_v28 = vld [vmem:[%s18005_s0 + $0x90] sm:$0xff]  ;;  %v635_v30 = vld [vmem:[%s18005_s0 + $0x98] sm:$0xff] }
   0x8   :  { %v633_v27 = vld [vmem:[%s18005_s0 + $0x88] sm:$0xff]  ;;  %v105_v29 = vld [vmem:[%s18005_s0 + $0x10] sm:$0xff]  ;;  %v106_v31 = vld [vmem:[%s18005_s0 + $0x18] sm:$0xff] }
   0x9   :  { %8837 = vmatpush3.bf16.msra.mxu0 %v10775_v5  ;;  %8869 = vmatpush3.bf16.msra.mxu1 %v10775_v5  ;;  %v107_v32 = vld [vmem:[%s18005_s0 + $0x20] sm:$0xff]  ;;  %v108_v34 = vld [vmem:[%s18005_s0 + $0x28] sm:$0xff]  ;;  %v638_v36 = vld [vmem:[%s18005_s0 + $0xb0] sm:$0xff] }
   0xa   :  { %8839 = vmatprep.subr.bf16.mxu0 %v10789_v8  ;;  %8871 = vmatprep.subr.bf16.mxu1 %v10789_v8  ;;  %v636_v33 = vld [vmem:[%s18005_s0 + $0xa0] sm:$0xff]  ;;  %v637_v35 = vld [vmem:[%s18005_s0 + $0xa8] sm:$0xff]  ;;  %v109_v37 = vld [vmem:[%s18005_s0 + $0x30] sm:$0xff] }
   0xd   :  { %8841 = vmatpush3.bf16.msra.mxu0 %v10789_v8  ;;  %8873 = vmatpush3.bf16.msra.mxu1 %v10789_v8 }
   0xe   :  { %8843 = vmatprep.subr.bf16.mxu0 %v10807_v13  ;;  %8875 = vmatprep.subr.bf16.mxu1 %v10807_v13 }
  0x11   :  { %8845 = vmatpush3.bf16.msra.mxu0 %v10807_v13  ;;  %8877 = vmatpush3.bf16.msra.mxu1 %v10807_v13 }
  0x12   :  { %8847 = vmatprep.subr.bf16.mxu0 %v10819_v16  ;;  %8879 = vmatprep.subr.bf16.mxu1 %v10819_v16 }
  0x15   :  { %8849 = vmatpush3.bf16.msra.mxu0 %v10819_v16  ;;  %8881 = vmatpush3.bf16.msra.mxu1 %v10819_v16 }
  0x16   :  { %8851 = vmatprep.subr.bf16.mxu0 %v10831_v19  ;;  %8883 = vmatprep.subr.bf16.mxu1 %v10831_v19 }
  0x19   :  { %8853 = vmatpush3.bf16.msra.mxu0 %v10831_v19  ;;  %8885 = vmatpush3.bf16.msra.mxu1 %v10831_v19 }
  0x1a   :  { %8855 = vmatprep.subr.bf16.mxu0 %v10843_v22  ;;  %8887 = vmatprep.subr.bf16.mxu1 %v10843_v22 }
  0x1d   :  { %8857 = vmatpush3.bf16.msra.mxu0 %v10843_v22  ;;  %8889 = vmatpush3.bf16.msra.mxu1 %v10843_v22 }
  0x1e   :  { %8859 = vmatprep.subr.bf16.mxu0 %v10855_v25  ;;  %8891 = vmatprep.subr.bf16.mxu1 %v10855_v25 }
  0x21   :  { %8861 = vmatpush3.bf16.msra.mxu0 %v10855_v25  ;;  %8893 = vmatpush3.bf16.msra.mxu1 %v10855_v25 }
  0x22   :  { %8895 = vmatprep.subr.bf16.mxu0 %v10770_v3  ;;  %8927 = vmatprep.subr.bf16.mxu1 %v10770_v3 }
  0x24   :  { %7972 = vmatmul.mubr.f32.vlgmr.msra.gmra.mrb[0].mxu0 %v104_v26  ;;  %8028 = vmatmul.mubr.f32.vlgmr.msra.gmra.mrb[0].mxu1 %v633_v27 }
  0x25   :  { %8030 = vmatprep.mubr.f32.mxu1 %v634_v28  ;;  %7974 = vmatprep.mubr.f32.mxu0 %v105_v29 }
  0x26   :  { %8897 = vmatpush3.bf16.msra.mxu0 %v10770_v3  ;;  %8929 = vmatpush3.bf16.msra.mxu1 %v10770_v3 }
  0x27   :  { %8899 = vmatprep.subr.bf16.mxu0 %v10775_v5  ;;  %8931 = vmatprep.subr.bf16.mxu1 %v10775_v5 }
  0x28   :  { %8031 = vmatmul.mubr.f32.gmra.mrb[2].mxu1 %v635_v30  ;;  %7975 = vmatmul.mubr.f32.gmra.mrb[2].mxu0 %v106_v31 }
  0x29   :  { %7977 = vmatprep.mubr.f32.mxu0 %v107_v32  ;;  %8033 = vmatprep.mubr.f32.mxu1 %v636_v33 }
  0x2a   :  { %8901 = vmatpush3.bf16.msra.mxu0 %v10775_v5  ;;  %8933 = vmatpush3.bf16.msra.mxu1 %v10775_v5 }
  0x2b   :  { %8903 = vmatprep.subr.bf16.mxu0 %v10789_v8  ;;  %8935 = vmatprep.subr.bf16.mxu1 %v10789_v8 }
  0x2c   :  { %7978 = vmatmul.mubr.f32.gmra.mrb[4].mxu0 %v108_v34  ;;  %8034 = vmatmul.mubr.f32.gmra.mrb[4].mxu1 %v637_v35 }
  0x2d   :  { %21 = vsyncpa [#allocation5], 0  ;;  %8036 = vmatprep.mubr.f32.mxu1 %v638_v36  ;;  %7980 = vmatprep.mubr.f32.mxu0 %v109_v37  ;;  %v639_v38 = vld [vmem:[%s18005_s0 + $0xb8] sm:$0xff]  ;;  %v640_v40 = vld [vmem:[%s18005_s0 + $0xc0] sm:$0xff] }
  0x2e   :  { %v110_v39 = vld [vmem:[%s18005_s0 + $0x38] sm:$0xff]  ;;  %v111_v41 = vld [vmem:[%s18005_s0 + $0x40] sm:$0xff]  ;;  %8905 = vmatpush3.bf16.msra.mxu0 %v10789_v8  ;;  %8937 = vmatpush3.bf16.msra.mxu1 %v10789_v8  ;;  %v641_v42 = vld [vmem:[%s18005_s0 + $0xc8] sm:$0xff] }
  0x2f   :  { %8907 = vmatprep.subr.bf16.mxu0 %v10807_v13  ;;  %8939 = vmatprep.subr.bf16.mxu1 %v10807_v13  ;;  %v112_v43 = vld [vmem:[%s18005_s0 + $0x48] sm:$0xff]  ;;  %v642_v44 = vld [vmem:[%s18005_s0 + $0xd0] sm:$0xff]  ;;  %v643_v46 = vld [vmem:[%s18005_s0 + $0xd8] sm:$0xff] }
  0x30   :  { %8037 = vmatmul.mubr.f32.gmra.mrb[6].mxu1 %v639_v38  ;;  %7981 = vmatmul.mubr.f32.gmra.mrb[6].mxu0 %v110_v39  ;;  %v113_v45 = vld [vmem:[%s18005_s0 + $0x50] sm:$0xff]  ;;  %v114_v47 = vld [vmem:[%s18005_s0 + $0x58] sm:$0xff]  ;;  %v644_v48 = vld [vmem:[%s18005_s0 + $0xe0] sm:$0xff] }
  0x31   :  { %8039 = vmatprep.mubr.f32.mxu1 %v640_v40  ;;  %7983 = vmatprep.mubr.f32.mxu0 %v111_v41  ;;  %v115_v49 = vld [vmem:[%s18005_s0 + $0x60] sm:$0xff]  ;;  %v645_v50 = vld [vmem:[%s18005_s0 + $0xe8] sm:$0xff]  ;;  %v646_v52 = vld [vmem:[%s18005_s0 + $0xf0] sm:$0xff] }
  0x32   :  { %8909 = vmatpush3.bf16.msra.mxu0 %v10807_v13  ;;  %8941 = vmatpush3.bf16.msra.mxu1 %v10807_v13  ;;  %v116_v51 = vld [vmem:[%s18005_s0 + $0x68] sm:$0xff]  ;;  %v117_v53 = vld [vmem:[%s18005_s0 + $0x70] sm:$0xff]  ;;  %v647_v54 = vld [vmem:[%s18005_s0 + $0xf8] sm:$0xff] }
  0x33   :  { %8911 = vmatprep.subr.bf16.mxu0 %v10819_v16  ;;  %8943 = vmatprep.subr.bf16.mxu1 %v10819_v16  ;;  %v118_v55 = vld [vmem:[%s18005_s0 + $0x78] sm:$0xff]  ;;  %v1177_v56 = vld [vmem:[%s18005_s0 + $0x100] sm:$0xff]  ;;  %v1178_v58 = vld [vmem:[%s18005_s0 + $0x108] sm:$0xff] }
  0x34   :  { %8040 = vmatmul.mubr.f32.gmra.mrb[8].mxu1 %v641_v42  ;;  %7984 = vmatmul.mubr.f32.gmra.mrb[8].mxu0 %v112_v43  ;;  %v1722_v57 = vld [vmem:[%s18005_s0 + $0x180] sm:$0xff]  ;;  %v1723_v59 = vld [vmem:[%s18005_s0 + $0x188] sm:$0xff]  ;;  %v1179_v60 = vld [vmem:[%s18005_s0 + $0x110] sm:$0xff] }
  0x35   :  { %8042 = vmatprep.mubr.f32.mxu1 %v642_v44  ;;  %7986 = vmatprep.mubr.f32.mxu0 %v113_v45  ;;  %v1724_v61 = vld [vmem:[%s18005_s0 + $0x190] sm:$0xff]  ;;  %v1180_v62 = vld [vmem:[%s18005_s0 + $0x118] sm:$0xff]  ;;  %v1181_v0 = vld [vmem:[%s18005_s0 + $0x120] sm:$0xff] }
  0x36   :  { %8913 = vmatpush3.bf16.msra.mxu0 %v10819_v16  ;;  %8945 = vmatpush3.bf16.msra.mxu1 %v10819_v16  ;;  %v1725_v63 = vld [vmem:[%s18005_s0 + $0x198] sm:$0xff]  ;;  %v1726_v1 = vld [vmem:[%s18005_s0 + $0x1a0] sm:$0xff]  ;;  %v1182_v2 = vld [vmem:[%s18005_s0 + $0x128] sm:$0xff] }
  0x37   :  { %8915 = vmatprep.subr.bf16.mxu0 %v10831_v19  ;;  %8947 = vmatprep.subr.bf16.mxu1 %v10831_v19  ;;  %v1727_v4 = vld [vmem:[%s18005_s0 + $0x1a8] sm:$0xff]  ;;  %v1183_v6 = vld [vmem:[%s18005_s0 + $0x130] sm:$0xff]  ;;  %v1184_v9 = vld [vmem:[%s18005_s0 + $0x138] sm:$0xff] }
  0x38   :  { %8043 = vmatmul.mubr.f32.gmra.mrb[10].mxu1 %v643_v46  ;;  %7987 = vmatmul.mubr.f32.gmra.mrb[10].mxu0 %v114_v47  ;;  %v1728_v7 = vld [vmem:[%s18005_s0 + $0x1b0] sm:$0xff]  ;;  %v1729_v10 = vld [vmem:[%s18005_s0 + $0x1b8] sm:$0xff]  ;;  %v1185_v11 = vld [vmem:[%s18005_s0 + $0x140] sm:$0xff] }
  0x39   :  { %8045 = vmatprep.mubr.f32.mxu1 %v644_v48  ;;  %7989 = vmatprep.mubr.f32.mxu0 %v115_v49  ;;  %v1730_v12 = vld [vmem:[%s18005_s0 + $0x1c0] sm:$0xff]  ;;  %v1186_v14 = vld [vmem:[%s18005_s0 + $0x148] sm:$0xff]  ;;  %v1187_v17 = vld [vmem:[%s18005_s0 + $0x150] sm:$0xff] }
  0x3a   :  { %8917 = vmatpush3.bf16.msra.mxu0 %v10831_v19  ;;  %8949 = vmatpush3.bf16.msra.mxu1 %v10831_v19  ;;  %v1731_v15 = vld [vmem:[%s18005_s0 + $0x1c8] sm:$0xff]  ;;  %v1732_v18 = vld [vmem:[%s18005_s0 + $0x1d0] sm:$0xff]  ;;  %v1188_v20 = vld [vmem:[%s18005_s0 + $0x158] sm:$0xff] }
  0x3b   :  { %8919 = vmatprep.subr.bf16.mxu0 %v10843_v22  ;;  %8951 = vmatprep.subr.bf16.mxu1 %v10843_v22  ;;  %v1733_v21 = vld [vmem:[%s18005_s0 + $0x1d8] sm:$0xff]  ;;  %v1189_v23 = vld [vmem:[%s18005_s0 + $0x160] sm:$0xff]  ;;  %v1190_v26 = vld [vmem:[%s18005_s0 + $0x168] sm:$0xff] }
  0x3c   :  { %8046 = vmatmul.mubr.f32.gmra.mrb[12].mxu1 %v645_v50  ;;  %7990 = vmatmul.mubr.f32.gmra.mrb[12].mxu0 %v116_v51  ;;  %v1734_v24 = vld [vmem:[%s18005_s0 + $0x1e0] sm:$0xff]  ;;  %v1735_v27 = vld [vmem:[%s18005_s0 + $0x1e8] sm:$0xff]  ;;  %v1191_v28 = vld [vmem:[%s18005_s0 + $0x170] sm:$0xff] }
  0x3d   :  { %8048 = vmatprep.mubr.f32.mxu1 %v646_v52  ;;  %7992 = vmatprep.mubr.f32.mxu0 %v117_v53  ;;  %v1736_v29 = vld [vmem:[%s18005_s0 + $0x1f0] sm:$0xff]  ;;  %v1192_v30 = vld [vmem:[%s18005_s0 + $0x178] sm:$0xff]  ;;  %v2267_v32 = vld [vmem:[%s18005_s0 + $0x200] sm:$0xff] }
  0x3e   :  { %8921 = vmatpush3.bf16.msra.mxu0 %v10843_v22  ;;  %8953 = vmatpush3.bf16.msra.mxu1 %v10843_v22  ;;  %v1737_v31 = vld [vmem:[%s18005_s0 + $0x1f8] sm:$0xff]  ;;  %v2812_v33 = vld [vmem:[%s18005_s0 + $0x280] sm:$0xff]  ;;  %v2268_v34 = vld [vmem:[%s18005_s0 + $0x208] sm:$0xff] }
  0x3f   :  { %8923 = vmatprep.subr.bf16.mxu0 %v10855_v25  ;;  %8955 = vmatprep.subr.bf16.mxu1 %v10855_v25  ;;  %v2813_v35 = vld [vmem:[%s18005_s0 + $0x288] sm:$0xff]  ;;  %v2269_v36 = vld [vmem:[%s18005_s0 + $0x210] sm:$0xff]  ;;  %v2270_v38 = vld [vmem:[%s18005_s0 + $0x218] sm:$0xff] }
  0x40   :  { %8049 = vmatmul.mubr.f32.gmra.mrb[14].mxu1 %v647_v54  ;;  %7993 = vmatmul.mubr.f32.gmra.mrb[14].mxu0 %v118_v55  ;;  %v2814_v37 = vld [vmem:[%s18005_s0 + $0x290] sm:$0xff]  ;;  %v2815_v39 = vld [vmem:[%s18005_s0 + $0x298] sm:$0xff]  ;;  %v2271_v40 = vld [vmem:[%s18005_s0 + $0x220] sm:$0xff] }
  0x41   :  { %8083 = vmatprep.mubr.f32.mxu0 %v1177_v56  ;;  %8139 = vmatprep.mubr.f32.mxu1 %v1722_v57  ;;  %v2816_v41 = vld [vmem:[%s18005_s0 + $0x2a0] sm:$0xff]  ;;  %v2272_v42 = vld [vmem:[%s18005_s0 + $0x228] sm:$0xff]  ;;  %v2818_v44 = vld [vmem:[%s18005_s0 + $0x2b0] sm:$0xff] }
  0x42   :  { %8925 = vmatpush3.bf16.msra.mxu0 %v10855_v25  ;;  %8957 = vmatpush3.bf16.msra.mxu1 %v10855_v25  ;;  %v2817_v43 = vld [vmem:[%s18005_s0 + $0x2a8] sm:$0xff]  ;;  %v2274_v45 = vld [vmem:[%s18005_s0 + $0x238] sm:$0xff]  ;;  %v2820_v47 = vld [vmem:[%s18005_s0 + $0x2c0] sm:$0xff] }
  0x43   :  { %8959 = vmatprep.subr.bf16.mxu0 %v10770_v3  ;;  %8991 = vmatprep.subr.bf16.mxu1 %v10770_v3  ;;  %v2819_v46 = vld [vmem:[%s18005_s0 + $0x2b8] sm:$0xff]  ;;  %v2276_v48 = vld [vmem:[%s18005_s0 + $0x248] sm:$0xff]  ;;  %v2822_v50 = vld [vmem:[%s18005_s0 + $0x2d0] sm:$0xff] }
  0x44   :  { %v2821_v49 = vld [vmem:[%s18005_s0 + $0x2c8] sm:$0xff]  ;;  %v2278_v51 = vld [vmem:[%s18005_s0 + $0x258] sm:$0xff]  ;;  %v2279_v52 = vld [vmem:[%s18005_s0 + $0x260] sm:$0xff] }
  0x45   :  { %8084 = vmatmul.mubr.f32.vlgmr.msra.gmra.mrb[16].mxu0 %v1178_v58  ;;  %8140 = vmatmul.mubr.f32.vlgmr.msra.gmra.mrb[16].mxu1 %v1723_v59  ;;  %v2824_v53 = vld [vmem:[%s18005_s0 + $0x2e0] sm:$0xff]  ;;  %v2280_v54 = vld [vmem:[%s18005_s0 + $0x268] sm:$0xff]  ;;  %v2281_v55 = vld [vmem:[%s18005_s0 + $0x270] sm:$0xff] }
  0x46   :  { %8086 = vmatprep.mubr.f32.mxu0 %v1179_v60  ;;  %8142 = vmatprep.mubr.f32.mxu1 %v1724_v61  ;;  %v2826_v56 = vld [vmem:[%s18005_s0 + $0x2f0] sm:$0xff]  ;;  %v2282_v57 = vld [vmem:[%s18005_s0 + $0x278] sm:$0xff]  ;;  %v3357_v58 = vld [vmem:[%s18005_s0 + $0x300] sm:$0xff] }
  0x47   :  { %8961 = vmatpush3.bf16.msra.mxu0 %v10770_v3  ;;  %8993 = vmatpush3.bf16.msra.mxu1 %v10770_v3  ;;  %v3902_v59 = vld [vmem:[%s18005_s0 + $0x380] sm:$0xff]  ;;  %v3903_v60 = vld [vmem:[%s18005_s0 + $0x388] sm:$0xff]  ;;  %v3359_v61 = vld [vmem:[%s18005_s0 + $0x310] sm:$0xff] }
  0x48   :  { %8963 = vmatprep.subr.bf16.mxu0 %v10775_v5  ;;  %8995 = vmatprep.subr.bf16.mxu1 %v10775_v5 }
  0x49   :  { %8087 = vmatmul.mubr.f32.gmra.mrb[18].mxu0 %v1180_v62  ;;  %8143 = vmatmul.mubr.f32.gmra.mrb[18].mxu1 %v1725_v63  ;;  %v3904_v62 = vld [vmem:[%s18005_s0 + $0x390] sm:$0xff]  ;;  %v3360_v63 = vld [vmem:[%s18005_s0 + $0x318] sm:$0xff] }
  0x4a   :  { %8089 = vmatprep.mubr.f32.mxu0 %v1181_v0  ;;  %8145 = vmatprep.mubr.f32.mxu1 %v1726_v1  ;;  %v3361_v0 = vld [vmem:[%s18005_s0 + $0x320] sm:$0xff] }
  0x4b   :  { %8965 = vmatpush3.bf16.msra.mxu0 %v10775_v5  ;;  %8997 = vmatpush3.bf16.msra.mxu1 %v10775_v5  ;;  %v3906_v1 = vld [vmem:[%s18005_s0 + $0x3a0] sm:$0xff] }
  0x4c   :  { %8967 = vmatprep.subr.bf16.mxu0 %v10789_v8  ;;  %8999 = vmatprep.subr.bf16.mxu1 %v10789_v8 }
  0x4d   :  { %8090 = vmatmul.mubr.f32.gmra.mrb[20].mxu0 %v1182_v2  ;;  %8146 = vmatmul.mubr.f32.gmra.mrb[20].mxu1 %v1727_v4  ;;  %v3362_v2 = vld [vmem:[%s18005_s0 + $0x328] sm:$0xff] }
  0x4e   :  { %8092 = vmatprep.mubr.f32.mxu0 %v1183_v6  ;;  %8148 = vmatprep.mubr.f32.mxu1 %v1728_v7  ;;  %v3907_v4 = vld [vmem:[%s18005_s0 + $0x3a8] sm:$0xff]  ;;  %v3363_v6 = vld [vmem:[%s18005_s0 + $0x330] sm:$0xff] }
  0x4f   :  { %8969 = vmatpush3.bf16.msra.mxu0 %v10789_v8  ;;  %9001 = vmatpush3.bf16.msra.mxu1 %v10789_v8  ;;  %v3908_v7 = vld [vmem:[%s18005_s0 + $0x3b0] sm:$0xff] }
  0x50   :  { %8971 = vmatprep.subr.bf16.mxu0 %v10807_v13  ;;  %9003 = vmatprep.subr.bf16.mxu1 %v10807_v13 }
  0x51   :  { %8093 = vmatmul.mubr.f32.gmra.mrb[22].mxu0 %v1184_v9  ;;  %8149 = vmatmul.mubr.f32.gmra.mrb[22].mxu1 %v1729_v10  ;;  %v3364_v9 = vld [vmem:[%s18005_s0 + $0x338] sm:$0xff] }
  0x52   :  { %8095 = vmatprep.mubr.f32.mxu0 %v1185_v11  ;;  %8151 = vmatprep.mubr.f32.mxu1 %v1730_v12  ;;  %v3909_v10 = vld [vmem:[%s18005_s0 + $0x3b8] sm:$0xff]  ;;  %v3365_v11 = vld [vmem:[%s18005_s0 + $0x340] sm:$0xff] }
  0x53   :  { %8973 = vmatpush3.bf16.msra.mxu0 %v10807_v13  ;;  %9005 = vmatpush3.bf16.msra.mxu1 %v10807_v13  ;;  %v3910_v12 = vld [vmem:[%s18005_s0 + $0x3c0] sm:$0xff] }
  0x54   :  { %8975 = vmatprep.subr.bf16.mxu0 %v10819_v16  ;;  %9007 = vmatprep.subr.bf16.mxu1 %v10819_v16 }
  0x55   :  { %8096 = vmatmul.mubr.f32.gmra.mrb[24].mxu0 %v1186_v14  ;;  %8152 = vmatmul.mubr.f32.gmra.mrb[24].mxu1 %v1731_v15  ;;  %v3366_v14 = vld [vmem:[%s18005_s0 + $0x348] sm:$0xff] }
  0x56   :  { %8098 = vmatprep.mubr.f32.mxu0 %v1187_v17  ;;  %8154 = vmatprep.mubr.f32.mxu1 %v1732_v18  ;;  %v3911_v15 = vld [vmem:[%s18005_s0 + $0x3c8] sm:$0xff]  ;;  %v3367_v17 = vld [vmem:[%s18005_s0 + $0x350] sm:$0xff] }
  0x57   :  { %8977 = vmatpush3.bf16.msra.mxu0 %v10819_v16  ;;  %9009 = vmatpush3.bf16.msra.mxu1 %v10819_v16  ;;  %v3912_v18 = vld [vmem:[%s18005_s0 + $0x3d0] sm:$0xff] }
  0x58   :  { %8979 = vmatprep.subr.bf16.mxu0 %v10831_v19  ;;  %9011 = vmatprep.subr.bf16.mxu1 %v10831_v19 }
  0x59   :  { %8099 = vmatmul.mubr.f32.gmra.mrb[26].mxu0 %v1188_v20  ;;  %8155 = vmatmul.mubr.f32.gmra.mrb[26].mxu1 %v1733_v21  ;;  %v3368_v20 = vld [vmem:[%s18005_s0 + $0x358] sm:$0xff] }
  0x5a   :  { %8101 = vmatprep.mubr.f32.mxu0 %v1189_v23  ;;  %8157 = vmatprep.mubr.f32.mxu1 %v1734_v24  ;;  %v3913_v21 = vld [vmem:[%s18005_s0 + $0x3d8] sm:$0xff]  ;;  %v3369_v23 = vld [vmem:[%s18005_s0 + $0x360] sm:$0xff] }
  0x5b   :  { %8981 = vmatpush3.bf16.msra.mxu0 %v10831_v19  ;;  %9013 = vmatpush3.bf16.msra.mxu1 %v10831_v19  ;;  %v3914_v24 = vld [vmem:[%s18005_s0 + $0x3e0] sm:$0xff] }
  0x5c   :  { %8983 = vmatprep.subr.bf16.mxu0 %v10843_v22  ;;  %9015 = vmatprep.subr.bf16.mxu1 %v10843_v22 }
  0x5d   :  { %8102 = vmatmul.mubr.f32.gmra.mrb[28].mxu0 %v1190_v26  ;;  %8158 = vmatmul.mubr.f32.gmra.mrb[28].mxu1 %v1735_v27  ;;  %v3370_v26 = vld [vmem:[%s18005_s0 + $0x368] sm:$0xff] }
  0x5e   :  { %8104 = vmatprep.mubr.f32.mxu0 %v1191_v28  ;;  %8160 = vmatprep.mubr.f32.mxu1 %v1736_v29  ;;  %v3915_v27 = vld [vmem:[%s18005_s0 + $0x3e8] sm:$0xff]  ;;  %v3371_v28 = vld [vmem:[%s18005_s0 + $0x370] sm:$0xff] }
  0x5f   :  { %8985 = vmatpush3.bf16.msra.mxu0 %v10843_v22  ;;  %9017 = vmatpush3.bf16.msra.mxu1 %v10843_v22  ;;  %v3916_v29 = vld [vmem:[%s18005_s0 + $0x3f0] sm:$0xff] }
  0x60   :  { %8987 = vmatprep.subr.bf16.mxu0 %v10855_v25  ;;  %9019 = vmatprep.subr.bf16.mxu1 %v10855_v25 }
  0x61   :  { %8105 = vmatmul.mubr.f32.gmra.mrb[30].mxu0 %v1192_v30  ;;  %8161 = vmatmul.mubr.f32.gmra.mrb[30].mxu1 %v1737_v31  ;;  %v3372_v30 = vld [vmem:[%s18005_s0 + $0x378] sm:$0xff] }
  0x62   :  { %8195 = vmatprep.mubr.f32.mxu0 %v2267_v32  ;;  %8251 = vmatprep.mubr.f32.mxu1 %v2812_v33  ;;  %v3917_v31 = vld [vmem:[%s18005_s0 + $0x3f8] sm:$0xff]  ;;  %v11340_v32 = vld [vmem:[%s18007_s2 + $0x8] sm:$0xff]  ;;  %v11345_v33 = vld [vmem:[%s18007_s2] sm:$0xff] }
  0x63   :  { %8989 = vmatpush3.bf16.msra.mxu0 %v10855_v25  ;;  %9021 = vmatpush3.bf16.msra.mxu1 %v10855_v25 }
  0x64   :  { %9023 = vmatprep.subr.bf16.mxu0 %v10770_v3  ;;  %9055 = vmatprep.subr.bf16.mxu1 %v10770_v3 }
  0x66   :  { %8196 = vmatmul.mubr.f32.vlgmr.msra.gmra.mrb[32].mxu0 %v2268_v34  ;;  %8252 = vmatmul.mubr.f32.vlgmr.msra.gmra.mrb[32].mxu1 %v2813_v35 }
  0x67   :  { %8198 = vmatprep.mubr.f32.mxu0 %v2269_v36  ;;  %8254 = vmatprep.mubr.f32.mxu1 %v2814_v37 }
  0x68   :  { %9025 = vmatpush3.bf16.msra.mxu0 %v10770_v3  ;;  %9057 = vmatpush3.bf16.msra.mxu1 %v10770_v3  ;;  %v2273_v3 = vld [vmem:[%s18005_s0 + $0x230] sm:$0xff] }
  0x69   :  { %9027 = vmatprep.subr.bf16.mxu0 %v10775_v5  ;;  %9059 = vmatprep.subr.bf16.mxu1 %v10775_v5 }
  0x6a   :  { %8199 = vmatmul.mubr.f32.gmra.mrb[34].mxu0 %v2270_v38  ;;  %8255 = vmatmul.mubr.f32.gmra.mrb[34].mxu1 %v2815_v39 }
  0x6b   :  { %8201 = vmatprep.mubr.f32.mxu0 %v2271_v40  ;;  %8257 = vmatprep.mubr.f32.mxu1 %v2816_v41 }
  0x6c   :  { %9029 = vmatpush3.bf16.msra.mxu0 %v10775_v5  ;;  %9061 = vmatpush3.bf16.msra.mxu1 %v10775_v5  ;;  %v2275_v5 = vld [vmem:[%s18005_s0 + $0x240] sm:$0xff] }
  0x6d   :  { %9031 = vmatprep.subr.bf16.mxu0 %v10789_v8  ;;  %9063 = vmatprep.subr.bf16.mxu1 %v10789_v8 }
  0x6e   :  { %8202 = vmatmul.mubr.f32.gmra.mrb[36].mxu0 %v2272_v42  ;;  %8258 = vmatmul.mubr.f32.gmra.mrb[36].mxu1 %v2817_v43 }
  0x6f   :  { %8204 = vmatprep.mubr.f32.mxu0 %v2273_v3  ;;  %8260 = vmatprep.mubr.f32.mxu1 %v2818_v44  ;;  %v11354_v3 = vld [vmem:[%s18007_s2 + $0x18] sm:$0xff] }
  0x70   :  { %9033 = vmatpush3.bf16.msra.mxu0 %v10789_v8  ;;  %9065 = vmatpush3.bf16.msra.mxu1 %v10789_v8  ;;  %v2277_v8 = vld [vmem:[%s18005_s0 + $0x250] sm:$0xff] }
  0x71   :  { %9035 = vmatprep.subr.bf16.mxu0 %v10807_v13  ;;  %9067 = vmatprep.subr.bf16.mxu1 %v10807_v13 }
  0x72   :  { %8205 = vmatmul.mubr.f32.gmra.mrb[38].mxu0 %v2274_v45  ;;  %8261 = vmatmul.mubr.f32.gmra.mrb[38].mxu1 %v2819_v46 }
  0x73   :  { %8207 = vmatprep.mubr.f32.mxu0 %v2275_v5  ;;  %8263 = vmatprep.mubr.f32.mxu1 %v2820_v47 }
  0x74   :  { %9037 = vmatpush3.bf16.msra.mxu0 %v10807_v13  ;;  %9069 = vmatpush3.bf16.msra.mxu1 %v10807_v13  ;;  %v2823_v13 = vld [vmem:[%s18005_s0 + $0x2d8] sm:$0xff] }
  0x75   :  { %9039 = vmatprep.subr.bf16.mxu0 %v10819_v16  ;;  %9071 = vmatprep.subr.bf16.mxu1 %v10819_v16 }
  0x76   :  { %8208 = vmatmul.mubr.f32.gmra.mrb[40].mxu0 %v2276_v48  ;;  %8264 = vmatmul.mubr.f32.gmra.mrb[40].mxu1 %v2821_v49 }
  0x77   :  { %8210 = vmatprep.mubr.f32.mxu0 %v2277_v8  ;;  %8266 = vmatprep.mubr.f32.mxu1 %v2822_v50  ;;  %v11371_v50 = vld [vmem:[%s18007_s2 + $0x10] sm:$0xff] }
  0x78   :  { %9041 = vmatpush3.bf16.msra.mxu0 %v10819_v16  ;;  %9073 = vmatpush3.bf16.msra.mxu1 %v10819_v16  ;;  %v2825_v16 = vld [vmem:[%s18005_s0 + $0x2e8] sm:$0xff]  ;;  %18149 = vst [vmem:[#allocation8_spill] sm:$0xff] %v11371_v50 }
  0x79   :  { %9043 = vmatprep.subr.bf16.mxu0 %v10831_v19  ;;  %9075 = vmatprep.subr.bf16.mxu1 %v10831_v19 }
  0x7a   :  { %8211 = vmatmul.mubr.f32.gmra.mrb[42].mxu0 %v2278_v51  ;;  %8267 = vmatmul.mubr.f32.gmra.mrb[42].mxu1 %v2823_v13  ;;  %v11376_v51 = vld [vmem:[%s18007_s2 + $0x28] sm:$0xff] }
  0x7b   :  { %8213 = vmatprep.mubr.f32.mxu0 %v2279_v52  ;;  %8269 = vmatprep.mubr.f32.mxu1 %v2824_v53 }
  0x7c   :  { %9045 = vmatpush3.bf16.msra.mxu0 %v10831_v19  ;;  %9077 = vmatpush3.bf16.msra.mxu1 %v10831_v19  ;;  %v2827_v19 = vld [vmem:[%s18005_s0 + $0x2f8] sm:$0xff] }
  0x7d   :  { %9047 = vmatprep.subr.bf16.mxu0 %v10843_v22  ;;  %9079 = vmatprep.subr.bf16.mxu1 %v10843_v22 }
  0x7e   :  { %8214 = vmatmul.mubr.f32.gmra.mrb[44].mxu0 %v2280_v54  ;;  %8270 = vmatmul.mubr.f32.gmra.mrb[44].mxu1 %v2825_v16 }
  0x7f   :  { %8216 = vmatprep.mubr.f32.mxu0 %v2281_v55  ;;  %8272 = vmatprep.mubr.f32.mxu1 %v2826_v56  ;;  %v11390_v55 = vld [vmem:[%s18009_s4] ss:$0 sm:$0xff] }
  0x80   :  { %9049 = vmatpush3.bf16.msra.mxu0 %v10843_v22  ;;  %9081 = vmatpush3.bf16.msra.mxu1 %v10843_v22  ;;  %v3358_v22 = vld [vmem:[%s18005_s0 + $0x308] sm:$0xff] }
  0x81   :  { %9051 = vmatprep.subr.bf16.mxu0 %v10855_v25  ;;  %9083 = vmatprep.subr.bf16.mxu1 %v10855_v25 }
  0x82   :  { %8217 = vmatmul.mubr.f32.gmra.mrb[46].mxu0 %v2282_v57  ;;  %8273 = vmatmul.mubr.f32.gmra.mrb[46].mxu1 %v2827_v19 }
  0x83   :  { %8307 = vmatprep.mubr.f32.mxu0 %v3357_v58  ;;  %8363 = vmatprep.mubr.f32.mxu1 %v3902_v59 }
  0x84   :  { %9053 = vmatpush3.bf16.msra.mxu0 %v10855_v25  ;;  %9085 = vmatpush3.bf16.msra.mxu1 %v10855_v25  ;;  %v3905_v25 = vld [vmem:[%s18005_s0 + $0x398] sm:$0xff] }
  0x87   :  { %8308 = vmatmul.mubr.f32.vlgmr.msra.gmra.mrb[48].mxu0 %v3358_v22  ;;  %8364 = vmatmul.mubr.f32.vlgmr.msra.gmra.mrb[48].mxu1 %v3903_v60 }
  0x88   :  { %8310 = vmatprep.mubr.f32.mxu0 %v3359_v61  ;;  %8366 = vmatprep.mubr.f32.mxu1 %v3904_v62  ;;  %v11410_v62 = vld [vmem:[%s18007_s2 + $0x20] sm:$0xff] }
  0x89   :  { %18150 = vst [vmem:[#allocation9_spill] sm:$0xff] %v11410_v62 }
  0x8b   :  { %8311 = vmatmul.mubr.f32.gmra.mrb[50].mxu0 %v3360_v63  ;;  %8367 = vmatmul.mubr.f32.gmra.mrb[50].mxu1 %v3905_v25  ;;  %v11415_v63 = vld [vmem:[%s18008_s3 + $0x8] sm:$0xff] }
  0x8c   :  { %8313 = vmatprep.mubr.f32.mxu0 %v3361_v0  ;;  %8369 = vmatprep.mubr.f32.mxu1 %v3906_v1 }
  0x8f   :  { %8314 = vmatmul.mubr.f32.gmra.mrb[52].mxu0 %v3362_v2  ;;  %8370 = vmatmul.mubr.f32.gmra.mrb[52].mxu1 %v3907_v4  ;;  %v11426_v4 = vld [vmem:[%s18008_s3] sm:$0xff] }
  0x90   :  { %8316 = vmatprep.mubr.f32.mxu0 %v3363_v6  ;;  %8372 = vmatprep.mubr.f32.mxu1 %v3908_v7  ;;  %v11432_v7 = vld [vmem:[%s18007_s2 + $0x38] sm:$0xff] }
  0x91   :  { %18151 = vst [vmem:[#allocation10_spill] sm:$0xff] %v11432_v7 }
  0x93   :  { %8317 = vmatmul.mubr.f32.gmra.mrb[54].mxu0 %v3364_v9  ;;  %8373 = vmatmul.mubr.f32.gmra.mrb[54].mxu1 %v3909_v10 }
  0x94   :  { %8319 = vmatprep.mubr.f32.mxu0 %v3365_v11  ;;  %8375 = vmatprep.mubr.f32.mxu1 %v3910_v12 }
  0x97   :  { %8320 = vmatmul.mubr.f32.gmra.mrb[56].mxu0 %v3366_v14  ;;  %8376 = vmatmul.mubr.f32.gmra.mrb[56].mxu1 %v3911_v15 }
  0x98   :  { %8322 = vmatprep.mubr.f32.mxu0 %v3367_v17  ;;  %8378 = vmatprep.mubr.f32.mxu1 %v3912_v18 }
  0x9b   :  { %8323 = vmatmul.mubr.f32.gmra.mrb[58].mxu0 %v3368_v20  ;;  %8379 = vmatmul.mubr.f32.gmra.mrb[58].mxu1 %v3913_v21 }
  0x9c   :  { %8325 = vmatprep.mubr.f32.mxu0 %v3369_v23  ;;  %8381 = vmatprep.mubr.f32.mxu1 %v3914_v24 }
  0x9f   :  { %8326 = vmatmul.mubr.f32.gmra.mrb[60].mxu0 %v3370_v26  ;;  %8382 = vmatmul.mubr.f32.gmra.mrb[60].mxu1 %v3915_v27 }
  0xa0   :  { %8328 = vmatprep.mubr.f32.mxu0 %v3371_v28  ;;  %8384 = vmatprep.mubr.f32.mxu1 %v3916_v29  ;;  %v11460_v28 = vld [vmem:[%s18008_s3 + $0x18] sm:$0xff] }
  0xa3   :  { %8329 = vmatmul.mubr.f32.gmra.mrb[62].mxu0 %v3372_v30  ;;  %8385 = vmatmul.mubr.f32.gmra.mrb[62].mxu1 %v3917_v31 }
  0xf7   :  { %v7973_v34 = vpop.f32.mrb[0].mxu0  ;;  %v8029_v35 = vpop.f32.mrb[0].mxu1 }
  0xf8   :  { %v185_v36 = vpop.f32.mrb[1].mxu0  ;;  %v714_v37 = vpop.f32.mrb[1].mxu1  ;;  %v265_v38 = vmul.f32 %v7973_v34, %v11340_v32  ;;  %v794_v40 = vmul.f32 %v8029_v35, %v11340_v32  ;;  %v537_v61 = vmul.f32 %v7973_v34, %v11390_v55  ;;  %v1066_v0 = vmul.f32 %v8029_v35, %v11390_v55  ;;  %v11469_v35 = vld [vmem:[%s18007_s2 + $0x30] sm:$0xff] }
  0xf9   :  { %v264_v39 = vmul.f32 %v185_v36, %v11345_v33  ;;  %v793_v43 = vmul.f32 %v714_v37, %v11345_v33  ;;  %v536_v25 = vmul.f32 %v11390_v55, %v185_v36  ;;  %v1065_v6 = vmul.f32 %v11390_v55, %v714_v37  ;;  %18152 = vst [vmem:[#allocation11_spill] sm:$0xff] %v11469_v35  ;;  %v11474_v37 = vld [vmem:[%s18008_s3 + $0x10] sm:$0xff] }
  0xfa   :  { %282 = vadd.xlane.f32.xlu1 %v265_v38  ;;  %v553_v12 = vadd.f32 %v537_v61, %v11415_v63  ;;  %v1082_v15 = vadd.f32 %v1066_v0, %v11415_v63 }
  0xfb   :  { %280 = vadd.xlane.f32.xlu0 %v264_v39  ;;  %v8032_v41 = vpop.f32.mrb[2].mxu1  ;;  %v7976_v42 = vpop.f32.mrb[2].mxu0  ;;  %v552_v14 = vadd.f32 %v536_v25, %v11426_v4  ;;  %v1081_v23 = vadd.f32 %v1065_v6, %v11426_v4  ;;  %v11481_v39 = vld [vmem:[%s18007_s2 + $0x48] sm:$0xff]  ;;  %v11519_v6 = vld [vmem:[%s18008_s3 + $0x20] sm:$0xff] }
  0xfc   :  { %v724_v44 = vpop.f32.mrb[3].mxu1  ;;  %v11356_v45 = vpop.f32.mrb[3].mxu0  ;;  %v267_v47 = vmul.f32 %v7976_v42, %v11354_v3  ;;  %v796_v48 = vmul.f32 %v8032_v41, %v11354_v3  ;;  %v1068_v24 = vmul.f32 %v8032_v41, %v11390_v55  ;;  %v539_v29 = vmul.f32 %v7976_v42, %v11390_v55  ;;  %18153 = vst [vmem:[#allocation12_spill] sm:$0xff] %v11481_v39 }
  0xfd   :  { %v795_v53 = vmul.f32 %v724_v44, %v11371_v50  ;;  %v266_v56 = vmul.f32 %v11356_v45, %v11371_v50  ;;  %vm569_vm0 = vcmp.gt.f32.partialorder %v553_v12, 0.0  ;;  %v585_v31 = vmul.f32 0.2, %v553_v12 }
  0xfe   :  { %811 = vadd.xlane.f32.xlu1 %v794_v40  ;;  %v1067_v34 = vmul.f32 %v11390_v55, %v724_v44  ;;  %vm568_vm1 = vcmp.gt.f32.partialorder %v552_v14, 0.0  ;;  %vm1098_vm2 = vcmp.gt.f32.partialorder %v1082_v15, 0.0  ;;  %v1114_v36 = vmul.f32 0.2, %v1082_v15 }
  0xff   :  { %809 = vadd.xlane.f32.xlu0 %v793_v43  ;;  %v11358_v46 = vpop.f32.mrb[4].mxu0  ;;  %v11360_v5 = vpop.f32.mrb[4].mxu1  ;;  %v538_v38 = vmul.f32 %v11390_v55, %v11356_v45  ;;  %v584_v40 = vmul.f32 0.2, %v552_v14  ;;  %v1113_v41 = vmul.f32 0.2, %v1081_v23  ;;  %v1084_v42 = vadd.f32 %v1068_v24, %v11460_v28 }
 0x100   :  { %v11364_v49 = vpop.f32.mrb[5].mxu0  ;;  %v11366_v8 = vpop.f32.mrb[5].mxu1  ;;  %v798_v57 = vmul.f32 %v11360_v5, %v11376_v51  ;;  %v269_v60 = vmul.f32 %v11358_v46, %v11376_v51  ;;  %v541_v43 = vmul.f32 %v11358_v46, %v11390_v55  ;;  %vm1097_vm3 = vcmp.gt.f32.partialorder %v1081_v23, 0.0 }
 0x101   :  { %v797_v11 = vmul.f32 %v11366_v8, %v11410_v62  ;;  %v268_v17 = vmul.f32 %v11364_v49, %v11410_v62  ;;  %v11491_v45 = vadd.f32 %v539_v29, %v11460_v28  ;;  %v1083_v61 = vadd.f32 %v1067_v34, %v11474_v37 }
 0x102   :  { %286 = vadd.xlane.f32.xlu1 %v267_v47  ;;  %v540_v25 = vmul.f32 %v11390_v55, %v11364_v49  ;;  %v11513_v0 = vsel %vm1098_vm2, %v1082_v15, %v1114_v36  ;;  %v11529_v49 = vsel %vm1097_vm3, %v1081_v23, %v1113_v41  ;;  %v1116_v15 = vmul.f32 0.2, %v1084_v42  ;;  %v11547_v36 = vld [vmem:[%s18007_s2 + $0x40] sm:$0xff] }
 0x103   :  { %815 = vadd.xlane.f32.xlu0 %v796_v48  ;;  %v11378_v13 = vpop.f32.mrb[6].mxu1  ;;  %v11380_v52 = vpop.f32.mrb[6].mxu0  ;;  %v11496_v48 = vld [vmem:[%s18008_s3 + $0x28] sm:$0xff]  ;;  %18155 = vst [vmem:[#allocation14_spill] sm:$0xff] %v11513_v0  ;;  %18157 = vst [vmem:[#allocation16_spill] sm:$0xff] %v11529_v49  ;;  %vm1100_vm4 = vcmp.gt.f32.partialorder %v1084_v42, 0.0  ;;  %v1069_v34 = vmul.f32 %v11390_v55, %v11366_v8 }
 0x104   :  { %v11383_v54 = vpop.f32.mrb[7].mxu1  ;;  %v11385_v16 = vpop.f32.mrb[7].mxu0  ;;  %v271_v18 = vmul.f32 %v11380_v52, %v11432_v7  ;;  %v800_v30 = vmul.f32 %v11378_v13, %v11432_v7  ;;  %vm571_vm5 = vcmp.gt.f32.partialorder %v11491_v45, 0.0  ;;  %vm1099_vm6 = vcmp.gt.f32.partialorder %v1083_v61, 0.0  ;;  %18158 = vst [vmem:[#allocation17_spill] sm:$0xff] %v11547_v36 }
 0x105   :  { %v799_v46 = vmul.f32 %v11383_v54, %v11469_v35  ;;  %v587_v23 = vmul.f32 0.2, %v11491_v45  ;;  %v1115_v41 = vmul.f32 0.2, %v1083_v61  ;;  %v1072_v8 = vmul.f32 %v11378_v13, %v11390_v55 }
 0x106   :  { %813 = vadd.xlane.f32.xlu1 %v795_v53  ;;  %v1070_v53 = vmul.f32 %v11360_v5, %v11390_v55  ;;  %v554_v5 = vadd.f32 %v538_v38, %v11474_v37  ;;  %v542_v62 = vmul.f32 %v11390_v55, %v11385_v16 }
 0x107   :  { %v11396_v19 = vpop.f32.mrb[8].mxu1  ;;  %v11398_v58 = vpop.f32.mrb[8].mxu0  ;;  %284 = vadd.xlane.f32.xlu0 %v266_v56  ;;  %v11602_v7 = vsel %vm1099_vm6, %v1083_v61, %v1115_v41 }
 0x108   :  { %v11400_v59 = vpop.f32.mrb[9].mxu1  ;;  %v11402_v22 = vpop.f32.mrb[9].mxu0  ;;  %vm570_vm7 = vcmp.gt.f32.partialorder %v554_v5, 0.0  ;;  %18163 = vst [vmem:[#allocation22_spill] sm:$0xff] %v11602_v7 }
 0x10a   :  { %819 = vadd.xlane.f32.xlu1 %v798_v57 }
 0x10b   :  { %v11419_v1 = vpop.f32.mrb[10].mxu1  ;;  %v11421_v2 = vpop.f32.mrb[10].mxu0  ;;  %290 = vadd.xlane.f32.xlu0 %v269_v60  ;;  %v11507_v60 = vsel %vm569_vm0, %v553_v12, %v585_v31  ;;  %v273_v12 = vmul.f32 %v11398_v58, %v11481_v39  ;;  %v556_v31 = vadd.f32 %v540_v25, %v11519_v6 }
 0x10c   :  { %v11434_v9 = vpop.f32.mrb[11].mxu1  ;;  %v11436_v10 = vpop.f32.mrb[11].mxu0  ;;  %18154 = vst [vmem:[#allocation13_spill] sm:$0xff] %v11507_v60  ;;  %v11568_v60 = vld [vmem:[%s18007_s2 + $0x58] sm:$0xff] }
 0x10d   :  { %18161 = vst [vmem:[#allocation20_spill] sm:$0xff] %v11568_v60  ;;  %vm572_vm10 = vcmp.gt.f32.partialorder %v556_v31, 0.0  ;;  %v275_v50 = vmul.f32 %v11421_v2, %v11568_v60 }
 0x10e   :  { %817 = vadd.xlane.f32.xlu1 %v797_v11  ;;  %v270_v11 = vmul.f32 %v11385_v16, %v11469_v35  ;;  %v11588_v35 = vadd.f32 %v1069_v34, %v11519_v6  ;;  %v11607_v16 = vsel %vm571_vm5, %v11491_v45, %v587_v23 }
 0x10f   :  { %v11447_v20 = vpop.f32.mrb[12].mxu1  ;;  %v11449_v21 = vpop.f32.mrb[12].mxu0  ;;  %288 = vadd.xlane.f32.xlu0 %v268_v17  ;;  %v11526_v17 = vsel %vm568_vm1, %v552_v14, %v584_v40  ;;  %v802_v14 = vmul.f32 %v11396_v19, %v11481_v39  ;;  %18164 = vst [vmem:[#allocation23_spill] sm:$0xff] %v11607_v16 }
 0x110   :  { %v11453_v26 = vpop.f32.mrb[13].mxu1  ;;  %v11455_v27 = vpop.f32.mrb[13].mxu0  ;;  %18156 = vst [vmem:[#allocation15_spill] sm:$0xff] %v11526_v17  ;;  %v588_v17 = vmul.f32 0.2, %v556_v31  ;;  %vm1101_vm11 = vcmp.gt.f32.partialorder %v11588_v35, 0.0 }
 0x112   :  { %294 = vadd.xlane.f32.xlu1 %v271_v18  ;;  %v557_v18 = vadd.f32 %v541_v43, %v11496_v48  ;;  %v586_v43 = vmul.f32 0.2, %v554_v5 }
 0x113   :  { %v11486_v44 = vpop.f32.mrb[14].mxu1  ;;  %v11488_v47 = vpop.f32.mrb[14].mxu0  ;;  %823 = vadd.xlane.f32.xlu0 %v800_v30  ;;  %v1086_v30 = vadd.f32 %v1070_v53, %v11496_v48  ;;  %v11556_v53 = vld [vmem:[%s18008_s3 + $0x38] sm:$0xff] }
 0x114   :  { %v11502_v56 = vpop.f32.mrb[15].mxu1  ;;  %v11504_v57 = vpop.f32.mrb[15].mxu0  ;;  %18159 = vst [vmem:[#allocation18_spill] sm:$0xff] %v11556_v53  ;;  %vm573_vm8 = vcmp.gt.f32.partialorder %v557_v18, 0.0  ;;  %v589_v25 = vmul.f32 0.2, %v557_v18  ;;  %v11593_v39 = vadd.f32 %v1072_v8, %v11556_v53  ;;  %v1073_v8 = vmul.f32 %v11390_v55, %v11400_v59 }
 0x115   :  { %vm1102_vm9 = vcmp.gt.f32.partialorder %v1086_v30, 0.0  ;;  %v1118_v13 = vmul.f32 0.2, %v1086_v30  ;;  %v11624_v41 = vsel %vm570_vm7, %v554_v5, %v586_v43 }
 0x116   :  { %821 = vadd.xlane.f32.xlu1 %v799_v46  ;;  %v11561_v46 = vsel %vm1100_vm4, %v1084_v42, %v1116_v15  ;;  %v11577_v42 = vld [vmem:[%s18008_s3 + $0x30] sm:$0xff]  ;;  %18166 = vst [vmem:[#allocation25_spill] sm:$0xff] %v11624_v41  ;;  %v11627_v45 = vsel %vm573_vm8, %v557_v18, %v589_v25  ;;  %v11645_v18 = vsel %vm572_vm10, %v556_v31, %v588_v17  ;;  %vm1104_vm12 = vcmp.gt.f32.partialorder %v11593_v39, 0.0 }
 0x117   :  { %292 = vadd.xlane.f32.xlu0 %v270_v11  ;;  %18160 = vst [vmem:[#allocation19_spill] sm:$0xff] %v11561_v46  ;;  %v1071_v11 = vmul.f32 %v11390_v55, %v11383_v54  ;;  %18162 = vst [vmem:[#allocation21_spill] sm:$0xff] %v11577_v42  ;;  %v801_v54 = vmul.f32 %v11400_v59, %v11547_v36  ;;  %v804_v59 = vmul.f32 %v11419_v1, %v11568_v60  ;;  %v11652_v25 = vld [vmem:[%s18007_s2 + $0x50] sm:$0xff] }
 0x118   :  { %v11532_v24 = vpop.f32.mrb[16].mxu0  ;;  %v11534_v29 = vpop.f32.mrb[16].mxu1  ;;  %18167 = vst [vmem:[#allocation26_spill] sm:$0xff] %v11627_v45  ;;  %v11642_v5 = vsel %vm1102_vm9, %v1086_v30, %v1118_v13  ;;  %18170 = vst [vmem:[#allocation29_spill] sm:$0xff] %v11645_v18  ;;  %v558_v43 = vadd.f32 %v542_v62, %v11577_v42  ;;  %v545_v31 = vmul.f32 %v11398_v58, %v11390_v55  ;;  %v11666_v13 = vld [vmem:[%s18007_s2 + $0x68] sm:$0xff] }
 0x119   :  { %v11549_v38 = vpop.f32.mrb[17].mxu0  ;;  %v11551_v40 = vpop.f32.mrb[17].mxu1  ;;  %v11610_v34 = vadd.f32 %v1071_v11, %v11577_v42  ;;  %v11633_v11 = vld [vmem:[%s18008_s3 + $0x40] sm:$0xff]  ;;  %18169 = vst [vmem:[#allocation28_spill] sm:$0xff] %v11642_v5  ;;  %18171 = vst [vmem:[#allocation30_spill] sm:$0xff] %v11652_v25  ;;  %v1076_v18 = vmul.f32 %v11419_v1, %v11390_v55  ;;  %v1075_v41 = vmul.f32 %v11390_v55, %v11434_v9 }
 0x11a   :  { %298 = vadd.xlane.f32.xlu1 %v273_v12  ;;  %v543_v12 = vmul.f32 %v11380_v52, %v11390_v55  ;;  %v1074_v52 = vmul.f32 %v11396_v19, %v11390_v55  ;;  %v11615_v19 = vld [vmem:[%s18008_s3 + $0x48] sm:$0xff]  ;;  %v1089_v62 = vadd.f32 %v1073_v8, %v11633_v11  ;;  %18172 = vst [vmem:[#allocation31_spill] sm:$0xff] %v11666_v13  ;;  %vm574_vm15 = vcmp.gt.f32.partialorder %v558_v43, 0.0 }
 0x11b   :  { %827 = vadd.xlane.f32.xlu0 %v802_v14  ;;  %v272_v14 = vmul.f32 %v11402_v22, %v11547_v36  ;;  %18165 = vst [vmem:[#allocation24_spill] sm:$0xff] %v11615_v19  ;;  %vm1103_vm13 = vcmp.gt.f32.partialorder %v11610_v34, 0.0  ;;  %v1119_v17 = vmul.f32 0.2, %v11610_v34  ;;  %v803_v8 = vmul.f32 %v11434_v9, %v11652_v25 }
 0x11c   :  { %v11570_v0 = vpop.f32.mrb[18].mxu0  ;;  %v11572_v49 = vpop.f32.mrb[18].mxu1  ;;  %v559_v23 = vadd.f32 %v543_v12, %v11556_v53  ;;  %v1117_v12 = vmul.f32 0.2, %v11588_v35  ;;  %v1090_v30 = vadd.f32 %v1074_v52, %v11615_v19  ;;  %v544_v52 = vmul.f32 %v11390_v55, %v11402_v22  ;;  %v11687_v22 = vld [vmem:[%s18008_s3 + $0x58] sm:$0xff] }
 0x11d   :  { %v11583_v15 = vpop.f32.mrb[19].mxu0  ;;  %v11585_v46 = vpop.f32.mrb[19].mxu1  ;;  %v590_v58 = vmul.f32 0.2, %v558_v43  ;;  %18177 = vst [vmem:[#allocation36_spill] sm:$0xff] %v11687_v22  ;;  %v547_v1 = vmul.f32 %v11421_v2, %v11390_v55  ;;  %v274_v9 = vmul.f32 %v11436_v10, %v11652_v25  ;;  %v277_v53 = vmul.f32 %v11449_v21, %v11666_v13 }
 0x11e   :  { %825 = vadd.xlane.f32.xlu1 %v801_v54  ;;  %vm575_vm14 = vcmp.gt.f32.partialorder %v559_v23, 0.0  ;;  %v1122_v42 = vmul.f32 0.2, %v1090_v30  ;;  %vm1106_vm0 = vcmp.gt.f32.partialorder %v1090_v30, 0.0  ;;  %v11710_v2 = vsel %vm1101_vm11, %v11588_v35, %v1117_v12 }
 0x11f   :  { %296 = vadd.xlane.f32.xlu0 %v272_v14  ;;  %v1120_v14 = vmul.f32 0.2, %v11593_v39  ;;  %18179 = vst [vmem:[#allocation38_spill] sm:$0xff] %v11710_v2  ;;  %vm1105_vm1 = vcmp.gt.f32.partialorder %v1089_v62, 0.0  ;;  %v806_v25 = vmul.f32 %v11447_v20, %v11666_v13  ;;  %v11727_v35 = vsel %vm1103_vm13, %v11610_v34, %v1119_v17 }
 0x120   :  { %v11619_v54 = vpop.f32.mrb[20].mxu0  ;;  %v11621_v61 = vpop.f32.mrb[20].mxu1  ;;  %18181 = vst [vmem:[#allocation40_spill] sm:$0xff] %v11727_v35  ;;  %v1092_v12 = vadd.f32 %v1076_v18, %v11687_v22  ;;  %v563_v34 = vadd.f32 %v547_v1, %v11687_v22 }
 0x121   :  { %v11637_v16 = vpop.f32.mrb[21].mxu0  ;;  %v11639_v7 = vpop.f32.mrb[21].mxu1 }
 0x122   :  { %18168 = vst [vmem:[#allocation27_spill] sm:$0xff] %v11639_v7  ;;  %302 = vadd.xlane.f32.xlu1 %v275_v50  ;;  %v591_v50 = vmul.f32 0.2, %v559_v23  ;;  %vm1108_vm4 = vcmp.gt.f32.partialorder %v1092_v12, 0.0  ;;  %vm579_vm6 = vcmp.gt.f32.partialorder %v563_v34, 0.0 }
 0x123   :  { %831 = vadd.xlane.f32.xlu0 %v804_v59  ;;  %v11692_v59 = vld [vmem:[%s18008_s3 + $0x50] sm:$0xff] }
 0x124   :  { %v11668_v5 = vpop.f32.mrb[22].mxu0  ;;  %v11670_v45 = vpop.f32.mrb[22].mxu1  ;;  %18178 = vst [vmem:[#allocation37_spill] sm:$0xff] %v11692_v59  ;;  %v11737_v2 = vsel %vm575_vm14, %v559_v23, %v591_v50  ;;  %v11753_v23 = vld [vmem:[%s18008_s3 + $0x68] sm:$0xff] }
 0x125   :  { %18173 = vst [vmem:[#allocation32_spill] sm:$0xff] %v11668_v5  ;;  %18174 = vst [vmem:[#allocation33_spill] sm:$0xff] %v11670_v45  ;;  %v11680_v36 = vpop.f32.mrb[23].mxu0  ;;  %v11682_v60 = vpop.f32.mrb[23].mxu1  ;;  %v561_v45 = vadd.f32 %v545_v31, %v11615_v19 }
 0x126   :  { %18175 = vst [vmem:[#allocation34_spill] sm:$0xff] %v11680_v36  ;;  %18176 = vst [vmem:[#allocation35_spill] sm:$0xff] %v11682_v60  ;;  %829 = vadd.xlane.f32.xlu1 %v803_v8  ;;  %v1121_v60 = vmul.f32 0.2, %v1089_v62  ;;  %v546_v36 = vmul.f32 %v11390_v55, %v11436_v10  ;;  %v560_v8 = vadd.f32 %v544_v52, %v11633_v11 }
 0x127   :  { %300 = vadd.xlane.f32.xlu0 %v274_v9  ;;  %v11722_v10 = vsel %vm1104_vm12, %v11593_v39, %v1120_v14  ;;  %v1091_v52 = vadd.f32 %v1075_v41, %v11692_v59  ;;  %v11734_v9 = vld [vmem:[%s18007_s2 + $0x60] sm:$0xff]  ;;  %18183 = vst [vmem:[#allocation42_spill] sm:$0xff] %v11737_v2  ;;  %v11740_v39 = vsel %vm574_vm15, %v558_v43, %v590_v58  ;;  %v593_v41 = vmul.f32 0.2, %v561_v45 }
 0x128   :  { %v11703_v7 = vpop.f32.mrb[24].mxu0  ;;  %v11705_v5 = vpop.f32.mrb[24].mxu1  ;;  %18180 = vst [vmem:[#allocation39_spill] sm:$0xff] %v11722_v10  ;;  %18182 = vst [vmem:[#allocation41_spill] sm:$0xff] %v11734_v9  ;;  %v11743_v14 = vsel %vm1106_vm0, %v1090_v30, %v1122_v42  ;;  %v11747_v18 = vsel %vm1105_vm1, %v1089_v62, %v1121_v60  ;;  %v562_v17 = vadd.f32 %v546_v36, %v11692_v59  ;;  %v11760_v42 = vld [vmem:[%s18007_s2 + $0x78] sm:$0xff]  ;;  %vm577_vm2 = vcmp.gt.f32.partialorder %v561_v45, 0.0 }
 0x129   :  { %v11715_v31 = vpop.f32.mrb[25].mxu0  ;;  %v11717_v19 = vpop.f32.mrb[25].mxu1  ;;  %18184 = vst [vmem:[#allocation43_spill] sm:$0xff] %v11740_v39  ;;  %18185 = vst [vmem:[#allocation44_spill] sm:$0xff] %v11743_v14  ;;  %v1078_v43 = vmul.f32 %v11447_v20, %v11390_v55  ;;  %vm576_vm3 = vcmp.gt.f32.partialorder %v560_v8, 0.0  ;;  %v805_v30 = vmul.f32 %v11453_v26, %v11734_v9  ;;  %vm1107_vm5 = vcmp.gt.f32.partialorder %v1091_v52, 0.0 }
 0x12a   :  { %306 = vadd.xlane.f32.xlu1 %v277_v53  ;;  %18186 = vst [vmem:[#allocation45_spill] sm:$0xff] %v11747_v18  ;;  %18187 = vst [vmem:[#allocation46_spill] sm:$0xff] %v11760_v42  ;;  %v592_v36 = vmul.f32 0.2, %v560_v8  ;;  %v1124_v20 = vmul.f32 0.2, %v1092_v12  ;;  %v1077_v58 = vmul.f32 %v11390_v55, %v11453_v26  ;;  %v279_v10 = vmul.f32 %v11488_v47, %v11760_v42 }
 0x12b   :  { %835 = vadd.xlane.f32.xlu0 %v806_v25  ;;  %v1123_v1 = vmul.f32 0.2, %v1091_v52  ;;  %v595_v14 = vmul.f32 0.2, %v563_v34  ;;  %v11777_v18 = vld [vmem:[%s18008_s3 + $0x60] sm:$0xff]  ;;  %v276_v25 = vmul.f32 %v11455_v27, %v11734_v9  ;;  %v1094_v35 = vadd.f32 %v1078_v43, %v11753_v23 }
 0x12c   :  { %v11762_v53 = vpop.f32.mrb[26].mxu0  ;;  %v11764_v60 = vpop.f32.mrb[26].mxu1  ;;  %v594_v2 = vmul.f32 0.2, %v562_v17  ;;  %v549_v26 = vmul.f32 %v11449_v21, %v11390_v55  ;;  %vm578_vm7 = vcmp.gt.f32.partialorder %v562_v17, 0.0  ;;  %v1080_v9 = vmul.f32 %v11486_v44, %v11390_v55 }
 0x12d   :  { %v11768_v62 = vpop.f32.mrb[27].mxu0  ;;  %v11770_v50 = vpop.f32.mrb[27].mxu1  ;;  %v808_v59 = vmul.f32 %v11486_v44, %v11760_v42  ;;  %v11801_v21 = vsel %vm577_vm2, %v561_v45, %v593_v41  ;;  %v1079_v44 = vmul.f32 %v11390_v55, %v11502_v56  ;;  %v11822_v45 = vsel %vm1108_vm4, %v1092_v12, %v1124_v20 }
 0x12e   :  { %833 = vadd.xlane.f32.xlu1 %v805_v30  ;;  %v548_v30 = vmul.f32 %v11390_v55, %v11455_v27  ;;  %18190 = vst [vmem:[#allocation49_spill] sm:$0xff] %v11801_v21  ;;  %v11812_v27 = vld [vmem:[%s18008_s3 + $0x78] sm:$0xff]  ;;  %18193 = vst [vmem:[#allocation52_spill] sm:$0xff] %v11822_v45  ;;  %v11828_v41 = vsel %vm579_vm6, %v563_v34, %v595_v14  ;;  %v11838_v21 = vsel %vm578_vm7, %v562_v17, %v594_v2 }
 0x12f   :  { %304 = vadd.xlane.f32.xlu0 %v276_v25  ;;  %v11819_v25 = vld [vmem:[%s18007_s2 + $0x70] sm:$0xff]  ;;  %18195 = vst [vmem:[#allocation54_spill] sm:$0xff] %v11828_v41  ;;  %18197 = vst [vmem:[#allocation56_spill] sm:$0xff] %v11838_v21  ;;  %v1126_v12 = vmul.f32 0.2, %v1094_v35  ;;  %v565_v20 = vadd.f32 %v549_v26, %v11753_v23  ;;  %vm1110_vm8 = vcmp.gt.f32.partialorder %v1094_v35, 0.0  ;;  %v1096_v45 = vadd.f32 %v1080_v9, %v11812_v27 }
 0x130   :  { %v11786_v39 = vpop.f32.mrb[28].mxu0  ;;  %v11788_v13 = vpop.f32.mrb[28].mxu1  ;;  %18192 = vst [vmem:[#allocation51_spill] sm:$0xff] %v11819_v25  ;;  %v1611_v26 = vmul.f32 %v11532_v24, %v11390_v55  ;;  %v1339_v41 = vmul.f32 %v11532_v24, %v11340_v32 }
 0x131   :  { %18188 = vst [vmem:[#allocation47_spill] sm:$0xff] %v11786_v39  ;;  %18189 = vst [vmem:[#allocation48_spill] sm:$0xff] %v11788_v13  ;;  %v11796_v22 = vpop.f32.mrb[29].mxu0  ;;  %v11798_v43 = vpop.f32.mrb[29].mxu1  ;;  %v11804_v13 = vsel %vm576_vm3, %v560_v8, %v592_v36  ;;  %v11807_v39 = vadd.f32 %v1077_v58, %v11777_v18  ;;  %v11825_v8 = vsel %vm1107_vm5, %v1091_v52, %v1123_v1  ;;  %v11833_v36 = vld [vmem:[%s18008_s3 + $0x70] sm:$0xff]  ;;  %vm581_vm10 = vcmp.gt.f32.partialorder %v565_v20, 0.0 }
 0x132   :  { %18191 = vst [vmem:[#allocation50_spill] sm:$0xff] %v11804_v13  ;;  %18194 = vst [vmem:[#allocation53_spill] sm:$0xff] %v11825_v8  ;;  %v551_v58 = vmul.f32 %v11488_v47, %v11390_v55  ;;  %310 = vadd.xlane.f32.xlu1 %v279_v10  ;;  %v550_v52 = vmul.f32 %v11390_v55, %v11504_v57  ;;  %v564_v1 = vadd.f32 %v548_v30, %v11777_v18 }
 0x133   :  { %18196 = vst [vmem:[#allocation55_spill] sm:$0xff] %v11833_v36  ;;  %839 = vadd.xlane.f32.xlu0 %v808_v59  ;;  %v807_v47 = vmul.f32 %v11502_v56, %v11819_v25  ;;  %vm1109_vm9 = vcmp.gt.f32.partialorder %v11807_v39, 0.0  ;;  %v1095_v17 = vadd.f32 %v1079_v44, %v11833_v36  ;;  %v1610_v30 = vmul.f32 %v11390_v55, %v11549_v38 }
 0x134   :  { %v11843_v14 = vpop.f32.mrb[30].mxu0  ;;  %v11845_v34 = vpop.f32.mrb[30].mxu1  ;;  %v1125_v9 = vmul.f32 0.2, %v11807_v39  ;;  %v567_v59 = vadd.f32 %v551_v58, %v11812_v27  ;;  %v278_v56 = vmul.f32 %v11504_v57, %v11819_v25  ;;  %v11868_v8 = vsel %vm1110_vm8, %v1094_v35, %v1126_v12 }
 0x135   :  { %18198 = vst [vmem:[#allocation57_spill] sm:$0xff] %v11845_v34  ;;  %v11851_v2 = vpop.f32.mrb[31].mxu0  ;;  %v11853_v10 = vpop.f32.mrb[31].mxu1  ;;  %18200 = vst [vmem:[#allocation59_spill] sm:$0xff] %v11868_v8  ;;  %v597_v44 = vmul.f32 0.2, %v565_v20  ;;  %v566_v21 = vadd.f32 %v550_v52, %v11833_v36  ;;  %v1338_v58 = vmul.f32 %v11549_v38, %v11345_v33  ;;  %v1627_v24 = vadd.f32 %v1611_v26, %v11415_v63 }
 0x136   :  { %18199 = vst [vmem:[#allocation58_spill] sm:$0xff] %v11853_v10  ;;  %837 = vadd.xlane.f32.xlu1 %v807_v47  ;;  %vm580_vm11 = vcmp.gt.f32.partialorder %v564_v1, 0.0  ;;  %v596_v13 = vmul.f32 0.2, %v564_v1  ;;  %vm1112_vm12 = vcmp.gt.f32.partialorder %v1096_v45, 0.0  ;;  %vm1111_vm13 = vcmp.gt.f32.partialorder %v1095_v17, 0.0 }
 0x137   :  { %308 = vadd.xlane.f32.xlu0 %v278_v56  ;;  %v1128_v25 = vmul.f32 0.2, %v1096_v45  ;;  %v1626_v35 = vadd.f32 %v1610_v30, %v11426_v4  ;;  %v1127_v8 = vmul.f32 0.2, %v1095_v17  ;;  %vm583_vm14 = vcmp.gt.f32.partialorder %v567_v59, 0.0 }
 0x138   :  { %v2156_v56 = vmul.f32 %v11534_v29, %v11390_v55  ;;  %v1884_v38 = vmul.f32 %v11534_v29, %v11340_v32  ;;  %vm582_vm15 = vcmp.gt.f32.partialorder %v566_v21, 0.0  ;;  %v2155_v26 = vmul.f32 %v11390_v55, %v11551_v40 }
 0x139   :  { %v11873_v47 = vpop.f32.mrb[32].mxu0  ;;  %v11875_v57 = vpop.f32.mrb[32].mxu1  ;;  %v1613_v30 = vmul.f32 %v11570_v0, %v11390_v55  ;;  %v598_v42 = vmul.f32 0.2, %v566_v21  ;;  %v2158_v34 = vmul.f32 %v11572_v49, %v11390_v55  ;;  %v11902_v29 = vsel %vm1109_vm9, %v11807_v39, %v1125_v9 }
 0x13a   :  { %18201 = vst [vmem:[#allocation60_spill] sm:$0xff] %v11873_v47  ;;  %18202 = vst [vmem:[#allocation61_spill] sm:$0xff] %v11875_v57  ;;  %v11879_v12 = vpop.f32.mrb[33].mxu0  ;;  %v11881_v52 = vpop.f32.mrb[33].mxu1  ;;  %1356 = vadd.xlane.f32.xlu1 %v1339_v41  ;;  %v599_v57 = vmul.f32 0.2, %v567_v59  ;;  %v1883_v41 = vmul.f32 %v11551_v40, %v11345_v33  ;;  %v2172_v33 = vadd.f32 %v2156_v56, %v11415_v63 }
 0x13b   :  { %18203 = vst [vmem:[#allocation62_spill] sm:$0xff] %v11879_v12  ;;  %18204 = vst [vmem:[#allocation63_spill] sm:$0xff] %v11881_v52  ;;  %v1612_v52 = vmul.f32 %v11390_v55, %v11583_v15  ;;  %1354 = vadd.xlane.f32.xlu0 %v1338_v58  ;;  %v11905_v12 = vsel %vm581_vm10, %v565_v20, %v597_v44  ;;  %v1659_v47 = vmul.f32 0.2, %v1627_v24  ;;  %v1658_v10 = vmul.f32 0.2, %v1626_v35 }
 0x13c   :  { %18206 = vst [vmem:[#allocation65_spill] sm:$0xff] %v11902_v29  ;;  %18207 = vst [vmem:[#allocation66_spill] sm:$0xff] %v11905_v12  ;;  %vm1643_vm0 = vcmp.gt.f32.partialorder %v1627_v24, 0.0  ;;  %vm1642_vm1 = vcmp.gt.f32.partialorder %v1626_v35, 0.0  ;;  %v1343_v40 = vmul.f32 %v11619_v54, %v11376_v51  ;;  %v11917_v39 = vsel %vm580_vm11, %v564_v1, %v596_v13  ;;  %v18223_v29 = vld [vmem:[#allocation34_spill] sm:$0xff] }
 0x13d   :  { %v11897_v32 = vpop.f32.mrb[34].mxu0  ;;  %v11909_v58 = vpop.f32.mrb[34].mxu1  ;;  %18208 = vst [vmem:[#allocation67_spill] sm:$0xff] %v11917_v39  ;;  %v11920_v20 = vsel %vm1112_vm12, %v1096_v45, %v1128_v25  ;;  %v2171_v9 = vadd.f32 %v2155_v26, %v11426_v4  ;;  %v1629_v44 = vadd.f32 %v1613_v30, %v11460_v28  ;;  %v11925_v12 = vsel %vm1111_vm13, %v1095_v17, %v1127_v8  ;;  %v18228_v39 = vld [vmem:[#allocation8_spill] sm:$0xff] }
 0x13e   :  { %18205 = vst [vmem:[#allocation64_spill] sm:$0xff] %v11897_v32  ;;  %v11907_v36 = vpop.f32.mrb[35].mxu0  ;;  %1901 = vadd.xlane.f32.xlu1 %v1884_v38  ;;  %v11914_v32 = vpop.f32.mrb[35].mxu1  ;;  %18209 = vst [vmem:[#allocation68_spill] sm:$0xff] %v11920_v20  ;;  %v11928_v63 = vsel %vm583_vm14, %v567_v59, %v599_v57  ;;  %v1628_v56 = vadd.f32 %v1612_v52, %v11474_v37  ;;  %v2174_v38 = vadd.f32 %v2158_v34, %v11460_v28  ;;  %v18217_v20 = vld [vmem:[#allocation32_spill] sm:$0xff] }
 0x13f   :  { %18210 = vst [vmem:[#allocation69_spill] sm:$0xff] %v11925_v12  ;;  %18211 = vst [vmem:[#allocation70_spill] sm:$0xff] %v11928_v63  ;;  %1899 = vadd.xlane.f32.xlu0 %v1883_v41  ;;  %v11937_v25 = vsel %vm582_vm15, %v566_v21, %v598_v42  ;;  %v11940_v45 = vsel %vm1643_vm0, %v1627_v24, %v1659_v47  ;;  %v11943_v8 = vsel %vm1642_vm1, %v1626_v35, %v1658_v10 }
 0x140   :  { %18212 = vst [vmem:[#allocation71_spill] sm:$0xff] %v11937_v25  ;;  %18213 = vst [vmem:[#allocation72_spill] sm:$0xff] %v11940_v45  ;;  %v1615_v17 = vmul.f32 %v11619_v54, %v11390_v55  ;;  %v2204_v59 = vmul.f32 0.2, %v2172_v33  ;;  %v1614_v28 = vmul.f32 %v11390_v55, %v11637_v16  ;;  %v1341_v34 = vmul.f32 %v11570_v0, %v11354_v3 }
 0x141   :  { %v11932_v13 = vpop.f32.mrb[36].mxu0  ;;  %v11934_v1 = vpop.f32.mrb[36].mxu1  ;;  %18214 = vst [vmem:[#allocation73_spill] sm:$0xff] %v11943_v8  ;;  %v1888_v42 = vmul.f32 %v11621_v61, %v11376_v51  ;;  %vm2188_vm2 = vcmp.gt.f32.partialorder %v2172_v33, 0.0  ;;  %v2203_v10 = vmul.f32 0.2, %v2171_v9  ;;  %v2157_v54 = vmul.f32 %v11390_v55, %v11585_v46 }
 0x142   :  { %1364 = vadd.xlane.f32.xlu1 %v1343_v40  ;;  %v11953_v21 = vpop.f32.mrb[37].mxu0  ;;  %v11955_v47 = vpop.f32.mrb[37].mxu1  ;;  %v1661_v57 = vmul.f32 0.2, %v1629_v44  ;;  %vm2187_vm3 = vcmp.gt.f32.partialorder %v2171_v9, 0.0  ;;  %vm1645_vm4 = vcmp.gt.f32.partialorder %v1629_v44, 0.0  ;;  %v1631_v0 = vadd.f32 %v1615_v17, %v11496_v48 }
 0x143   :  { %v1660_v24 = vmul.f32 0.2, %v1628_v56  ;;  %v2206_v35 = vmul.f32 0.2, %v2174_v38  ;;  %1360 = vadd.xlane.f32.xlu0 %v1341_v34  ;;  %vm1644_vm5 = vcmp.gt.f32.partialorder %v1628_v56, 0.0  ;;  %vm2190_vm6 = vcmp.gt.f32.partialorder %v2174_v38, 0.0 }
 0x144   :  { %v2160_v51 = vmul.f32 %v11621_v61, %v11390_v55  ;;  %v11966_v30 = vsel %vm2188_vm2, %v2172_v33, %v2204_v59  ;;  %v1630_v41 = vadd.f32 %v1614_v28, %v11519_v6  ;;  %v1886_v40 = vmul.f32 %v11572_v49, %v11354_v3  ;;  %v18216_v34 = vld [vmem:[#allocation10_spill] sm:$0xff]  ;;  %v18220_v59 = vld [vmem:[#allocation27_spill] sm:$0xff] }
 0x145   :  { %v11962_v52 = vpop.f32.mrb[38].mxu0  ;;  %v11964_v26 = vpop.f32.mrb[38].mxu1  ;;  %18215 = vst [vmem:[#allocation74_spill] sm:$0xff] %v11966_v30  ;;  %v1345_v63 = vmul.f32 %v18217_v20, %v18216_v34  ;;  %v11978_v61 = vsel %vm2187_vm3, %v2171_v9, %v2203_v10  ;;  %v11981_v25 = vsel %vm1645_vm4, %v1629_v44, %v1661_v57  ;;  %v2173_v33 = vadd.f32 %v2157_v54, %v11474_v37 }
 0x146   :  { %1909 = vadd.xlane.f32.xlu1 %v1888_v42  ;;  %v11973_v12 = vpop.f32.mrb[39].mxu0  ;;  %v11975_v17 = vpop.f32.mrb[39].mxu1  ;;  %18218 = vst [vmem:[#allocation10_spill] sm:$0xff] %v11978_v61  ;;  %18219 = vst [vmem:[#allocation32_spill] sm:$0xff] %v11981_v25  ;;  %v2159_v28 = vmul.f32 %v11390_v55, %v18220_v59  ;;  %v11987_v3 = vsel %vm1644_vm5, %v1628_v56, %v1660_v24  ;;  %v11990_v49 = vsel %vm2190_vm6, %v2174_v38, %v2206_v35  ;;  %v18225_v56 = vld [vmem:[#allocation33_spill] sm:$0xff]  ;;  %v18227_v35 = vld [vmem:[#allocation35_spill] sm:$0xff] }
 0x147   :  { %18221 = vst [vmem:[#allocation27_spill] sm:$0xff] %v11987_v3  ;;  %18222 = vst [vmem:[#allocation75_spill] sm:$0xff] %v11990_v49  ;;  %v1617_v42 = vmul.f32 %v18217_v20, %v11390_v55  ;;  %v1616_v9 = vmul.f32 %v11390_v55, %v18223_v29  ;;  %1905 = vadd.xlane.f32.xlu0 %v1886_v40  ;;  %vm1647_vm7 = vcmp.gt.f32.partialorder %v1631_v0, 0.0  ;;  %v1663_v37 = vmul.f32 0.2, %v1631_v0  ;;  %v18229_v61 = vld [vmem:[#allocation18_spill] sm:$0xff] }
 0x148   :  { %v2176_v57 = vadd.f32 %v2160_v51, %v11496_v48  ;;  %v2162_v54 = vmul.f32 %v18225_v56, %v11390_v55  ;;  %v1662_v20 = vmul.f32 0.2, %v1630_v41  ;;  %v2161_v40 = vmul.f32 %v11390_v55, %v18227_v35 }
 0x149   :  { %v11996_v44 = vpop.f32.mrb[40].mxu0  ;;  %v11998_v10 = vpop.f32.mrb[40].mxu1  ;;  %v1340_v49 = vmul.f32 %v11583_v15, %v18228_v39  ;;  %v1890_v25 = vmul.f32 %v18225_v56, %v18216_v34  ;;  %vm1646_vm8 = vcmp.gt.f32.partialorder %v1630_v41, 0.0  ;;  %v2205_v48 = vmul.f32 0.2, %v2173_v33 }
 0x14a   :  { %18224 = vst [vmem:[#allocation34_spill] sm:$0xff] %v11998_v10  ;;  %v12003_v38 = vpop.f32.mrb[41].mxu0  ;;  %v12005_v24 = vpop.f32.mrb[41].mxu1  ;;  %1368 = vadd.xlane.f32.xlu1 %v1345_v63  ;;  %v2175_v51 = vadd.f32 %v2159_v28, %v11519_v6  ;;  %v1619_v3 = vmul.f32 %v11703_v7, %v11390_v55  ;;  %vm2189_vm9 = vcmp.gt.f32.partialorder %v2173_v33, 0.0  ;;  %v1633_v30 = vadd.f32 %v1617_v42, %v18229_v61  ;;  %v18230_v63 = vld [vmem:[#allocation21_spill] sm:$0xff] }
 0x14b   :  { %18226 = vst [vmem:[#allocation33_spill] sm:$0xff] %v12005_v24  ;;  %v1632_v45 = vadd.f32 %v1616_v9, %v18230_v63  ;;  %1358 = vadd.xlane.f32.xlu0 %v1340_v49  ;;  %v1618_v8 = vmul.f32 %v11390_v55, %v11715_v31  ;;  %v12025_v34 = vsel %vm1647_vm7, %v1631_v0, %v1663_v37  ;;  %vm2192_vm10 = vcmp.gt.f32.partialorder %v2176_v57, 0.0  ;;  %v18235_v9 = vld [vmem:[#allocation12_spill] sm:$0xff] }
 0x14c   :  { %18233 = vst [vmem:[#allocation18_spill] sm:$0xff] %v12025_v34  ;;  %v2208_v6 = vmul.f32 0.2, %v2176_v57  ;;  %v2178_v28 = vadd.f32 %v2162_v54, %v18229_v61  ;;  %v12028_v56 = vsel %vm1646_vm8, %v1630_v41, %v1662_v20  ;;  %v2177_v42 = vadd.f32 %v2161_v40, %v18230_v63  ;;  %v18237_v41 = vld [vmem:[#allocation24_spill] sm:$0xff]  ;;  %v18240_v40 = vld [vmem:[#allocation9_spill] sm:$0xff] }
 0x14d   :  { %v12020_v15 = vpop.f32.mrb[42].mxu0  ;;  %v12022_v24 = vpop.f32.mrb[42].mxu1  ;;  %18234 = vst [vmem:[#allocation21_spill] sm:$0xff] %v12028_v56  ;;  %v1885_v49 = vmul.f32 %v11585_v46, %v18228_v39  ;;  %v12040_v0 = vsel %vm2189_vm9, %v2173_v33, %v2205_v48  ;;  %vm2191_vm11 = vcmp.gt.f32.partialorder %v2175_v51, 0.0  ;;  %v2207_v61 = vmul.f32 0.2, %v2175_v51 }
 0x14e   :  { %18231 = vst [vmem:[#allocation35_spill] sm:$0xff] %v12020_v15  ;;  %18232 = vst [vmem:[#allocation8_spill] sm:$0xff] %v12022_v24  ;;  %1913 = vadd.xlane.f32.xlu1 %v1890_v25  ;;  %v1347_v15 = vmul.f32 %v11703_v7, %v18235_v9  ;;  %v12035_v10 = vpop.f32.mrb[43].mxu0  ;;  %v12037_v24 = vpop.f32.mrb[43].mxu1  ;;  %v1635_v37 = vadd.f32 %v1619_v3, %v18237_v41  ;;  %vm1649_vm12 = vcmp.gt.f32.partialorder %v1633_v30, 0.0  ;;  %vm1648_vm13 = vcmp.gt.f32.partialorder %v1632_v45, 0.0 }
 0x14f   :  { %18236 = vst [vmem:[#allocation12_spill] sm:$0xff] %v12040_v0  ;;  %v1665_v54 = vmul.f32 0.2, %v1633_v30  ;;  %v1664_v25 = vmul.f32 0.2, %v1632_v45  ;;  %v1634_v20 = vadd.f32 %v1618_v8, %v11633_v11  ;;  %1903 = vadd.xlane.f32.xlu0 %v1885_v49  ;;  %vm2194_vm14 = vcmp.gt.f32.partialorder %v2178_v28, 0.0 }
 0x150   :  { %v2210_v7 = vmul.f32 0.2, %v2178_v28  ;;  %v2164_v46 = vmul.f32 %v11705_v5, %v11390_v55  ;;  %vm2193_vm15 = vcmp.gt.f32.partialorder %v2177_v42, 0.0  ;;  %v2163_v3 = vmul.f32 %v11390_v55, %v11717_v19 }
 0x151   :  { %v12046_v39 = vpop.f32.mrb[44].mxu0  ;;  %v12048_v33 = vpop.f32.mrb[44].mxu1  ;;  %v1342_v48 = vmul.f32 %v11637_v16, %v18240_v40  ;;  %v1892_v8 = vmul.f32 %v11705_v5, %v18235_v9  ;;  %v2209_v34 = vmul.f32 0.2, %v2177_v42  ;;  %vm1651_vm0 = vcmp.gt.f32.partialorder %v1635_v37, 0.0 }
 0x152   :  { %18238 = vst [vmem:[#allocation24_spill] sm:$0xff] %v12046_v39  ;;  %18239 = vst [vmem:[#allocation76_spill] sm:$0xff] %v12048_v33  ;;  %1372 = vadd.xlane.f32.xlu1 %v1347_v15  ;;  %v12056_v63 = vpop.f32.mrb[45].mxu0  ;;  %v12058_v49 = vpop.f32.mrb[45].mxu1  ;;  %v1621_v0 = vmul.f32 %v11762_v53, %v11390_v55  ;;  %v1620_v15 = vmul.f32 %v11390_v55, %v11768_v62  ;;  %v12065_v56 = vsel %vm2192_vm10, %v2176_v57, %v2208_v6 }
 0x153   :  { %18241 = vst [vmem:[#allocation9_spill] sm:$0xff] %v12056_v63  ;;  %18242 = vst [vmem:[#allocation77_spill] sm:$0xff] %v12058_v49  ;;  %v12068_v16 = vsel %vm2191_vm11, %v2175_v51, %v2207_v61  ;;  %v1667_v33 = vmul.f32 0.2, %v1635_v37  ;;  %v1666_v5 = vmul.f32 0.2, %v1634_v20  ;;  %1362 = vadd.xlane.f32.xlu0 %v1342_v48  ;;  %v2180_v63 = vadd.f32 %v2164_v46, %v18237_v41 }
 0x154   :  { %18243 = vst [vmem:[#allocation78_spill] sm:$0xff] %v12065_v56  ;;  %18244 = vst [vmem:[#allocation79_spill] sm:$0xff] %v12068_v16  ;;  %vm1650_vm1 = vcmp.gt.f32.partialorder %v1634_v20, 0.0  ;;  %v2166_v39 = vmul.f32 %v11764_v60, %v11390_v55  ;;  %v2165_v57 = vmul.f32 %v11390_v55, %v11770_v50  ;;  %v12084_v61 = vsel %vm1649_vm12, %v1633_v30, %v1665_v54  ;;  %v18250_v41 = vld [vmem:[#allocation20_spill] sm:$0xff] }
 0x155   :  { %v12070_v9 = vpop.f32.mrb[46].mxu0  ;;  %v12072_v49 = vpop.f32.mrb[46].mxu1  ;;  %18249 = vst [vmem:[#allocation84_spill] sm:$0xff] %v12084_v61  ;;  %v2179_v48 = vadd.f32 %v2163_v3, %v11633_v11  ;;  %v1887_v56 = vmul.f32 %v18220_v59, %v18240_v40  ;;  %v1349_v46 = vmul.f32 %v11762_v53, %v18250_v41  ;;  %v12092_v16 = vsel %vm1648_vm13, %v1632_v45, %v1664_v25  ;;  %v18258_v53 = vld [vmem:[#allocation47_spill] sm:$0xff] }
 0x156   :  { %18245 = vst [vmem:[#allocation80_spill] sm:$0xff] %v12070_v9  ;;  %18246 = vst [vmem:[#allocation81_spill] sm:$0xff] %v12072_v49  ;;  %v12079_v6 = vpop.f32.mrb[47].mxu0  ;;  %v12081_v51 = vpop.f32.mrb[47].mxu1  ;;  %1917 = vadd.xlane.f32.xlu1 %v1892_v8  ;;  %v12095_v49 = vsel %vm2194_vm14, %v2178_v28, %v2210_v7  ;;  %v18254_v9 = vld [vmem:[#allocation37_spill] sm:$0xff]  ;;  %v12100_v54 = vsel %vm2193_vm15, %v2177_v42, %v2209_v34  ;;  %v12103_v11 = vsel %vm1651_vm0, %v1635_v37, %v1667_v33  ;;  %v18259_v34 = vld [vmem:[#allocation11_spill] sm:$0xff] }
 0x157   :  { %18247 = vst [vmem:[#allocation82_spill] sm:$0xff] %v12079_v6  ;;  %18248 = vst [vmem:[#allocation83_spill] sm:$0xff] %v12081_v51  ;;  %v18253_v6 = vld [vmem:[#allocation36_spill] sm:$0xff]  ;;  %v1636_v30 = vadd.f32 %v1620_v15, %v18254_v9  ;;  %v12106_v59 = vsel %vm1650_vm1, %v1634_v20, %v1666_v5  ;;  %1907 = vadd.xlane.f32.xlu0 %v1887_v56  ;;  %v1623_v45 = vmul.f32 %v18258_v53, %v11390_v55 }
 0x158   :  { %18251 = vst [vmem:[#allocation20_spill] sm:$0xff] %v12092_v16  ;;  %18252 = vst [vmem:[#allocation85_spill] sm:$0xff] %v12095_v49  ;;  %v1637_v51 = vadd.f32 %v1621_v0, %v18253_v6  ;;  %vm2196_vm2 = vcmp.gt.f32.partialorder %v2180_v63, 0.0  ;;  %v2212_v28 = vmul.f32 0.2, %v2180_v63  ;;  %v2182_v25 = vadd.f32 %v2166_v39, %v18253_v6 }
 0x159   :  { %18255 = vst [vmem:[#allocation36_spill] sm:$0xff] %v12100_v54  ;;  %18256 = vst [vmem:[#allocation37_spill] sm:$0xff] %v12103_v11  ;;  %v2181_v0 = vadd.f32 %v2165_v57, %v18254_v9  ;;  %vm2195_vm3 = vcmp.gt.f32.partialorder %v2179_v48, 0.0  ;;  %v2211_v7 = vmul.f32 0.2, %v2179_v48  ;;  %v1344_v42 = vmul.f32 %v18223_v29, %v18259_v34 }
 0x15a   :  { %18257 = vst [vmem:[#allocation86_spill] sm:$0xff] %v12106_v59  ;;  %1376 = vadd.xlane.f32.xlu1 %v1349_v46  ;;  %v1894_v37 = vmul.f32 %v11764_v60, %v18250_v41  ;;  %v12116_v20 = vpop.f32.mrb[48].mxu0  ;;  %v12118_v56 = vpop.f32.mrb[48].mxu1  ;;  %vm1653_vm4 = vcmp.gt.f32.partialorder %v1637_v51, 0.0  ;;  %v1669_v33 = vmul.f32 0.2, %v1637_v51  ;;  %v1622_v39 = vmul.f32 %v11390_v55, %v11796_v22 }
 0x15b   :  { %vm1652_vm5 = vcmp.gt.f32.partialorder %v1636_v30, 0.0  ;;  %v12122_v3 = vpop.f32.mrb[49].mxu0  ;;  %v12124_v40 = vpop.f32.mrb[49].mxu1  ;;  %v1668_v8 = vmul.f32 0.2, %v1636_v30  ;;  %1366 = vadd.xlane.f32.xlu0 %v1344_v42  ;;  %v1639_v29 = vadd.f32 %v1623_v45, %v11753_v23  ;;  %v18260_v60 = vld [vmem:[#allocation48_spill] sm:$0xff]  ;;  %v2167_v5 = vmul.f32 %v11390_v55, %v11798_v43 }
 0x15c   :  { %v2168_v15 = vmul.f32 %v18260_v60, %v11390_v55  ;;  %v2214_v9 = vmul.f32 0.2, %v2182_v25  ;;  %v2213_v57 = vmul.f32 0.2, %v2181_v0  ;;  %v1889_v6 = vmul.f32 %v18227_v35, %v18259_v34  ;;  %v18262_v45 = vld [vmem:[#allocation31_spill] sm:$0xff] }
 0x15d   :  { %v1625_v41 = vmul.f32 %v11843_v14, %v11390_v55  ;;  %vm2198_vm6 = vcmp.gt.f32.partialorder %v2182_v25, 0.0  ;;  %vm2197_vm7 = vcmp.gt.f32.partialorder %v2181_v0, 0.0  ;;  %v1351_v42 = vmul.f32 %v18258_v53, %v18262_v45 }
 0x15e   :  { %v12135_v46 = vpop.f32.mrb[50].mxu0  ;;  %v12137_v49 = vpop.f32.mrb[50].mxu1  ;;  %1921 = vadd.xlane.f32.xlu1 %v1894_v37  ;;  %v1624_v11 = vmul.f32 %v11390_v55, %v11851_v2  ;;  %v12148_v35 = vsel %vm2196_vm2, %v2180_v63, %v2212_v28  ;;  %v12151_v34 = vsel %vm2195_vm3, %v2179_v48, %v2211_v7  ;;  %v12154_v61 = vsel %vm1653_vm4, %v1637_v51, %v1669_v33  ;;  %v18270_v28 = vld [vmem:[#allocation17_spill] sm:$0xff]  ;;  %v18271_v33 = vld [vmem:[#allocation55_spill] sm:$0xff] }
 0x15f   :  { %18261 = vst [vmem:[#allocation47_spill] sm:$0xff] %v12137_v49  ;;  %v12143_v59 = vpop.f32.mrb[51].mxu0  ;;  %v12145_v54 = vpop.f32.mrb[51].mxu1  ;;  %18264 = vst [vmem:[#allocation48_spill] sm:$0xff] %v12148_v35  ;;  %v1638_v37 = vadd.f32 %v1622_v39, %v11777_v18  ;;  %v12158_v53 = vsel %vm1652_vm5, %v1636_v30, %v1668_v8  ;;  %v1671_v16 = vmul.f32 0.2, %v1639_v29  ;;  %1911 = vadd.xlane.f32.xlu0 %v1889_v6 }
 0x160   :  { %18263 = vst [vmem:[#allocation11_spill] sm:$0xff] %v12145_v54  ;;  %18265 = vst [vmem:[#allocation31_spill] sm:$0xff] %v12151_v34  ;;  %v2184_v49 = vadd.f32 %v2168_v15, %v11753_v23  ;;  %v2183_v54 = vadd.f32 %v2167_v5, %v11777_v18  ;;  %v12163_v63 = vsel %vm2198_vm6, %v2182_v25, %v2214_v9  ;;  %vm1655_vm8 = vcmp.gt.f32.partialorder %v1639_v29, 0.0  ;;  %v18272_v39 = vld [vmem:[#allocation58_spill] sm:$0xff] }
 0x161   :  { %18266 = vst [vmem:[#allocation87_spill] sm:$0xff] %v12154_v61  ;;  %18267 = vst [vmem:[#allocation88_spill] sm:$0xff] %v12158_v53  ;;  %v12166_v48 = vsel %vm2197_vm7, %v2181_v0, %v2213_v57  ;;  %v1641_v51 = vadd.f32 %v1625_v41, %v11812_v27  ;;  %v1346_v30 = vmul.f32 %v11715_v31, %v18270_v28  ;;  %vm1654_vm9 = vcmp.gt.f32.partialorder %v1638_v37, 0.0  ;;  %v18273_v0 = vld [vmem:[#allocation60_spill] sm:$0xff]  ;;  %v18274_v5 = vld [vmem:[#allocation62_spill] sm:$0xff] }
 0x162   :  { %18268 = vst [vmem:[#allocation89_spill] sm:$0xff] %v12163_v63  ;;  %18269 = vst [vmem:[#allocation90_spill] sm:$0xff] %v12166_v48  ;;  %1380 = vadd.xlane.f32.xlu1 %v1351_v42  ;;  %v1896_v7 = vmul.f32 %v18260_v60, %v18262_v45  ;;  %v1640_v23 = vadd.f32 %v1624_v11, %v18271_v33  ;;  %v2169_v8 = vmul.f32 %v11390_v55, %v18272_v39  ;;  %v12185_v11 = vld [vmem:[%s18009_s4] ss:$0 sm:$0xff]  ;;  %v18276_v60 = vld [vmem:[#allocation57_spill] sm:$0xff] }
 0x163   :  { %v1670_v25 = vmul.f32 0.2, %v1638_v37  ;;  %v2701_v15 = vmul.f32 %v18273_v0, %v11390_v55  ;;  %v2700_v9 = vmul.f32 %v11390_v55, %v18274_v5  ;;  %v12180_v57 = vsel %vm1655_vm8, %v1639_v29, %v1671_v16  ;;  %1370 = vadd.xlane.f32.xlu0 %v1346_v30  ;;  %v18277_v16 = vld [vmem:[#allocation46_spill] sm:$0xff] }
 0x164   :  { %18275 = vst [vmem:[#allocation17_spill] sm:$0xff] %v12180_v57  ;;  %v2216_v6 = vmul.f32 0.2, %v2184_v49  ;;  %v2215_v31 = vmul.f32 0.2, %v2183_v54  ;;  %v2170_v41 = vmul.f32 %v12185_v11, %v18276_v60  ;;  %vm2200_vm10 = vcmp.gt.f32.partialorder %v2184_v49, 0.0 }
 0x165   :  { %vm2199_vm11 = vcmp.gt.f32.partialorder %v2183_v54, 0.0  ;;  %v1673_v45 = vmul.f32 0.2, %v1641_v51  ;;  %v1891_v42 = vmul.f32 %v11717_v19, %v18270_v28  ;;  %vm1657_vm12 = vcmp.gt.f32.partialorder %v1641_v51, 0.0  ;;  %v12200_v57 = vld [vmem:[%s18008_s3 + $0x8] sm:$0xff]  ;;  %v10565_v53 = vld [vmem:[%s18007_s2 + $0x10] sm:$0xff] }
 0x166   :  { %1925 = vadd.xlane.f32.xlu1 %v1896_v7  ;;  %v1672_v55 = vmul.f32 0.2, %v1640_v23  ;;  %v1353_v29 = vmul.f32 %v11843_v14, %v18277_v16  ;;  %v2185_v30 = vadd.f32 %v2169_v8, %v18271_v33  ;;  %v12195_v63 = vsel %vm1654_vm9, %v1638_v37, %v1670_v25  ;;  %v18282_v37 = vld [vmem:[#allocation30_spill] sm:$0xff] }
 0x167   :  { %18278 = vst [vmem:[#allocation55_spill] sm:$0xff] %v12195_v63  ;;  %vm1656_vm13 = vcmp.gt.f32.partialorder %v1640_v23, 0.0  ;;  %v2717_v48 = vadd.f32 %v12200_v57, %v2701_v15  ;;  %v2716_v19 = vadd.f32 %v2700_v9, %v11426_v4  ;;  %v12204_v28 = vsel %vm2200_vm10, %v2184_v49, %v2216_v6  ;;  %1915 = vadd.xlane.f32.xlu0 %v1891_v42  ;;  %v18284_v63 = vld [vmem:[#allocation61_spill] sm:$0xff]  ;;  %v18285_v4 = vld [vmem:[#allocation63_spill] sm:$0xff]  ;;  %v18287_v6 = vld [vmem:[#allocation64_spill] sm:$0xff] }
 0x168   :  { %18279 = vst [vmem:[#allocation58_spill] sm:$0xff] %v12204_v28  ;;  %v12206_v7 = vsel %vm2199_vm11, %v2183_v54, %v2215_v31  ;;  %v12209_v14 = vadd.f32 %v2170_v41, %v11812_v27  ;;  %v1348_v33 = vmul.f32 %v11768_v62, %v18282_v37  ;;  %v12213_v8 = vsel %vm1657_vm12, %v1641_v51, %v1673_v45  ;;  %v12229_v41 = vpop.f32.mrb[52].mxu0 }
 0x169   :  { %18280 = vst [vmem:[#allocation60_spill] sm:$0xff] %v12206_v7  ;;  %18283 = vst [vmem:[#allocation57_spill] sm:$0xff] %v12213_v8  ;;  %v1898_v25 = vmul.f32 %v18276_v60, %v18277_v16  ;;  %v3246_v15 = vmul.f32 %v12185_v11, %v18284_v63  ;;  %v3245_v49 = vmul.f32 %v12185_v11, %v18285_v4  ;;  %v2217_v9 = vmul.f32 0.2, %v2185_v30  ;;  %v12235_v45 = vpop.f32.mrb[53].mxu0  ;;  %v12244_v16 = vld [vmem:[%s18007_s2 + $0x8] sm:$0xff] }
 0x16a   :  { %18281 = vst [vmem:[#allocation62_spill] sm:$0xff] %v12209_v14  ;;  %v12221_v54 = vsel %vm1656_vm13, %v1640_v23, %v1672_v55  ;;  %1384 = vadd.xlane.f32.xlu1 %v1353_v29  ;;  %v1893_v27 = vmul.f32 %v11770_v50, %v18282_v37  ;;  %v2703_v62 = vmul.f32 %v12185_v11, %v18287_v6  ;;  %vm2201_vm14 = vcmp.gt.f32.partialorder %v2185_v30, 0.0  ;;  %v12251_v37 = vld [vmem:[%s18008_s3] sm:$0xff] }
 0x16b   :  { %18286 = vst [vmem:[#allocation46_spill] sm:$0xff] %v12221_v54  ;;  %v2749_v51 = vmul.f32 0.2, %v2717_v48  ;;  %v2748_v31 = vmul.f32 0.2, %v2716_v19  ;;  %v2702_v60 = vmul.f32 %v12185_v11, %v11907_v36  ;;  %1374 = vadd.xlane.f32.xlu0 %v1348_v33  ;;  %vm2733_vm15 = vcmp.gt.f32.partialorder %v2717_v48, 0.0 }
 0x16c   :  { %vm2732_vm0 = vcmp.gt.f32.partialorder %v2716_v19, 0.0  ;;  %v3248_v23 = vmul.f32 %v12185_v11, %v11909_v58  ;;  %v3247_v50 = vmul.f32 %v12185_v11, %v11914_v32  ;;  %v12238_v42 = vmul.f32 0.2, %v12209_v14 }
 0x16d   :  { %v3262_v55 = vadd.f32 %v12200_v57, %v3246_v15  ;;  %v2429_v29 = vmul.f32 %v12244_v16, %v18273_v0  ;;  %v3261_v33 = vadd.f32 %v12251_v37, %v3245_v49  ;;  %v12255_v28 = vsel %vm2201_vm14, %v2185_v30, %v2217_v9  ;;  %v18290_v15 = vld [vmem:[#allocation41_spill] sm:$0xff]  ;;  %v10561_v0 = vld [vmem:[%s18008_s3 + $0x18] sm:$0xff]  ;;  %v12280_v9 = vld [vmem:[%s18007_s2] sm:$0xff] }
 0x16e   :  { %18288 = vst [vmem:[#allocation30_spill] sm:$0xff] %v12238_v42  ;;  %18289 = vst [vmem:[#allocation61_spill] sm:$0xff] %v12255_v28  ;;  %1929 = vadd.xlane.f32.xlu1 %v1898_v25  ;;  %v1350_v42 = vmul.f32 %v11796_v22, %v18290_v15  ;;  %v2974_v14 = vmul.f32 %v12244_v16, %v18284_v63  ;;  %v2719_v8 = vadd.f32 %v10561_v0, %v2703_v62  ;;  %v10562_v22 = vld [vmem:[%s18008_s3 + $0x10] sm:$0xff]  ;;  %v12275_v63 = vpop.f32.mrb[52].mxu1  ;;  %v12304_v28 = vpop.f32.mrb[54].mxu0 }
 0x16f   :  { %v12265_v7 = vsel %vm2733_vm15, %v2717_v48, %v2749_v51  ;;  %v12268_v49 = vsel %vm2732_vm0, %v2716_v19, %v2748_v31  ;;  %v1895_v30 = vmul.f32 %v11798_v43, %v18290_v15  ;;  %v2718_v25 = vadd.f32 %v10562_v22, %v2702_v60  ;;  %1919 = vadd.xlane.f32.xlu0 %v1893_v27  ;;  %v18293_v19 = vld [vmem:[#allocation51_spill] sm:$0xff]  ;;  %v12288_v31 = vpop.f32.mrb[53].mxu1  ;;  %v12308_v61 = vpop.f32.mrb[55].mxu0 }
 0x170   :  { %18291 = vst [vmem:[#allocation63_spill] sm:$0xff] %v12265_v7  ;;  %18292 = vst [vmem:[#allocation64_spill] sm:$0xff] %v12268_v49  ;;  %v2428_v48 = vmul.f32 %v12280_v9, %v18274_v5  ;;  %v12286_v62 = vmul.f32 %v11851_v2, %v18293_v19  ;;  %v3264_v43 = vadd.f32 %v10561_v0, %v3248_v23  ;;  %vm3278_vm1 = vcmp.gt.f32.partialorder %v3262_v55, 0.0 }
 0x171   :  { %v3263_v51 = vadd.f32 %v10562_v22, %v3247_v50  ;;  %v3294_v60 = vmul.f32 0.2, %v3262_v55  ;;  %vm3277_vm2 = vcmp.gt.f32.partialorder %v3261_v33, 0.0  ;;  %v2705_v27 = vmul.f32 %v12185_v11, %v11932_v13  ;;  %18294 = vst [vmem:[#allocation41_spill] sm:$0xff] %v12308_v61 }
 0x172   :  { %2446 = vadd.xlane.f32.xlu1 %v2429_v29  ;;  %v3293_v15 = vmul.f32 0.2, %v3261_v33  ;;  %vm2735_vm3 = vcmp.gt.f32.partialorder %v2719_v8, 0.0  ;;  %v12294_v5 = vmul.f32 %v12280_v9, %v18285_v4  ;;  %v12298_v2 = vmul.f32 %v18272_v39, %v18293_v19  ;;  %v10564_v39 = vld [vmem:[%s18008_s3 + $0x28] sm:$0xff] }
 0x173   :  { %v2751_v23 = vmul.f32 0.2, %v2719_v8  ;;  %v2750_v50 = vmul.f32 0.2, %v2718_v25  ;;  %v2704_v0 = vmul.f32 %v12185_v11, %v11953_v21  ;;  %v3250_v22 = vmul.f32 %v12185_v11, %v11934_v1  ;;  %1378 = vadd.xlane.f32.xlu0 %v1350_v42 }
 0x174   :  { %vm2734_vm4 = vcmp.gt.f32.partialorder %v2718_v25, 0.0  ;;  %v3296_v29 = vmul.f32 0.2, %v3264_v43  ;;  %v3295_v54 = vmul.f32 0.2, %v3263_v51  ;;  %v3249_v4 = vmul.f32 %v12185_v11, %v11955_v47 }
 0x175   :  { %vm3280_vm5 = vcmp.gt.f32.partialorder %v3264_v43, 0.0  ;;  %vm3279_vm6 = vcmp.gt.f32.partialorder %v3263_v51, 0.0  ;;  %v2721_v19 = vadd.f32 %v10564_v39, %v2705_v27  ;;  %v2707_v35 = vmul.f32 %v12185_v11, %v11962_v52  ;;  %v10566_v27 = vld [vmem:[%s18007_s2 + $0x18] sm:$0xff] }
 0x176   :  { %v12316_v42 = vsel %vm3278_vm1, %v3262_v55, %v3294_v60  ;;  %v12319_v34 = vsel %vm3277_vm2, %v3261_v33, %v3293_v15  ;;  %2991 = vadd.xlane.f32.xlu1 %v2974_v14  ;;  %v12325_v49 = vmul.f32 %v10565_v53, %v11907_v36  ;;  %v12331_v7 = vmul.f32 %v10566_v27, %v18287_v6  ;;  %v10567_v14 = vld [vmem:[%s18008_s3 + $0x20] sm:$0xff]  ;;  %v12342_v15 = vpop.f32.mrb[54].mxu1 }
 0x177   :  { %18295 = vst [vmem:[#allocation51_spill] sm:$0xff] %v12316_v42  ;;  %18296 = vst [vmem:[#allocation91_spill] sm:$0xff] %v12319_v34  ;;  %v12334_v55 = vsel %vm2735_vm3, %v2719_v8, %v2751_v23  ;;  %v12337_v33 = vmul.f32 %v10565_v53, %v11914_v32  ;;  %v2720_v60 = vadd.f32 %v10567_v14, %v2704_v0  ;;  %1923 = vadd.xlane.f32.xlu0 %v1895_v30  ;;  %v10568_v0 = vld [vmem:[%s18008_s3 + $0x38] sm:$0xff] }
 0x178   :  { %18297 = vst [vmem:[#allocation92_spill] sm:$0xff] %v12334_v55  ;;  %v3266_v36 = vadd.f32 %v10564_v39, %v3250_v22  ;;  %v12345_v34 = vsel %vm2734_vm4, %v2718_v25, %v2750_v50  ;;  %v12348_v6 = vsel %vm3280_vm5, %v3264_v43, %v3296_v29  ;;  %v12351_v8 = vsel %vm3279_vm6, %v3263_v51, %v3295_v54  ;;  %v12361_v25 = vpop.f32.mrb[55].mxu1  ;;  %v10569_v54 = vld [vmem:[%s18007_s2 + $0x20] sm:$0xff] }
 0x179   :  { %18298 = vst [vmem:[#allocation93_spill] sm:$0xff] %v12345_v34  ;;  %18299 = vst [vmem:[#allocation94_spill] sm:$0xff] %v12348_v6  ;;  %v3265_v32 = vadd.f32 %v10567_v14, %v3249_v4  ;;  %v2753_v53 = vmul.f32 0.2, %v2721_v19  ;;  %v12354_v23 = vmul.f32 %v10566_v27, %v11909_v58  ;;  %v2723_v22 = vadd.f32 %v10568_v0, %v2707_v35 }
 0x17a   :  { %18300 = vst [vmem:[#allocation95_spill] sm:$0xff] %v12351_v8  ;;  %v2706_v30 = vmul.f32 %v12185_v11, %v11973_v12  ;;  %18301 = vst [vmem:[#allocation96_spill] sm:$0xff] %v12361_v25  ;;  %2444 = vadd.xlane.f32.xlu1 %v2428_v48  ;;  %vm2737_vm7 = vcmp.gt.f32.partialorder %v2721_v19, 0.0  ;;  %v12367_v43 = vmul.f32 %v10569_v54, %v11953_v21  ;;  %v2752_v51 = vmul.f32 0.2, %v2720_v60  ;;  %v10570_v48 = vld [vmem:[%s18007_s2 + $0x28] sm:$0xff] }
 0x17b   :  { %v3252_v58 = vmul.f32 %v12185_v11, %v11964_v26  ;;  %v3251_v35 = vmul.f32 %v12185_v11, %v11975_v17  ;;  %v3298_v50 = vmul.f32 0.2, %v3266_v36  ;;  %v12377_v29 = vmul.f32 %v10570_v48, %v11932_v13  ;;  %1382 = vadd.xlane.f32.xlu0 %v12286_v62  ;;  %v10571_v13 = vld [vmem:[%s18008_s3 + $0x30] sm:$0xff] }
 0x17c   :  { %v2709_v4 = vmul.f32 %v12185_v11, %v11996_v44  ;;  %vm2736_vm8 = vcmp.gt.f32.partialorder %v2720_v60, 0.0  ;;  %vm3282_vm9 = vcmp.gt.f32.partialorder %v3266_v36, 0.0  ;;  %v3297_v21 = vmul.f32 0.2, %v3265_v32 }
 0x17d   :  { %v2708_v39 = vmul.f32 %v12185_v11, %v12003_v38  ;;  %v12384_v27 = vsel %vm2737_vm7, %v2721_v19, %v2753_v53  ;;  %vm3281_vm10 = vcmp.gt.f32.partialorder %v3265_v32, 0.0  ;;  %v2755_v14 = vmul.f32 0.2, %v2723_v22  ;;  %v10572_v53 = vld [vmem:[%s18008_s3 + $0x48] sm:$0xff] }
 0x17e   :  { %18302 = vst [vmem:[#allocation97_spill] sm:$0xff] %v12384_v27  ;;  %v2722_v6 = vadd.f32 %v10571_v13, %v2706_v30  ;;  %2989 = vadd.xlane.f32.xlu1 %v12294_v5  ;;  %vm2739_vm11 = vcmp.gt.f32.partialorder %v2723_v22, 0.0  ;;  %v12391_v62 = vmul.f32 %v10569_v54, %v11955_v47  ;;  %v3268_v55 = vadd.f32 %v10568_v0, %v3252_v58  ;;  %v10573_v47 = vld [vmem:[%s18008_s3 + $0x40] sm:$0xff]  ;;  %v18306_v0 = vld [vmem:[#allocation34_spill] sm:$0xff]  ;;  %v18307_v54 = vld [vmem:[#allocation33_spill] sm:$0xff] }
 0x17f   :  { %v3267_v8 = vadd.f32 %v10571_v13, %v3251_v35  ;;  %v12393_v34 = vsel %vm2736_vm8, %v2720_v60, %v2752_v51  ;;  %v12395_v42 = vsel %vm3282_vm9, %v3266_v36, %v3298_v50  ;;  %v12398_v19 = vmul.f32 %v10570_v48, %v11934_v1  ;;  %1927 = vadd.xlane.f32.xlu0 %v12298_v2  ;;  %v10574_v2 = vld [vmem:[%s18007_s2 + $0x30] sm:$0xff]  ;;  %v10575_v51 = vld [vmem:[%s18007_s2 + $0x38] sm:$0xff] }
 0x180   :  { %18303 = vst [vmem:[#allocation98_spill] sm:$0xff] %v12393_v34  ;;  %18304 = vst [vmem:[#allocation99_spill] sm:$0xff] %v12395_v42  ;;  %v2725_v30 = vadd.f32 %v10572_v53, %v2709_v4  ;;  %v12404_v5 = vsel %vm3281_vm10, %v3265_v32, %v3297_v21  ;;  %v2724_v60 = vadd.f32 %v10573_v47, %v2708_v39  ;;  %v2754_v35 = vmul.f32 0.2, %v2722_v6  ;;  %v12431_v21 = vpop.f32.mrb[56].mxu0 }
 0x181   :  { %18305 = vst [vmem:[#allocation100_spill] sm:$0xff] %v12404_v5  ;;  %v3254_v36 = vmul.f32 %v12185_v11, %v18306_v0  ;;  %v3253_v1 = vmul.f32 %v12185_v11, %v18307_v54  ;;  %v12413_v58 = vsel %vm2739_vm11, %v2723_v22, %v2755_v14  ;;  %v12419_v32 = vmul.f32 %v10574_v2, %v11973_v12  ;;  %v12433_v39 = vpop.f32.mrb[57].mxu0  ;;  %v18319_v5 = vld [vmem:[#allocation24_spill] sm:$0xff] }
 0x182   :  { %18308 = vst [vmem:[#allocation34_spill] sm:$0xff] %v12413_v58  ;;  %v12425_v50 = vmul.f32 %v10575_v51, %v11962_v52  ;;  %2448 = vadd.xlane.f32.xlu1 %v12325_v49  ;;  %vm2738_vm12 = vcmp.gt.f32.partialorder %v2722_v6, 0.0  ;;  %v3300_v22 = vmul.f32 0.2, %v3268_v55  ;;  %v3299_v48 = vmul.f32 0.2, %v3267_v8 }
 0x183   :  { %v12429_v4 = vmul.f32 %v10574_v2, %v11975_v17  ;;  %18309 = vst [vmem:[#allocation33_spill] sm:$0xff] %v12431_v21  ;;  %vm3284_vm13 = vcmp.gt.f32.partialorder %v3268_v55, 0.0  ;;  %vm3283_vm14 = vcmp.gt.f32.partialorder %v3267_v8, 0.0  ;;  %vm2741_vm15 = vcmp.gt.f32.partialorder %v2725_v30, 0.0  ;;  %18310 = vst [vmem:[#allocation101_spill] sm:$0xff] %v12433_v39  ;;  %2450 = vadd.xlane.f32.xlu0 %v12331_v7  ;;  %v18311_v49 = vld [vmem:[#allocation35_spill] sm:$0xff] }
 0x184   :  { %v2757_v12 = vmul.f32 0.2, %v2725_v30  ;;  %v2756_v52 = vmul.f32 0.2, %v2724_v60  ;;  %v3270_v14 = vadd.f32 %v10572_v53, %v3254_v36  ;;  %v3269_v13 = vadd.f32 %v10573_v47, %v3253_v1 }
 0x185   :  { %v2711_v58 = vmul.f32 %v12185_v11, %v18311_v49  ;;  %v12438_v42 = vsel %vm2738_vm12, %v2722_v6, %v2754_v35  ;;  %vm2740_vm0 = vcmp.gt.f32.partialorder %v2724_v60, 0.0  ;;  %v12441_v17 = vmul.f32 %v10575_v51, %v11964_v26  ;;  %v10576_v6 = vld [vmem:[%s18007_s2 + $0x40] sm:$0xff] }
 0x186   :  { %18312 = vst [vmem:[#allocation35_spill] sm:$0xff] %v12438_v42  ;;  %v2710_v2 = vmul.f32 %v12185_v11, %v12035_v10  ;;  %2993 = vadd.xlane.f32.xlu1 %v12337_v33  ;;  %v12447_v7 = vsel %vm3284_vm13, %v3268_v55, %v3300_v22  ;;  %v12450_v53 = vsel %vm3283_vm14, %v3267_v8, %v3299_v48  ;;  %v18315_v26 = vld [vmem:[#allocation8_spill] sm:$0xff]  ;;  %v3301_v22 = vmul.f32 0.2, %v3269_v13 }
 0x187   :  { %v283_v27 = vpop.xlane.xlu1 %282  ;;  %18313 = vst [vmem:[#allocation102_spill] sm:$0xff] %v12447_v7  ;;  %18314 = vst [vmem:[#allocation103_spill] sm:$0xff] %v12450_v53  ;;  %v12456_v47 = vmul.f32 %v10576_v6, %v12003_v38  ;;  %v3256_v36 = vmul.f32 %v12185_v11, %v18315_v26  ;;  %v12463_v35 = vsel %vm2741_vm15, %v2725_v30, %v2757_v12  ;;  %v10577_v55 = vld [vmem:[%s18007_s2 + $0x48] sm:$0xff]  ;;  %2995 = vadd.xlane.f32.xlu0 %v12354_v23  ;;  %v10578_v30 = vld [vmem:[%s18008_s3 + $0x58] sm:$0xff] }
 0x188   :  { %v12460_v1 = vmax.f32 %v283_v27, 0.0  ;;  %v281_v33 = vpop.xlane.xlu0 %280  ;;  %18316 = vst [vmem:[#allocation8_spill] sm:$0xff] %v12463_v35  ;;  %v12469_v8 = vmul.f32 %v10577_v55, %v11996_v44  ;;  %v3255_v38 = vmul.f32 %v12185_v11, %v12037_v24  ;;  %v12475_v51 = vsel %vm2740_vm0, %v2724_v60, %v2756_v52  ;;  %v10579_v44 = vld [vmem:[%s18008_s3 + $0x50] sm:$0xff] }
 0x189   :  { %18317 = vst [vmem:[#allocation104_spill] sm:$0xff] %v12475_v51  ;;  %v3302_v27 = vmul.f32 0.2, %v3270_v14  ;;  %v2727_v48 = vadd.f32 %v10578_v30, %v2711_v58  ;;  %vm3286_vm1 = vcmp.gt.f32.partialorder %v3270_v14, 0.0  ;;  %vm3285_vm2 = vcmp.gt.f32.partialorder %v3269_v13, 0.0  ;;  %v12493_v51 = vpop.f32.mrb[56].mxu1 }
 0x18a   :  { %9405 = vrsqrt.f32 %v12460_v1  ;;  %v2726_v12 = vadd.f32 %v10579_v44, %v2710_v2  ;;  %v12484_v23 = vmax.f32 %v281_v33, 0.0  ;;  %2452 = vadd.xlane.f32.xlu1 %v12367_v43  ;;  %v12488_v52 = vmul.f32 %v10576_v6, %v18307_v54  ;;  %18318 = vst [vmem:[#allocation105_spill] sm:$0xff] %v12493_v51  ;;  %v18320_v33 = vld [vmem:[#allocation9_spill] sm:$0xff]  ;;  %v12501_v34 = vpop.f32.mrb[57].mxu1 }
 0x18b   :  { %v812_v60 = vpop.xlane.xlu1 %811  ;;  %v12491_v35 = vmul.f32 %v10577_v55, %v18306_v0  ;;  %v3272_v58 = vadd.f32 %v10578_v30, %v3256_v36  ;;  %v3271_v42 = vadd.f32 %v10579_v44, %v3255_v38  ;;  %v2713_v2 = vmul.f32 %v12185_v11, %v18319_v5  ;;  %18321 = vst [vmem:[#allocation24_spill] sm:$0xff] %v12501_v34  ;;  %v18324_v38 = vld [vmem:[#allocation76_spill] sm:$0xff]  ;;  %v18325_v44 = vld [vmem:[#allocation77_spill] sm:$0xff] }
 0x18c   :  { %v12495_v7 = vmax.f32 %v812_v60, 0.0  ;;  %v810_v53 = vpop.xlane.xlu0 %809  ;;  %v2712_v43 = vmul.f32 %v12185_v11, %v18320_v33  ;;  %2454 = vadd.xlane.f32.xlu0 %v12377_v29  ;;  %v12507_v0 = vsel %vm3286_vm1, %v3270_v14, %v3302_v27  ;;  %v12510_v6 = vsel %vm3285_vm2, %v3269_v13, %v3301_v22  ;;  %v10580_v22 = vld [vmem:[%s18008_s3 + $0x68] sm:$0xff] }
 0x18d   :  { %v12504_v54 = vmax.f32 %v810_v53, 0.0  ;;  %18322 = vst [vmem:[#allocation9_spill] sm:$0xff] %v12507_v0  ;;  %18323 = vst [vmem:[#allocation106_spill] sm:$0xff] %v12510_v6  ;;  %vm2743_vm3 = vcmp.gt.f32.partialorder %v2727_v48, 0.0  ;;  %v2759_v36 = vmul.f32 0.2, %v2727_v48  ;;  %v3258_v30 = vmul.f32 %v12185_v11, %v18324_v38 }
 0x18e   :  { %vm2742_vm4 = vcmp.gt.f32.partialorder %v2726_v12, 0.0  ;;  %v2758_v55 = vmul.f32 0.2, %v2726_v12  ;;  %9407 = vrsqrt.f32 %v12484_v23  ;;  %2997 = vadd.xlane.f32.xlu1 %v12391_v62  ;;  %vm3288_vm5 = vcmp.gt.f32.partialorder %v3272_v58, 0.0  ;;  %v10581_v62 = vld [vmem:[%s18007_s2 + $0x50] sm:$0xff]  ;;  %v18326_v34 = vld [vmem:[#allocation80_spill] sm:$0xff] }
 0x18f   :  { %v287_v29 = vpop.xlane.xlu1 %286  ;;  %v3304_v53 = vmul.f32 0.2, %v3272_v58  ;;  %v3257_v14 = vmul.f32 %v12185_v11, %v18325_v44  ;;  %9409 = vrsqrt.f32 %v12495_v7  ;;  %v3303_v27 = vmul.f32 0.2, %v3271_v42 }
 0x190   :  { %v816_v13 = vpop.xlane.xlu0 %815  ;;  %v2729_v60 = vadd.f32 %v10580_v22, %v2713_v2  ;;  %v2728_v0 = vadd.f32 %v2712_v43, %v11777_v18  ;;  %9411 = vrsqrt.f32 %v12504_v54  ;;  %2999 = vadd.xlane.f32.xlu0 %v12398_v19  ;;  %vm3287_vm6 = vcmp.gt.f32.partialorder %v3271_v42, 0.0  ;;  %v10582_v18 = vld [vmem:[%s18007_s2 + $0x58] sm:$0xff] }
 0x191   :  { %v12529_v6 = vmul.f32 %v10581_v62, %v12035_v10  ;;  %v2715_v51 = vmul.f32 %v12185_v11, %v18326_v34  ;;  %v12534_v39 = vsel %vm2743_vm3, %v2727_v48, %v2759_v36  ;;  %v12540_v19 = vmul.f32 %v10582_v18, %v18311_v49  ;;  %v10583_v49 = vld [vmem:[%s18008_s3 + $0x60] sm:$0xff] }
 0x192   :  { %18327 = vst [vmem:[#allocation76_spill] sm:$0xff] %v12534_v39  ;;  %v12543_v2 = vmul.f32 %v10581_v62, %v12037_v24  ;;  %v3274_v43 = vadd.f32 %v10580_v22, %v3258_v30  ;;  %2456 = vadd.xlane.f32.xlu1 %v12419_v32  ;;  %v12547_v10 = vsel %vm2742_vm4, %v2726_v12, %v2758_v55  ;;  %v12558_v39 = vpop.f32.mrb[58].mxu0  ;;  %v12560_v30 = vmax.f32 %v287_v29, 0.0 }
 0x193   :  { %18328 = vst [vmem:[#allocation77_spill] sm:$0xff] %v12547_v10  ;;  %v12550_v25 = vsel %vm3288_vm5, %v3272_v58, %v3304_v53  ;;  %v12553_v48 = vmul.f32 %v10582_v18, %v18315_v26  ;;  %v3273_v36 = vadd.f32 %v10583_v49, %v3257_v14  ;;  %18330 = vst [vmem:[#allocation107_spill] sm:$0xff] %v12558_v39  ;;  %v814_v32 = vpop.xlane.xlu1 %813  ;;  %v2761_v55 = vmul.f32 0.2, %v2729_v60  ;;  %v10584_v26 = vld [vmem:[%s18008_s3 + $0x78] sm:$0xff]  ;;  %v12573_v22 = vpop.f32.mrb[59].mxu0 }
 0x194   :  { %18329 = vst [vmem:[#allocation80_spill] sm:$0xff] %v12550_v25  ;;  %v9406_v24 = vpop.eup %9405  ;;  %v12563_v12 = vsel %vm3287_vm6, %v3271_v42, %v3303_v27  ;;  %v2760_v58 = vmul.f32 0.2, %v2728_v0  ;;  %2458 = vadd.xlane.f32.xlu0 %v12425_v50  ;;  %vm2745_vm7 = vcmp.gt.f32.partialorder %v2729_v60, 0.0  ;;  %vm2744_vm8 = vcmp.gt.f32.partialorder %v2728_v0, 0.0  ;;  %v18333_v14 = vld [vmem:[#allocation82_spill] sm:$0xff]  ;;  %v285_v62 = vpop.xlane.xlu0 %284 }
 0x195   :  { %18331 = vst [vmem:[#allocation108_spill] sm:$0xff] %v12563_v12  ;;  %v12569_v53 = vadd.f32 %v10584_v26, %v2715_v51  ;;  %v2714_v29 = vmul.f32 %v12185_v11, %v18333_v14  ;;  %18334 = vst [vmem:[#allocation82_spill] sm:$0xff] %v12573_v22  ;;  %v336_v42 = vmul.f32 %v9406_v24, %v12460_v1  ;;  %v12576_v27 = vmax.f32 %v816_v13, 0.0  ;;  %v18335_v50 = vld [vmem:[#allocation81_spill] sm:$0xff]  ;;  %v10585_v51 = vld [vmem:[%s18007_s2 + $0x60] sm:$0xff] }
 0x196   :  { %v3306_v18 = vmul.f32 0.2, %v3274_v43  ;;  %v3260_v49 = vmul.f32 %v12185_v11, %v18335_v50  ;;  %3001 = vadd.xlane.f32.xlu1 %v12429_v4  ;;  %vm3290_vm9 = vcmp.gt.f32.partialorder %v3274_v43, 0.0  ;;  %v3305_v25 = vmul.f32 0.2, %v3273_v36  ;;  %v10586_v39 = vld [vmem:[%s18008_s3 + $0x70] sm:$0xff] }
 0x197   :  { %18332 = vst [vmem:[#allocation109_spill] sm:$0xff] %v12569_v53  ;;  %v12585_v12 = vmul.f32 %v10585_v51, %v18320_v33  ;;  %v3791_v13 = vmul.f32 %v12185_v11, %v12116_v20  ;;  %9413 = vrsqrt.f32 %v12560_v30  ;;  %v820_v24 = vpop.xlane.xlu1 %819  ;;  %v12591_v10 = vsel %vm2745_vm7, %v2729_v60, %v2761_v55 }
 0x198   :  { %18336 = vst [vmem:[#allocation81_spill] sm:$0xff] %v12591_v10  ;;  %v12594_v4 = vsel %vm2744_vm8, %v2728_v0, %v2760_v58  ;;  %vm3289_vm10 = vcmp.gt.f32.partialorder %v3273_v36, 0.0  ;;  %v9408_v22 = vpop.eup %9407  ;;  %vm337_vm11 = vcmp.eq.f32.partialorder %v12460_v1, inf  ;;  %3003 = vadd.xlane.f32.xlu0 %v12441_v17  ;;  %v12599_v33 = vmul.f32 0.2, %v12569_v53  ;;  %v12609_v0 = vld [vmem:[%s18007_s2 + $0x68] sm:$0xff] }
 0x199   :  { %18337 = vst [vmem:[#allocation110_spill] sm:$0xff] %v12594_v4  ;;  %v12604_v21 = vadd.f32 %v10586_v39, %v2714_v29  ;;  %v12613_v60 = vmul.f32 %v12609_v0, %v18319_v5  ;;  %v9410_v55 = vpop.eup %9409  ;;  %v338_v17 = vsel %vm337_vm11, %v12460_v1, %v336_v42  ;;  %9415 = vrsqrt.f32 %v12576_v27  ;;  %v12632_v42 = vpop.f32.mrb[58].mxu1 }
 0x19a   :  { %18338 = vst [vmem:[#allocation111_spill] sm:$0xff] %v12599_v33  ;;  %v12618_v58 = vsel %vm3290_vm9, %v3274_v43, %v3306_v18  ;;  %v12620_v33 = vadd.f32 %v10584_v26, %v3260_v49  ;;  %v9412_v29 = vpop.eup %9411  ;;  %v340_v10 = vand.u32 2147483648, %v12460_v1  ;;  %v12623_v53 = vmax.f32 %v814_v32, 0.0  ;;  %2460 = vadd.xlane.f32.xlu1 %v12456_v47  ;;  %18342 = vst [vmem:[#allocation115_spill] sm:$0xff] %v12632_v42  ;;  %v12638_v18 = vpop.xlane.xlu0 %290 }
 0x19b   :  { %18339 = vst [vmem:[#allocation112_spill] sm:$0xff] %v12618_v58  ;;  %v12627_v5 = vsel %vm3289_vm10, %v3273_v36, %v3305_v25  ;;  %v12630_v4 = vadd.f32 %v12200_v57, %v3791_v13  ;;  %vm339_vm12 = vcmp.eq.f32.partialorder %v12460_v1, 0.0  ;;  %v329_v43 = vmul.f32 %v9408_v22, %v12484_v23  ;;  %v12643_v47 = vpop.f32.mrb[59].mxu1  ;;  %v12646_v49 = vpop.xlane.xlu1 %817 }
 0x19c   :  { %18340 = vst [vmem:[#allocation113_spill] sm:$0xff] %v12620_v33  ;;  %18341 = vst [vmem:[#allocation114_spill] sm:$0xff] %v12627_v5  ;;  %v12636_v26 = vmax.f32 %v285_v62, 0.0  ;;  %v12641_v32 = vmul.f32 %v10585_v51, %v18325_v44  ;;  %v341_v25 = vsel %vm339_vm12, %v340_v10, %v338_v17  ;;  %v865_v36 = vmul.f32 %v9410_v55, %v12495_v7  ;;  %v12658_v44 = vld [vmem:[%s18007_s2 + $0x70] sm:$0xff]  ;;  %v18345_v10 = vld [vmem:[#allocation83_spill] sm:$0xff] }
 0x19d   :  { %18343 = vst [vmem:[#allocation116_spill] sm:$0xff] %v12643_v47  ;;  %2462 = vadd.xlane.f32.xlu0 %v12469_v8  ;;  %vm2746_vm13 = vcmp.gt.f32.partialorder %v12604_v21, 0.0  ;;  %v2762_v1 = vmul.f32 0.2, %v12604_v21  ;;  %v858_v22 = vmul.f32 %v9412_v29, %v12504_v54  ;;  %v12653_v62 = vmul.f32 0.2, %v12620_v33 }
 0x19e   :  { %v12662_v51 = vmul.f32 %v12658_v44, %v18345_v10  ;;  %v3259_v8 = vmul.f32 %v12185_v11, %v18345_v10  ;;  %vm330_vm14 = vcmp.eq.f32.partialorder %v12484_v23, inf  ;;  %9417 = vrsqrt.f32 %v12623_v53  ;;  %3005 = vadd.xlane.f32.xlu1 %v12488_v52  ;;  %v12684_v58 = vpop.xlane.xlu0 %288 }
 0x19f   :  { %18344 = vst [vmem:[#allocation117_spill] sm:$0xff] %v12653_v62  ;;  %vm3823_vm15 = vcmp.gt.f32.partialorder %v12630_v4, 0.0  ;;  %v3790_v13 = vmul.f32 %v12185_v11, %v12122_v3  ;;  %v7249_v55 = vmul.f32 -1.442695, %v341_v25  ;;  %v331_v17 = vsel %vm330_vm14, %v12484_v23, %v329_v43 }
 0x1a0   :  { %vm866_vm0 = vcmp.eq.f32.partialorder %v12495_v7, inf  ;;  %9419 = vrsqrt.f32 %v12636_v26  ;;  %v333_v29 = vand.u32 2147483648, %v12484_v23  ;;  %vm859_vm1 = vcmp.eq.f32.partialorder %v12504_v54, inf }
 0x1a1   :  { %v867_v10 = vsel %vm866_vm0, %v12495_v7, %v865_v36  ;;  %v12678_v62 = vmax.f32 %v820_v24, 0.0  ;;  %3007 = vadd.xlane.f32.xlu0 %v12491_v35  ;;  %v9414_v52 = vpop.eup %9413  ;;  %vm332_vm2 = vcmp.eq.f32.partialorder %v12484_v23, 0.0  ;;  %v869_v25 = vand.u32 2147483648, %v12495_v7  ;;  %v12689_v24 = vpop.xlane.xlu1 %294 }
 0x1a2   :  { %v860_v43 = vsel %vm859_vm1, %v12504_v54, %v858_v22  ;;  %v3839_v33 = vmul.f32 0.2, %v12630_v4  ;;  %v334_v5 = vsel %vm332_vm2, %v333_v29, %v331_v17  ;;  %vm868_vm3 = vcmp.eq.f32.partialorder %v12495_v7, 0.0  ;;  %2464 = vadd.xlane.f32.xlu1 %v12529_v6  ;;  %v12699_v17 = vpop.f32.mrb[60].mxu0 }
 0x1a3   :  { %v862_v36 = vand.u32 2147483648, %v12504_v54  ;;  %v3275_v35 = vadd.f32 %v10586_v39, %v3259_v8  ;;  %v9416_v47 = vpop.eup %9415  ;;  %9421 = vpow2.f32 %v7249_v55  ;;  %v870_v23 = vsel %vm868_vm3, %v869_v25, %v867_v10 }
 0x1a4   :  { %vm861_vm4 = vcmp.eq.f32.partialorder %v12504_v54, 0.0  ;;  %v3806_v22 = vadd.f32 %v12251_v37, %v3790_v13  ;;  %v350_v61 = vmul.f32 %v9414_v52, %v12560_v30  ;;  %9423 = vrsqrt.f32 %v12678_v62 }
 0x1a5   :  { %v863_v42 = vsel %vm861_vm4, %v862_v36, %v860_v43  ;;  %2466 = vadd.xlane.f32.xlu0 %v12540_v19  ;;  %v4336_v7 = vmul.f32 %v12185_v11, %v12118_v56  ;;  %v7248_v39 = vmul.f32 -1.442695, %v334_v5  ;;  %v12704_v6 = vsel %vm2746_vm13, %v12604_v21, %v2762_v1  ;;  %v12719_v21 = vpop.f32.mrb[61].mxu0 }
 0x1a6   :  { %18346 = vst [vmem:[#allocation83_spill] sm:$0xff] %v12704_v6  ;;  %v12708_v54 = vmul.f32 %v12280_v9, %v12122_v3  ;;  %v2986_v8 = vmul.f32 %v12609_v0, %v18324_v38  ;;  %v7265_v13 = vmul.f32 -1.442695, %v870_v23  ;;  %v879_v19 = vmul.f32 %v9416_v47, %v12576_v27  ;;  %3009 = vadd.xlane.f32.xlu1 %v12543_v2  ;;  %v12722_v3 = vpop.xlane.xlu0 %823  ;;  %v12728_v47 = vpop.xlane.xlu1 %821 }
 0x1a7   :  { %v12717_v5 = vsel %vm3823_vm15, %v12630_v4, %v3839_v33  ;;  %v3307_v55 = vmul.f32 0.2, %v3275_v35  ;;  %v7264_v1 = vmul.f32 -1.442695, %v863_v42  ;;  %vm351_vm5 = vcmp.eq.f32.partialorder %v12560_v30, inf }
 0x1a8   :  { %18347 = vst [vmem:[#allocation118_spill] sm:$0xff] %v12717_v5  ;;  %vm3291_vm6 = vcmp.gt.f32.partialorder %v3275_v35, 0.0  ;;  %vm3822_vm7 = vcmp.gt.f32.partialorder %v3806_v22, 0.0  ;;  %v9418_v38 = vpop.eup %9417  ;;  %v352_v0 = vsel %vm351_vm5, %v12560_v30, %v350_v61  ;;  %v12726_v2 = vmax.f32 %v12638_v18, 0.0 }
 0x1a9   :  { %3011 = vadd.xlane.f32.xlu0 %v12553_v48  ;;  %v3838_v4 = vmul.f32 0.2, %v3806_v22  ;;  %v12732_v33 = vadd.f32 %v12200_v57, %v4336_v7  ;;  %9425 = vpow2.f32 %v7248_v39  ;;  %v354_v29 = vand.u32 2147483648, %v12560_v30 }
 0x1aa   :  { %v9420_v42 = vpop.eup %9419  ;;  %vm880_vm8 = vcmp.eq.f32.partialorder %v12576_v27, inf  ;;  %v12737_v10 = vmax.f32 %v12646_v49, 0.0  ;;  %9427 = vpow2.f32 %v7265_v13  ;;  %vm353_vm9 = vcmp.eq.f32.partialorder %v12560_v30, 0.0  ;;  %2468 = vadd.xlane.f32.xlu1 %v12585_v12  ;;  %v12754_v12 = vpop.f32.mrb[60].mxu1 }
 0x1ab   :  { %v881_v61 = vsel %vm880_vm8, %v12576_v27, %v879_v19  ;;  %v12743_v48 = vsel %vm3291_vm6, %v3275_v35, %v3307_v55  ;;  %9429 = vpow2.f32 %v7264_v1  ;;  %v355_v57 = vsel %vm353_vm9, %v354_v29, %v352_v0  ;;  %v293_v36 = vpop.xlane.xlu0 %292  ;;  %v12759_v35 = vpop.f32.mrb[61].mxu1  ;;  %v10589_v55 = vld [vmem:[%s18007_s2 + $0x78] sm:$0xff] }
 0x1ac   :  { %18348 = vst [vmem:[#allocation119_spill] sm:$0xff] %v12743_v48  ;;  %v883_v18 = vand.u32 2147483648, %v12576_v27  ;;  %v872_v52 = vmul.f32 %v9418_v38, %v12623_v53  ;;  %vm882_vm10 = vcmp.eq.f32.partialorder %v12576_v27, 0.0  ;;  %v343_v49 = vmul.f32 %v9420_v42, %v12636_v26 }
 0x1ad   :  { %9431 = vrsqrt.f32 %v12726_v2  ;;  %2470 = vadd.xlane.f32.xlu0 %v12613_v60  ;;  %v12752_v30 = vsel %vm3822_vm7, %v3806_v22, %v3838_v4  ;;  %v9422_v25 = vpop.eup %9421  ;;  %vm4368_vm11 = vcmp.gt.f32.partialorder %v12732_v33, 0.0  ;;  %v4384_v27 = vmul.f32 0.2, %v12732_v33  ;;  %v12762_v60 = vpop.xlane.xlu1 %298 }
 0x1ae   :  { %18349 = vst [vmem:[#allocation120_spill] sm:$0xff] %v12752_v30  ;;  %v884_v43 = vsel %vm882_vm10, %v883_v18, %v881_v61  ;;  %9433 = vrsqrt.f32 %v12737_v10  ;;  %v9424_v23 = vpop.eup %9423  ;;  %v7251_v7 = vmul.f32 -1.442695, %v355_v57  ;;  %vm873_vm12 = vcmp.eq.f32.partialorder %v12623_v53, inf  ;;  %3013 = vadd.xlane.f32.xlu1 %v12641_v32 }
 0x1af   :  { %v3519_v22 = vmul.f32 %v12244_v16, %v12116_v20  ;;  %v12769_v39 = vmul.f32 %v12280_v9, %v12124_v40  ;;  %v874_v13 = vsel %vm873_vm12, %v12623_v53, %v872_v52  ;;  %vm344_vm13 = vcmp.eq.f32.partialorder %v12636_v26, inf }
 0x1b0   :  { %v12774_v19 = vmax.f32 %v12684_v58, 0.0  ;;  %v2443_v32 = vmul.f32 %v10589_v55, %v18326_v34  ;;  %v7267_v1 = vmul.f32 -1.442695, %v884_v43  ;;  %v876_v20 = vand.u32 2147483648, %v12623_v53 }
 0x1b1   :  { %v345_v38 = vsel %vm344_vm13, %v12636_v26, %v343_v49  ;;  %3015 = vadd.xlane.f32.xlu0 %v2986_v8  ;;  %v4064_v9 = vmul.f32 %v12244_v16, %v12118_v56  ;;  %v489_v0 = vadd.f32 1.0, %v9422_v25  ;;  %vm875_vm14 = vcmp.eq.f32.partialorder %v12623_v53, 0.0  ;;  %v828_v16 = vpop.xlane.xlu0 %827 }
 0x1b2   :  { %v347_v58 = vand.u32 2147483648, %v12636_v26  ;;  %v893_v4 = vmul.f32 %v9424_v23, %v12678_v62  ;;  %9435 = vpow2.f32 %v7251_v7  ;;  %v877_v42 = vsel %vm875_vm14, %v876_v20, %v874_v13  ;;  %3536 = vadd.xlane.f32.xlu1 %v3519_v22 }
 0x1b3   :  { %vm346_vm15 = vcmp.eq.f32.partialorder %v12636_v26, 0.0  ;;  %v12789_v34 = vmax.f32 %v12689_v24, 0.0  ;;  %v9426_v29 = vpop.eup %9425  ;;  %9437 = vrsqrt.f32 %v12774_v19  ;;  %v12793_v56 = vmax.f32 %v12722_v3, 0.0  ;;  %v826_v24 = vpop.xlane.xlu1 %825 }
 0x1b4   :  { %v348_v8 = vsel %vm346_vm15, %v347_v58, %v345_v38  ;;  %v4335_v53 = vmul.f32 %v12185_v11, %v12124_v40  ;;  %v9428_v61 = vpop.eup %9427  ;;  %9439 = vpow2.f32 %v7267_v1  ;;  %vm894_vm0 = vcmp.eq.f32.partialorder %v12678_v62, inf }
 0x1b5   :  { %v12799_v26 = vmax.f32 %v12728_v47, 0.0  ;;  %v12804_v57 = vsel %vm4368_vm11, %v12732_v33, %v4384_v27  ;;  %2474 = vadd.xlane.f32.xlu0 %v2443_v32  ;;  %v9430_v3 = vpop.eup %9429  ;;  %9441 = vrcp.f32 %v489_v0  ;;  %v7266_v18 = vmul.f32 -1.442695, %v877_v42 }
 0x1b6   :  { %18350 = vst [vmem:[#allocation121_spill] sm:$0xff] %v12804_v57  ;;  %v895_v52 = vsel %vm894_vm0, %v12678_v62, %v893_v4  ;;  %v12809_v40 = vmul.f32 %v12185_v11, %v12135_v46  ;;  %v7250_v25 = vmul.f32 -1.442695, %v348_v8  ;;  %v897_v47 = vand.u32 2147483648, %v12678_v62  ;;  %4081 = vadd.xlane.f32.xlu1 %v4064_v9 }
 0x1b7   :  { %v9432_v49 = vpop.eup %9431  ;;  %9443 = vrsqrt.f32 %v12789_v34  ;;  %v2988_v33 = vmul.f32 %v10589_v55, %v18335_v50  ;;  %vm896_vm1 = vcmp.eq.f32.partialorder %v12678_v62, 0.0  ;;  %v12816_v27 = vmax.f32 %v293_v36, 0.0  ;;  %v297_v36 = vpop.xlane.xlu0 %296 }
 0x1b8   :  { %v9434_v43 = vpop.eup %9433  ;;  %9445 = vrsqrt.f32 %v12793_v56  ;;  %v12819_v23 = vadd.f32 %v12251_v37, %v4335_v53  ;;  %v488_v7 = vadd.f32 1.0, %v9426_v29  ;;  %v898_v22 = vsel %vm896_vm1, %v897_v47, %v895_v52  ;;  %v303_v32 = vpop.xlane.xlu1 %302 }
 0x1b9   :  { %9447 = vrsqrt.f32 %v12799_v26  ;;  %v12824_v13 = vmul.f32 %v12185_v11, %v12143_v59  ;;  %3019 = vadd.xlane.f32.xlu0 %v2988_v33  ;;  %v1018_v50 = vadd.f32 1.0, %v9428_v61  ;;  %v364_v62 = vmul.f32 %v9432_v49, %v12726_v2  ;;  %v12833_v11 = vpop.f32.mrb[62].mxu0  ;;  %v12859_v49 = vpop.f32.mrb[62].mxu1 }
 0x1ba   :  { %9449 = vpow2.f32 %v7266_v18  ;;  %vm365_vm2 = vcmp.eq.f32.partialorder %v12726_v2, inf  ;;  %v1017_v55 = vadd.f32 1.0, %v9430_v3  ;;  %vm367_vm3 = vcmp.eq.f32.partialorder %v12726_v2, 0.0  ;;  %v12840_v58 = vpop.f32.mrb[63].mxu0  ;;  %18351 = vst [vmem:[#allocation122_spill] sm:$0xff] %v12859_v49  ;;  %v12907_v6 = vpop.f32.mrb[63].mxu1 }
 0x1bb   :  { %9451 = vpow2.f32 %v7250_v25  ;;  %v886_v37 = vmul.f32 %v9434_v43, %v12737_v10  ;;  %v7269_v1 = vmul.f32 -1.442695, %v898_v22  ;;  %v368_v20 = vand.u32 2147483648, %v12726_v2  ;;  %v832_v52 = vpop.xlane.xlu0 %831  ;;  %18352 = vst [vmem:[#allocation123_spill] sm:$0xff] %v12907_v6 }
 0x1bc   :  { %vm887_vm4 = vcmp.eq.f32.partialorder %v12737_v10, inf  ;;  %9453 = vrsqrt.f32 %v12816_v27  ;;  %v9436_v38 = vpop.eup %9435  ;;  %vm889_vm5 = vcmp.eq.f32.partialorder %v12737_v10, 0.0  ;;  %v890_v9 = vand.u32 2147483648, %v12737_v10  ;;  %v830_v43 = vpop.xlane.xlu1 %829 }
 0x1bd   :  { %9455 = vrcp.f32 %v488_v7  ;;  %v12838_v0 = vmax.f32 %v12762_v60, 0.0  ;;  %v9438_v4 = vpop.eup %9437  ;;  %v366_v42 = vsel %vm365_vm2, %v12726_v2, %v364_v62  ;;  %vm358_vm6 = vcmp.eq.f32.partialorder %v12774_v19, inf }
 0x1be   :  { %9457 = vrcp.f32 %v1018_v50  ;;  %v12846_v29 = vmax.f32 %v828_v16, 0.0  ;;  %v9440_v8 = vpop.eup %9439  ;;  %v888_v53 = vsel %vm887_vm4, %v12737_v10, %v886_v37  ;;  %vm360_vm7 = vcmp.eq.f32.partialorder %v12774_v19, 0.0 }
 0x1bf   :  { %9459 = vrcp.f32 %v1017_v55  ;;  %v361_v60 = vand.u32 2147483648, %v12774_v19  ;;  %v12853_v61 = vmax.f32 %v826_v24, 0.0  ;;  %v12855_v3 = vpop.eup %9441  ;;  %v491_v18 = vadd.f32 1.0, %v9436_v38 }
 0x1c0   :  { %9461 = vpow2.f32 %v7269_v1  ;;  %vm379_vm8 = vcmp.eq.f32.partialorder %v12789_v34, inf  ;;  %v382_v16 = vand.u32 2147483648, %v12789_v34  ;;  %v369_v47 = vsel %vm367_vm3, %v368_v20, %v366_v42 }
 0x1c1   :  { %v9444_v25 = vpop.eup %9443  ;;  %v357_v33 = vmul.f32 %v9438_v4, %v12774_v19  ;;  %9463 = vrsqrt.f32 %v12838_v0  ;;  %v12865_v24 = vmax.f32 %v297_v36, 0.0  ;;  %v891_v22 = vsel %vm889_vm5, %v890_v9, %v888_v53 }
 0x1c2   :  { %v9446_v7 = vpop.eup %9445  ;;  %vm381_vm9 = vcmp.eq.f32.partialorder %v12789_v34, 0.0  ;;  %vm908_vm10 = vcmp.eq.f32.partialorder %v12793_v56, inf  ;;  %9465 = vrsqrt.f32 %v12846_v29  ;;  %v12872_v50 = vmax.f32 %v303_v32, 0.0 }
 0x1c3   :  { %v9448_v2 = vpop.eup %9447  ;;  %v1020_v62 = vadd.f32 1.0, %v9440_v8  ;;  %vm910_vm11 = vcmp.eq.f32.partialorder %v12793_v56, 0.0  ;;  %v911_v36 = vand.u32 2147483648, %v12793_v56  ;;  %9467 = vrsqrt.f32 %v12853_v61  ;;  %v301_v8 = vpop.xlane.xlu0 %300 }
 0x1c4   :  { %v9450_v55 = vpop.eup %9449  ;;  %9469 = vrcp.f32 %v491_v18  ;;  %v7253_v10 = vmul.f32 -1.442695, %v369_v47  ;;  %v378_v37 = vmul.f32 %v9444_v25, %v12789_v34  ;;  %vm901_vm12 = vcmp.eq.f32.partialorder %v12799_v26, inf  ;;  %v307_v25 = vpop.xlane.xlu1 %306 }
 0x1c5   :  { %v9452_v1 = vpop.eup %9451  ;;  %v7268_v20 = vmul.f32 -1.442695, %v891_v22  ;;  %v359_v32 = vsel %vm358_vm6, %v12774_v19, %v357_v33  ;;  %v907_v38 = vmul.f32 %v9446_v7, %v12793_v56  ;;  %9471 = vrsqrt.f32 %v12865_v24 }
 0x1c6   :  { %v9454_v9 = vpop.eup %9453  ;;  %v900_v4 = vmul.f32 %v9448_v2, %v12799_v26  ;;  %vm903_vm13 = vcmp.eq.f32.partialorder %v12799_v26, 0.0  ;;  %9473 = vrsqrt.f32 %v12872_v50  ;;  %v12887_v42 = vmax.f32 %v832_v52, 0.0 }
 0x1c7   :  { %v12889_v53 = vpop.eup %9455  ;;  %9475 = vrcp.f32 %v1020_v62  ;;  %v904_v18 = vand.u32 2147483648, %v12799_v26  ;;  %vm372_vm14 = vcmp.eq.f32.partialorder %v12816_v27, inf  ;;  %vm374_vm15 = vcmp.eq.f32.partialorder %v12816_v27, 0.0 }
 0x1c8   :  { %v12894_v47 = vpop.eup %9457  ;;  %v1019_v33 = vadd.f32 1.0, %v9450_v55  ;;  %9477 = vpow2.f32 %v7253_v10  ;;  %v362_v7 = vsel %vm360_vm7, %v361_v60, %v359_v32  ;;  %v380_v52 = vsel %vm379_vm8, %v12789_v34, %v378_v37 }
 0x1c9   :  { %v12901_v22 = vpop.eup %9459  ;;  %v490_v2 = vadd.f32 1.0, %v9452_v1  ;;  %9479 = vpow2.f32 %v7268_v20  ;;  %v909_v62 = vsel %vm908_vm10, %v12793_v56, %v907_v38  ;;  %v371_v48 = vmul.f32 %v9454_v9, %v12816_v27  ;;  %v12933_v56 = vpop.xlane.xlu1 %833 }
 0x1ca   :  { %v9462_v55 = vpop.eup %9461  ;;  %v902_v19 = vsel %vm901_vm12, %v12799_v26, %v900_v4  ;;  %v375_v60 = vand.u32 2147483648, %v12816_v27  ;;  %9481 = vrsqrt.f32 %v12887_v42  ;;  %v12914_v10 = vmax.f32 %v830_v43, 0.0  ;;  %v12926_v4 = vpop.xlane.xlu0 %835 }
 0x1cb   :  { %v9464_v37 = vpop.eup %9463  ;;  %v7252_v1 = vmul.f32 -1.442695, %v362_v7  ;;  %v383_v20 = vsel %vm381_vm9, %v382_v16, %v380_v52  ;;  %vm393_vm0 = vcmp.eq.f32.partialorder %v12838_v0, inf  ;;  %v396_v32 = vand.u32 2147483648, %v12838_v0 }
 0x1cc   :  { %v9466_v38 = vpop.eup %9465  ;;  %9483 = vrcp.f32 %v1019_v33  ;;  %v912_v9 = vsel %vm910_vm11, %v911_v36, %v909_v62  ;;  %vm395_vm1 = vcmp.eq.f32.partialorder %v12838_v0, 0.0  ;;  %vm922_vm2 = vcmp.eq.f32.partialorder %v12846_v29, inf }
 0x1cd   :  { %v12924_v43 = vmax.f32 %v301_v8, 0.0  ;;  %v9468_v7 = vpop.eup %9467  ;;  %9485 = vrcp.f32 %v490_v2  ;;  %v1022_v34 = vadd.f32 1.0, %v9462_v55  ;;  %v905_v16 = vsel %vm903_vm13, %v904_v18, %v902_v19 }
 0x1ce   :  { %v373_v33 = vsel %vm372_vm14, %v12816_v27, %v371_v48  ;;  %v12935_v36 = vpop.eup %9469  ;;  %v7255_v52 = vmul.f32 -1.442695, %v383_v20  ;;  %v392_v8 = vmul.f32 %v9464_v37, %v12838_v0  ;;  %vm924_vm3 = vcmp.eq.f32.partialorder %v12846_v29, 0.0 }
 0x1cf   :  { %18353 = vst [vmem:[#allocation124_spill] sm:$0xff] %v12935_v36  ;;  %9487 = vrsqrt.f32 %v12914_v10  ;;  %v9472_v2 = vpop.eup %9471  ;;  %v7271_v62 = vmul.f32 -1.442695, %v912_v9  ;;  %v921_v26 = vmul.f32 %v9466_v38, %v12846_v29  ;;  %v925_v18 = vand.u32 2147483648, %v12846_v29 }
 0x1d0   :  { %9489 = vpow2.f32 %v7252_v1  ;;  %v9474_v55 = vpop.eup %9473  ;;  %v7270_v48 = vmul.f32 -1.442695, %v905_v16  ;;  %v376_v19 = vsel %vm374_vm15, %v375_v60, %v373_v33  ;;  %v914_v20 = vmul.f32 %v9468_v7, %v12853_v61  ;;  %v12957_v7 = vpop.xlane.xlu0 %304 }
 0x1d1   :  { %9491 = vrsqrt.f32 %v12924_v43  ;;  %v12946_v37 = vpop.eup %9475  ;;  %vm915_vm4 = vcmp.eq.f32.partialorder %v12853_v61, inf  ;;  %vm917_vm5 = vcmp.eq.f32.partialorder %v12853_v61, 0.0  ;;  %v12950_v1 = vmax.f32 %v307_v25, 0.0 }
 0x1d2   :  { %18354 = vst [vmem:[#allocation125_spill] sm:$0xff] %v12946_v37  ;;  %9493 = vrcp.f32 %v1022_v34  ;;  %v9478_v38 = vpop.eup %9477  ;;  %v394_v27 = vsel %vm393_vm0, %v12838_v0, %v392_v8  ;;  %v918_v60 = vand.u32 2147483648, %v12853_v61  ;;  %v385_v9 = vmul.f32 %v9472_v2, %v12865_v24 }
 0x1d3   :  { %9495 = vpow2.f32 %v7255_v52  ;;  %v9480_v16 = vpop.eup %9479  ;;  %v7254_v34 = vmul.f32 -1.442695, %v376_v19  ;;  %v923_v25 = vsel %vm922_vm2, %v12846_v29, %v921_v26  ;;  %v406_v33 = vmul.f32 %v9474_v55, %v12872_v50  ;;  %v12963_v52 = vpop.xlane.xlu1 %310 }
 0x1d4   :  { %9497 = vpow2.f32 %v7271_v62  ;;  %v9482_v37 = vpop.eup %9481  ;;  %v916_v8 = vsel %vm915_vm4, %v12853_v61, %v914_v20  ;;  %vm386_vm6 = vcmp.eq.f32.partialorder %v12865_v24, inf  ;;  %vm388_vm7 = vcmp.eq.f32.partialorder %v12865_v24, 0.0 }
 0x1d5   :  { %9499 = vpow2.f32 %v7270_v48  ;;  %v493_v2 = vadd.f32 1.0, %v9478_v38  ;;  %v397_v62 = vsel %vm395_vm1, %v396_v32, %v394_v27  ;;  %v389_v26 = vand.u32 2147483648, %v12865_v24 }
 0x1d6   :  { %9501 = vrsqrt.f32 %v12950_v1  ;;  %v12974_v55 = vpop.eup %9483  ;;  %v1021_v19 = vadd.f32 1.0, %v9480_v16  ;;  %v926_v48 = vsel %vm924_vm3, %v925_v18, %v923_v25  ;;  %v387_v20 = vsel %vm386_vm6, %v12865_v24, %v385_v9  ;;  %v12989_v18 = vpop.xlane.xlu0 %839 }
 0x1d7   :  { %18355 = vst [vmem:[#allocation126_spill] sm:$0xff] %v12974_v55  ;;  %vm407_vm8 = vcmp.eq.f32.partialorder %v12872_v50, inf  ;;  %v12980_v36 = vpop.eup %9485  ;;  %9503 = vpow2.f32 %v7254_v34  ;;  %v919_v0 = vsel %vm917_vm5, %v918_v60, %v916_v8  ;;  %v935_v38 = vmul.f32 %v9482_v37, %v12887_v42  ;;  %v10590_v37 = vld [vmem:[%s18007_s2 + $0x18] sm:$0xff]  ;;  %v12997_v34 = vpop.xlane.xlu1 %837 }
 0x1d8   :  { %18356 = vst [vmem:[#allocation127_spill] sm:$0xff] %v12980_v36  ;;  %v408_v32 = vsel %vm407_vm8, %v12872_v50, %v406_v33  ;;  %v7257_v30 = vmul.f32 -1.442695, %v397_v62  ;;  %vm409_vm9 = vcmp.eq.f32.partialorder %v12872_v50, 0.0  ;;  %v410_v29 = vand.u32 2147483648, %v12872_v50 }
 0x1d9   :  { %v9488_v27 = vpop.eup %9487  ;;  %vm936_vm10 = vcmp.eq.f32.partialorder %v12887_v42, inf  ;;  %9505 = vrcp.f32 %v493_v2  ;;  %v7273_v16 = vmul.f32 -1.442695, %v926_v48  ;;  %v390_v61 = vsel %vm388_vm7, %v389_v26, %v387_v20  ;;  %v18358_v26 = vld [vmem:[#allocation47_spill] sm:$0xff] }
 0x1da   :  { %v9490_v9 = vpop.eup %9489  ;;  %v3521_v60 = vmul.f32 %v10590_v37, %v12135_v46  ;;  %9507 = vrcp.f32 %v1021_v19  ;;  %v7272_v50 = vmul.f32 -1.442695, %v919_v0  ;;  %v411_v33 = vsel %vm409_vm9, %v410_v29, %v408_v32 }
 0x1db   :  { %v9492_v25 = vpop.eup %9491  ;;  %vm938_vm11 = vcmp.eq.f32.partialorder %v12887_v42, 0.0  ;;  %v937_v2 = vsel %vm936_vm10, %v12887_v42, %v935_v38  ;;  %v928_v24 = vmul.f32 %v9488_v27, %v12914_v10  ;;  %v13005_v62 = vmax.f32 %v12926_v4, 0.0 }
 0x1dc   :  { %v13000_v8 = vpop.eup %9493  ;;  %v4066_v48 = vmul.f32 %v10590_v37, %v18358_v26  ;;  %3540 = vadd.xlane.f32.xlu1 %v3521_v60  ;;  %9509 = vpow2.f32 %v7257_v30  ;;  %v7256_v20 = vmul.f32 -1.442695, %v390_v61  ;;  %v939_v19 = vand.u32 2147483648, %v12887_v42  ;;  %v13016_v30 = vpop.xlane.xlu0 %308 }
 0x1dd   :  { %18357 = vst [vmem:[#allocation128_spill] sm:$0xff] %v13000_v8  ;;  %v9496_v46 = vpop.eup %9495  ;;  %v2442_v0 = vmul.f32 %v12658_v44, %v18333_v14  ;;  %v492_v29 = vadd.f32 1.0, %v9490_v9  ;;  %9511 = vpow2.f32 %v7273_v16  ;;  %vm929_vm12 = vcmp.eq.f32.partialorder %v12914_v10, inf  ;;  %v10591_v9 = vld [vmem:[%s18007_s2 + $0x28] sm:$0xff]  ;;  %v13024_v42 = vpop.xlane.xlu1 %1356 }
 0x1de   :  { %v9498_v32 = vpop.eup %9497  ;;  %v399_v38 = vmul.f32 %v9492_v25, %v12924_v43  ;;  %9513 = vpow2.f32 %v7272_v50  ;;  %v7259_v27 = vmul.f32 -1.442695, %v411_v33  ;;  %v940_v37 = vsel %vm938_vm11, %v939_v19, %v937_v2 }
 0x1df   :  { %v9500_v4 = vpop.eup %9499  ;;  %vm931_vm13 = vcmp.eq.f32.partialorder %v12914_v10, 0.0  ;;  %2472 = vadd.xlane.f32.xlu0 %v2442_v0  ;;  %v495_v14 = vadd.f32 1.0, %v9496_v46  ;;  %v930_v44 = vsel %vm929_vm12, %v12914_v10, %v928_v24  ;;  %9515 = vrsqrt.f32 %v13005_v62 }
 0x1e0   :  { %v9502_v61 = vpop.eup %9501  ;;  %4085 = vadd.xlane.f32.xlu1 %v4066_v48  ;;  %v3523_v16 = vmul.f32 %v10591_v9, %v12229_v41  ;;  %v1024_v60 = vadd.f32 1.0, %v9498_v32  ;;  %9517 = vpow2.f32 %v7256_v20  ;;  %v932_v25 = vand.u32 2147483648, %v12914_v10 }
 0x1e1   :  { %vm400_vm14 = vcmp.eq.f32.partialorder %v12924_v43, inf  ;;  %v9504_v50 = vpop.eup %9503  ;;  %9519 = vrcp.f32 %v492_v29  ;;  %v7275_v33 = vmul.f32 -1.442695, %v940_v37  ;;  %v403_v24 = vand.u32 2147483648, %v12924_v43 }
 0x1e2   :  { %v401_v2 = vsel %vm400_vm14, %v12924_v43, %v399_v38  ;;  %v1023_v48 = vadd.f32 1.0, %v9500_v4  ;;  %9521 = vpow2.f32 %v7259_v27  ;;  %v933_v46 = vsel %vm931_vm13, %v932_v25, %v930_v44  ;;  %v10593_v27 = vld [vmem:[%s18008_s3 + $0x18] sm:$0xff] }
 0x1e3   :  { %v420_v19 = vmul.f32 %v9502_v61, %v12950_v1  ;;  %3017 = vadd.xlane.f32.xlu0 %v12662_v51  ;;  %v13034_v20 = vpop.eup %9505  ;;  %9523 = vrcp.f32 %v495_v14  ;;  %vm402_vm15 = vcmp.eq.f32.partialorder %v12924_v43, 0.0  ;;  %v13038_v0 = vmax.f32 %v12933_v56, 0.0  ;;  %v13046_v51 = vld [vmem:[%s18007_s2 + $0x10] sm:$0xff]  ;;  %v13050_v43 = vpop.xlane.xlu0 %1354 }
 0x1e4   :  { %18359 = vst [vmem:[#allocation47_spill] sm:$0xff] %v13034_v20  ;;  %v4068_v32 = vmul.f32 %v10591_v9, %v12275_v63  ;;  %3544 = vadd.xlane.f32.xlu1 %v3523_v16  ;;  %v13041_v29 = vpop.eup %9507  ;;  %9525 = vrcp.f32 %v1024_v60  ;;  %v494_v10 = vadd.f32 1.0, %v9504_v50  ;;  %v404_v38 = vsel %vm402_vm15, %v403_v24, %v401_v2  ;;  %v13057_v61 = vpop.xlane.xlu1 %1901  ;;  %v18366_v20 = vld [vmem:[#allocation11_spill] sm:$0xff] }
 0x1e5   :  { %18360 = vst [vmem:[#allocation129_spill] sm:$0xff] %v13041_v29  ;;  %v3520_v4 = vmul.f32 %v13046_v51, %v12143_v59  ;;  %9527 = vpow2.f32 %v7275_v33  ;;  %v7274_v56 = vmul.f32 -1.442695, %v933_v46  ;;  %v3809_v37 = vadd.f32 %v10593_v27, %v12809_v40  ;;  %v13063_v59 = vld [vmem:[%s18008_s3 + $0x10] sm:$0xff] }
 0x1e6   :  { %vm421_vm0 = vcmp.eq.f32.partialorder %v12950_v1, inf  ;;  %v9510_v14 = vpop.eup %9509  ;;  %9529 = vrcp.f32 %v1023_v48  ;;  %v3808_v9 = vadd.f32 %v13063_v59, %v12824_v13  ;;  %v13068_v16 = vmax.f32 %v12957_v7, 0.0  ;;  %v13080_v13 = vld [vmem:[%s18009_s4] ss:$0 sm:$0xff] }
 0x1e7   :  { %v422_v44 = vsel %vm421_vm0, %v12950_v1, %v420_v19  ;;  %3534 = vadd.xlane.f32.xlu0 %v12708_v54  ;;  %v9512_v40 = vpop.eup %9511  ;;  %v13072_v60 = vmul.f32 0.2, %v12819_v23  ;;  %v7258_v25 = vmul.f32 -1.442695, %v404_v38  ;;  %v424_v50 = vand.u32 2147483648, %v12950_v1 }
 0x1e8   :  { %9531 = vrsqrt.f32 %v13038_v0  ;;  %4089 = vadd.xlane.f32.xlu1 %v4068_v32  ;;  %v9514_v33 = vpop.eup %9513  ;;  %vm423_vm1 = vcmp.eq.f32.partialorder %v12950_v1, 0.0  ;;  %v4338_v54 = vmul.f32 %v13080_v13, %v18358_v26  ;;  %v13085_v7 = vmax.f32 %v12963_v52, 0.0  ;;  %v13096_v52 = vld [vmem:[%s18007_s2 + $0x38] sm:$0xff] }
 0x1e9   :  { %18361 = vst [vmem:[#allocation130_spill] sm:$0xff] %v13072_v60  ;;  %9533 = vrcp.f32 %v494_v10  ;;  %v9516_v2 = vpop.eup %9515  ;;  %v497_v24 = vadd.f32 1.0, %v9510_v14  ;;  %v3841_v48 = vmul.f32 0.2, %v3809_v37  ;;  %v425_v46 = vsel %vm423_vm1, %v424_v50, %v422_v44  ;;  %v13089_v10 = vpop.xlane.xlu0 %1899 }
 0x1ea   :  { %9535 = vpow2.f32 %v7274_v56  ;;  %v9518_v19 = vpop.eup %9517  ;;  %v1026_v32 = vadd.f32 1.0, %v9512_v40  ;;  %vm3825_vm2 = vcmp.gt.f32.partialorder %v3809_v37, 0.0  ;;  %v3840_v1 = vmul.f32 0.2, %v3808_v9  ;;  %v13100_v14 = vpop.xlane.xlu1 %1364 }
 0x1eb   :  { %9537 = vrsqrt.f32 %v13068_v16  ;;  %4079 = vadd.xlane.f32.xlu0 %v12769_v39  ;;  %v13091_v38 = vpop.eup %9519  ;;  %v1025_v26 = vadd.f32 1.0, %v9514_v33  ;;  %vm3824_vm3 = vcmp.gt.f32.partialorder %v3808_v9, 0.0  ;;  %v3525_v56 = vmul.f32 %v13096_v52, %v12304_v28 }
 0x1ec   :  { %18362 = vst [vmem:[#allocation131_spill] sm:$0xff] %v13091_v38  ;;  %9539 = vpow2.f32 %v7258_v25  ;;  %v9522_v44 = vpop.eup %9521  ;;  %v7261_v40 = vmul.f32 -1.442695, %v425_v46  ;;  %v949_v39 = vmul.f32 %v9516_v2, %v13005_v62  ;;  %v13103_v50 = vadd.f32 %v10593_v27, %v4338_v54 }
 0x1ed   :  { %9541 = vrsqrt.f32 %v13085_v7  ;;  %v13106_v25 = vpop.eup %9523  ;;  %v496_v33 = vadd.f32 1.0, %v9518_v19  ;;  %v13109_v8 = vsel %vm3825_vm2, %v3809_v37, %v3841_v48  ;;  %v4337_v29 = vmul.f32 %v13080_v13, %v18366_v20  ;;  %3548 = vadd.xlane.f32.xlu1 %v3525_v56 }
 0x1ee   :  { %18363 = vst [vmem:[#allocation132_spill] sm:$0xff] %v13103_v50  ;;  %18364 = vst [vmem:[#allocation133_spill] sm:$0xff] %v13106_v25  ;;  %9543 = vrcp.f32 %v497_v24  ;;  %v13113_v38 = vpop.eup %9525  ;;  %v13116_v2 = vsel %vm3824_vm3, %v3808_v9, %v3840_v1  ;;  %vm950_vm4 = vcmp.eq.f32.partialorder %v13005_v62, inf  ;;  %vm952_vm5 = vcmp.eq.f32.partialorder %v13005_v62, 0.0 }
 0x1ef   :  { %18365 = vst [vmem:[#allocation134_spill] sm:$0xff] %v13109_v8  ;;  %18367 = vst [vmem:[#allocation11_spill] sm:$0xff] %v13113_v38  ;;  %9545 = vrcp.f32 %v1026_v32  ;;  %3538 = vadd.xlane.f32.xlu0 %v3520_v4  ;;  %v9528_v27 = vpop.eup %9527  ;;  %v499_v54 = vadd.f32 1.0, %v9522_v44  ;;  %v953_v37 = vand.u32 2147483648, %v13005_v62  ;;  %v4065_v24 = vmul.f32 %v13046_v51, %v18366_v20  ;;  %v13132_v4 = vpop.xlane.xlu0 %1360 }
 0x1f0   :  { %18368 = vst [vmem:[#allocation135_spill] sm:$0xff] %v13116_v2  ;;  %9547 = vrcp.f32 %v1025_v26  ;;  %v13123_v48 = vpop.eup %9529  ;;  %v951_v46 = vsel %vm950_vm4, %v13005_v62, %v949_v39  ;;  %v13127_v9 = vmul.f32 0.2, %v13103_v50  ;;  %v13130_v19 = vmax.f32 %v12989_v18, 0.0  ;;  %v13142_v26 = vpop.xlane.xlu1 %1909 }
 0x1f1   :  { %18369 = vst [vmem:[#allocation136_spill] sm:$0xff] %v13123_v48  ;;  %9549 = vpow2.f32 %v7261_v40  ;;  %v13135_v1 = vadd.f32 %v13063_v59, %v4337_v29  ;;  %v3795_v20 = vmul.f32 %v13080_v13, %v12229_v41  ;;  %v13140_v51 = vmax.f32 %v12997_v34, 0.0  ;;  %v10597_v34 = vld [vmem:[%s18007_s2 + $0x20] sm:$0xff] }
 0x1f2   :  { %18370 = vst [vmem:[#allocation137_spill] sm:$0xff] %v13127_v9  ;;  %v9532_v32 = vpop.eup %9531  ;;  %9551 = vrcp.f32 %v496_v33  ;;  %v1028_v44 = vadd.f32 1.0, %v9528_v27  ;;  %vm943_vm6 = vcmp.eq.f32.partialorder %v13038_v0, inf  ;;  %vm945_vm7 = vcmp.eq.f32.partialorder %v13038_v0, 0.0 }
 0x1f3   :  { %18371 = vst [vmem:[#allocation138_spill] sm:$0xff] %v13135_v1  ;;  %v13144_v56 = vpop.eup %9533  ;;  %v946_v18 = vand.u32 2147483648, %v13038_v0  ;;  %4083 = vadd.xlane.f32.xlu0 %v4065_v24  ;;  %9553 = vrcp.f32 %v499_v54  ;;  %v954_v41 = vsel %vm952_vm5, %v953_v37, %v951_v46  ;;  %v3522_v59 = vmul.f32 %v10597_v34, %v12235_v45 }
 0x1f4   :  { %18372 = vst [vmem:[#allocation139_spill] sm:$0xff] %v13144_v56  ;;  %v9536_v29 = vpop.eup %9535  ;;  %v13156_v40 = vmax.f32 %v13016_v30, 0.0  ;;  %v942_v33 = vmul.f32 %v9532_v32, %v13038_v0  ;;  %v3794_v27 = vmul.f32 %v13080_v13, %v12235_v45  ;;  %9555 = vrsqrt.f32 %v13130_v19  ;;  %v10598_v30 = vld [vmem:[%s18008_s3 + $0x28] sm:$0xff]  ;;  %v13175_v32 = vpop.xlane.xlu0 %1905 }
 0x1f5   :  { %v9538_v39 = vpop.eup %9537  ;;  %v13163_v62 = vmax.f32 %v13024_v42, 0.0  ;;  %v13166_v37 = vmul.f32 0.2, %v13135_v1  ;;  %vm414_vm8 = vcmp.eq.f32.partialorder %v13068_v16, inf  ;;  %v3811_v24 = vadd.f32 %v10598_v30, %v3795_v20  ;;  %v13183_v48 = vpop.xlane.xlu1 %1368 }
 0x1f6   :  { %v9540_v54 = vpop.eup %9539  ;;  %9557 = vrsqrt.f32 %v13140_v51  ;;  %v7277_v45 = vmul.f32 -1.442695, %v954_v41  ;;  %vm416_vm9 = vcmp.eq.f32.partialorder %v13068_v16, 0.0  ;;  %v417_v42 = vand.u32 2147483648, %v13068_v16 }
 0x1f7   :  { %18373 = vst [vmem:[#allocation140_spill] sm:$0xff] %v13166_v37  ;;  %v9542_v46 = vpop.eup %9541  ;;  %9559 = vrcp.f32 %v1028_v44  ;;  %3542 = vadd.xlane.f32.xlu0 %v3522_v59  ;;  %v1027_v25 = vadd.f32 1.0, %v9536_v29  ;;  %v413_v9 = vmul.f32 %v9538_v39, %v13068_v16  ;;  %v4070_v20 = vmul.f32 %v13096_v52, %v12342_v15  ;;  %v10599_v59 = vld [vmem:[%s18008_s3 + $0x20] sm:$0xff] }
 0x1f8   :  { %v13177_v38 = vpop.eup %9543  ;;  %9561 = vrsqrt.f32 %v13156_v40  ;;  %v944_v41 = vsel %vm943_vm6, %v13038_v0, %v942_v33  ;;  %v3810_v29 = vadd.f32 %v10599_v59, %v3794_v27  ;;  %v4067_v39 = vmul.f32 %v10597_v34, %v12288_v31 }
 0x1f9   :  { %18374 = vst [vmem:[#allocation141_spill] sm:$0xff] %v13177_v38  ;;  %v13185_v44 = vpop.eup %9545  ;;  %9563 = vrsqrt.f32 %v13163_v62  ;;  %v498_v52 = vadd.f32 1.0, %v9540_v54  ;;  %vm3827_vm10 = vcmp.gt.f32.partialorder %v3811_v24, 0.0  ;;  %v434_v56 = vmul.f32 %v9542_v46, %v13085_v7  ;;  %4093 = vadd.xlane.f32.xlu1 %v4070_v20  ;;  %v18378_v20 = vld [vmem:[#allocation41_spill] sm:$0xff]  ;;  %v13233_v2 = vpop.xlane.xlu1 %1913 }
 0x1fa   :  { %18375 = vst [vmem:[#allocation142_spill] sm:$0xff] %v13185_v44  ;;  %v13195_v38 = vpop.eup %9547  ;;  %vm435_vm11 = vcmp.eq.f32.partialorder %v13085_v7, inf  ;;  %9565 = vpow2.f32 %v7277_v45  ;;  %v3843_v33 = vmul.f32 0.2, %v3811_v24  ;;  %v4340_v8 = vmul.f32 %v13080_v13, %v12275_v63 }
 0x1fb   :  { %18376 = vst [vmem:[#allocation143_spill] sm:$0xff] %v13195_v38  ;;  %v9550_v44 = vpop.eup %9549  ;;  %v13202_v27 = vmax.f32 %v13050_v43, 0.0  ;;  %4087 = vadd.xlane.f32.xlu0 %v4067_v39  ;;  %9567 = vrcp.f32 %v1027_v25  ;;  %v947_v54 = vsel %vm945_vm7, %v946_v18, %v944_v41  ;;  %v415_v46 = vsel %vm414_vm8, %v13068_v16, %v413_v9  ;;  %v10600_v43 = vld [vmem:[%s18007_s2 + $0x30] sm:$0xff]  ;;  %v13217_v25 = vpop.xlane.xlu0 %1358  ;;  %v13229_v38 = vld [vmem:[%s18007_s2 + $0x48] sm:$0xff] }
 0x1fc   :  { %v13204_v34 = vpop.eup %9551  ;;  %vm437_vm12 = vcmp.eq.f32.partialorder %v13085_v7, 0.0  ;;  %v438_v45 = vand.u32 2147483648, %v13085_v7  ;;  %vm3826_vm13 = vcmp.gt.f32.partialorder %v3810_v29, 0.0  ;;  %v3842_v63 = vmul.f32 0.2, %v3810_v29 }
 0x1fd   :  { %18377 = vst [vmem:[#allocation144_spill] sm:$0xff] %v13204_v34  ;;  %v3524_v39 = vmul.f32 %v10600_v43, %v18378_v20  ;;  %v13219_v0 = vpop.eup %9553  ;;  %v501_v18 = vadd.f32 1.0, %v9550_v44  ;;  %v436_v9 = vsel %vm435_vm11, %v13085_v7, %v434_v56  ;;  %v4339_v41 = vmul.f32 %v13080_v13, %v12288_v31  ;;  %v18380_v34 = vld [vmem:[#allocation33_spill] sm:$0xff] }
 0x1fe   :  { %18379 = vst [vmem:[#allocation41_spill] sm:$0xff] %v13219_v0  ;;  %v3527_v50 = vmul.f32 %v13229_v38, %v18380_v34  ;;  %v9556_v37 = vpop.eup %9555  ;;  %v7276_v0 = vmul.f32 -1.442695, %v947_v54  ;;  %v418_v44 = vsel %vm416_vm9, %v417_v42, %v415_v46  ;;  %v13237_v57 = vadd.f32 %v10598_v30, %v4340_v8  ;;  %v18384_v30 = vld [vmem:[#allocation96_spill] sm:$0xff] }
 0x1ff   :  { %9569 = vrsqrt.f32 %v13202_v27  ;;  %3546 = vadd.xlane.f32.xlu0 %v3524_v39  ;;  %v13241_v56 = vsel %vm3827_vm10, %v3811_v24, %v3843_v33  ;;  %vm964_vm14 = vcmp.eq.f32.partialorder %v13130_v19, inf  ;;  %v13245_v55 = vmax.f32 %v13057_v61, 0.0  ;;  %v13264_v39 = vpop.xlane.xlu0 %1903 }
 0x200   :  { %18381 = vst [vmem:[#allocation33_spill] sm:$0xff] %v13237_v57  ;;  %v9558_v31 = vpop.eup %9557  ;;  %9571 = vrcp.f32 %v498_v52  ;;  %18382 = vst [vmem:[#allocation145_spill] sm:$0xff] %v13241_v56  ;;  %3552 = vadd.xlane.f32.xlu1 %v3527_v50  ;;  %v439_v8 = vsel %vm437_vm12, %v438_v45, %v436_v9  ;;  %vm966_vm15 = vcmp.eq.f32.partialorder %v13130_v19, 0.0  ;;  %v967_v16 = vand.u32 2147483648, %v13130_v19  ;;  %v10602_v9 = vld [vmem:[%s18007_s2 + $0x40] sm:$0xff] }
 0x201   :  { %v13247_v54 = vpop.eup %9559  ;;  %v4069_v42 = vmul.f32 %v10600_v43, %v18384_v30  ;;  %9573 = vrcp.f32 %v501_v18  ;;  %v7260_v24 = vmul.f32 -1.442695, %v418_v44  ;;  %v13255_v33 = vsel %vm3826_vm13, %v3810_v29, %v3842_v63 }
 0x202   :  { %18383 = vst [vmem:[#allocation146_spill] sm:$0xff] %v13247_v54  ;;  %v9562_v52 = vpop.eup %9561  ;;  %18385 = vst [vmem:[#allocation96_spill] sm:$0xff] %v13255_v33  ;;  %v963_v61 = vmul.f32 %v9556_v37, %v13130_v19  ;;  %9575 = vpow2.f32 %v7276_v0  ;;  %v13259_v46 = vmul.f32 0.2, %v13237_v57  ;;  %v13261_v7 = vadd.f32 %v10599_v59, %v4339_v41  ;;  %v13270_v37 = vpop.xlane.xlu1 %1372  ;;  %v18388_v41 = vld [vmem:[#allocation101_spill] sm:$0xff]  ;;  %v18394_v57 = vld [vmem:[#allocation24_spill] sm:$0xff] }
 0x203   :  { %v9564_v50 = vpop.eup %9563  ;;  %v956_v45 = vmul.f32 %v9558_v31, %v13140_v51  ;;  %4091 = vadd.xlane.f32.xlu0 %v4069_v42  ;;  %v7263_v43 = vmul.f32 -1.442695, %v439_v8  ;;  %vm957_vm0 = vcmp.eq.f32.partialorder %v13140_v51, inf  ;;  %v3797_v29 = vmul.f32 %v13080_v13, %v12304_v28 }
 0x204   :  { %18386 = vst [vmem:[#allocation147_spill] sm:$0xff] %v13259_v46  ;;  %18387 = vst [vmem:[#allocation148_spill] sm:$0xff] %v13261_v7  ;;  %9577 = vrsqrt.f32 %v13245_v55  ;;  %v9566_v63 = vpop.eup %9565  ;;  %v427_v0 = vmul.f32 %v9562_v52, %v13156_v40  ;;  %v3796_v59 = vmul.f32 %v13080_v13, %v18378_v20  ;;  %v13276_v18 = vmax.f32 %v13100_v14, 0.0 }
 0x205   :  { %v3526_v44 = vmul.f32 %v10602_v9, %v18388_v41  ;;  %v13282_v28 = vpop.eup %9567  ;;  %9579 = vpow2.f32 %v7260_v24  ;;  %v965_v31 = vsel %vm964_vm14, %v13130_v19, %v963_v61  ;;  %vm959_vm1 = vcmp.eq.f32.partialorder %v13140_v51, 0.0  ;;  %v13297_v24 = vld [vmem:[%s18008_s3 + $0x38] sm:$0xff] }
 0x206   :  { %18389 = vst [vmem:[#allocation101_spill] sm:$0xff] %v13282_v28  ;;  %v1410_v20 = vmul.f32 %v9564_v50, %v13163_v62  ;;  %v958_v14 = vsel %vm957_vm0, %v13140_v51, %v956_v45  ;;  %v960_v8 = vand.u32 2147483648, %v13140_v51  ;;  %vm428_vm2 = vcmp.eq.f32.partialorder %v13156_v40, inf  ;;  %v13322_v46 = vpop.xlane.xlu1 %1917 }
 0x207   :  { %9581 = vrsqrt.f32 %v13276_v18  ;;  %3550 = vadd.xlane.f32.xlu0 %v3526_v44  ;;  %v1030_v42 = vadd.f32 1.0, %v9566_v63  ;;  %v431_v52 = vand.u32 2147483648, %v13156_v40  ;;  %v3813_v61 = vadd.f32 %v13297_v24, %v3797_v29  ;;  %v13310_v44 = vpop.xlane.xlu0 %1362 }
 0x208   :  { %9583 = vpow2.f32 %v7263_v43  ;;  %v968_v45 = vsel %vm966_vm15, %v967_v16, %v965_v31  ;;  %v429_v54 = vsel %vm428_vm2, %v13156_v40, %v427_v0  ;;  %vm1411_vm3 = vcmp.eq.f32.partialorder %v13163_v62, inf  ;;  %v13307_v43 = vld [vmem:[%s18008_s3 + $0x30] sm:$0xff] }
 0x209   :  { %v9570_v50 = vpop.eup %9569  ;;  %v3812_v63 = vadd.f32 %v13307_v43, %v3796_v59  ;;  %v961_v29 = vsel %vm959_vm1, %v960_v8, %v958_v14  ;;  %v1412_v19 = vsel %vm1411_vm3, %v13163_v62, %v1410_v20  ;;  %v13318_v16 = vmax.f32 %v13089_v10, 0.0  ;;  %v18391_v0 = vld [vmem:[#allocation105_spill] sm:$0xff] }
 0x20a   :  { %v13312_v28 = vpop.eup %9571  ;;  %v4072_v31 = vmul.f32 %v13229_v38, %v18391_v0  ;;  %v13325_v56 = vmul.f32 0.2, %v13261_v7  ;;  %vm430_vm4 = vcmp.eq.f32.partialorder %v13156_v40, 0.0  ;;  %v1414_v59 = vand.u32 2147483648, %v13163_v62 }
 0x20b   :  { %18390 = vst [vmem:[#allocation149_spill] sm:$0xff] %v13312_v28  ;;  %v13330_v51 = vmax.f32 %v13132_v4, 0.0  ;;  %v13332_v14 = vpop.eup %9573  ;;  %v7279_v20 = vmul.f32 -1.442695, %v968_v45  ;;  %v432_v10 = vsel %vm430_vm4, %v431_v52, %v429_v54  ;;  %vm1413_vm5 = vcmp.eq.f32.partialorder %v13163_v62, 0.0  ;;  %v13340_v62 = vpop.xlane.xlu0 %1907 }
 0x20c   :  { %18392 = vst [vmem:[#allocation105_spill] sm:$0xff] %v13325_v56  ;;  %18393 = vst [vmem:[#allocation150_spill] sm:$0xff] %v13332_v14  ;;  %v1403_v38 = vmul.f32 %v9570_v50, %v13202_v27  ;;  %4097 = vadd.xlane.f32.xlu1 %v4072_v31  ;;  %v9576_v8 = vpop.eup %9575  ;;  %9585 = vrcp.f32 %v1030_v42  ;;  %v7278_v28 = vmul.f32 -1.442695, %v961_v29  ;;  %v1415_v56 = vsel %vm1413_vm5, %v1414_v59, %v1412_v19  ;;  %v13345_v50 = vpop.xlane.xlu1 %1376 }
 0x20d   :  { %v4071_v40 = vmul.f32 %v10602_v9, %v18394_v57  ;;  %vm3829_vm6 = vcmp.gt.f32.partialorder %v3813_v61, 0.0  ;;  %v3845_v7 = vmul.f32 0.2, %v3813_v61  ;;  %v3844_v4 = vmul.f32 0.2, %v3812_v63 }
 0x20e   :  { %v9578_v33 = vpop.eup %9577  ;;  %9587 = vrsqrt.f32 %v13318_v16  ;;  %v7262_v14 = vmul.f32 -1.442695, %v432_v10  ;;  %vm3828_vm7 = vcmp.gt.f32.partialorder %v3812_v63, 0.0  ;;  %vm1404_vm8 = vcmp.eq.f32.partialorder %v13202_v27, inf }
 0x20f   :  { %9589 = vrsqrt.f32 %v13330_v51  ;;  %4095 = vadd.xlane.f32.xlu0 %v4071_v40  ;;  %v9580_v54 = vpop.eup %9579  ;;  %v7281_v42 = vmul.f32 -1.442695, %v1415_v56  ;;  %v1405_v9 = vsel %vm1404_vm8, %v13202_v27, %v1403_v38  ;;  %v4342_v52 = vmul.f32 %v13080_v13, %v12342_v15 }
 0x210   :  { %9591 = vpow2.f32 %v7279_v20  ;;  %v1029_v29 = vadd.f32 1.0, %v9576_v8  ;;  %v1407_v19 = vand.u32 2147483648, %v13202_v27  ;;  %v1955_v31 = vmul.f32 %v9578_v33, %v13245_v55  ;;  %v13376_v40 = vpop.xlane.xlu1 %1921 }
 0x211   :  { %v9582_v45 = vpop.eup %9581  ;;  %9593 = vpow2.f32 %v7278_v28  ;;  %v13350_v10 = vsel %vm3829_vm6, %v3813_v61, %v3845_v7  ;;  %v13353_v56 = vsel %vm3828_vm7, %v3812_v63, %v3844_v4  ;;  %vm1406_vm9 = vcmp.eq.f32.partialorder %v13202_v27, 0.0  ;;  %v13368_v63 = vpop.xlane.xlu0 %1366 }
 0x212   :  { %v9584_v59 = vpop.eup %9583  ;;  %18395 = vst [vmem:[#allocation24_spill] sm:$0xff] %v13350_v10  ;;  %18396 = vst [vmem:[#allocation151_spill] sm:$0xff] %v13353_v56  ;;  %v13357_v15 = vmax.f32 %v13142_v26, 0.0  ;;  %9595 = vpow2.f32 %v7262_v14  ;;  %v1408_v20 = vsel %vm1406_vm9, %v1407_v19, %v1405_v9  ;;  %v4341_v28 = vmul.f32 %v13080_v13, %v18384_v30  ;;  %v10605_v30 = vld [vmem:[%s18007_s2 + $0x58] sm:$0xff]  ;;  %v10606_v9 = vld [vmem:[%s18007_s2 + $0x50] sm:$0xff] }
 0x213   :  { %v1438_v38 = vmul.f32 %v9582_v45, %v13276_v18  ;;  %v500_v33 = vadd.f32 1.0, %v9580_v54  ;;  %9597 = vpow2.f32 %v7281_v42  ;;  %v13363_v7 = vadd.f32 %v13297_v24, %v4342_v52  ;;  %v18398_v24 = vld [vmem:[#allocation107_spill] sm:$0xff]  ;;  %v18400_v52 = vld [vmem:[#allocation82_spill] sm:$0xff] }
 0x214   :  { %vm1956_vm10 = vcmp.eq.f32.partialorder %v13245_v55, inf  ;;  %9599 = vrcp.f32 %v1029_v29  ;;  %v503_v61 = vadd.f32 1.0, %v9584_v59  ;;  %v1959_v26 = vand.u32 2147483648, %v13245_v55 }
 0x215   :  { %18397 = vst [vmem:[#allocation152_spill] sm:$0xff] %v13363_v7  ;;  %v1957_v27 = vsel %vm1956_vm10, %v13245_v55, %v1955_v31  ;;  %v7280_v14 = vmul.f32 -1.442695, %v1408_v20  ;;  %vm1439_vm11 = vcmp.eq.f32.partialorder %v13276_v18, inf  ;;  %9601 = vrsqrt.f32 %v13357_v15 }
 0x216   :  { %v3529_v8 = vmul.f32 %v10605_v30, %v18398_v24  ;;  %v13378_v4 = vpop.eup %9585  ;;  %vm1958_vm12 = vcmp.eq.f32.partialorder %v13245_v55, 0.0  ;;  %v1440_v54 = vsel %vm1439_vm11, %v13276_v18, %v1438_v38  ;;  %v13383_v42 = vmax.f32 %v13183_v48, 0.0 }
 0x217   :  { %18399 = vst [vmem:[#allocation107_spill] sm:$0xff] %v13378_v4  ;;  %v3528_v45 = vmul.f32 %v10606_v9, %v18400_v52  ;;  %9603 = vrcp.f32 %v500_v33  ;;  %v1960_v19 = vsel %vm1958_vm12, %v1959_v26, %v1957_v27  ;;  %v1442_v31 = vand.u32 2147483648, %v13276_v18 }
 0x218   :  { %v9588_v29 = vpop.eup %9587  ;;  %v13391_v59 = vmax.f32 %v13217_v25, 0.0  ;;  %3556 = vadd.xlane.f32.xlu1 %v3529_v8  ;;  %v13394_v20 = vadd.f32 %v13307_v43, %v4341_v28  ;;  %vm1441_vm13 = vcmp.eq.f32.partialorder %v13276_v18, 0.0  ;;  %v13398_v48 = vmax.f32 %v13175_v32, 0.0  ;;  %v13409_v28 = vpop.xlane.xlu0 %1911 }
 0x219   :  { %v9590_v55 = vpop.eup %9589  ;;  %9605 = vrsqrt.f32 %v13383_v42  ;;  %3554 = vadd.xlane.f32.xlu0 %v3528_v45  ;;  %v3799_v33 = vmul.f32 %v13080_v13, %v18380_v34  ;;  %v1443_v25 = vsel %vm1441_vm13, %v1442_v31, %v1440_v54  ;;  %v3798_v27 = vmul.f32 %v13080_v13, %v18388_v41 }
 0x21a   :  { %18401 = vst [vmem:[#allocation82_spill] sm:$0xff] %v13394_v20  ;;  %v9592_v38 = vpop.eup %9591  ;;  %9607 = vpow2.f32 %v7280_v14  ;;  %v13406_v43 = vmul.f32 0.2, %v13363_v7  ;;  %v7297_v18 = vmul.f32 -1.442695, %v1960_v19  ;;  %v1948_v32 = vmul.f32 %v9588_v29, %v13318_v16  ;;  %v13415_v14 = vpop.xlane.xlu1 %1380  ;;  %v10607_v19 = vld [vmem:[%s18008_s3 + $0x48] sm:$0xff] }
 0x21b   :  { %v9594_v26 = vpop.eup %9593  ;;  %9609 = vrcp.f32 %v503_v61  ;;  %vm1949_vm14 = vcmp.eq.f32.partialorder %v13318_v16, inf  ;;  %vm1951_vm15 = vcmp.eq.f32.partialorder %v13318_v16, 0.0  ;;  %v1424_v34 = vmul.f32 %v9590_v55, %v13330_v51  ;;  %v10608_v55 = vld [vmem:[%s18008_s3 + $0x40] sm:$0xff] }
 0x21c   :  { %18402 = vst [vmem:[#allocation153_spill] sm:$0xff] %v13406_v43  ;;  %9611 = vrsqrt.f32 %v13391_v59  ;;  %v9596_v41 = vpop.eup %9595  ;;  %v1032_v61 = vadd.f32 1.0, %v9592_v38  ;;  %v1952_v8 = vand.u32 2147483648, %v13318_v16  ;;  %v7285_v54 = vmul.f32 -1.442695, %v1443_v25  ;;  %v18403_v38 = vld [vmem:[#allocation115_spill] sm:$0xff] }
 0x21d   :  { %9613 = vrsqrt.f32 %v13398_v48  ;;  %v9598_v45 = vpop.eup %9597  ;;  %v1031_v29 = vadd.f32 1.0, %v9594_v26  ;;  %v13422_v31 = vadd.f32 %v10607_v19, %v3799_v33  ;;  %v13427_v4 = vadd.f32 %v10608_v55, %v3798_v27  ;;  %v18405_v26 = vld [vmem:[#allocation116_spill] sm:$0xff] }
 0x21e   :  { %v4074_v43 = vmul.f32 %v10605_v30, %v18403_v38  ;;  %v13430_v10 = vpop.eup %9599  ;;  %9615 = vpow2.f32 %v7297_v18  ;;  %v1950_v25 = vsel %vm1949_vm14, %v13318_v16, %v1948_v32  ;;  %vm1425_vm0 = vcmp.eq.f32.partialorder %v13330_v51, inf  ;;  %v13446_v32 = vld [vmem:[%s18007_s2 + $0x68] sm:$0xff] }
 0x21f   :  { %18404 = vst [vmem:[#allocation115_spill] sm:$0xff] %v13430_v10  ;;  %v4073_v33 = vmul.f32 %v10606_v9, %v18405_v26  ;;  %v9602_v7 = vpop.eup %9601  ;;  %v502_v56 = vadd.f32 1.0, %v9596_v41  ;;  %v1426_v1 = vsel %vm1425_vm0, %v13330_v51, %v1424_v34  ;;  %v1428_v27 = vand.u32 2147483648, %v13330_v51  ;;  %v13450_v34 = vpop.xlane.xlu0 %1370 }
 0x220   :  { %v4344_v30 = vmul.f32 %v13080_v13, %v18391_v0  ;;  %4101 = vadd.xlane.f32.xlu1 %v4074_v43  ;;  %v1563_v10 = vadd.f32 1.0, %v9598_v45  ;;  %9617 = vpow2.f32 %v7285_v54  ;;  %v4343_v18 = vmul.f32 %v13080_v13, %v18394_v57  ;;  %v13460_v43 = vpop.xlane.xlu1 %1925 }
 0x221   :  { %v3531_v9 = vmul.f32 %v13446_v32, %v12699_v17  ;;  %4099 = vadd.xlane.f32.xlu0 %v4073_v33  ;;  %v13452_v41 = vpop.eup %9603  ;;  %9619 = vrcp.f32 %v1032_v61  ;;  %v1953_v0 = vsel %vm1951_vm15, %v1952_v8, %v1950_v25  ;;  %vm1427_vm1 = vcmp.eq.f32.partialorder %v13330_v51, 0.0 }
 0x222   :  { %18406 = vst [vmem:[#allocation116_spill] sm:$0xff] %v13452_v41  ;;  %v13458_v57 = vmax.f32 %v13233_v2, 0.0  ;;  %9621 = vrcp.f32 %v1031_v29  ;;  %v13463_v45 = vmul.f32 0.2, %v13394_v20  ;;  %v1429_v33 = vsel %vm1427_vm1, %v1428_v27, %v1426_v1  ;;  %v10612_v20 = vld [vmem:[%s18007_s2 + $0x60] sm:$0xff] }
 0x223   :  { %v9606_v54 = vpop.eup %9605  ;;  %v1983_v36 = vmul.f32 %v9602_v7, %v13357_v15  ;;  %9623 = vrcp.f32 %v502_v56  ;;  %v13467_v16 = vmul.f32 0.2, %v13422_v31  ;;  %v13470_v51 = vmul.f32 0.2, %v13427_v4  ;;  %v13487_v27 = vpop.xlane.xlu0 %1915 }
 0x224   :  { %18407 = vst [vmem:[#allocation154_spill] sm:$0xff] %v13463_v45  ;;  %v9608_v41 = vpop.eup %9607  ;;  %v13472_v2 = vadd.f32 %v10607_v19, %v4344_v30  ;;  %3560 = vadd.xlane.f32.xlu1 %v3531_v9  ;;  %9625 = vrcp.f32 %v1563_v10  ;;  %v7296_v8 = vmul.f32 -1.442695, %v1953_v0  ;;  %v13476_v29 = vadd.f32 %v10608_v55, %v4343_v18 }
 0x225   :  { %v13474_v61 = vpop.eup %9609  ;;  %vm1984_vm2 = vcmp.eq.f32.partialorder %v13357_v15, inf  ;;  %v7283_v7 = vmul.f32 -1.442695, %v1429_v33  ;;  %vm1986_vm3 = vcmp.eq.f32.partialorder %v13357_v15, 0.0  ;;  %v1452_v56 = vmul.f32 %v9606_v54, %v13383_v42 }
 0x226   :  { %18408 = vst [vmem:[#allocation155_spill] sm:$0xff] %v13472_v2  ;;  %18409 = vst [vmem:[#allocation156_spill] sm:$0xff] %v13474_v61  ;;  %v9612_v1 = vpop.eup %9611  ;;  %9627 = vrsqrt.f32 %v13458_v57  ;;  %v1562_v19 = vadd.f32 1.0, %v9608_v41  ;;  %vm3831_vm4 = vcmp.gt.f32.partialorder %v13422_v31, 0.0  ;;  %vm3830_vm5 = vcmp.gt.f32.partialorder %v13427_v4, 0.0  ;;  %v13497_v41 = vpop.xlane.xlu1 %1384 }
 0x227   :  { %18410 = vst [vmem:[#allocation157_spill] sm:$0xff] %v13476_v29  ;;  %v9614_v25 = vpop.eup %9613  ;;  %v1985_v10 = vsel %vm1984_vm2, %v13357_v15, %v1983_v36  ;;  %v1987_v55 = vand.u32 2147483648, %v13357_v15  ;;  %vm1970_vm6 = vcmp.eq.f32.partialorder %v13398_v48, inf  ;;  %vm1972_vm7 = vcmp.eq.f32.partialorder %v13398_v48, 0.0 }
 0x228   :  { %v1973_v30 = vand.u32 2147483648, %v13398_v48  ;;  %v13492_v18 = vmax.f32 %v13264_v39, 0.0  ;;  %v13495_v9 = vmax.f32 %v13270_v37, 0.0  ;;  %v9616_v0 = vpop.eup %9615  ;;  %9629 = vpow2.f32 %v7296_v8 }
 0x229   :  { %v3801_v36 = vmul.f32 %v13080_v13, %v18398_v24  ;;  %vm1453_vm8 = vcmp.eq.f32.partialorder %v13383_v42, inf  ;;  %v1417_v54 = vmul.f32 %v9612_v1, %v13391_v59  ;;  %9631 = vpow2.f32 %v7283_v7 }
 0x22a   :  { %v1988_v33 = vsel %vm1986_vm3, %v1987_v55, %v1985_v10  ;;  %v1969_v39 = vmul.f32 %v9614_v25, %v13398_v48  ;;  %v1454_v37 = vsel %vm1453_vm8, %v13383_v42, %v1452_v56  ;;  %v9618_v61 = vpop.eup %9617  ;;  %vm1455_vm9 = vcmp.eq.f32.partialorder %v13383_v42, 0.0  ;;  %v13524_v10 = vpop.xlane.xlu0 %1374 }
 0x22b   :  { %v1456_v8 = vand.u32 2147483648, %v13383_v42  ;;  %v3800_v24 = vmul.f32 %v13080_v13, %v18400_v52  ;;  %9633 = vrsqrt.f32 %v13495_v9  ;;  %v13512_v45 = vpop.eup %9619  ;;  %v2108_v1 = vadd.f32 1.0, %v9616_v0 }
 0x22c   :  { %18411 = vst [vmem:[#allocation158_spill] sm:$0xff] %v13512_v45  ;;  %vm1418_vm10 = vcmp.eq.f32.partialorder %v13391_v59, inf  ;;  %9635 = vrsqrt.f32 %v13492_v18  ;;  %v13517_v15 = vmax.f32 %v13310_v44, 0.0  ;;  %v13519_v7 = vpop.eup %9621  ;;  %v7301_v56 = vmul.f32 -1.442695, %v1988_v33  ;;  %v13533_v33 = vpop.xlane.xlu1 %1929 }
 0x22d   :  { %18412 = vst [vmem:[#allocation159_spill] sm:$0xff] %v13519_v7  ;;  %v1457_v25 = vsel %vm1455_vm9, %v1456_v8, %v1454_v37  ;;  %v1419_v42 = vsel %vm1418_vm10, %v13391_v59, %v1417_v54  ;;  %v4076_v52 = vmul.f32 %v13446_v32, %v12754_v12  ;;  %v13526_v55 = vpop.eup %9623  ;;  %v1567_v0 = vadd.f32 1.0, %v9618_v61  ;;  %v13540_v32 = vld [vmem:[%s18008_s3 + $0x58] sm:$0xff]  ;;  %v13548_v54 = vld [vmem:[%s18008_s3 + $0x50] sm:$0xff] }
 0x22e   :  { %18413 = vst [vmem:[#allocation160_spill] sm:$0xff] %v13526_v55  ;;  %v1971_v45 = vsel %vm1970_vm6, %v13398_v48, %v1969_v39  ;;  %v1421_v44 = vand.u32 2147483648, %v13391_v59  ;;  %9637 = vrsqrt.f32 %v13517_v15  ;;  %v13535_v37 = vpop.eup %9625  ;;  %v13543_v61 = vadd.f32 %v13540_v32, %v3801_v36 }
 0x22f   :  { %9639 = vrcp.f32 %v1562_v19  ;;  %v13551_v39 = vadd.f32 %v13548_v54, %v3800_v24  ;;  %vm1420_vm11 = vcmp.eq.f32.partialorder %v13391_v59, 0.0  ;;  %4105 = vadd.xlane.f32.xlu1 %v4076_v52  ;;  %v7287_v8 = vmul.f32 -1.442695, %v1457_v25 }
 0x230   :  { %v9628_v19 = vpop.eup %9627  ;;  %9641 = vrcp.f32 %v2108_v1  ;;  %v1422_v7 = vsel %vm1420_vm11, %v1421_v44, %v1419_v42  ;;  %v13555_v55 = vmax.f32 %v13322_v46, 0.0  ;;  %v1974_v36 = vsel %vm1972_vm7, %v1973_v30, %v1971_v45  ;;  %v13596_v42 = vpop.xlane.xlu1 %2446 }
 0x231   :  { %9643 = vpow2.f32 %v7301_v56  ;;  %v3530_v24 = vmul.f32 %v10612_v20, %v12719_v21  ;;  %v13564_v59 = vmax.f32 %v13340_v62, 0.0  ;;  %v13570_v1 = vsel %vm3831_vm4, %v13422_v31, %v13467_v16  ;;  %v13588_v31 = vpop.xlane.xlu0 %1919 }
 0x232   :  { %18414 = vst [vmem:[#allocation161_spill] sm:$0xff] %v13570_v1  ;;  %9645 = vrcp.f32 %v1567_v0  ;;  %v13576_v46 = vsel %vm3830_vm5, %v13427_v4, %v13470_v51  ;;  %v13579_v48 = vmul.f32 0.2, %v13472_v2  ;;  %v13581_v45 = vpop.eup %9629  ;;  %v13584_v62 = vmul.f32 0.2, %v13476_v29 }
 0x233   :  { %18415 = vst [vmem:[#allocation162_spill] sm:$0xff] %v13576_v46  ;;  %v7282_v30 = vmul.f32 -1.442695, %v1422_v7  ;;  %v1997_v56 = vmul.f32 %v9628_v19, %v13458_v57  ;;  %9647 = vrsqrt.f32 %v13555_v55  ;;  %3558 = vadd.xlane.f32.xlu1 %v3530_v24  ;;  %v9632_v16 = vpop.eup %9631  ;;  %v7299_v25 = vmul.f32 -1.442695, %v1974_v36 }
 0x234   :  { %18416 = vst [vmem:[#allocation163_spill] sm:$0xff] %v13579_v48  ;;  %18417 = vst [vmem:[#allocation164_spill] sm:$0xff] %v13584_v62  ;;  %v13591_v4 = vmul.f32 0.2, %v13543_v61  ;;  %9649 = vpow2.f32 %v7287_v8  ;;  %v13594_v51 = vmul.f32 0.2, %v13551_v39  ;;  %v4075_v7 = vmul.f32 %v10612_v20, %v12759_v35 }
 0x235   :  { %v9634_v52 = vpop.eup %9633  ;;  %vm1998_vm12 = vcmp.eq.f32.partialorder %v13458_v57, inf  ;;  %vm2000_vm13 = vcmp.eq.f32.partialorder %v13458_v57, 0.0  ;;  %9651 = vrsqrt.f32 %v13564_v59  ;;  %vm1467_vm14 = vcmp.eq.f32.partialorder %v13495_v9, inf  ;;  %v13615_v20 = vld [vmem:[%s18007_s2 + $0x78] sm:$0xff]  ;;  %v13629_v46 = vpop.xlane.xlu0 %1378 }
 0x236   :  { %v9636_v0 = vpop.eup %9635  ;;  %v1466_v44 = vmul.f32 %v9634_v52, %v13495_v9  ;;  %v1470_v19 = vand.u32 2147483648, %v13495_v9  ;;  %v13606_v8 = vmax.f32 %v13345_v50, 0.0  ;;  %9653 = vpow2.f32 %v7282_v30 }
 0x237   :  { %v1999_v36 = vsel %vm1998_vm12, %v13458_v57, %v1997_v56  ;;  %v13610_v24 = vmax.f32 %v13368_v63, 0.0  ;;  %v3533_v52 = vmul.f32 %v13615_v20, %v12833_v11  ;;  %4103 = vadd.xlane.f32.xlu1 %v4075_v7  ;;  %9655 = vpow2.f32 %v7299_v25 }
 0x238   :  { %v9638_v48 = vpop.eup %9637  ;;  %v2001_v50 = vand.u32 2147483648, %v13458_v57  ;;  %v1468_v30 = vsel %vm1467_vm14, %v13495_v9, %v1466_v44  ;;  %vm1469_vm15 = vcmp.eq.f32.partialorder %v13495_v9, 0.0  ;;  %v1962_v63 = vmul.f32 %v9636_v0, %v13492_v18  ;;  %v13637_v9 = vpop.xlane.xlu1 %2991 }
 0x239   :  { %v13622_v56 = vpop.eup %9639  ;;  %v1471_v62 = vsel %vm1469_vm15, %v1470_v19, %v1468_v30  ;;  %v1431_v1 = vmul.f32 %v9638_v48, %v13517_v15  ;;  %v13627_v2 = vmax.f32 %v13376_v40, 0.0  ;;  %vm1432_vm0 = vcmp.eq.f32.partialorder %v13517_v15, inf }
 0x23a   :  { %v13631_v7 = vpop.eup %9641  ;;  %v2002_v25 = vsel %vm2000_vm13, %v2001_v50, %v1999_v36  ;;  %v7289_v44 = vmul.f32 -1.442695, %v1471_v62  ;;  %9657 = vrsqrt.f32 %v13606_v8  ;;  %v1565_v48 = vadd.f32 1.0, %v9632_v16 }
 0x23b   :  { %v13639_v0 = vpop.eup %9643  ;;  %v4346_v40 = vmul.f32 %v13080_v13, %v18403_v38  ;;  %v1433_v19 = vsel %vm1432_vm0, %v13517_v15, %v1431_v1  ;;  %9659 = vrsqrt.f32 %v13610_v24  ;;  %3564 = vadd.xlane.f32.xlu1 %v3533_v52  ;;  %vm1963_vm1 = vcmp.eq.f32.partialorder %v13492_v18, inf }
 0x23c   :  { %18418 = vst [vmem:[#allocation165_spill] sm:$0xff] %v13639_v0  ;;  %v13645_v57 = vpop.eup %9645  ;;  %9661 = vpow2.f32 %v7289_v44  ;;  %vm1434_vm2 = vcmp.eq.f32.partialorder %v13517_v15, 0.0  ;;  %v1435_v62 = vand.u32 2147483648, %v13517_v15  ;;  %v7303_v50 = vmul.f32 -1.442695, %v2002_v25  ;;  %v10614_v44 = vld [vmem:[%s18007_s2 + $0x70] sm:$0xff] }
 0x23d   :  { %18419 = vst [vmem:[#allocation166_spill] sm:$0xff] %v13645_v57  ;;  %v9648_v36 = vpop.eup %9647  ;;  %v1964_v16 = vsel %vm1963_vm1, %v13492_v18, %v1962_v63  ;;  %9663 = vrsqrt.f32 %v13627_v2  ;;  %v13653_v38 = vmax.f32 %v13409_v28, 0.0  ;;  %v3532_v29 = vmul.f32 %v10614_v44, %v12840_v58 }
 0x23e   :  { %v9650_v1 = vpop.eup %9649  ;;  %v1436_v52 = vsel %vm1434_vm2, %v1435_v62, %v1433_v19  ;;  %v2011_v30 = vmul.f32 %v9648_v36, %v13555_v55  ;;  %v13661_v15 = vmax.f32 %v13415_v14, 0.0  ;;  %9665 = vrcp.f32 %v1565_v48  ;;  %v13671_v62 = vpop.xlane.xlu0 %1923 }
 0x23f   :  { %v9652_v25 = vpop.eup %9651  ;;  %v13664_v63 = vadd.f32 %v13540_v32, %v4346_v40  ;;  %v13668_v28 = vmul.f32 %v13080_v13, %v18405_v26  ;;  %v1966_v19 = vand.u32 2147483648, %v13492_v18  ;;  %vm1965_vm3 = vcmp.eq.f32.partialorder %v13492_v18, 0.0  ;;  %3562 = vadd.xlane.f32.xlu0 %v3532_v29  ;;  %v13677_v48 = vpop.xlane.xlu1 %2444 }
 0x240   :  { %vm2012_vm4 = vcmp.eq.f32.partialorder %v13555_v55, inf  ;;  %v1976_v14 = vmul.f32 %v9652_v25, %v13564_v59  ;;  %9667 = vrsqrt.f32 %v13653_v38  ;;  %v9654_v32 = vpop.eup %9653  ;;  %v7284_v13 = vmul.f32 -1.442695, %v1436_v52 }
 0x241   :  { %18420 = vst [vmem:[#allocation167_spill] sm:$0xff] %v13664_v63  ;;  %9669 = vpow2.f32 %v7303_v50  ;;  %v1967_v40 = vsel %vm1965_vm3, %v1966_v19, %v1964_v16  ;;  %vm2014_vm5 = vcmp.eq.f32.partialorder %v13555_v55, 0.0  ;;  %v13680_v26 = vpop.eup %9655  ;;  %v2013_v36 = vsel %vm2012_vm4, %v13555_v55, %v2011_v30 }
 0x242   :  { %18421 = vst [vmem:[#allocation168_spill] sm:$0xff] %v13680_v26  ;;  %v2015_v18 = vand.u32 2147483648, %v13555_v55  ;;  %vm1977_vm6 = vcmp.eq.f32.partialorder %v13564_v59, inf  ;;  %9671 = vrsqrt.f32 %v13661_v15  ;;  %v1569_v25 = vadd.f32 1.0, %v9650_v1  ;;  %v13696_v26 = vpop.xlane.xlu0 %1382 }
 0x243   :  { %v1978_v29 = vsel %vm1977_vm6, %v13564_v59, %v1976_v14  ;;  %vm1979_vm7 = vcmp.eq.f32.partialorder %v13564_v59, 0.0  ;;  %v1980_v50 = vand.u32 2147483648, %v13564_v59  ;;  %v1564_v52 = vadd.f32 1.0, %v9654_v32 }
 0x244   :  { %v9658_v16 = vpop.eup %9657  ;;  %v7298_v19 = vmul.f32 -1.442695, %v1967_v40  ;;  %vm1481_vm8 = vcmp.eq.f32.partialorder %v13606_v8, inf  ;;  %v1484_v30 = vand.u32 2147483648, %v13606_v8  ;;  %9673 = vpow2.f32 %v7284_v13  ;;  %v13703_v13 = vpop.xlane.xlu1 %2989 }
 0x245   :  { %v9660_v0 = vpop.eup %9659  ;;  %v2016_v57 = vsel %vm2014_vm5, %v2015_v18, %v2013_v36  ;;  %v1480_v1 = vmul.f32 %v9658_v16, %v13606_v8  ;;  %v4078_v14 = vmul.f32 %v13615_v20, %v12859_v49  ;;  %v1981_v5 = vsel %vm1979_vm7, %v1980_v50, %v1978_v29 }
 0x246   :  { %v9662_v59 = vpop.eup %9661  ;;  %v1445_v32 = vmul.f32 %v9660_v0, %v13610_v24  ;;  %v13700_v40 = vmax.f32 %v13450_v34, 0.0  ;;  %v4077_v60 = vmul.f32 %v10614_v44, %v12907_v6  ;;  %vm1483_vm9 = vcmp.eq.f32.partialorder %v13606_v8, 0.0  ;;  %v13716_v44 = vld [vmem:[%s18009_s4] ss:$0 sm:$0xff] }
 0x247   :  { %v9664_v55 = vpop.eup %9663  ;;  %v1482_v36 = vsel %vm1481_vm8, %v13606_v8, %v1480_v1  ;;  %vm1446_vm10 = vcmp.eq.f32.partialorder %v13610_v24, inf  ;;  %v1449_v20 = vand.u32 2147483648, %v13610_v24  ;;  %4109 = vadd.xlane.f32.xlu1 %v4078_v14  ;;  %v7305_v18 = vmul.f32 -1.442695, %v2016_v57 }
 0x248   :  { %v1485_v29 = vsel %vm1483_vm9, %v1484_v30, %v1482_v36  ;;  %v1447_v0 = vsel %vm1446_vm10, %v13610_v24, %v1445_v32  ;;  %9675 = vrsqrt.f32 %v13700_v40  ;;  %4107 = vadd.xlane.f32.xlu0 %v4077_v60  ;;  %v13711_v34 = vpop.eup %9665  ;;  %v13720_v8 = vmul.f32 %v13716_v44, %v12699_v17  ;;  %v13735_v14 = vpop.xlane.xlu1 %2448 }
 0x249   :  { %9677 = vrcp.f32 %v1569_v25  ;;  %v7300_v50 = vmul.f32 -1.442695, %v1981_v5  ;;  %vm1448_vm11 = vcmp.eq.f32.partialorder %v13610_v24, 0.0  ;;  %v1571_v16 = vadd.f32 1.0, %v9662_v59  ;;  %v13730_v5 = vpop.xlane.xlu0 %1927 }
 0x24a   :  { %v9668_v57 = vpop.eup %9667  ;;  %9679 = vpow2.f32 %v7298_v19  ;;  %v1450_v30 = vsel %vm1448_vm11, %v1449_v20, %v1447_v0  ;;  %v2025_v60 = vmul.f32 %v9664_v55, %v13627_v2  ;;  %vm3833_vm12 = vcmp.gt.f32.partialorder %v13543_v61, 0.0 }
 0x24b   :  { %v13724_v1 = vpop.eup %9669  ;;  %vm3832_vm13 = vcmp.gt.f32.partialorder %v13551_v39, 0.0  ;;  %9681 = vrcp.f32 %v1564_v52  ;;  %v7291_v25 = vmul.f32 -1.442695, %v1485_v29  ;;  %vm2026_vm14 = vcmp.eq.f32.partialorder %v13627_v2, inf }
 0x24c   :  { %18422 = vst [vmem:[#allocation169_spill] sm:$0xff] %v13724_v1  ;;  %v1990_v17 = vmul.f32 %v9668_v57, %v13653_v38  ;;  %v9672_v24 = vpop.eup %9671  ;;  %9683 = vpow2.f32 %v7305_v18  ;;  %v2029_v19 = vand.u32 2147483648, %v13627_v2  ;;  %vm1991_vm15 = vcmp.eq.f32.partialorder %v13653_v38, inf }
 0x24d   :  { %vm1495_vm0 = vcmp.eq.f32.partialorder %v13661_v15, inf  ;;  %9685 = vpow2.f32 %v7300_v50  ;;  %v7286_v59 = vmul.f32 -1.442695, %v1450_v30  ;;  %v1494_v52 = vmul.f32 %v9672_v24, %v13661_v15 }
 0x24e   :  { %v1498_v32 = vand.u32 2147483648, %v13661_v15  ;;  %9687 = vrcp.f32 %v1571_v16  ;;  %v2027_v55 = vsel %vm2026_vm14, %v13627_v2, %v2025_v60  ;;  %v13741_v36 = vmax.f32 %v13460_v43, 0.0  ;;  %v9674_v18 = vpop.eup %9673  ;;  %v13753_v16 = vpop.xlane.xlu0 %2450 }
 0x24f   :  { %v13744_v20 = vmax.f32 %v13487_v27, 0.0  ;;  %9689 = vpow2.f32 %v7291_v25  ;;  %v1992_v29 = vsel %vm1991_vm15, %v13653_v38, %v1990_v17  ;;  %v1496_v0 = vsel %vm1495_vm0, %v13661_v15, %v1494_v52 }
 0x250   :  { %vm1497_vm1 = vcmp.eq.f32.partialorder %v13661_v15, 0.0  ;;  %vm2028_vm2 = vcmp.eq.f32.partialorder %v13627_v2, 0.0  ;;  %v1994_v50 = vand.u32 2147483648, %v13653_v38  ;;  %9691 = vrsqrt.f32 %v13741_v36  ;;  %v13759_v2 = vpop.xlane.xlu1 %2993 }
 0x251   :  { %v1499_v57 = vsel %vm1497_vm1, %v1498_v32, %v1496_v0  ;;  %9693 = vpow2.f32 %v7286_v59  ;;  %v2030_v43 = vsel %vm2028_vm2, %v2029_v19, %v2027_v55  ;;  %vm1993_vm3 = vcmp.eq.f32.partialorder %v13653_v38, 0.0 }
 0x252   :  { %v7293_v27 = vmul.f32 -1.442695, %v1499_v57  ;;  %v9676_v30 = vpop.eup %9675  ;;  %v1566_v60 = vadd.f32 1.0, %v9674_v18  ;;  %v1995_v25 = vsel %vm1993_vm3, %v1994_v50, %v1992_v29  ;;  %9695 = vrsqrt.f32 %v13744_v20 }
 0x253   :  { %v13757_v15 = vmax.f32 %v13497_v41, 0.0  ;;  %v13761_v17 = vpop.eup %9677  ;;  %v1459_v24 = vmul.f32 %v9676_v30, %v13700_v40  ;;  %v13765_v38 = vmax.f32 %v13524_v10, 0.0  ;;  %v13768_v19 = vmax.f32 %v13533_v33, 0.0 }
 0x254   :  { %18423 = vst [vmem:[#allocation170_spill] sm:$0xff] %v13761_v17  ;;  %9697 = vpow2.f32 %v7293_v27  ;;  %v13770_v59 = vpop.eup %9679  ;;  %v7307_v52 = vmul.f32 -1.442695, %v2030_v43  ;;  %vm1460_vm4 = vcmp.eq.f32.partialorder %v13700_v40, inf  ;;  %v1463_v41 = vand.u32 2147483648, %v13700_v40 }
 0x255   :  { %9699 = vrsqrt.f32 %v13757_v15  ;;  %v13775_v32 = vpop.eup %9681  ;;  %v7302_v55 = vmul.f32 -1.442695, %v1995_v25  ;;  %v1461_v18 = vsel %vm1460_vm4, %v13700_v40, %v1459_v24  ;;  %vm1462_vm5 = vcmp.eq.f32.partialorder %v13700_v40, 0.0 }
 0x256   :  { %9701 = vrsqrt.f32 %v13765_v38  ;;  %v13780_v10 = vpop.eup %9683  ;;  %v13786_v33 = vsel %vm3833_vm12, %v13543_v61, %v13591_v4  ;;  %v13792_v29 = vsel %vm3832_vm13, %v13551_v39, %v13594_v51  ;;  %v1464_v0 = vsel %vm1462_vm5, %v1463_v41, %v1461_v18  ;;  %v13804_v4 = vpop.xlane.xlu0 %2995  ;;  %v10616_v39 = vld [vmem:[%s18008_s3 + $0x68] sm:$0xff] }
 0x257   :  { %18424 = vst [vmem:[#allocation171_spill] sm:$0xff] %v13780_v10  ;;  %18425 = vst [vmem:[#allocation172_spill] sm:$0xff] %v13786_v33  ;;  %9703 = vrsqrt.f32 %v13768_v19  ;;  %v13795_v40 = vpop.eup %9685  ;;  %v13798_v50 = vmul.f32 0.2, %v13664_v63  ;;  %v13802_v57 = vadd.f32 %v13548_v54, %v13668_v28  ;;  %v7288_v61 = vmul.f32 -1.442695, %v1464_v0  ;;  %v13820_v28 = vpop.xlane.xlu1 %2452 }
 0x258   :  { %18426 = vst [vmem:[#allocation173_spill] sm:$0xff] %v13792_v29  ;;  %9705 = vrcp.f32 %v1566_v60  ;;  %v13806_v43 = vpop.eup %9687  ;;  %v13812_v51 = vadd.f32 %v10616_v39, %v13720_v8  ;;  %v13815_v27 = vmax.f32 %v13588_v31, 0.0  ;;  %v13818_v54 = vmax.f32 %v13596_v42, 0.0 }
 0x259   :  { %18427 = vst [vmem:[#allocation174_spill] sm:$0xff] %v13798_v50  ;;  %18428 = vst [vmem:[#allocation175_spill] sm:$0xff] %v13802_v57  ;;  %9707 = vpow2.f32 %v7307_v52  ;;  %v9690_v30 = vpop.eup %9689  ;;  %v13824_v60 = vmul.f32 %v13716_v44, %v12719_v21  ;;  %vm2040_vm6 = vcmp.eq.f32.partialorder %v13741_v36, inf  ;;  %v13828_v8 = vmax.f32 %v13629_v46, 0.0 }
 0x25a   :  { %18429 = vst [vmem:[#allocation176_spill] sm:$0xff] %v13806_v43  ;;  %9709 = vpow2.f32 %v7302_v55  ;;  %v9692_v25 = vpop.eup %9691  ;;  %vm2042_vm7 = vcmp.eq.f32.partialorder %v13741_v36, 0.0  ;;  %v2043_v31 = vand.u32 2147483648, %v13741_v36  ;;  %v13833_v42 = vmax.f32 %v13637_v9, 0.0  ;;  %v13848_v0 = vpop.xlane.xlu0 %2454 }
 0x25b   :  { %9711 = vpow2.f32 %v7288_v61  ;;  %v9694_v24 = vpop.eup %9693  ;;  %v2039_v52 = vmul.f32 %v9692_v25, %v13741_v36  ;;  %vm2005_vm8 = vcmp.eq.f32.partialorder %v13744_v20, inf  ;;  %vm2007_vm9 = vcmp.eq.f32.partialorder %v13744_v20, 0.0  ;;  %v13853_v49 = vpop.xlane.xlu1 %2997 }
 0x25c   :  { %9713 = vrsqrt.f32 %v13815_v27  ;;  %v9696_v21 = vpop.eup %9695  ;;  %v2008_v46 = vand.u32 2147483648, %v13744_v20  ;;  %vm1509_vm10 = vcmp.eq.f32.partialorder %v13757_v15, inf  ;;  %vm1511_vm11 = vcmp.eq.f32.partialorder %v13757_v15, 0.0 }
 0x25d   :  { %9715 = vrsqrt.f32 %v13818_v54  ;;  %v1573_v41 = vadd.f32 1.0, %v9690_v30  ;;  %v2041_v55 = vsel %vm2040_vm6, %v13741_v36, %v2039_v52  ;;  %v2004_v18 = vmul.f32 %v9696_v21, %v13744_v20 }
 0x25e   :  { %v9698_v9 = vpop.eup %9697  ;;  %9717 = vrsqrt.f32 %v13828_v8  ;;  %v1568_v39 = vadd.f32 1.0, %v9694_v24  ;;  %v1512_v25 = vand.u32 2147483648, %v13757_v15  ;;  %vm1474_vm12 = vcmp.eq.f32.partialorder %v13765_v38, inf }
 0x25f   :  { %v9700_v61 = vpop.eup %9699  ;;  %9719 = vrsqrt.f32 %v13833_v42  ;;  %v2006_v52 = vsel %vm2005_vm8, %v13744_v20, %v2004_v18  ;;  %vm1476_vm13 = vcmp.eq.f32.partialorder %v13765_v38, 0.0  ;;  %v13861_v6 = vmax.f32 %v13671_v62, 0.0 }
 0x260   :  { %v9702_v30 = vpop.eup %9701  ;;  %v1508_v21 = vmul.f32 %v9700_v61, %v13757_v15  ;;  %v2044_v50 = vsel %vm2042_vm7, %v2043_v31, %v2041_v55  ;;  %v1477_v63 = vand.u32 2147483648, %v13765_v38  ;;  %vm2054_vm14 = vcmp.eq.f32.partialorder %v13768_v19, inf }
 0x261   :  { %v9704_v24 = vpop.eup %9703  ;;  %v1473_v33 = vmul.f32 %v9702_v30, %v13765_v38  ;;  %9721 = vrcp.f32 %v1573_v41  ;;  %v2009_v18 = vsel %vm2007_vm9, %v2008_v46, %v2006_v52  ;;  %vm2056_vm15 = vcmp.eq.f32.partialorder %v13768_v19, 0.0  ;;  %v13887_v30 = vpop.xlane.xlu0 %2999 }
 0x262   :  { %v13868_v29 = vpop.eup %9705  ;;  %v1510_v62 = vsel %vm1509_vm10, %v13757_v15, %v1508_v21  ;;  %9723 = vrcp.f32 %v1568_v39  ;;  %v1575_v31 = vadd.f32 1.0, %v9698_v9  ;;  %v2053_v61 = vmul.f32 %v9704_v24, %v13768_v19  ;;  %v13893_v21 = vpop.xlane.xlu1 %2456 }
 0x263   :  { %v13876_v36 = vpop.eup %9707  ;;  %v1475_v55 = vsel %vm1474_vm12, %v13765_v38, %v1473_v33  ;;  %v7309_v20 = vmul.f32 -1.442695, %v2044_v50  ;;  %v2057_v46 = vand.u32 2147483648, %v13768_v19  ;;  %vm2501_vm0 = vcmp.eq.f32.partialorder %v13818_v54, inf }
 0x264   :  { %18430 = vst [vmem:[#allocation177_spill] sm:$0xff] %v13876_v36  ;;  %v13882_v41 = vpop.eup %9709  ;;  %9725 = vrsqrt.f32 %v13861_v6  ;;  %v7304_v39 = vmul.f32 -1.442695, %v2009_v18  ;;  %v1513_v9 = vsel %vm1511_vm11, %v1512_v25, %v1510_v62  ;;  %vm2503_vm1 = vcmp.eq.f32.partialorder %v13818_v54, 0.0 }
 0x265   :  { %18431 = vst [vmem:[#allocation178_spill] sm:$0xff] %v13882_v41  ;;  %v9712_v52 = vpop.eup %9711  ;;  %v2504_v33 = vand.u32 2147483648, %v13818_v54  ;;  %v1478_v24 = vsel %vm1476_vm13, %v1477_v63, %v1475_v55  ;;  %vm1488_vm2 = vcmp.eq.f32.partialorder %v13828_v8, inf  ;;  %vm1490_vm3 = vcmp.eq.f32.partialorder %v13828_v8, 0.0 }
 0x266   :  { %v9714_v50 = vpop.eup %9713  ;;  %v1491_v36 = vand.u32 2147483648, %v13828_v8  ;;  %9727 = vrcp.f32 %v1575_v31  ;;  %v2055_v15 = vsel %vm2054_vm14, %v13768_v19, %v2053_v61  ;;  %vm3046_vm4 = vcmp.eq.f32.partialorder %v13833_v42, inf }
 0x267   :  { %v9716_v18 = vpop.eup %9715  ;;  %v13905_v25 = vmax.f32 %v13696_v26, 0.0  ;;  %9729 = vpow2.f32 %v7309_v20  ;;  %v7295_v63 = vmul.f32 -1.442695, %v1513_v9  ;;  %v3049_v55 = vand.u32 2147483648, %v13833_v42 }
 0x268   :  { %v9718_v62 = vpop.eup %9717  ;;  %v2500_v38 = vmul.f32 %v9716_v18, %v13818_v54  ;;  %v1570_v43 = vadd.f32 1.0, %v9712_v52  ;;  %9731 = vpow2.f32 %v7304_v39  ;;  %v7290_v31 = vmul.f32 -1.442695, %v1478_v24  ;;  %v13919_v18 = vpop.xlane.xlu0 %2458 }
 0x269   :  { %v9720_v10 = vpop.eup %9719  ;;  %v1487_v1 = vmul.f32 %v9718_v62, %v13828_v8  ;;  %v2058_v61 = vsel %vm2056_vm15, %v2057_v46, %v2055_v15  ;;  %v13917_v9 = vmax.f32 %v13677_v48, 0.0  ;;  %v2018_v52 = vmul.f32 %v9714_v50, %v13815_v27  ;;  %v13928_v46 = vpop.xlane.xlu1 %3001  ;;  %v10617_v62 = vld [vmem:[%s18008_s3 + $0x60] sm:$0xff] }
 0x26a   :  { %v2502_v26 = vsel %vm2501_vm0, %v13818_v54, %v2500_v38  ;;  %v3045_v20 = vmul.f32 %v9720_v10, %v13833_v42  ;;  %9733 = vrsqrt.f32 %v13905_v25  ;;  %v3851_v50 = vmul.f32 0.2, %v13812_v51 }
 0x26b   :  { %v2505_v39 = vsel %vm2503_vm1, %v2504_v33, %v2502_v26  ;;  %v1489_v19 = vsel %vm1488_vm2, %v13828_v8, %v1487_v1  ;;  %v13930_v24 = vpop.eup %9721  ;;  %9735 = vpow2.f32 %v7295_v63  ;;  %vm3048_vm5 = vcmp.eq.f32.partialorder %v13833_v42, 0.0 }
 0x26c   :  { %18432 = vst [vmem:[#allocation179_spill] sm:$0xff] %v13930_v24  ;;  %v7313_v48 = vmul.f32 -1.442695, %v2505_v39  ;;  %v1492_v10 = vsel %vm1490_vm3, %v1491_v36, %v1489_v19  ;;  %v3047_v54 = vsel %vm3046_vm4, %v13833_v42, %v3045_v20  ;;  %v13937_v33 = vpop.eup %9723  ;;  %9737 = vrcp.f32 %v1570_v43 }
 0x26d   :  { %18433 = vst [vmem:[#allocation180_spill] sm:$0xff] %v13937_v33  ;;  %v13942_v1 = vmax.f32 %v13703_v13, 0.0  ;;  %9739 = vpow2.f32 %v7290_v31  ;;  %vm2019_vm6 = vcmp.eq.f32.partialorder %v13815_v27, inf  ;;  %v7292_v8 = vmul.f32 -1.442695, %v1492_v10  ;;  %v13963_v26 = vpop.xlane.xlu1 %2460 }
 0x26e   :  { %v9726_v15 = vpop.eup %9725  ;;  %v3050_v36 = vsel %vm3048_vm5, %v3049_v55, %v3047_v54  ;;  %v3818_v63 = vadd.f32 %v10617_v62, %v13824_v60  ;;  %v7311_v38 = vmul.f32 -1.442695, %v2058_v61  ;;  %v2020_v43 = vsel %vm2019_vm6, %v13815_v27, %v2018_v52  ;;  %v13956_v55 = vpop.xlane.xlu0 %3003 }
 0x26f   :  { %9741 = vrsqrt.f32 %v13917_v9  ;;  %vm3835_vm7 = vcmp.gt.f32.partialorder %v13812_v51, 0.0  ;;  %v2022_v13 = vand.u32 2147483648, %v13815_v27  ;;  %v13954_v42 = vmax.f32 %v13730_v5, 0.0 }
 0x270   :  { %9743 = vpow2.f32 %v7313_v48  ;;  %v13958_v31 = vpop.eup %9727  ;;  %vm2021_vm8 = vcmp.eq.f32.partialorder %v13815_v27, 0.0  ;;  %v7329_v60 = vmul.f32 -1.442695, %v3050_v36  ;;  %v2032_v61 = vmul.f32 %v9726_v15, %v13861_v6 }
 0x271   :  { %18434 = vst [vmem:[#allocation181_spill] sm:$0xff] %v13958_v31  ;;  %9745 = vrsqrt.f32 %v13942_v1  ;;  %v13965_v20 = vpop.eup %9729  ;;  %v13968_v52 = vmul.f32 0.2, %v13802_v57  ;;  %v2023_v5 = vsel %vm2021_vm8, %v2022_v13, %v2020_v43  ;;  %v13971_v39 = vmax.f32 %v13735_v14, 0.0 }
 0x272   :  { %18435 = vst [vmem:[#allocation182_spill] sm:$0xff] %v13965_v20  ;;  %9747 = vpow2.f32 %v7292_v8  ;;  %v13973_v19 = vpop.eup %9731  ;;  %v13978_v27 = vsel %vm3835_vm7, %v13812_v51, %v3851_v50  ;;  %v3850_v48 = vmul.f32 0.2, %v3818_v63  ;;  %v13981_v10 = vmax.f32 %v13753_v16, 0.0 }
 0x273   :  { %18436 = vst [vmem:[#allocation183_spill] sm:$0xff] %v13968_v52  ;;  %18437 = vst [vmem:[#allocation184_spill] sm:$0xff] %v13973_v19  ;;  %9749 = vpow2.f32 %v7311_v38  ;;  %vm3834_vm9 = vcmp.gt.f32.partialorder %v3818_v63, 0.0  ;;  %v4347_v54 = vmul.f32 %v13716_v44, %v12759_v35  ;;  %vm2033_vm10 = vcmp.eq.f32.partialorder %v13861_v6, inf  ;;  %v13998_v38 = vpop.xlane.xlu0 %2462 }
 0x274   :  { %18438 = vst [vmem:[#allocation185_spill] sm:$0xff] %v13978_v27  ;;  %9751 = vrsqrt.f32 %v13954_v42  ;;  %v9734_v14 = vpop.eup %9733  ;;  %v3804_v15 = vmul.f32 %v13716_v44, %v12840_v58  ;;  %v7306_v8 = vmul.f32 -1.442695, %v2023_v5  ;;  %v2034_v51 = vsel %vm2033_vm10, %v13861_v6, %v2032_v61 }
 0x275   :  { %9753 = vpow2.f32 %v7329_v60  ;;  %v9736_v50 = vpop.eup %9735  ;;  %v2036_v16 = vand.u32 2147483648, %v13861_v6  ;;  %v13993_v36 = vmax.f32 %v13759_v2, 0.0  ;;  %v13996_v35 = vmax.f32 %v13804_v4, 0.0  ;;  %v14011_v2 = vpop.xlane.xlu1 %3005 }
 0x276   :  { %9755 = vrsqrt.f32 %v13971_v39  ;;  %v14000_v43 = vpop.eup %9737  ;;  %v14003_v58 = vsel %vm3834_vm9, %v3818_v63, %v3850_v48  ;;  %v14007_v13 = vmul.f32 %v13716_v44, %v12754_v12  ;;  %vm2035_vm11 = vcmp.eq.f32.partialorder %v13861_v6, 0.0  ;;  %v10618_v6 = vld [vmem:[%s18008_s3 + $0x70] sm:$0xff] }
 0x277   :  { %18439 = vst [vmem:[#allocation186_spill] sm:$0xff] %v14000_v43  ;;  %18440 = vst [vmem:[#allocation187_spill] sm:$0xff] %v14003_v58  ;;  %9757 = vrsqrt.f32 %v13981_v10  ;;  %v9740_v60 = vpop.eup %9739  ;;  %v14013_v4 = vadd.f32 %v10617_v62, %v4347_v54  ;;  %v2037_v61 = vsel %vm2035_vm11, %v2036_v16, %v2034_v51  ;;  %v1501_v5 = vmul.f32 %v9734_v14, %v13905_v25 }
 0x278   :  { %18441 = vst [vmem:[#allocation188_spill] sm:$0xff] %v14007_v13  ;;  %9759 = vrsqrt.f32 %v13993_v36  ;;  %v14019_v48 = vmul.f32 %v13716_v44, %v12833_v11  ;;  %v14024_v12 = vadd.f32 %v10618_v6, %v3804_v15  ;;  %vm2494_vm12 = vcmp.eq.f32.partialorder %v13917_v9, inf  ;;  %v14037_v6 = vpop.xlane.xlu0 %3007 }
 0x279   :  { %18442 = vst [vmem:[#allocation189_spill] sm:$0xff] %v14013_v4  ;;  %v9742_v63 = vpop.eup %9741  ;;  %9761 = vpow2.f32 %v7306_v8  ;;  %v1577_v54 = vadd.f32 1.0, %v9736_v50  ;;  %vm2496_vm13 = vcmp.eq.f32.partialorder %v13917_v9, 0.0  ;;  %v2497_v14 = vand.u32 2147483648, %v13917_v9 }
 0x27a   :  { %18443 = vst [vmem:[#allocation190_spill] sm:$0xff] %v14019_v48  ;;  %18444 = vst [vmem:[#allocation191_spill] sm:$0xff] %v14024_v12  ;;  %v9744_v62 = vpop.eup %9743  ;;  %vm1502_vm14 = vcmp.eq.f32.partialorder %v13905_v25, inf  ;;  %9763 = vrsqrt.f32 %v13996_v35  ;;  %v7308_v44 = vmul.f32 -1.442695, %v2037_v61  ;;  %vm1504_vm15 = vcmp.eq.f32.partialorder %v13905_v25, 0.0 }
 0x27b   :  { %v9746_v11 = vpop.eup %9745  ;;  %v1505_v15 = vand.u32 2147483648, %v13905_v25  ;;  %vm3039_vm0 = vcmp.eq.f32.partialorder %v13942_v1, inf  ;;  %v1572_v51 = vadd.f32 1.0, %v9740_v60  ;;  %v2493_v50 = vmul.f32 %v9742_v63, %v13917_v9  ;;  %v14047_v60 = vpop.xlane.xlu1 %2464 }
 0x27c   :  { %v9748_v8 = vpop.eup %9747  ;;  %v1503_v16 = vsel %vm1502_vm14, %v13905_v25, %v1501_v5  ;;  %vm3041_vm1 = vcmp.eq.f32.partialorder %v13942_v1, 0.0  ;;  %v3038_v61 = vmul.f32 %v9746_v11, %v13942_v1  ;;  %v3042_v48 = vand.u32 2147483648, %v13942_v1 }
 0x27d   :  { %v14039_v13 = vpop.eup %9749  ;;  %vm2047_vm2 = vcmp.eq.f32.partialorder %v13954_v42, inf  ;;  %v14045_v4 = vmax.f32 %v13820_v28, 0.0  ;;  %9765 = vrcp.f32 %v1577_v54  ;;  %v2653_v5 = vadd.f32 1.0, %v9744_v62 }
 0x27e   :  { %18445 = vst [vmem:[#allocation192_spill] sm:$0xff] %v14039_v13  ;;  %v9752_v63 = vpop.eup %9751  ;;  %v2050_v12 = vand.u32 2147483648, %v13954_v42  ;;  %vm2508_vm3 = vcmp.eq.f32.partialorder %v13971_v39, inf  ;;  %v1574_v13 = vadd.f32 1.0, %v9748_v8  ;;  %9767 = vpow2.f32 %v7308_v44 }
 0x27f   :  { %v9754_v27 = vpop.eup %9753  ;;  %v1506_v11 = vsel %vm1504_vm15, %v1505_v15, %v1503_v16  ;;  %vm2049_vm4 = vcmp.eq.f32.partialorder %v13954_v42, 0.0  ;;  %v2511_v28 = vand.u32 2147483648, %v13971_v39  ;;  %9769 = vrcp.f32 %v1572_v51  ;;  %v14073_v16 = vpop.xlane.xlu0 %2466 }
 0x280   :  { %v9756_v58 = vpop.eup %9755  ;;  %v2495_v62 = vsel %vm2494_vm12, %v13917_v9, %v2493_v50  ;;  %vm2515_vm5 = vcmp.eq.f32.partialorder %v13981_v10, inf  ;;  %v14060_v54 = vmax.f32 %v13848_v0, 0.0  ;;  %v3040_v25 = vsel %vm3039_vm0, %v13942_v1, %v3038_v61 }
 0x281   :  { %v9758_v8 = vpop.eup %9757  ;;  %v2046_v44 = vmul.f32 %v9752_v63, %v13954_v42  ;;  %vm2510_vm6 = vcmp.eq.f32.partialorder %v13971_v39, 0.0  ;;  %9771 = vrsqrt.f32 %v14045_v4  ;;  %v14069_v15 = vmax.f32 %v13853_v49, 0.0  ;;  %v14080_v49 = vpop.xlane.xlu1 %3009 }
 0x282   :  { %v9760_v51 = vpop.eup %9759  ;;  %9773 = vrcp.f32 %v2653_v5  ;;  %v7294_v50 = vmul.f32 -1.442695, %v1506_v11  ;;  %vm2517_vm7 = vcmp.eq.f32.partialorder %v13981_v10, 0.0  ;;  %v2518_v0 = vand.u32 2147483648, %v13981_v10 }
 0x283   :  { %v14075_v52 = vpop.eup %9761  ;;  %9775 = vrcp.f32 %v1574_v13  ;;  %v3198_v61 = vadd.f32 1.0, %v9754_v27  ;;  %v2498_v63 = vsel %vm2496_vm13, %v2497_v14, %v2495_v62  ;;  %v2507_v20 = vmul.f32 %v9756_v58, %v13971_v39 }
 0x284   :  { %18446 = vst [vmem:[#allocation193_spill] sm:$0xff] %v14075_v52  ;;  %v9764_v31 = vpop.eup %9763  ;;  %v3043_v5 = vsel %vm3041_vm1, %v3042_v48, %v3040_v25  ;;  %v2514_v11 = vmul.f32 %v9758_v8, %v13981_v10  ;;  %vm3053_vm8 = vcmp.eq.f32.partialorder %v13993_v36, inf  ;;  %9777 = vrsqrt.f32 %v14060_v54 }
 0x285   :  { %v2048_v27 = vsel %vm2047_vm2, %v13954_v42, %v2046_v44  ;;  %v3052_v9 = vmul.f32 %v9760_v51, %v13993_v36  ;;  %9779 = vrsqrt.f32 %v14069_v15  ;;  %v14093_v58 = vmax.f32 %v13887_v30, 0.0  ;;  %v14112_v44 = vpop.xlane.xlu0 %3011 }
 0x286   :  { %v7312_v13 = vmul.f32 -1.442695, %v2498_v63  ;;  %9781 = vpow2.f32 %v7294_v50  ;;  %vm3055_vm9 = vcmp.eq.f32.partialorder %v13993_v36, 0.0  ;;  %v3059_v1 = vmul.f32 %v9764_v31, %v13996_v35 }
 0x287   :  { %9783 = vrcp.f32 %v3198_v61  ;;  %v2509_v48 = vsel %vm2508_vm3, %v13971_v39, %v2507_v20  ;;  %v3056_v14 = vand.u32 2147483648, %v13993_v36  ;;  %vm3060_vm10 = vcmp.eq.f32.partialorder %v13996_v35, inf  ;;  %v14102_v62 = vpop.eup %9765 }
 0x288   :  { %18447 = vst [vmem:[#allocation194_spill] sm:$0xff] %v14102_v62  ;;  %v7328_v8 = vmul.f32 -1.442695, %v3043_v5  ;;  %v2051_v30 = vsel %vm2049_vm4, %v2050_v12, %v2048_v27  ;;  %v2516_v25 = vsel %vm2515_vm5, %v13981_v10, %v2514_v11  ;;  %v14110_v31 = vmax.f32 %v13893_v21, 0.0  ;;  %v14114_v20 = vpop.eup %9767  ;;  %v14124_v12 = vpop.xlane.xlu1 %2468 }
 0x289   :  { %18448 = vst [vmem:[#allocation195_spill] sm:$0xff] %v14114_v20  ;;  %v3054_v51 = vsel %vm3053_vm8, %v13993_v36, %v3052_v9  ;;  %vm3062_vm11 = vcmp.eq.f32.partialorder %v13996_v35, 0.0  ;;  %9785 = vrsqrt.f32 %v14093_v58  ;;  %v14122_v42 = vmax.f32 %v13919_v18, 0.0  ;;  %v14126_v50 = vpop.eup %9769 }
 0x28a   :  { %18449 = vst [vmem:[#allocation196_spill] sm:$0xff] %v14126_v50  ;;  %v2512_v21 = vsel %vm2510_vm6, %v2511_v28, %v2509_v48  ;;  %v3061_v61 = vsel %vm3060_vm10, %v13996_v35, %v3059_v1  ;;  %9787 = vrsqrt.f32 %v14110_v31  ;;  %v14133_v63 = vmax.f32 %v13928_v46, 0.0 }
 0x28b   :  { %v9772_v5 = vpop.eup %9771  ;;  %9789 = vpow2.f32 %v7312_v13  ;;  %v7310_v11 = vmul.f32 -1.442695, %v2051_v30  ;;  %v2519_v18 = vsel %vm2517_vm7, %v2518_v0, %v2516_v25  ;;  %v3063_v27 = vand.u32 2147483648, %v13996_v35 }
 0x28c   :  { %v14138_v9 = vpop.eup %9773  ;;  %9791 = vpow2.f32 %v7328_v8  ;;  %v3057_v39 = vsel %vm3055_vm9, %v3056_v14, %v3054_v51  ;;  %vm2522_vm12 = vcmp.eq.f32.partialorder %v14045_v4, inf  ;;  %v14144_v28 = vmax.f32 %v13956_v55, 0.0  ;;  %v14155_v55 = vpop.xlane.xlu0 %2470 }
 0x28d   :  { %v14146_v46 = vpop.eup %9775  ;;  %v7314_v13 = vmul.f32 -1.442695, %v2512_v21  ;;  %v3064_v10 = vsel %vm3062_vm11, %v3063_v27, %v3061_v61  ;;  %vm2524_vm13 = vcmp.eq.f32.partialorder %v14045_v4, 0.0  ;;  %9793 = vrsqrt.f32 %v14122_v42  ;;  %v14159_v35 = vpop.xlane.xlu1 %3013 }
 0x28e   :  { %18450 = vst [vmem:[#allocation197_spill] sm:$0xff] %v14146_v46  ;;  %v9778_v0 = vpop.eup %9777  ;;  %v7315_v1 = vmul.f32 -1.442695, %v2519_v18  ;;  %v2521_v36 = vmul.f32 %v9772_v5, %v14045_v4  ;;  %v2525_v48 = vand.u32 2147483648, %v14045_v4  ;;  %9795 = vrsqrt.f32 %v14133_v63 }
 0x28f   :  { %v9780_v14 = vpop.eup %9779  ;;  %9797 = vpow2.f32 %v7310_v11  ;;  %v7330_v8 = vmul.f32 -1.442695, %v3057_v39  ;;  %vm2529_vm14 = vcmp.eq.f32.partialorder %v14060_v54, inf  ;;  %vm2531_vm15 = vcmp.eq.f32.partialorder %v14060_v54, 0.0 }
 0x290   :  { %v9782_v30 = vpop.eup %9781  ;;  %v7331_v25 = vmul.f32 -1.442695, %v3064_v10  ;;  %v2532_v51 = vand.u32 2147483648, %v14060_v54  ;;  %vm3067_vm0 = vcmp.eq.f32.partialorder %v14069_v15, inf  ;;  %9799 = vrsqrt.f32 %v14144_v28 }
 0x291   :  { %v14164_v21 = vpop.eup %9783  ;;  %9801 = vpow2.f32 %v7314_v13  ;;  %v2528_v61 = vmul.f32 %v9778_v0, %v14060_v54  ;;  %vm3069_vm1 = vcmp.eq.f32.partialorder %v14069_v15, 0.0  ;;  %v14169_v5 = vmax.f32 %v13963_v26, 0.0 }
 0x292   :  { %9803 = vpow2.f32 %v7315_v1  ;;  %v2523_v11 = vsel %vm2522_vm12, %v14045_v4, %v2521_v36  ;;  %v3066_v18 = vmul.f32 %v9780_v14, %v14069_v15  ;;  %v14176_v27 = vmax.f32 %v13998_v38, 0.0  ;;  %v14183_v1 = vpop.xlane.xlu0 %3015 }
 0x293   :  { %v9786_v39 = vpop.eup %9785  ;;  %v1576_v10 = vadd.f32 1.0, %v9782_v30  ;;  %9805 = vpow2.f32 %v7330_v8  ;;  %v3070_v13 = vand.u32 2147483648, %v14069_v15  ;;  %vm3074_vm2 = vcmp.eq.f32.partialorder %v14093_v58, inf  ;;  %v14196_v30 = vpop.xlane.xlu1 %3536 }
 0x294   :  { %v9788_v0 = vpop.eup %9787  ;;  %9807 = vpow2.f32 %v7331_v25  ;;  %vm3076_vm3 = vcmp.eq.f32.partialorder %v14093_v58, 0.0  ;;  %v3077_v26 = vand.u32 2147483648, %v14093_v58  ;;  %vm2536_vm4 = vcmp.eq.f32.partialorder %v14110_v31, inf }
 0x295   :  { %v14185_v36 = vpop.eup %9789  ;;  %v2526_v38 = vsel %vm2524_vm13, %v2525_v48, %v2523_v11  ;;  %v2530_v14 = vsel %vm2529_vm14, %v14060_v54, %v2528_v61  ;;  %9809 = vrsqrt.f32 %v14169_v5  ;;  %v14194_v8 = vmax.f32 %v14011_v2, 0.0 }
 0x296   :  { %v14198_v25 = vpop.eup %9791  ;;  %v3068_v62 = vsel %vm3067_vm0, %v14069_v15, %v3066_v18  ;;  %v3073_v4 = vmul.f32 %v9786_v39, %v14093_v58  ;;  %vm2538_vm5 = vcmp.eq.f32.partialorder %v14110_v31, 0.0  ;;  %9811 = vrsqrt.f32 %v14176_v27  ;;  %v14230_v15 = vpop.xlane.xlu0 %2474 }
 0x297   :  { %v9794_v48 = vpop.eup %9793  ;;  %9813 = vrcp.f32 %v1576_v10  ;;  %v2535_v61 = vmul.f32 %v9788_v0, %v14110_v31  ;;  %v2539_v2 = vand.u32 2147483648, %v14110_v31  ;;  %vm2543_vm6 = vcmp.eq.f32.partialorder %v14122_v42, inf }
 0x298   :  { %v9796_v11 = vpop.eup %9795  ;;  %v7316_v20 = vmul.f32 -1.442695, %v2526_v38  ;;  %v2533_v57 = vsel %vm2531_vm15, %v2532_v51, %v2530_v14  ;;  %vm2545_vm7 = vcmp.eq.f32.partialorder %v14122_v42, 0.0  ;;  %v14213_v18 = vmax.f32 %v14037_v6, 0.0 }
 0x299   :  { %v14215_v39 = vpop.eup %9797  ;;  %v3071_v10 = vsel %vm3069_vm1, %v3070_v13, %v3068_v62  ;;  %v2542_v0 = vmul.f32 %v9794_v48, %v14122_v42  ;;  %v2546_v46 = vand.u32 2147483648, %v14122_v42  ;;  %9815 = vrsqrt.f32 %v14194_v8 }
 0x29a   :  { %18451 = vst [vmem:[#allocation198_spill] sm:$0xff] %v14215_v39  ;;  %v9800_v38 = vpop.eup %9799  ;;  %v3075_v54 = vsel %vm3074_vm2, %v14093_v58, %v3073_v4  ;;  %vm3081_vm8 = vcmp.eq.f32.partialorder %v14133_v63, inf  ;;  %9817 = vrsqrt.f32 %v14213_v18  ;;  %v14228_v6 = vmax.f32 %v14047_v60, 0.0  ;;  %v14239_v4 = vpop.xlane.xlu1 %4081 }
 0x29b   :  { %v14232_v62 = vpop.eup %9801  ;;  %v7317_v51 = vmul.f32 -1.442695, %v2533_v57  ;;  %v2537_v13 = vsel %vm2536_vm4, %v14110_v31, %v2535_v61  ;;  %v3080_v14 = vmul.f32 %v9796_v11, %v14133_v63  ;;  %vm3083_vm9 = vcmp.eq.f32.partialorder %v14133_v63, 0.0 }
 0x29c   :  { %v14241_v48 = vpop.eup %9803  ;;  %9819 = vpow2.f32 %v7316_v20  ;;  %v7332_v60 = vmul.f32 -1.442695, %v3071_v10  ;;  %v3084_v39 = vand.u32 2147483648, %v14133_v63  ;;  %vm3088_vm10 = vcmp.eq.f32.partialorder %v14144_v28, inf }
 0x29d   :  { %v14245_v24 = vpop.eup %9805  ;;  %v3078_v57 = vsel %vm3076_vm3, %v3077_v26, %v3075_v54  ;;  %v2544_v61 = vsel %vm2543_vm6, %v14122_v42, %v2542_v0  ;;  %v3087_v11 = vmul.f32 %v9800_v38, %v14144_v28  ;;  %v14254_v52 = vmax.f32 %v14073_v16, 0.0  ;;  %v14274_v54 = vpop.xlane.xlu0 %3019 }
 0x29e   :  { %v14256_v20 = vpop.eup %9807  ;;  %v2540_v10 = vsel %vm2538_vm5, %v2539_v2, %v2537_v13  ;;  %vm3090_vm11 = vcmp.eq.f32.partialorder %v14144_v28, 0.0  ;;  %9821 = vrsqrt.f32 %v14228_v6  ;;  %v14263_v58 = vmax.f32 %v14080_v49, 0.0 }
 0x29f   :  { %v9810_v26 = vpop.eup %9809  ;;  %9823 = vpow2.f32 %v7317_v51  ;;  %v3082_v0 = vsel %vm3081_vm8, %v14133_v63, %v3080_v14  ;;  %v3091_v16 = vand.u32 2147483648, %v14144_v28  ;;  %vm2550_vm12 = vcmp.eq.f32.partialorder %v14169_v5, inf }
 0x2a0   :  { %v9812_v38 = vpop.eup %9811  ;;  %9825 = vpow2.f32 %v7332_v60  ;;  %v7333_v31 = vmul.f32 -1.442695, %v3078_v57  ;;  %v2547_v2 = vsel %vm2545_vm7, %v2546_v46, %v2544_v61  ;;  %vm2552_vm13 = vcmp.eq.f32.partialorder %v14169_v5, 0.0  ;;  %v14283_v60 = vpop.xlane.xlu1 %3540 }
 0x2a1   :  { %v2553_v49 = vand.u32 2147483648, %v14169_v5  ;;  %v14276_v51 = vpop.eup %9813  ;;  %v7318_v13 = vmul.f32 -1.442695, %v2540_v10  ;;  %v3089_v14 = vsel %vm3088_vm10, %v14144_v28, %v3087_v11  ;;  %vm2557_vm14 = vcmp.eq.f32.partialorder %v14176_v27, inf }
 0x2a2   :  { %18452 = vst [vmem:[#allocation199_spill] sm:$0xff] %v14276_v51  ;;  %9827 = vrsqrt.f32 %v14254_v52  ;;  %v3085_v42 = vsel %vm3083_vm9, %v3084_v39, %v3082_v0  ;;  %v2549_v46 = vmul.f32 %v9810_v26, %v14169_v5  ;;  %vm2559_vm15 = vcmp.eq.f32.partialorder %v14176_v27, 0.0 }
 0x2a3   :  { %9829 = vrsqrt.f32 %v14263_v58  ;;  %v9816_v57 = vpop.eup %9815  ;;  %v7319_v61 = vmul.f32 -1.442695, %v2547_v2  ;;  %v2556_v10 = vmul.f32 %v9812_v38, %v14176_v27  ;;  %v2560_v11 = vand.u32 2147483648, %v14176_v27 }
 0x2a4   :  { %vm3095_vm0 = vcmp.eq.f32.partialorder %v14194_v8, inf  ;;  %v9818_v51 = vpop.eup %9817  ;;  %9831 = vpow2.f32 %v7333_v31  ;;  %v3092_v63 = vsel %vm3090_vm11, %v3091_v16, %v3089_v14  ;;  %v14296_v39 = vmax.f32 %v14112_v44, 0.0  ;;  %v14311_v44 = vpop.xlane.xlu0 %2472 }
 0x2a5   :  { %v14299_v26 = vmax.f32 %v14124_v12, 0.0  ;;  %9833 = vpow2.f32 %v7318_v13  ;;  %v7334_v0 = vmul.f32 -1.442695, %v3085_v42  ;;  %vm3097_vm1 = vcmp.eq.f32.partialorder %v14194_v8, 0.0  ;;  %v14317_v14 = vpop.xlane.xlu1 %4085 }
 0x2a6   :  { %v3098_v38 = vand.u32 2147483648, %v14194_v8  ;;  %v14303_v2 = vpop.eup %9819  ;;  %v2551_v31 = vsel %vm2550_vm12, %v14169_v5, %v2549_v46  ;;  %v3094_v28 = vmul.f32 %v9816_v57, %v14194_v8  ;;  %vm3102_vm2 = vcmp.eq.f32.partialorder %v14213_v18, inf }
 0x2a7   :  { %9835 = vrsqrt.f32 %v14296_v39  ;;  %v7335_v12 = vmul.f32 -1.442695, %v3092_v63  ;;  %v2558_v16 = vsel %vm2557_vm14, %v14176_v27, %v2556_v10  ;;  %v3101_v13 = vmul.f32 %v9818_v51, %v14213_v18 }
 0x2a8   :  { %9837 = vpow2.f32 %v7319_v61  ;;  %v9822_v42 = vpop.eup %9821  ;;  %vm3104_vm3 = vcmp.eq.f32.partialorder %v14213_v18, 0.0  ;;  %v3105_v46 = vand.u32 2147483648, %v14213_v18  ;;  %v14323_v57 = vmax.f32 %v14155_v55, 0.0 }
 0x2a9   :  { %9839 = vrsqrt.f32 %v14299_v26  ;;  %v14325_v61 = vpop.eup %9823  ;;  %v2554_v10 = vsel %vm2552_vm13, %v2553_v49, %v2551_v31  ;;  %vm2564_vm4 = vcmp.eq.f32.partialorder %v14228_v6, inf  ;;  %vm2566_vm5 = vcmp.eq.f32.partialorder %v14228_v6, 0.0 }
 0x2aa   :  { %18453 = vst [vmem:[#allocation200_spill] sm:$0xff] %v14325_v61  ;;  %9841 = vpow2.f32 %v7334_v0  ;;  %v14331_v51 = vpop.eup %9825  ;;  %v2561_v63 = vsel %vm2559_vm15, %v2560_v11, %v2558_v16  ;;  %v3096_v55 = vsel %vm3095_vm0, %v14194_v8, %v3094_v28  ;;  %v2567_v50 = vand.u32 2147483648, %v14228_v6 }
 0x2ab   :  { %18454 = vst [vmem:[#allocation201_spill] sm:$0xff] %v14331_v51  ;;  %v14340_v0 = vmax.f32 %v14159_v35, 0.0  ;;  %9843 = vpow2.f32 %v7335_v12  ;;  %v3103_v49 = vsel %vm3102_vm2, %v14213_v18, %v3101_v13  ;;  %v2563_v31 = vmul.f32 %v9822_v42, %v14228_v6  ;;  %v14352_v35 = vpop.xlane.xlu0 %3017 }
 0x2ac   :  { %v9828_v5 = vpop.eup %9827  ;;  %v14347_v27 = vmax.f32 %v14196_v30, 0.0  ;;  %v7320_v16 = vmul.f32 -1.442695, %v2554_v10  ;;  %vm2571_vm6 = vcmp.eq.f32.partialorder %v14254_v52, inf  ;;  %vm2573_vm7 = vcmp.eq.f32.partialorder %v14254_v52, 0.0  ;;  %v14358_v30 = vpop.xlane.xlu1 %3544 }
 0x2ad   :  { %v9830_v11 = vpop.eup %9829  ;;  %9845 = vrsqrt.f32 %v14323_v57  ;;  %v7321_v28 = vmul.f32 -1.442695, %v2561_v63  ;;  %v3099_v12 = vsel %vm3097_vm1, %v3098_v38, %v3096_v55  ;;  %v2574_v13 = vand.u32 2147483648, %v14254_v52 }
 0x2ae   :  { %9847 = vrsqrt.f32 %v14340_v0  ;;  %v14360_v42 = vpop.eup %9831  ;;  %v3106_v10 = vsel %vm3104_vm3, %v3105_v46, %v3103_v49  ;;  %v2570_v19 = vmul.f32 %v9828_v5, %v14254_v52  ;;  %vm3109_vm8 = vcmp.eq.f32.partialorder %v14263_v58, inf }
 0x2af   :  { %18455 = vst [vmem:[#allocation202_spill] sm:$0xff] %v14360_v42  ;;  %v14367_v63 = vmax.f32 %v14183_v1, 0.0  ;;  %v14369_v8 = vpop.eup %9833  ;;  %v2565_v38 = vsel %vm2564_vm4, %v14228_v6, %v2563_v31  ;;  %v3108_v55 = vmul.f32 %v9830_v11, %v14263_v58  ;;  %9849 = vrsqrt.f32 %v14347_v27 }
 0x2b0   :  { %18456 = vst [vmem:[#allocation203_spill] sm:$0xff] %v14369_v8  ;;  %v14377_v18 = vmax.f32 %v14230_v15, 0.0  ;;  %9851 = vpow2.f32 %v7320_v16  ;;  %v7336_v5 = vmul.f32 -1.442695, %v3099_v12  ;;  %vm3111_vm9 = vcmp.eq.f32.partialorder %v14263_v58, 0.0  ;;  %v14392_v12 = vpop.xlane.xlu0 %3534 }
 0x2b1   :  { %v9836_v46 = vpop.eup %9835  ;;  %v3112_v1 = vand.u32 2147483648, %v14263_v58  ;;  %9853 = vpow2.f32 %v7321_v28  ;;  %v7337_v43 = vmul.f32 -1.442695, %v3106_v10  ;;  %vm3116_vm10 = vcmp.eq.f32.partialorder %v14296_v39, inf }
 0x2b2   :  { %v14381_v49 = vpop.eup %9837  ;;  %vm3118_vm11 = vcmp.eq.f32.partialorder %v14296_v39, 0.0  ;;  %v2568_v15 = vsel %vm2566_vm5, %v2567_v50, %v2565_v38  ;;  %v2572_v11 = vsel %vm2571_vm6, %v14254_v52, %v2570_v19  ;;  %v3115_v16 = vmul.f32 %v9836_v46, %v14296_v39  ;;  %v14404_v19 = vpop.xlane.xlu1 %4089 }
 0x2b3   :  { %18457 = vst [vmem:[#allocation204_spill] sm:$0xff] %v14381_v49  ;;  %v9840_v31 = vpop.eup %9839  ;;  %9855 = vrsqrt.f32 %v14367_v63  ;;  %v3110_v10 = vsel %vm3109_vm8, %v14263_v58, %v3108_v55  ;;  %v14402_v50 = vmax.f32 %v14239_v4, 0.0  ;;  %v3119_v6 = vand.u32 2147483648, %v14296_v39 }
 0x2b4   :  { %v14394_v28 = vpop.eup %9841  ;;  %v2577_v49 = vmul.f32 %v9840_v31, %v14299_v26  ;;  %9857 = vrsqrt.f32 %v14377_v18  ;;  %vm2578_vm12 = vcmp.eq.f32.partialorder %v14299_v26, inf  ;;  %v14409_v38 = vmax.f32 %v14274_v54, 0.0  ;;  %v14433_v58 = vpop.xlane.xlu0 %4079 }
 0x2b5   :  { %18458 = vst [vmem:[#allocation205_spill] sm:$0xff] %v14394_v28  ;;  %9859 = vpow2.f32 %v7336_v5  ;;  %v14411_v46 = vpop.eup %9843  ;;  %v7322_v55 = vmul.f32 -1.442695, %v2568_v15  ;;  %v2575_v31 = vsel %vm2573_vm7, %v2574_v13, %v2572_v11  ;;  %vm2580_vm13 = vcmp.eq.f32.partialorder %v14299_v26, 0.0 }
 0x2b6   :  { %18459 = vst [vmem:[#allocation206_spill] sm:$0xff] %v14411_v46  ;;  %9861 = vrsqrt.f32 %v14402_v50  ;;  %v3113_v5 = vsel %vm3111_vm9, %v3112_v1, %v3110_v10  ;;  %v3117_v17 = vsel %vm3116_vm10, %v14296_v39, %v3115_v16  ;;  %v2581_v54 = vand.u32 2147483648, %v14299_v26  ;;  %v14438_v16 = vpop.xlane.xlu1 %3548 }
 0x2b7   :  { %v9846_v4 = vpop.eup %9845  ;;  %vm2585_vm14 = vcmp.eq.f32.partialorder %v14323_v57, inf  ;;  %9863 = vpow2.f32 %v7337_v43  ;;  %v2579_v52 = vsel %vm2578_vm12, %v14299_v26, %v2577_v49  ;;  %v2588_v13 = vand.u32 2147483648, %v14323_v57 }
 0x2b8   :  { %v9848_v15 = vpop.eup %9847  ;;  %v14427_v11 = vmax.f32 %v14283_v60, 0.0  ;;  %v7323_v46 = vmul.f32 -1.442695, %v2575_v31  ;;  %vm2587_vm15 = vcmp.eq.f32.partialorder %v14323_v57, 0.0  ;;  %vm3123_vm0 = vcmp.eq.f32.partialorder %v14340_v0, inf }
 0x2b9   :  { %vm3125_vm1 = vcmp.eq.f32.partialorder %v14340_v0, 0.0  ;;  %9865 = vrsqrt.f32 %v14409_v38  ;;  %v9850_v1 = vpop.eup %9849  ;;  %v7338_v43 = vmul.f32 -1.442695, %v3113_v5  ;;  %v3120_v49 = vsel %vm3118_vm11, %v3119_v6, %v3117_v17 }
 0x2ba   :  { %9867 = vpow2.f32 %v7322_v55  ;;  %v3126_v60 = vand.u32 2147483648, %v14340_v0  ;;  %v14440_v10 = vpop.eup %9851  ;;  %v2582_v31 = vsel %vm2580_vm13, %v2581_v54, %v2579_v52  ;;  %v2584_v28 = vmul.f32 %v9846_v4, %v14323_v57 }
 0x2bb   :  { %18460 = vst [vmem:[#allocation207_spill] sm:$0xff] %v14440_v10  ;;  %v3122_v8 = vmul.f32 %v9848_v15, %v14340_v0  ;;  %vm3130_vm2 = vcmp.eq.f32.partialorder %v14367_v63, inf  ;;  %v3590_v55 = vmul.f32 %v9850_v1, %v14347_v27  ;;  %v14448_v5 = vpop.eup %9853  ;;  %v3133_v17 = vand.u32 2147483648, %v14367_v63 }
 0x2bc   :  { %18461 = vst [vmem:[#allocation208_spill] sm:$0xff] %v14448_v5  ;;  %vm3591_vm3 = vcmp.eq.f32.partialorder %v14347_v27, inf  ;;  %v3594_v39 = vand.u32 2147483648, %v14347_v27  ;;  %9869 = vrsqrt.f32 %v14427_v11  ;;  %v7339_v6 = vmul.f32 -1.442695, %v3120_v49 }
 0x2bd   :  { %v9856_v26 = vpop.eup %9855  ;;  %9871 = vpow2.f32 %v7323_v46  ;;  %v3592_v4 = vsel %vm3591_vm3, %v14347_v27, %v3590_v55  ;;  %vm3593_vm4 = vcmp.eq.f32.partialorder %v14347_v27, 0.0  ;;  %v7324_v15 = vmul.f32 -1.442695, %v2582_v31  ;;  %v14469_v31 = vpop.xlane.xlu0 %3538 }
 0x2be   :  { %v9858_v54 = vpop.eup %9857  ;;  %vm3132_vm5 = vcmp.eq.f32.partialorder %v14367_v63, 0.0  ;;  %v3595_v52 = vsel %vm3593_vm4, %v3594_v39, %v3592_v4  ;;  %vm2599_vm6 = vcmp.eq.f32.partialorder %v14377_v18, inf  ;;  %v14459_v1 = vmax.f32 %v14311_v44, 0.0 }
 0x2bf   :  { %v14461_v5 = vpop.eup %9859  ;;  %9873 = vpow2.f32 %v7338_v43  ;;  %v2586_v46 = vsel %vm2585_vm14, %v14323_v57, %v2584_v28  ;;  %v3124_v27 = vsel %vm3123_vm0, %v14340_v0, %v3122_v8  ;;  %v7345_v49 = vmul.f32 -1.442695, %v3595_v52  ;;  %v14477_v43 = vpop.xlane.xlu1 %4093 }
 0x2c0   :  { %18462 = vst [vmem:[#allocation209_spill] sm:$0xff] %v14461_v5  ;;  %v9862_v55 = vpop.eup %9861  ;;  %v3129_v39 = vmul.f32 %v9856_v26, %v14367_v63  ;;  %vm4136_vm7 = vcmp.eq.f32.partialorder %v14402_v50, inf  ;;  %9875 = vrsqrt.f32 %v14459_v1  ;;  %v14475_v44 = vmax.f32 %v14317_v14, 0.0 }
 0x2c1   :  { %9877 = vpow2.f32 %v7339_v6  ;;  %v2598_v28 = vmul.f32 %v9858_v54, %v14377_v18  ;;  %v4135_v8 = vmul.f32 %v9862_v55, %v14402_v50  ;;  %vm4138_vm8 = vcmp.eq.f32.partialorder %v14402_v50, 0.0  ;;  %v14482_v4 = vpop.eup %9863 }
 0x2c2   :  { %18463 = vst [vmem:[#allocation210_spill] sm:$0xff] %v14482_v4  ;;  %9879 = vpow2.f32 %v7324_v15  ;;  %v2589_v26 = vsel %vm2587_vm15, %v2588_v13, %v2586_v46  ;;  %v3127_v52 = vsel %vm3125_vm1, %v3126_v60, %v3124_v27  ;;  %v4139_v14 = vand.u32 2147483648, %v14402_v50  ;;  %v14510_v60 = vpop.xlane.xlu0 %4083 }
 0x2c3   :  { %v9866_v5 = vpop.eup %9865  ;;  %9881 = vpow2.f32 %v7345_v49  ;;  %v4137_v6 = vsel %vm4136_vm7, %v14402_v50, %v4135_v8  ;;  %v14491_v54 = vmax.f32 %v14352_v35, 0.0  ;;  %v14494_v55 = vmax.f32 %v14358_v30, 0.0 }
 0x2c4   :  { %v14496_v4 = vpop.eup %9867  ;;  %v3131_v57 = vsel %vm3130_vm2, %v14367_v63, %v3129_v39  ;;  %v4140_v0 = vsel %vm4138_vm8, %v4139_v14, %v4137_v6  ;;  %9883 = vrsqrt.f32 %v14475_v44  ;;  %v14503_v13 = vmax.f32 %v14392_v12, 0.0  ;;  %v14515_v12 = vpop.xlane.xlu1 %3552 }
 0x2c5   :  { %18464 = vst [vmem:[#allocation211_spill] sm:$0xff] %v14496_v4  ;;  %v2600_v35 = vsel %vm2599_vm6, %v14377_v18, %v2598_v28  ;;  %v7361_v50 = vmul.f32 -1.442695, %v4140_v0  ;;  %v3143_v30 = vmul.f32 %v9866_v5, %v14409_v38  ;;  %9885 = vrsqrt.f32 %v14491_v54 }
 0x2c6   :  { %v9870_v15 = vpop.eup %9869  ;;  %v7325_v46 = vmul.f32 -1.442695, %v2589_v26  ;;  %vm2601_vm9 = vcmp.eq.f32.partialorder %v14377_v18, 0.0  ;;  %v2602_v27 = vand.u32 2147483648, %v14377_v18  ;;  %9887 = vrsqrt.f32 %v14494_v55 }
 0x2c7   :  { %v14517_v49 = vpop.eup %9871  ;;  %v7340_v39 = vmul.f32 -1.442695, %v3127_v52  ;;  %v3134_v5 = vsel %vm3132_vm5, %v3133_v17, %v3131_v57  ;;  %9889 = vpow2.f32 %v7361_v50  ;;  %v3604_v28 = vmul.f32 %v9870_v15, %v14427_v11 }
 0x2c8   :  { %18465 = vst [vmem:[#allocation212_spill] sm:$0xff] %v14517_v49  ;;  %v2603_v8 = vsel %vm2601_vm9, %v2602_v27, %v2600_v35  ;;  %vm3144_vm10 = vcmp.eq.f32.partialorder %v14409_v38, inf  ;;  %vm3146_vm11 = vcmp.eq.f32.partialorder %v14409_v38, 0.0  ;;  %9891 = vrsqrt.f32 %v14503_v13 }
 0x2c9   :  { %v14525_v18 = vpop.eup %9873  ;;  %v3145_v26 = vsel %vm3144_vm10, %v14409_v38, %v3143_v30  ;;  %v3147_v14 = vand.u32 2147483648, %v14409_v38  ;;  %vm3605_vm12 = vcmp.eq.f32.partialorder %v14427_v11, inf  ;;  %v14531_v63 = vmax.f32 %v14404_v19, 0.0  ;;  %v14539_v30 = vpop.xlane.xlu0 %3542 }
 0x2ca   :  { %18466 = vst [vmem:[#allocation213_spill] sm:$0xff] %v14525_v18  ;;  %v9876_v17 = vpop.eup %9875  ;;  %9893 = vpow2.f32 %v7325_v46  ;;  %v7341_v52 = vmul.f32 -1.442695, %v3134_v5  ;;  %v3606_v6 = vsel %vm3605_vm12, %v14427_v11, %v3604_v28  ;;  %vm3607_vm13 = vcmp.eq.f32.partialorder %v14427_v11, 0.0 }
 0x2cb   :  { %v14535_v57 = vpop.eup %9877  ;;  %9895 = vpow2.f32 %v7340_v39  ;;  %v7327_v0 = vmul.f32 -1.442695, %v2603_v8  ;;  %v3608_v35 = vand.u32 2147483648, %v14427_v11  ;;  %v2591_v50 = vmul.f32 %v9876_v17, %v14459_v1  ;;  %v14550_v39 = vpop.xlane.xlu1 %4097 }
 0x2cc   :  { %18467 = vst [vmem:[#allocation214_spill] sm:$0xff] %v14535_v57  ;;  %v14541_v15 = vpop.eup %9879  ;;  %v3148_v19 = vsel %vm3146_vm11, %v3147_v14, %v3145_v26  ;;  %vm2592_vm14 = vcmp.eq.f32.partialorder %v14459_v1, inf  ;;  %v2595_v46 = vand.u32 2147483648, %v14459_v1  ;;  %v14548_v27 = vmax.f32 %v14438_v16, 0.0 }
 0x2cd   :  { %18468 = vst [vmem:[#allocation215_spill] sm:$0xff] %v14541_v15  ;;  %v9882_v5 = vpop.eup %9881  ;;  %v3609_v11 = vsel %vm3607_vm13, %v3608_v35, %v3606_v6  ;;  %v2593_v28 = vsel %vm2592_vm14, %v14459_v1, %v2591_v50  ;;  %9897 = vrsqrt.f32 %v14531_v63  ;;  %v14555_v8 = vmax.f32 %v14433_v58, 0.0 }
 0x2ce   :  { %v9884_v38 = vpop.eup %9883  ;;  %9899 = vpow2.f32 %v7341_v52  ;;  %vm2594_vm15 = vcmp.eq.f32.partialorder %v14459_v1, 0.0  ;;  %v14560_v16 = vmax.f32 %v14469_v31, 0.0  ;;  %v7343_v17 = vmul.f32 -1.442695, %v3148_v19  ;;  %v14570_v19 = vpop.xlane.xlu0 %4087 }
 0x2cf   :  { %v9886_v14 = vpop.eup %9885  ;;  %9901 = vpow2.f32 %v7327_v0  ;;  %v2596_v6 = vsel %vm2594_vm15, %v2595_v46, %v2593_v28  ;;  %vm3137_vm0 = vcmp.eq.f32.partialorder %v14491_v54, inf  ;;  %v7347_v50 = vmul.f32 -1.442695, %v3609_v11  ;;  %v14575_v28 = vpop.xlane.xlu1 %3556 }
 0x2d0   :  { %v9888_v35 = vpop.eup %9887  ;;  %vm4150_vm1 = vcmp.eq.f32.partialorder %v14475_v44, inf  ;;  %v3136_v58 = vmul.f32 %v9886_v14, %v14491_v54  ;;  %vm3139_vm2 = vcmp.eq.f32.partialorder %v14491_v54, 0.0  ;;  %9903 = vrsqrt.f32 %v14548_v27 }
 0x2d1   :  { %v9890_v1 = vpop.eup %9889  ;;  %v3743_v52 = vadd.f32 1.0, %v9882_v5  ;;  %v3140_v31 = vand.u32 2147483648, %v14491_v54  ;;  %v3618_v0 = vmul.f32 %v9888_v35, %v14494_v55  ;;  %9905 = vrsqrt.f32 %v14555_v8 }
 0x2d2   :  { %v9892_v46 = vpop.eup %9891  ;;  %v7326_v11 = vmul.f32 -1.442695, %v2596_v6  ;;  %vm3619_vm3 = vcmp.eq.f32.partialorder %v14494_v55, inf  ;;  %vm3621_vm4 = vcmp.eq.f32.partialorder %v14494_v55, 0.0  ;;  %9907 = vrsqrt.f32 %v14560_v16 }
 0x2d3   :  { %9909 = vpow2.f32 %v7343_v17  ;;  %vm4152_vm5 = vcmp.eq.f32.partialorder %v14475_v44, 0.0  ;;  %v3138_v5 = vsel %vm3137_vm0, %v14491_v54, %v3136_v58  ;;  %v3583_v14 = vmul.f32 %v9892_v46, %v14503_v13 }
 0x2d4   :  { %v14583_v35 = vmax.f32 %v14477_v43, 0.0  ;;  %v14585_v6 = vpop.eup %9893  ;;  %9911 = vpow2.f32 %v7347_v50  ;;  %v3620_v26 = vsel %vm3619_vm3, %v14494_v55, %v3618_v0  ;;  %v3622_v15 = vand.u32 2147483648, %v14494_v55  ;;  %v4463_v0 = vld [vmem:[%s18012_s7] sm:$0xff] }
 0x2d5   :  { %18469 = vst [vmem:[#allocation216_spill] sm:$0xff] %v14585_v6  ;;  %vm3584_vm6 = vcmp.eq.f32.partialorder %v14503_v13, inf  ;;  %v14590_v17 = vpop.eup %9895  ;;  %9913 = vrcp.f32 %v3743_v52  ;;  %v4288_v57 = vadd.f32 1.0, %v9890_v1  ;;  %v4149_v58 = vmul.f32 %v9884_v38, %v14475_v44  ;;  %v4464_v1 = vld [vmem:[%s18012_s7 + $0x8] sm:$0xff] }
 0x2d6   :  { %18470 = vst [vmem:[#allocation217_spill] sm:$0xff] %v14590_v17  ;;  %v3585_v46 = vsel %vm3584_vm6, %v14503_v13, %v3583_v14  ;;  %9915 = vpow2.f32 %v7326_v11  ;;  %v3141_v43 = vsel %vm3139_vm2, %v3140_v31, %v3138_v5  ;;  %vm3586_vm7 = vcmp.eq.f32.partialorder %v14503_v13, 0.0  ;;  %v14609_v31 = vpop.xlane.xlu0 %3546 }
 0x2d7   :  { %v3587_v50 = vand.u32 2147483648, %v14503_v13  ;;  %v9898_v52 = vpop.eup %9897  ;;  %v3623_v38 = vsel %vm3621_vm4, %v3622_v15, %v3620_v26  ;;  %vm4164_vm8 = vcmp.eq.f32.partialorder %v14531_v63, inf  ;;  %v4167_v54 = vand.u32 2147483648, %v14531_v63  ;;  %v14623_v15 = vpop.xlane.xlu1 %4101 }
 0x2d8   :  { %9917 = vrsqrt.f32 %v14583_v35  ;;  %v14611_v13 = vpop.eup %9899  ;;  %vm4166_vm9 = vcmp.eq.f32.partialorder %v14531_v63, 0.0  ;;  %v14615_v5 = vmax.f32 %v14510_v60, 0.0  ;;  %v14618_v14 = vmax.f32 %v14515_v12, 0.0 }
 0x2d9   :  { %18471 = vst [vmem:[#allocation218_spill] sm:$0xff] %v14611_v13  ;;  %v3588_v11 = vsel %vm3586_vm7, %v3587_v50, %v3585_v46  ;;  %v14621_v55 = vmax.f32 %v14539_v30, 0.0  ;;  %v14625_v26 = vpop.eup %9901  ;;  %9919 = vrcp.f32 %v4288_v57  ;;  %v4151_v46 = vsel %vm4150_vm1, %v14475_v44, %v4149_v58 }
 0x2da   :  { %18472 = vst [vmem:[#allocation219_spill] sm:$0xff] %v14625_v26  ;;  %v7342_v50 = vmul.f32 -1.442695, %v3141_v43  ;;  %v9086_v13 = vpack.c.bf16 %v4464_v1, %v4463_v0  ;;  %v9904_v6 = vpop.eup %9903  ;;  %v7349_v60 = vmul.f32 -1.442695, %v3623_v38  ;;  %v4163_v17 = vmul.f32 %v9898_v52, %v14531_v63  ;;  %v14655_v38 = vpop.xlane.xlu0 %4091  ;;  %v4468_v26 = vld [vmem:[%s18012_s7 + $0x28] sm:$0xff] }
 0x2db   :  { %vm4129_vm10 = vcmp.eq.f32.partialorder %v14555_v8, inf  ;;  %9921 = vrsqrt.f32 %v14615_v5  ;;  %v9906_v12 = vpop.eup %9905  ;;  %v7344_v30 = vmul.f32 -1.442695, %v3588_v11  ;;  %v4132_v49 = vand.u32 2147483648, %v14555_v8 }
 0x2dc   :  { %v3632_v57 = vmul.f32 %v9904_v6, %v14548_v27  ;;  %9923 = vrsqrt.f32 %v14618_v14  ;;  %9087 = vmatprep.subr.bf16.mxu0 %v9086_v13  ;;  %v9908_v58 = vpop.eup %9907  ;;  %v18473_v43 = vand.u32 2147483648, %v14475_v44  ;;  %vm4131_vm11 = vcmp.eq.f32.partialorder %v14555_v8, 0.0 }
 0x2dd   :  { %vm3633_vm12 = vcmp.eq.f32.partialorder %v14548_v27, inf  ;;  %9925 = vrsqrt.f32 %v14621_v55  ;;  %v14646_v1 = vmax.f32 %v14550_v39, 0.0  ;;  %9089 = vmatpush3.bf16.msra.mxu0 %v9086_v13  ;;  %v14648_v6 = vpop.eup %9909  ;;  %vm3635_vm13 = vcmp.eq.f32.partialorder %v14548_v27, 0.0 }
 0x2de   :  { %v14640_v0 = vsel %vm4152_vm5, %v18473_v43, %v4151_v46  ;;  %18474 = vst [vmem:[#allocation220_spill] sm:$0xff] %v14648_v6  ;;  %9927 = vpow2.f32 %v7342_v50  ;;  %v3597_v52 = vmul.f32 %v9908_v58, %v14560_v16  ;;  %v14653_v44 = vmax.f32 %v14570_v19, 0.0  ;;  %v14657_v11 = vpop.eup %9911  ;;  %v14666_v50 = vpop.xlane.xlu1 %3560  ;;  %v4466_v6 = vld [vmem:[%s18012_s7 + $0x18] sm:$0xff] }
 0x2df   :  { %9929 = vpow2.f32 %v7349_v60  ;;  %v4165_v39 = vsel %vm4164_vm8, %v14531_v63, %v4163_v17  ;;  %v4128_v13 = vmul.f32 %v9906_v12, %v14555_v8  ;;  %v14664_v46 = vmax.f32 %v14575_v28, 0.0  ;;  %v14668_v58 = vpop.eup %9913 }
 0x2e0   :  { %9931 = vpow2.f32 %v7344_v30  ;;  %v3634_v19 = vsel %vm3633_vm12, %v14548_v27, %v3632_v57  ;;  %v3636_v60 = vand.u32 2147483648, %v14548_v27  ;;  %vm3598_vm14 = vcmp.eq.f32.partialorder %v14560_v16, inf  ;;  %v14675_v43 = vpop.eup %9915  ;;  %v4467_v57 = vld [vmem:[%s18012_s7 + $0x20] sm:$0xff] }
 0x2e1   :  { %18475 = vst [vmem:[#allocation221_spill] sm:$0xff] %v14675_v43  ;;  %v3599_v17 = vsel %vm3598_vm14, %v14560_v16, %v3597_v52  ;;  %vm3600_vm15 = vcmp.eq.f32.partialorder %v14560_v16, 0.0  ;;  %v3601_v28 = vand.u32 2147483648, %v14560_v16  ;;  %9933 = vrsqrt.f32 %v14646_v1  ;;  %v4465_v52 = vld [vmem:[%s18012_s7 + $0x10] sm:$0xff] }
 0x2e2   :  { %v9918_v12 = vpop.eup %9917  ;;  %v14683_v30 = vsel %vm4166_vm9, %v4167_v54, %v4165_v39  ;;  %vm4178_vm0 = vcmp.eq.f32.partialorder %v14583_v35, inf  ;;  %9935 = vrsqrt.f32 %v14653_v44  ;;  %v4130_v63 = vsel %vm4129_vm10, %v14555_v8, %v4128_v13  ;;  %v14723_v41 = vpop.xlane.xlu1 %4105 }
 0x2e3   :  { %18476 = vst [vmem:[#allocation222_spill] sm:$0xff] %v14683_v30  ;;  %v3637_v54 = vsel %vm3635_vm13, %v3636_v60, %v3634_v19  ;;  %vm4180_vm1 = vcmp.eq.f32.partialorder %v14583_v35, 0.0  ;;  %vm4143_vm2 = vcmp.eq.f32.partialorder %v14615_v5, inf  ;;  %9937 = vrsqrt.f32 %v14664_v46  ;;  %v14709_v13 = vpop.eup %9919  ;;  %v3551_v60 = vpop.xlane.xlu0 %3550 }
 0x2e4   :  { %v3602_v27 = vsel %vm3600_vm15, %v3601_v28, %v3599_v17  ;;  %vm3647_vm3 = vcmp.eq.f32.partialorder %v14618_v14, inf  ;;  %vm3649_vm4 = vcmp.eq.f32.partialorder %v14618_v14, 0.0  ;;  %v3650_v19 = vand.u32 2147483648, %v14618_v14 }
 0x2e5   :  { %v9922_v39 = vpop.eup %9921  ;;  %v4177_v43 = vmul.f32 %v9918_v12, %v14583_v35  ;;  %v14718_v18 = vmax.f32 %v14609_v31, 0.0  ;;  %v9090_v4 = vpack.c.bf16 %v4466_v6, %v4465_v52  ;;  %v14721_v10 = vmax.f32 %v14623_v15, 0.0 }
 0x2e6   :  { %v9924_v16 = vpop.eup %9923  ;;  %v14727_v17 = vsel %vm4131_vm11, %v4132_v49, %v4130_v63  ;;  %v7351_v28 = vmul.f32 -1.442695, %v3637_v54  ;;  %vm4145_vm5 = vcmp.eq.f32.partialorder %v14615_v5, 0.0  ;;  %vm3612_vm6 = vcmp.eq.f32.partialorder %v14621_v55, inf }
 0x2e7   :  { %v9094_v12 = vpack.c.bf16 %v4468_v26, %v4467_v57  ;;  %v9926_v33 = vpop.eup %9925  ;;  %v7346_v31 = vmul.f32 -1.442695, %v3602_v27  ;;  %v3646_v6 = vmul.f32 %v9924_v16, %v14618_v14  ;;  %vm3614_vm7 = vcmp.eq.f32.partialorder %v14621_v55, 0.0  ;;  %9091 = vmatprep.subr.bf16.mxu0 %v9090_v4  ;;  %v4096_v27 = vpop.xlane.xlu0 %4095 }
 0x2e8   :  { %9939 = vrsqrt.f32 %v14718_v18  ;;  %v14734_v15 = vpop.eup %9927  ;;  %v4142_v49 = vmul.f32 %v9922_v39, %v14615_v5  ;;  %v3611_v8 = vmul.f32 %v9926_v33, %v14621_v55  ;;  %v3615_v52 = vand.u32 2147483648, %v14621_v55  ;;  %9093 = vmatpush3.bf16.msra.mxu0 %v9090_v4 }
 0x2e9   :  { %18477 = vst [vmem:[#allocation223_spill] sm:$0xff] %v14734_v15  ;;  %9941 = vrsqrt.f32 %v14721_v10  ;;  %v14740_v26 = vpop.eup %9929  ;;  %v4179_v57 = vsel %vm4178_vm0, %v14583_v35, %v4177_v43  ;;  %v3648_v63 = vsel %vm3647_vm3, %v14618_v14, %v3646_v6  ;;  %vm4192_vm8 = vcmp.eq.f32.partialorder %v14646_v1, inf  ;;  %9095 = vmatprep.subr.bf16.mxu0 %v9094_v12 }
 0x2ea   :  { %18478 = vst [vmem:[#allocation224_spill] sm:$0xff] %v14740_v26  ;;  %v14751_v33 = vmax.f32 %v14655_v38, 0.0  ;;  %v14753_v4 = vpop.eup %9931  ;;  %9943 = vpow2.f32 %v7351_v28  ;;  %v3613_v39 = vsel %vm3612_vm6, %v14621_v55, %v3611_v8  ;;  %vm4157_vm9 = vcmp.eq.f32.partialorder %v14653_v44, inf  ;;  %v3559_v28 = vpop.xlane.xlu1 %3558  ;;  %v4469_v55 = vld [vmem:[%s18012_s7 + $0x30] sm:$0xff] }
 0x2eb   :  { %v9934_v16 = vpop.eup %9933  ;;  %9945 = vpow2.f32 %v7346_v31  ;;  %v3651_v6 = vsel %vm3649_vm4, %v3650_v19, %v3648_v63  ;;  %vm3661_vm10 = vcmp.eq.f32.partialorder %v14664_v46, inf  ;;  %v14764_v38 = vmax.f32 %v14666_v50, 0.0 }
 0x2ec   :  { %v9936_v54 = vpop.eup %9935  ;;  %v18479_v15 = vand.u32 2147483648, %v14583_v35  ;;  %v4144_v31 = vsel %vm4143_vm2, %v14615_v5, %v4142_v49  ;;  %vm4194_vm11 = vcmp.eq.f32.partialorder %v14646_v1, 0.0  ;;  %vm3663_vm12 = vcmp.eq.f32.partialorder %v14664_v46, 0.0  ;;  %9097 = vmatpush3.bf16.msra.mxu0 %v9094_v12 }
 0x2ed   :  { %v14777_v14 = vmax.f32 %v3551_v60, 0.0  ;;  %v9938_v50 = vpop.eup %9937  ;;  %v3616_v19 = vsel %vm3614_vm7, %v3615_v52, %v3613_v39  ;;  %vm4159_vm13 = vcmp.eq.f32.partialorder %v14653_v44, 0.0  ;;  %v3664_v35 = vand.u32 2147483648, %v14664_v46  ;;  %v4470_v60 = vld [vmem:[%s18012_s7 + $0x38] sm:$0xff] }
 0x2ee   :  { %v14770_v8 = vsel %vm4180_vm1, %v18479_v15, %v4179_v57  ;;  %vm3626_vm14 = vcmp.eq.f32.partialorder %v14718_v18, inf  ;;  %9947 = vrsqrt.f32 %v14751_v33  ;;  %v7353_v15 = vmul.f32 -1.442695, %v3651_v6  ;;  %v4472_v6 = vld [vmem:[%s18012_s7 + $0x48] sm:$0xff] }
 0x2ef   :  { %18480 = vst [vmem:[#allocation225_spill] sm:$0xff] %v14770_v8  ;;  %v4191_v49 = vmul.f32 %v9934_v16, %v14646_v1  ;;  %v3660_v57 = vmul.f32 %v9938_v50, %v14664_v46  ;;  %vm3628_vm15 = vcmp.eq.f32.partialorder %v14718_v18, 0.0  ;;  %v18481_v12 = vand.u32 2147483648, %v14615_v5  ;;  %v4471_v16 = vld [vmem:[%s18012_s7 + $0x40] sm:$0xff] }
 0x2f0   :  { %v4156_v63 = vmul.f32 %v9936_v54, %v14653_v44  ;;  %v3629_v39 = vand.u32 2147483648, %v14718_v18  ;;  %9949 = vrsqrt.f32 %v14764_v38  ;;  %v7348_v50 = vmul.f32 -1.442695, %v3616_v19  ;;  %v3555_v54 = vpop.xlane.xlu0 %3554  ;;  %v4104_v19 = vpop.xlane.xlu1 %4103 }
 0x2f1   :  { %v14798_v52 = vsel %vm4145_vm5, %v18481_v12, %v4144_v31  ;;  %v3662_v5 = vsel %vm3661_vm10, %v14664_v46, %v3660_v57  ;;  %vm4206_vm0 = vcmp.eq.f32.partialorder %v14721_v10, inf  ;;  %9951 = vrsqrt.f32 %v14777_v14 }
 0x2f2   :  { %v9940_v31 = vpop.eup %9939  ;;  %v3665_v12 = vsel %vm3663_vm12, %v3664_v35, %v3662_v5  ;;  %v9098_v43 = vpack.c.bf16 %v4470_v60, %v4469_v55  ;;  %v14817_v8 = vmax.f32 %v14723_v41, 0.0  ;;  %v14819_v30 = vmax.f32 %v4096_v27, 0.0 }
 0x2f3   :  { %v9942_v26 = vpop.eup %9941  ;;  %9953 = vpow2.f32 %v7353_v15  ;;  %v4193_v57 = vsel %vm4192_vm8, %v14646_v1, %v4191_v49  ;;  %v3625_v42 = vmul.f32 %v9940_v31, %v14718_v18  ;;  %vm4208_vm1 = vcmp.eq.f32.partialorder %v14721_v10, 0.0  ;;  %v4475_v31 = vld [vmem:[%s18012_s7 + $0x60] sm:$0xff] }
 0x2f4   :  { %v9102_v61 = vpack.c.bf16 %v4472_v6, %v4471_v16  ;;  %v4158_v46 = vsel %vm4157_vm9, %v14653_v44, %v4156_v63  ;;  %v4209_v41 = vand.u32 2147483648, %v14721_v10  ;;  %9099 = vmatprep.subr.bf16.mxu0 %v9098_v43  ;;  %9955 = vrsqrt.f32 %v14817_v8  ;;  %v14833_v35 = vpop.eup %9943  ;;  %v4100_v5 = vpop.xlane.xlu0 %4099 }
 0x2f5   :  { %v14831_v27 = vmax.f32 %v3559_v28, 0.0  ;;  %18482 = vst [vmem:[#allocation226_spill] sm:$0xff] %v14833_v35  ;;  %9957 = vpow2.f32 %v7348_v50  ;;  %v7355_v15 = vmul.f32 -1.442695, %v3665_v12  ;;  %v3627_v49 = vsel %vm3626_vm14, %v14718_v18, %v3625_v42  ;;  %9101 = vmatpush3.bf16.msra.mxu0 %v9098_v43  ;;  %v14839_v60 = vpop.eup %9945  ;;  %v4473_v42 = vld [vmem:[%s18012_s7 + $0x50] sm:$0xff]  ;;  %v4476_v12 = vld [vmem:[%s18012_s7 + $0x68] sm:$0xff] }
 0x2f6   :  { %v4205_v55 = vmul.f32 %v9942_v26, %v14721_v10  ;;  %v18483_v63 = vand.u32 2147483648, %v14646_v1  ;;  %vm4171_vm2 = vcmp.eq.f32.partialorder %v14751_v33, inf  ;;  %vm3675_vm3 = vcmp.eq.f32.partialorder %v14764_v38, inf  ;;  %9103 = vmatprep.subr.bf16.mxu0 %v9102_v61  ;;  %v4474_v26 = vld [vmem:[%s18012_s7 + $0x58] sm:$0xff] }
 0x2f7   :  { %9959 = vrsqrt.f32 %v14819_v30  ;;  %v18485_v1 = vand.u32 2147483648, %v14653_v44  ;;  %v3630_v6 = vsel %vm3628_vm15, %v3629_v39, %v3627_v49  ;;  %vm3677_vm4 = vcmp.eq.f32.partialorder %v14764_v38, 0.0  ;;  %v3565_v44 = vpop.xlane.xlu1 %3564 }
 0x2f8   :  { %v14845_v16 = vsel %vm4194_vm11, %v18483_v63, %v4193_v57  ;;  %v3678_v50 = vand.u32 2147483648, %v14764_v38  ;;  %v9948_v57 = vpop.eup %9947  ;;  %vm3640_vm5 = vcmp.eq.f32.partialorder %v14777_v14, inf  ;;  %vm3642_vm6 = vcmp.eq.f32.partialorder %v14777_v14, 0.0 }
 0x2f9   :  { %18484 = vst [vmem:[#allocation227_spill] sm:$0xff] %v14845_v16  ;;  %v14861_v43 = vsel %vm4159_vm13, %v18485_v1, %v4158_v46  ;;  %v3643_v18 = vand.u32 2147483648, %v14777_v14  ;;  %9961 = vrsqrt.f32 %v14831_v27  ;;  %v4207_v39 = vsel %vm4206_vm0, %v14721_v10, %v4205_v55  ;;  %9105 = vmatpush3.bf16.msra.mxu0 %v9102_v61  ;;  %v3563_v10 = vpop.xlane.xlu0 %3562 }
 0x2fa   :  { %18486 = vst [vmem:[#allocation228_spill] sm:$0xff] %v14861_v43  ;;  %9963 = vpow2.f32 %v7355_v15  ;;  %vm4173_vm7 = vcmp.eq.f32.partialorder %v14751_v33, 0.0  ;;  %v14881_v46 = vmax.f32 %v3555_v54, 0.0  ;;  %v9106_v49 = vpack.c.bf16 %v4474_v26, %v4473_v42  ;;  %v9950_v63 = vpop.eup %9949 }
 0x2fb   :  { %v7350_v1 = vmul.f32 -1.442695, %v3630_v6  ;;  %vm4220_vm8 = vcmp.eq.f32.partialorder %v14817_v8, inf  ;;  %v14884_v28 = vmax.f32 %v4104_v19, 0.0  ;;  %v14886_v16 = vmax.f32 %v4100_v5, 0.0  ;;  %v9952_v15 = vpop.eup %9951  ;;  %v4478_v6 = vld [vmem:[%s18012_s7 + $0x78] sm:$0xff] }
 0x2fc   :  { %v9110_v35 = vpack.c.bf16 %v4476_v12, %v4475_v31  ;;  %v4170_v43 = vmul.f32 %v9948_v57, %v14751_v33  ;;  %v3674_v55 = vmul.f32 %v9950_v63, %v14764_v38  ;;  %v4223_v51 = vand.u32 2147483648, %v14817_v8  ;;  %9107 = vmatprep.subr.bf16.mxu0 %v9106_v49  ;;  %v4110_v57 = vpop.xlane.xlu1 %4109 }
 0x2fd   :  { %9965 = vrsqrt.f32 %v14881_v46  ;;  %v14894_v61 = vsel %vm4208_vm1, %v4209_v41, %v4207_v39  ;;  %v3639_v54 = vmul.f32 %v9952_v15, %v14777_v14  ;;  %vm4185_vm9 = vcmp.eq.f32.partialorder %v14819_v30, inf  ;;  %v14899_v19 = vpop.eup %9953  ;;  %9109 = vmatpush3.bf16.msra.mxu0 %v9106_v49  ;;  %v4477_v41 = vld [vmem:[%s18012_s7 + $0x70] sm:$0xff] }
 0x2fe   :  { %9967 = vrsqrt.f32 %v14884_v28  ;;  %v3676_v42 = vsel %vm3675_vm3, %v14764_v38, %v3674_v55  ;;  %vm4222_vm10 = vcmp.eq.f32.partialorder %v14817_v8, 0.0  ;;  %vm3668_vm11 = vcmp.eq.f32.partialorder %v14831_v27, inf  ;;  %v9956_v5 = vpop.eup %9955  ;;  %9111 = vmatprep.subr.bf16.mxu0 %v9110_v35 }
 0x2ff   :  { %9969 = vrsqrt.f32 %v14886_v16  ;;  %v3679_v31 = vsel %vm3677_vm4, %v3678_v50, %v3676_v42  ;;  %v3641_v12 = vsel %vm3640_vm5, %v14777_v14, %v3639_v54  ;;  %vm3670_vm12 = vcmp.eq.f32.partialorder %v14831_v27, 0.0  ;;  %v14920_v39 = vpop.eup %9957 }
 0x300   :  { %9971 = vpow2.f32 %v7350_v1  ;;  %v4172_v49 = vsel %vm4171_vm2, %v14751_v33, %v4170_v43  ;;  %v7357_v63 = vmul.f32 -1.442695, %v3679_v31  ;;  %v3644_v1 = vsel %vm3642_vm6, %v3643_v18, %v3641_v12 }
 0x301   :  { %v4219_v38 = vmul.f32 %v9956_v5, %v14817_v8  ;;  %vm4187_vm13 = vcmp.eq.f32.partialorder %v14819_v30, 0.0  ;;  %v9960_v50 = vpop.eup %9959  ;;  %v7352_v15 = vmul.f32 -1.442695, %v3644_v1  ;;  %v14929_v55 = vmax.f32 %v3565_v44, 0.0  ;;  %9113 = vmatpush3.bf16.msra.mxu0 %v9110_v35 }
 0x302   :  { %v14931_v54 = vmax.f32 %v3563_v10, 0.0  ;;  %v9114_v42 = vpack.c.bf16 %v4478_v6, %v4477_v41  ;;  %9973 = vpow2.f32 %v7357_v63  ;;  %v4184_v26 = vmul.f32 %v9960_v50, %v14819_v30 }
 0x303   :  { %v3671_v43 = vand.u32 2147483648, %v14831_v27  ;;  %v14935_v31 = vmax.f32 %v4110_v57, 0.0  ;;  %v9962_v14 = vpop.eup %9961  ;;  %v18487_v18 = vand.u32 2147483648, %v14751_v33  ;;  %9975 = vpow2.f32 %v7352_v15 }
 0x304   :  { %vm3654_vm14 = vcmp.eq.f32.partialorder %v14881_v46, inf  ;;  %vm3656_vm15 = vcmp.eq.f32.partialorder %v14881_v46, 0.0  ;;  %9115 = vmatprep.subr.bf16.mxu0 %v9114_v42  ;;  %v14945_v44 = vpop.eup %9963  ;;  %v4221_v35 = vsel %vm4220_vm8, %v14817_v8, %v4219_v38  ;;  %v3667_v10 = vmul.f32 %v9962_v14, %v14831_v27  ;;  %v18488_v8 = vld [vmem:[#allocation15_spill] sm:$0xff] }
 0x305   :  { %v14941_v5 = vsel %vm4173_vm7, %v18487_v18, %v4172_v49  ;;  %v3657_v41 = vand.u32 2147483648, %v14881_v46  ;;  %9977 = vrsqrt.f32 %v14929_v55  ;;  %vm4213_vm0 = vcmp.eq.f32.partialorder %v14884_v28, inf  ;;  %9117 = vmatpush3.bf16.msra.mxu0 %v9114_v42  ;;  %v18489_v18 = vld [vmem:[#allocation16_spill] sm:$0xff] }
 0x306   :  { %v4216_v33 = vand.u32 2147483648, %v14884_v28  ;;  %vm4199_vm1 = vcmp.eq.f32.partialorder %v14886_v16, inf  ;;  %9979 = vrsqrt.f32 %v14931_v54  ;;  %v4186_v12 = vsel %vm4185_vm9, %v14819_v30, %v4184_v26 }
 0x307   :  { %v9966_v6 = vpop.eup %9965  ;;  %v3669_v57 = vsel %vm3668_vm11, %v14831_v27, %v3667_v10  ;;  %vm4215_vm2 = vcmp.eq.f32.partialorder %v14884_v28, 0.0  ;;  %v4202_v49 = vand.u32 2147483648, %v14886_v16  ;;  %9981 = vrsqrt.f32 %v14935_v31 }
 0x308   :  { %v9968_v63 = vpop.eup %9967  ;;  %v14970_v1 = vsel %vm4222_vm10, %v4223_v51, %v4221_v35  ;;  %v3672_v26 = vsel %vm3670_vm12, %v3671_v43, %v3669_v57  ;;  %v3653_v38 = vmul.f32 %v9966_v6, %v14881_v46  ;;  %v3692_v50 = vand.u32 2147483648, %v14929_v55  ;;  %v18491_v57 = vld [vmem:[#allocation73_spill] sm:$0xff] }
 0x309   :  { %v9970_v15 = vpop.eup %9969  ;;  %vm4367_vm3 = vcmp.gt.f32.partialorder %v12819_v23, 0.0  ;;  %v7356_v42 = vmul.f32 -1.442695, %v3672_v26  ;;  %v4212_v14 = vmul.f32 %v9968_v63, %v14884_v28  ;;  %vm4201_vm4 = vcmp.eq.f32.partialorder %v14886_v16, 0.0 }
 0x30a   :  { %vm3689_vm5 = vcmp.eq.f32.partialorder %v14929_v55, inf  ;;  %v616_v51 = vmul.f32 %v12889_v53, %v18488_v8  ;;  %v1145_v27 = vmul.f32 %v12901_v22, %v18489_v18  ;;  %v14984_v43 = vpop.eup %9971  ;;  %v18490_v35 = vand.u32 2147483648, %v14819_v30 }
 0x30b   :  { %v3655_v6 = vsel %vm3654_vm14, %v14881_v46, %v3653_v38  ;;  %vm3691_vm6 = vcmp.eq.f32.partialorder %v14929_v55, 0.0  ;;  %v1690_v53 = vmul.f32 %v13622_v56, %v18491_v57  ;;  %v2107_v63 = vadd.f32 1.0, %v13581_v45  ;;  %v4108_v38 = vpop.xlane.xlu0 %4107 }
 0x30c   :  { %v14990_v10 = vsel %vm4187_vm13, %v18490_v35, %v4186_v12  ;;  %9983 = vpow2.f32 %v7356_v42  ;;  %v3658_v22 = vsel %vm3656_vm15, %v3657_v41, %v3655_v6  ;;  %v4198_v26 = vmul.f32 %v9970_v15, %v14886_v16  ;;  %v15004_v8 = vpop.eup %9973 }
 0x30d   :  { %v1161_v30 = vmax.f32 %v616_v51, %v1145_v27  ;;  %v7354_v12 = vmul.f32 -1.442695, %v3658_v22  ;;  %vm3682_vm7 = vcmp.eq.f32.partialorder %v14931_v54, inf  ;;  %vm3684_vm8 = vcmp.eq.f32.partialorder %v14931_v54, 0.0  ;;  %v15013_v15 = vpop.eup %9975  ;;  %v18493_v22 = vld [vmem:[#allocation13_spill] sm:$0xff] }
 0x30e   :  { %9985 = vrcp.f32 %v2107_v63  ;;  %v4214_v45 = vsel %vm4213_vm0, %v14884_v28, %v4212_v14  ;;  %v2652_v46 = vadd.f32 1.0, %v14185_v36  ;;  %v3197_v41 = vadd.f32 1.0, %v14198_v25  ;;  %v18492_v36 = vld [vmem:[#allocation14_spill] sm:$0xff] }
 0x30f   :  { %v15009_v56 = vmax.f32 %v1161_v30, %v1690_v53  ;;  %9987 = vpow2.f32 %v7354_v12  ;;  %v3685_v42 = vand.u32 2147483648, %v14931_v54  ;;  %v3742_v51 = vadd.f32 1.0, %v14753_v4  ;;  %v9978_v27 = vpop.eup %9977  ;;  %v18494_v30 = vld [vmem:[#allocation72_spill] sm:$0xff]  ;;  %v18495_v12 = vld [vmem:[#allocation74_spill] sm:$0xff] }
 0x310   :  { %v7360_v18 = vmul.f32 -1.442695, %v14727_v17  ;;  %v4200_v14 = vsel %vm4199_vm1, %v14886_v16, %v4198_v26  ;;  %9989 = vrcp.f32 %v2652_v46  ;;  %v15021_v35 = vmax.f32 %v4108_v38, 0.0  ;;  %v9980_v6 = vpop.eup %9979 }
 0x311   :  { %v1146_v25 = vmul.f32 %v12894_v47, %v18492_v36  ;;  %v15027_v57 = vsel %vm4215_vm2, %v4216_v33, %v4214_v45  ;;  %v3688_v4 = vmul.f32 %v9978_v27, %v14929_v55  ;;  %v4237_v17 = vand.u32 2147483648, %v14935_v31  ;;  %v9982_v53 = vpop.eup %9981  ;;  %v18497_v27 = vld [vmem:[#allocation63_spill] sm:$0xff] }
 0x312   :  { %9991 = vrcp.f32 %v3197_v41  ;;  %v3681_v63 = vmul.f32 %v9980_v6, %v14931_v54  ;;  %v617_v26 = vmul.f32 %v12855_v3, %v18493_v22  ;;  %v1691_v47 = vmul.f32 %v13535_v37, %v18494_v30  ;;  %v18496_v41 = vld [vmem:[#allocation130_spill] sm:$0xff]  ;;  %v18500_v6 = vld [vmem:[#allocation25_spill] sm:$0xff] }
 0x313   :  { %9993 = vrcp.f32 %v3742_v51  ;;  %v15038_v28 = vsel %vm4201_vm4, %v4202_v49, %v4200_v14  ;;  %v3690_v33 = vsel %vm3689_vm5, %v14929_v55, %v3688_v4  ;;  %v2236_v38 = vmul.f32 %v13631_v7, %v18495_v12  ;;  %v18498_v14 = vld [vmem:[#allocation51_spill] sm:$0xff]  ;;  %v18503_v22 = vld [vmem:[#allocation10_spill] sm:$0xff] }
 0x314   :  { %9995 = vpow2.f32 %v7360_v18  ;;  %v3693_v45 = vsel %vm3691_vm6, %v3692_v50, %v3690_v33  ;;  %v3683_v3 = vsel %vm3682_vm7, %v14931_v54, %v3681_v63  ;;  %v1162_v37 = vmax.f32 %v617_v26, %v1146_v25  ;;  %v18499_v25 = vld [vmem:[#allocation118_spill] sm:$0xff]  ;;  %v18501_v4 = vld [vmem:[#allocation127_spill] sm:$0xff] }
 0x315   :  { %9997 = vrsqrt.f32 %v15021_v35  ;;  %v7359_v16 = vmul.f32 -1.442695, %v3693_v45  ;;  %v3686_v49 = vsel %vm3684_vm8, %v3685_v42, %v3683_v3  ;;  %v4233_v46 = vmul.f32 %v9982_v53, %v14935_v31  ;;  %v18502_v63 = vld [vmem:[#allocation138_spill] sm:$0xff] }
 0x316   :  { %v15058_v7 = vsel %vm4367_vm3, %v12819_v23, %v18496_v41  ;;  %v15060_v55 = vpop.eup %9983  ;;  %v7358_v50 = vmul.f32 -1.442695, %v3686_v49  ;;  %vm4234_vm9 = vcmp.eq.f32.partialorder %v14935_v31, inf  ;;  %v4230_v51 = vand.u32 2147483648, %v15021_v35  ;;  %v18505_v33 = vld [vmem:[#allocation126_spill] sm:$0xff] }
 0x317   :  { %v1707_v18 = vmax.f32 %v1162_v37, %v1691_v47  ;;  %v2781_v54 = vmul.f32 %v14138_v9, %v18497_v27  ;;  %9999 = vpow2.f32 %v7359_v16  ;;  %v3326_v36 = vmul.f32 %v14164_v21, %v18498_v14  ;;  %v18504_v47 = vld [vmem:[#allocation22_spill] sm:$0xff]  ;;  %v18506_v21 = vld [vmem:[#allocation27_spill] sm:$0xff]  ;;  %v18507_v27 = vld [vmem:[#allocation64_spill] sm:$0xff] }
 0x318   :  { %v9986_v42 = vpop.eup %9985  ;;  %v3871_v23 = vmul.f32 %v14668_v58, %v18499_v25  ;;  %v618_v53 = vmul.f32 %v18501_v4, %v18500_v6  ;;  %vm4369_vm10 = vcmp.gt.f32.partialorder %v18502_v63, 0.0  ;;  %10001 = vpow2.f32 %v7358_v50  ;;  %v18508_v14 = vld [vmem:[#allocation121_spill] sm:$0xff]  ;;  %v18510_v4 = vld [vmem:[#allocation120_spill] sm:$0xff] }
 0x319   :  { %v2235_v26 = vmul.f32 %v9986_v42, %v18503_v22  ;;  %v2252_v30 = vmax.f32 %v1707_v18, %v2236_v38  ;;  %v1147_v9 = vmul.f32 %v18505_v33, %v18504_v47  ;;  %v15076_v12 = vpop.eup %9987  ;;  %vm4236_vm11 = vcmp.eq.f32.partialorder %v14935_v31, 0.0  ;;  %v18511_v22 = vld [vmem:[#allocation23_spill] sm:$0xff] }
 0x31a   :  { %v1692_v45 = vmul.f32 %v13775_v32, %v18506_v21  ;;  %v2109_v58 = vadd.f32 1.0, %v13770_v59  ;;  %v2654_v3 = vadd.f32 1.0, %v14232_v62  ;;  %v3199_v37 = vadd.f32 1.0, %v14245_v24  ;;  %v9990_v16 = vpop.eup %9989  ;;  %v18509_v62 = vld [vmem:[#allocation91_spill] sm:$0xff] }
 0x31b   :  { %v2251_v49 = vmax.f32 %v15009_v56, %v2235_v26  ;;  %v2797_v38 = vmax.f32 %v2252_v30, %v2781_v54  ;;  %v1163_v41 = vmax.f32 %v618_v53, %v1147_v9  ;;  %v3744_v50 = vadd.f32 1.0, %v14839_v60  ;;  %v18513_v33 = vld [vmem:[#allocation19_spill] sm:$0xff]  ;;  %v18514_v9 = vld [vmem:[#allocation125_spill] sm:$0xff] }
 0x31c   :  { %v9992_v18 = vpop.eup %9991  ;;  %v2780_v42 = vmul.f32 %v9990_v16, %v18507_v27  ;;  %v15089_v25 = vmul.f32 %v14709_v13, %v18508_v14  ;;  %10003 = vrcp.f32 %v2109_v58  ;;  %v7362_v59 = vmul.f32 -1.442695, %v14798_v52  ;;  %v18512_v13 = vld [vmem:[#allocation124_spill] sm:$0xff] }
 0x31d   :  { %v9994_v32 = vpop.eup %9993  ;;  %v3325_v24 = vmul.f32 %v9992_v18, %v18509_v62  ;;  %vm4227_vm12 = vcmp.eq.f32.partialorder %v15021_v35, inf  ;;  %v3342_v56 = vmax.f32 %v2797_v38, %v3326_v36  ;;  %v15094_v54 = vmax.f32 %v1163_v41, %v1692_v45  ;;  %v18515_v58 = vld [vmem:[#allocation32_spill] sm:$0xff]  ;;  %v18519_v62 = vld [vmem:[#allocation131_spill] sm:$0xff] }
 0x31e   :  { %10005 = vrcp.f32 %v2654_v3  ;;  %v9996_v60 = vpop.eup %9995  ;;  %v2796_v6 = vmax.f32 %v2251_v49, %v2780_v42  ;;  %v3870_v53 = vmul.f32 %v9994_v32, %v18510_v4  ;;  %v619_v26 = vmul.f32 %v18512_v13, %v18511_v22  ;;  %v18518_v32 = vld [vmem:[#allocation29_spill] sm:$0xff] }
 0x31f   :  { %10007 = vrcp.f32 %v3199_v37  ;;  %v9998_v30 = vpop.eup %9997  ;;  %v4287_v47 = vadd.f32 1.0, %v9996_v60  ;;  %v15099_v52 = vmax.f32 %v3342_v56, %v3871_v23  ;;  %v1148_v21 = vmul.f32 %v18514_v9, %v18513_v33  ;;  %v18516_v23 = vld [vmem:[#allocation168_spill] sm:$0xff]  ;;  %v18522_v60 = vld [vmem:[#allocation21_spill] sm:$0xff] }
 0x320   :  { %10009 = vrcp.f32 %v3744_v50  ;;  %v4235_v36 = vsel %vm4234_vm9, %v14935_v31, %v4233_v46  ;;  %v3341_v45 = vmax.f32 %v2796_v6, %v3325_v24  ;;  %v1693_v3 = vmul.f32 %v13711_v34, %v18515_v58  ;;  %v18520_v31 = vld [vmem:[#allocation38_spill] sm:$0xff]  ;;  %v18525_v33 = vld [vmem:[#allocation93_spill] sm:$0xff]  ;;  %v18528_v58 = vld [vmem:[#allocation47_spill] sm:$0xff] }
 0x321   :  { %10011 = vpow2.f32 %v7362_v59  ;;  %v4432_v37 = vmax.f32 %v15099_v52, %v15089_v25  ;;  %v1164_v16 = vmax.f32 %v619_v26, %v1148_v21  ;;  %v2110_v49 = vadd.f32 1.0, %v18516_v23  ;;  %v15111_v38 = vpop.eup %9999  ;;  %v18517_v59 = vld [vmem:[#allocation140_spill] sm:$0xff]  ;;  %v18529_v23 = vld [vmem:[#allocation95_spill] sm:$0xff] }
 0x322   :  { %10013 = vrcp.f32 %v4287_v47  ;;  %v15113_v41 = vmax.f32 %v3341_v45, %v3870_v53  ;;  %v4226_v50 = vmul.f32 %v9998_v30, %v15021_v35  ;;  %v2655_v46 = vadd.f32 1.0, %v14241_v48  ;;  %v15118_v27 = vpop.eup %10001  ;;  %v18523_v53 = vld [vmem:[#allocation201_spill] sm:$0xff]  ;;  %v18524_v26 = vld [vmem:[#allocation12_spill] sm:$0xff]  ;;  %v18527_v45 = vld [vmem:[#allocation26_spill] sm:$0xff] }
 0x323   :  { %v3200_v18 = vadd.f32 1.0, %v14256_v20  ;;  %v15124_v34 = vsel %vm4236_vm11, %v4237_v17, %v4235_v36  ;;  %v15126_v42 = vmax.f32 %v1164_v16, %v1693_v3  ;;  %10015 = vrcp.f32 %v2110_v49  ;;  %v18521_v17 = vld [vmem:[#allocation129_spill] sm:$0xff]  ;;  %v18526_v21 = vld [vmem:[#allocation228_spill] sm:$0xff] }
 0x324   :  { %v3745_v14 = vadd.f32 1.0, %v14657_v11  ;;  %v15133_v48 = vsel %vm4369_vm10, %v18502_v63, %v18517_v59  ;;  %10017 = vrcp.f32 %v2655_v46  ;;  %v7363_v20 = vmul.f32 -1.442695, %v14640_v0  ;;  %v18532_v59 = vld [vmem:[#allocation128_spill] sm:$0xff] }
 0x325   :  { %v620_v24 = vmul.f32 %v18519_v62, %v18518_v32  ;;  %10019 = vrcp.f32 %v3200_v18  ;;  %v1149_v56 = vmul.f32 %v18521_v17, %v18520_v31  ;;  %v1694_v6 = vmul.f32 %v13868_v29, %v18522_v60  ;;  %v18530_v18 = vld [vmem:[#allocation135_spill] sm:$0xff]  ;;  %v18533_v32 = vld [vmem:[#allocation18_spill] sm:$0xff] }
 0x326   :  { %v2111_v11 = vadd.f32 1.0, %v13795_v40  ;;  %v10004_v4 = vpop.eup %10003  ;;  %v4228_v63 = vsel %vm4227_vm12, %v15021_v35, %v4226_v50  ;;  %10021 = vrcp.f32 %v3745_v14  ;;  %v2656_v0 = vadd.f32 1.0, %v14303_v2  ;;  %v18531_v14 = vld [vmem:[#allocation28_spill] sm:$0xff]  ;;  %v18534_v62 = vld [vmem:[#allocation166_spill] sm:$0xff] }
 0x327   :  { %v3201_v22 = vadd.f32 1.0, %v18523_v53  ;;  %vm4229_vm13 = vcmp.eq.f32.partialorder %v15021_v35, 0.0  ;;  %v2237_v30 = vmul.f32 %v10004_v4, %v18524_v26  ;;  %10023 = vpow2.f32 %v7363_v20  ;;  %v18536_v4 = vld [vmem:[#allocation200_spill] sm:$0xff]  ;;  %v18538_v26 = vld [vmem:[#allocation202_spill] sm:$0xff] }
 0x328   :  { %v10006_v13 = vpop.eup %10005  ;;  %v1165_v47 = vmax.f32 %v620_v24, %v1149_v56  ;;  %v3746_v29 = vadd.f32 1.0, %v14920_v39  ;;  %10025 = vrcp.f32 %v2111_v11  ;;  %v7364_v36 = vmul.f32 -1.442695, %v18526_v21 }
 0x329   :  { %v10008_v40 = vpop.eup %10007  ;;  %v2782_v9 = vmul.f32 %v10006_v13, %v18525_v33  ;;  %v621_v2 = vmul.f32 %v18528_v58, %v18527_v45  ;;  %v2253_v16 = vmax.f32 %v15094_v54, %v2237_v30  ;;  %10027 = vrcp.f32 %v2656_v0  ;;  %v18535_v54 = vld [vmem:[#allocation165_spill] sm:$0xff]  ;;  %v18541_v58 = vld [vmem:[#allocation92_spill] sm:$0xff] }
 0x32a   :  { %v10010_v3 = vpop.eup %10009  ;;  %v3327_v49 = vmul.f32 %v10008_v40, %v18529_v23  ;;  %v15157_v50 = vmax.f32 %v1165_v47, %v1694_v6  ;;  %10029 = vrcp.f32 %v3201_v22  ;;  %v1150_v20 = vmul.f32 %v18532_v59, %v18531_v14  ;;  %v18537_v22 = vld [vmem:[#allocation132_spill] sm:$0xff]  ;;  %v18545_v59 = vld [vmem:[#allocation134_spill] sm:$0xff] }
 0x32b   :  { %v10012_v46 = vpop.eup %10011  ;;  %v3872_v39 = vmul.f32 %v10010_v3, %v18530_v18  ;;  %v1695_v24 = vmul.f32 %v18534_v62, %v18533_v32  ;;  %v2798_v17 = vmax.f32 %v2253_v16, %v2782_v9  ;;  %10031 = vrcp.f32 %v3746_v29  ;;  %v18539_v47 = vld [vmem:[#allocation224_spill] sm:$0xff]  ;;  %v18540_v9 = vld [vmem:[#allocation75_spill] sm:$0xff]  ;;  %v18542_v3 = vld [vmem:[#allocation222_spill] sm:$0xff] }
 0x32c   :  { %v10014_v31 = vpop.eup %10013  ;;  %v4289_v56 = vadd.f32 1.0, %v10012_v46  ;;  %v2112_v60 = vadd.f32 1.0, %v18535_v54  ;;  %10033 = vpow2.f32 %v7364_v36  ;;  %v1166_v11 = vmax.f32 %v621_v2, %v1150_v20  ;;  %v18543_v46 = vld [vmem:[#allocation94_spill] sm:$0xff]  ;;  %v18544_v14 = vld [vmem:[#allocation148_spill] sm:$0xff]  ;;  %v18546_v32 = vld [vmem:[#allocation43_spill] sm:$0xff] }
 0x32d   :  { %v4415_v6 = vmul.f32 %v10014_v31, %v15058_v7  ;;  %v2657_v0 = vadd.f32 1.0, %v18536_v4  ;;  %v10016_v53 = vpop.eup %10015  ;;  %vm4370_vm14 = vcmp.gt.f32.partialorder %v18537_v22, 0.0  ;;  %v3343_v13 = vmax.f32 %v2798_v17, %v3327_v49  ;;  %v18547_v62 = vld [vmem:[#allocation139_spill] sm:$0xff]  ;;  %v18551_v54 = vld [vmem:[#allocation180_spill] sm:$0xff] }
 0x32e   :  { %10035 = vrcp.f32 %v4289_v56  ;;  %v3202_v30 = vadd.f32 1.0, %v18538_v26  ;;  %v3747_v40 = vadd.f32 1.0, %v18539_v47  ;;  %v10018_v33 = vpop.eup %10017  ;;  %v2238_v21 = vmul.f32 %v10016_v53, %v18540_v9  ;;  %v18550_v56 = vld [vmem:[#allocation20_spill] sm:$0xff] }
 0x32f   :  { %v4431_v29 = vmax.f32 %v15113_v41, %v4415_v6  ;;  %v15172_v45 = vmax.f32 %v1166_v11, %v1695_v24  ;;  %10037 = vrcp.f32 %v2112_v60  ;;  %v10020_v7 = vpop.eup %10019  ;;  %v15174_v36 = vmax.f32 %v3343_v13, %v3872_v39  ;;  %v18552_v11 = vld [vmem:[#allocation79_spill] sm:$0xff] }
 0x330   :  { %v2783_v2 = vmul.f32 %v10018_v33, %v18541_v58  ;;  %10039 = vrcp.f32 %v2657_v0  ;;  %v7365_v16 = vmul.f32 -1.442695, %v18542_v3  ;;  %v10022_v23 = vpop.eup %10021  ;;  %v15182_v41 = vsel %vm4229_vm13, %v4230_v51, %v4228_v63  ;;  %v18548_v51 = vld [vmem:[#allocation40_spill] sm:$0xff]  ;;  %v18554_v0 = vld [vmem:[#allocation203_spill] sm:$0xff] }
 0x331   :  { %8419 = vmatprep.mubr.f32.mxu0 %v4431_v29  ;;  %v2254_v49 = vmax.f32 %v15126_v42, %v2238_v21  ;;  %v3328_v18 = vmul.f32 %v10020_v7, %v18543_v46  ;;  %10041 = vrcp.f32 %v3202_v30  ;;  %v10024_v39 = vpop.eup %10023  ;;  %vm4371_vm15 = vcmp.gt.f32.partialorder %v18544_v14, 0.0  ;;  %v18549_v63 = vld [vmem:[#allocation136_spill] sm:$0xff]  ;;  %v18555_v30 = vld [vmem:[#allocation98_spill] sm:$0xff] }
 0x332   :  { %8420 = vmatmul.mubr.f32.vlgmr.msra.gmra.mrb[64].mxu0 %v4432_v37  ;;  %v3873_v20 = vmul.f32 %v10022_v23, %v18545_v59  ;;  %10043 = vrcp.f32 %v3747_v40  ;;  %v622_v35 = vmul.f32 %v18547_v62, %v18546_v32  ;;  %v1151_v24 = vmul.f32 %v18549_v63, %v18548_v51  ;;  %v10026_v42 = vpop.eup %10025  ;;  %v18553_v37 = vld [vmem:[#allocation178_spill] sm:$0xff]  ;;  %v18556_v40 = vld [vmem:[#allocation205_spill] sm:$0xff]  ;;  %v18557_v21 = vld [vmem:[#allocation100_spill] sm:$0xff] }
 0x333   :  { %v2799_v31 = vmax.f32 %v2254_v49, %v2783_v2  ;;  %v4290_v17 = vadd.f32 1.0, %v10024_v39  ;;  %10045 = vpow2.f32 %v7365_v16  ;;  %v1696_v60 = vmul.f32 %v18551_v54, %v18550_v56  ;;  %v10028_v6 = vpop.eup %10027  ;;  %v18558_v16 = vld [vmem:[#allocation96_spill] sm:$0xff]  ;;  %v18559_v62 = vld [vmem:[#allocation137_spill] sm:$0xff]  ;;  %v18564_v56 = vld [vmem:[#allocation11_spill] sm:$0xff] }
 0x334   :  { %v2239_v25 = vmul.f32 %v10026_v42, %v18552_v11  ;;  %v1167_v52 = vmax.f32 %v622_v35, %v1151_v24  ;;  %v2113_v4 = vadd.f32 1.0, %v18553_v37  ;;  %v2658_v53 = vadd.f32 1.0, %v18554_v0  ;;  %v10030_v13 = vpop.eup %10029  ;;  %v18560_v35 = vld [vmem:[#allocation42_spill] sm:$0xff]  ;;  %v18561_v51 = vld [vmem:[#allocation133_spill] sm:$0xff]  ;;  %v18566_v11 = vld [vmem:[#allocation84_spill] sm:$0xff] }
 0x335   :  { %v3344_v26 = vmax.f32 %v2799_v31, %v3328_v18  ;;  %10047 = vrcp.f32 %v4290_v17  ;;  %v2784_v47 = vmul.f32 %v10028_v6, %v18555_v30  ;;  %v3203_v33 = vadd.f32 1.0, %v18556_v40  ;;  %v10032_v29 = vpop.eup %10031  ;;  %v18562_v42 = vld [vmem:[#allocation78_spill] sm:$0xff]  ;;  %v18563_v17 = vld [vmem:[#allocation39_spill] sm:$0xff]  ;;  %v18568_v37 = vld [vmem:[#allocation33_spill] sm:$0xff] }
 0x336   :  { %v2255_v9 = vmax.f32 %v15157_v50, %v2239_v25  ;;  %v3329_v7 = vmul.f32 %v10030_v13, %v18557_v21  ;;  %v15204_v58 = vmax.f32 %v1167_v52, %v1696_v60  ;;  %10049 = vrcp.f32 %v2113_v4  ;;  %v10034_v2 = vpop.eup %10033  ;;  %v18565_v60 = vld [vmem:[#allocation97_spill] sm:$0xff]  ;;  %v18573_v21 = vld [vmem:[#allocation204_spill] sm:$0xff] }
 0x337   :  { %v15206_v3 = vmax.f32 %v3344_v26, %v3873_v20  ;;  %v3874_v23 = vmul.f32 %v10032_v29, %v18558_v16  ;;  %10051 = vrcp.f32 %v2658_v53  ;;  %v3748_v49 = vadd.f32 1.0, %v14984_v43  ;;  %v18569_v53 = vld [vmem:[#allocation99_spill] sm:$0xff]  ;;  %v18571_v40 = vld [vmem:[#allocation145_spill] sm:$0xff] }
 0x338   :  { %v10036_v46 = vpop.eup %10035  ;;  %v2800_v18 = vmax.f32 %v2255_v9, %v2784_v47  ;;  %v4291_v39 = vadd.f32 1.0, %v10034_v2  ;;  %10053 = vrcp.f32 %v3203_v33  ;;  %v7366_v59 = vmul.f32 -1.442695, %v14941_v5  ;;  %v18570_v47 = vld [vmem:[#allocation105_spill] sm:$0xff] }
 0x339   :  { %v10038_v50 = vpop.eup %10037  ;;  %v4417_v32 = vmul.f32 %v10036_v46, %v15133_v48  ;;  %v4402_v20 = vsel %vm4370_vm14, %v18537_v22, %v18559_v62  ;;  %10055 = vrcp.f32 %v3748_v49  ;;  %v623_v63 = vmul.f32 %v18561_v51, %v18560_v35  ;;  %v18567_v22 = vld [vmem:[#allocation170_spill] sm:$0xff]  ;;  %v18572_v29 = vld [vmem:[#allocation169_spill] sm:$0xff] }
 0x33a   :  { %v10040_v24 = vpop.eup %10039  ;;  %v3345_v43 = vmax.f32 %v2800_v18, %v3329_v7  ;;  %10057 = vrcp.f32 %v4291_v39  ;;  %v2240_v31 = vmul.f32 %v10038_v50, %v18562_v42  ;;  %v1152_v5 = vmul.f32 %v18564_v56, %v18563_v17  ;;  %v18575_v18 = vld [vmem:[#allocation226_spill] sm:$0xff]  ;;  %v18581_v17 = vld [vmem:[#allocation36_spill] sm:$0xff] }
 0x33b   :  { %v10042_v54 = vpop.eup %10041  ;;  %v4433_v48 = vmax.f32 %v15174_v36, %v4417_v32  ;;  %v2785_v6 = vmul.f32 %v10040_v24, %v18565_v60  ;;  %10059 = vpow2.f32 %v7366_v59  ;;  %v1697_v25 = vmul.f32 %v18567_v22, %v18566_v11  ;;  %v18576_v59 = vld [vmem:[#allocation225_spill] sm:$0xff]  ;;  %v18577_v32 = vld [vmem:[#allocation50_spill] sm:$0xff]  ;;  %v18584_v60 = vld [vmem:[#allocation184_spill] sm:$0xff] }
 0x33c   :  { %v10044_v52 = vpop.eup %10043  ;;  %vm4372_vm0 = vcmp.gt.f32.partialorder %v18568_v37, 0.0  ;;  %v15226_v4 = vmax.f32 %v3345_v43, %v3874_v23  ;;  %v2256_v0 = vmax.f32 %v15172_v45, %v2240_v31  ;;  %v3330_v13 = vmul.f32 %v10042_v54, %v18569_v53  ;;  %v18574_v45 = vld [vmem:[#allocation206_spill] sm:$0xff]  ;;  %v18579_v24 = vld [vmem:[#allocation45_spill] sm:$0xff]  ;;  %v18580_v43 = vld [vmem:[#allocation143_spill] sm:$0xff] }
 0x33d   :  { %v1168_v26 = vmax.f32 %v623_v63, %v1152_v5  ;;  %v10046_v30 = vpop.eup %10045  ;;  %8422 = vmatprep.mubr.f32.mxu0 %v4433_v48  ;;  %v4403_v36 = vsel %vm4371_vm15, %v18544_v14, %v18570_v47  ;;  %v3875_v33 = vmul.f32 %v10044_v52, %v18571_v40  ;;  %v2114_v9 = vadd.f32 1.0, %v18572_v29  ;;  %v18578_v14 = vld [vmem:[#allocation144_spill] sm:$0xff]  ;;  %v18582_v5 = vld [vmem:[#allocation86_spill] sm:$0xff]  ;;  %v18586_v52 = vld [vmem:[#allocation35_spill] sm:$0xff] }
 0x33e   :  { %v2659_v7 = vadd.f32 1.0, %v18573_v21  ;;  %v2801_v2 = vmax.f32 %v2256_v0, %v2785_v6  ;;  %v4292_v16 = vadd.f32 1.0, %v10046_v30  ;;  %v3204_v49 = vadd.f32 1.0, %v18574_v45  ;;  %v18583_v54 = vld [vmem:[#allocation186_spill] sm:$0xff]  ;;  %v18588_v29 = vld [vmem:[#allocation151_spill] sm:$0xff] }
 0x33f   :  { %v15237_v23 = vmax.f32 %v1168_v26, %v1697_v25  ;;  %v10048_v46 = vpop.eup %10047  ;;  %10061 = vrcp.f32 %v2114_v9  ;;  %v3749_v39 = vadd.f32 1.0, %v18575_v18  ;;  %v7367_v50 = vmul.f32 -1.442695, %v18576_v59  ;;  %v18585_v22 = vld [vmem:[#allocation82_spill] sm:$0xff]  ;;  %v18587_v26 = vld [vmem:[#allocation103_spill] sm:$0xff] }
 0x340   :  { %v624_v62 = vmul.f32 %v18578_v14, %v18577_v32  ;;  %v10050_v35 = vpop.eup %10049  ;;  %v4418_v51 = vmul.f32 %v10048_v46, %v4402_v20  ;;  %v3346_v63 = vmax.f32 %v2801_v2, %v3330_v13  ;;  %10063 = vrcp.f32 %v4292_v16  ;;  %v18589_v21 = vld [vmem:[#allocation207_spill] sm:$0xff]  ;;  %v18593_v14 = vld [vmem:[#allocation141_spill] sm:$0xff] }
 0x341   :  { %v1153_v42 = vmul.f32 %v18580_v43, %v18579_v24  ;;  %v10052_v31 = vpop.eup %10051  ;;  %v2241_v56 = vmul.f32 %v10050_v35, %v18581_v17  ;;  %10065 = vrcp.f32 %v2659_v7  ;;  %v1698_v48 = vmul.f32 %v18583_v54, %v18582_v5  ;;  %v18591_v59 = vld [vmem:[#allocation147_spill] sm:$0xff]  ;;  %v18594_v35 = vld [vmem:[#allocation44_spill] sm:$0xff]  ;;  %v18596_v24 = vld [vmem:[#allocation37_spill] sm:$0xff] }
 0x342   :  { %v2115_v6 = vadd.f32 1.0, %v18584_v60  ;;  %v10054_v11 = vpop.eup %10053  ;;  %vm4373_vm1 = vcmp.gt.f32.partialorder %v18585_v22, 0.0  ;;  %v4434_v25 = vmax.f32 %v15206_v3, %v4418_v51  ;;  %v15252_v20 = vmax.f32 %v3346_v63, %v3875_v33  ;;  %v18590_v3 = vld [vmem:[#allocation209_spill] sm:$0xff]  ;;  %v18595_v51 = vld [vmem:[#allocation142_spill] sm:$0xff]  ;;  %v18600_v5 = vld [vmem:[#allocation152_spill] sm:$0xff] }
 0x343   :  { %v2786_v0 = vmul.f32 %v10052_v31, %v18586_v52  ;;  %10067 = vrcp.f32 %v3204_v49  ;;  %v10056_v53 = vpop.eup %10055  ;;  %v2257_v13 = vmax.f32 %v15204_v58, %v2241_v56  ;;  %v3331_v30 = vmul.f32 %v10054_v11, %v18587_v26  ;;  %v18601_v54 = vld [vmem:[#allocation85_spill] sm:$0xff] }
 0x344   :  { %10069 = vrcp.f32 %v3749_v39  ;;  %v1169_v47 = vmax.f32 %v624_v62, %v1153_v42  ;;  %v10058_v40 = vpop.eup %10057  ;;  %8423 = vmatmul.mubr.f32.gmra.mrb[66].mxu0 %v4434_v25  ;;  %v3876_v9 = vmul.f32 %v10056_v53, %v18588_v29  ;;  %v2660_v7 = vadd.f32 1.0, %v18589_v21  ;;  %v18598_v42 = vld [vmem:[#allocation171_spill] sm:$0xff] }
 0x345   :  { %10071 = vpow2.f32 %v7367_v50  ;;  %v3205_v33 = vadd.f32 1.0, %v18590_v3  ;;  %v10060_v2 = vpop.eup %10059  ;;  %v4419_v16 = vmul.f32 %v10058_v40, %v4403_v36  ;;  %v2802_v45 = vmax.f32 %v2257_v13, %v2786_v0  ;;  %v18592_v36 = vld [vmem:[#allocation49_spill] sm:$0xff]  ;;  %v18603_v53 = vld [vmem:[#allocation227_spill] sm:$0xff] }
 0x346   :  { %v15260_v49 = vmax.f32 %v1169_v47, %v1698_v48  ;;  %10073 = vrcp.f32 %v2115_v6  ;;  %v4293_v58 = vadd.f32 1.0, %v10060_v2  ;;  %v3750_v46 = vadd.f32 1.0, %v15013_v15  ;;  %v18597_v15 = vld [vmem:[#allocation176_spill] sm:$0xff]  ;;  %v18602_v6 = vld [vmem:[#allocation210_spill] sm:$0xff] }
 0x347   :  { %10075 = vrcp.f32 %v2660_v7  ;;  %v7368_v18 = vmul.f32 -1.442695, %v14990_v10  ;;  %v4435_v39 = vmax.f32 %v15226_v4, %v4419_v16  ;;  %v4404_v50 = vsel %vm4372_vm0, %v18568_v37, %v18591_v59  ;;  %v18599_v37 = vld [vmem:[#allocation208_spill] sm:$0xff]  ;;  %v18604_v47 = vld [vmem:[#allocation34_spill] sm:$0xff] }
 0x348   :  { %v3347_v32 = vmax.f32 %v2802_v45, %v3331_v30  ;;  %10077 = vrcp.f32 %v3205_v33  ;;  %v625_v62 = vmul.f32 %v18593_v14, %v18592_v36  ;;  %v1154_v63 = vmul.f32 %v18595_v51, %v18594_v35  ;;  %v18605_v7 = vld [vmem:[#allocation154_spill] sm:$0xff]  ;;  %v18607_v45 = vld [vmem:[#allocation24_spill] sm:$0xff]  ;;  %v18614_v35 = vld [vmem:[#allocation157_spill] sm:$0xff] }
 0x349   :  { %10079 = vrcp.f32 %v4293_v58  ;;  %v1699_v43 = vmul.f32 %v18597_v15, %v18596_v24  ;;  %v10062_v10 = vpop.eup %10061  ;;  %8425 = vmatprep.mubr.f32.mxu0 %v4435_v39  ;;  %v2116_v31 = vadd.f32 1.0, %v18598_v42  ;;  %v2661_v17 = vadd.f32 1.0, %v18599_v37  ;;  %v18606_v33 = vld [vmem:[#allocation102_spill] sm:$0xff]  ;;  %v18608_v58 = vld [vmem:[#allocation56_spill] sm:$0xff]  ;;  %v18616_v15 = vld [vmem:[#allocation193_spill] sm:$0xff] }
 0x34a   :  { %v15275_v4 = vmax.f32 %v3347_v32, %v3876_v9  ;;  %10081 = vrcp.f32 %v3750_v46  ;;  %v10064_v56 = vpop.eup %10063  ;;  %vm4374_vm2 = vcmp.gt.f32.partialorder %v18600_v5, 0.0  ;;  %v2242_v48 = vmul.f32 %v10062_v10, %v18601_v54  ;;  %v18609_v46 = vld [vmem:[#allocation149_spill] sm:$0xff]  ;;  %v18612_v36 = vld [vmem:[#allocation88_spill] sm:$0xff]  ;;  %v18617_v10 = vld [vmem:[#allocation211_spill] sm:$0xff] }
 0x34b   :  { %10083 = vpow2.f32 %v7368_v18  ;;  %v1170_v60 = vmax.f32 %v625_v62, %v1154_v63  ;;  %v3206_v11 = vadd.f32 1.0, %v18602_v6  ;;  %v10066_v25 = vpop.eup %10065  ;;  %v4420_v52 = vmul.f32 %v10064_v56, %v4404_v50  ;;  %v18611_v50 = vld [vmem:[#allocation101_spill] sm:$0xff]  ;;  %v18615_v63 = vld [vmem:[#allocation31_spill] sm:$0xff]  ;;  %v18618_v37 = vld [vmem:[#allocation104_spill] sm:$0xff] }
 0x34c   :  { %10085 = vrcp.f32 %v2116_v31  ;;  %v3751_v0 = vadd.f32 1.0, %v14899_v19  ;;  %v7369_v13 = vmul.f32 -1.442695, %v18603_v53  ;;  %v2258_v30 = vmax.f32 %v15237_v23, %v2242_v48  ;;  %v18619_v54 = vld [vmem:[#allocation213_spill] sm:$0xff] }
 0x34d   :  { %v10068_v26 = vpop.eup %10067  ;;  %v2787_v40 = vmul.f32 %v10066_v25, %v18604_v47  ;;  %v15286_v29 = vmax.f32 %v1170_v60, %v1699_v43  ;;  %10087 = vrcp.f32 %v2661_v17  ;;  %v4436_v21 = vmax.f32 %v15252_v20, %v4420_v52  ;;  %v18610_v20 = vld [vmem:[#allocation53_spill] sm:$0xff]  ;;  %v18620_v25 = vld [vmem:[#allocation106_spill] sm:$0xff] }
 0x34e   :  { %v10070_v9 = vpop.eup %10069  ;;  %v4405_v3 = vsel %vm4373_vm1, %v18585_v22, %v18605_v7  ;;  %v3332_v19 = vmul.f32 %v10068_v26, %v18606_v33  ;;  %10089 = vrcp.f32 %v3206_v11  ;;  %v626_v18 = vmul.f32 %v18609_v46, %v18608_v58  ;;  %v18613_v22 = vld [vmem:[#allocation196_spill] sm:$0xff]  ;;  %v18622_v33 = vld [vmem:[#allocation155_spill] sm:$0xff]  ;;  %v18625_v58 = vld [vmem:[#allocation54_spill] sm:$0xff] }
 0x34f   :  { %v10072_v2 = vpop.eup %10071  ;;  %v2803_v16 = vmax.f32 %v2258_v30, %v2787_v40  ;;  %v3877_v23 = vmul.f32 %v10070_v9, %v18607_v45  ;;  %10091 = vrcp.f32 %v3751_v0  ;;  %8426 = vmatmul.mubr.f32.gmra.mrb[68].mxu0 %v4436_v21  ;;  %v1155_v32 = vmul.f32 %v18611_v50, %v18610_v20  ;;  %v18621_v40 = vld [vmem:[#allocation162_spill] sm:$0xff]  ;;  %v18624_v45 = vld [vmem:[#allocation48_spill] sm:$0xff]  ;;  %v18626_v46 = vld [vmem:[#allocation41_spill] sm:$0xff] }
 0x350   :  { %v10074_v39 = vpop.eup %10073  ;;  %v4294_v59 = vadd.f32 1.0, %v10072_v2  ;;  %10093 = vpow2.f32 %v7369_v13  ;;  %v1700_v14 = vmul.f32 %v18613_v22, %v18612_v36  ;;  %vm4375_vm3 = vcmp.gt.f32.partialorder %v18614_v35, 0.0  ;;  %v18629_v20 = vld [vmem:[#allocation146_spill] sm:$0xff] }
 0x351   :  { %v10076_v62 = vpop.eup %10075  ;;  %v3348_v51 = vmax.f32 %v2803_v16, %v3332_v19  ;;  %v2243_v24 = vmul.f32 %v10074_v39, %v18615_v63  ;;  %v2117_v43 = vadd.f32 1.0, %v18616_v15  ;;  %v2662_v42 = vadd.f32 1.0, %v18617_v10  ;;  %v18623_v19 = vld [vmem:[#allocation153_spill] sm:$0xff]  ;;  %v18627_v39 = vld [vmem:[#allocation8_spill] sm:$0xff] }
 0x352   :  { %v10078_v31 = vpop.eup %10077  ;;  %10095 = vrcp.f32 %v4294_v59  ;;  %v2788_v17 = vmul.f32 %v10076_v62, %v18618_v37  ;;  %v1171_v56 = vmax.f32 %v626_v18, %v1155_v32  ;;  %v3207_v48 = vadd.f32 1.0, %v18619_v54  ;;  %v18628_v59 = vld [vmem:[#allocation52_spill] sm:$0xff]  ;;  %v18630_v32 = vld [vmem:[#allocation87_spill] sm:$0xff]  ;;  %v18634_v10 = vld [vmem:[#allocation161_spill] sm:$0xff] }
 0x353   :  { %v10080_v60 = vpop.eup %10079  ;;  %v15307_v6 = vmax.f32 %v3348_v51, %v3877_v23  ;;  %v2259_v11 = vmax.f32 %v15260_v49, %v2243_v24  ;;  %v3333_v52 = vmul.f32 %v10078_v31, %v18620_v25  ;;  %10097 = vrcp.f32 %v2117_v43  ;;  %v18632_v51 = vld [vmem:[#allocation9_spill] sm:$0xff]  ;;  %v18635_v37 = vld [vmem:[#allocation212_spill] sm:$0xff] }
 0x354   :  { %v10082_v0 = vpop.eup %10081  ;;  %v4421_v53 = vmul.f32 %v10080_v60, %v4405_v3  ;;  %v15311_v13 = vmax.f32 %v1171_v56, %v1700_v14  ;;  %10099 = vrcp.f32 %v2662_v42  ;;  %v3752_v26 = vadd.f32 1.0, %v15076_v12  ;;  %v18633_v24 = vld [vmem:[#allocation177_spill] sm:$0xff]  ;;  %v18636_v56 = vld [vmem:[#allocation214_spill] sm:$0xff] }
 0x355   :  { %v10084_v30 = vpop.eup %10083  ;;  %v2804_v47 = vmax.f32 %v2259_v11, %v2788_v17  ;;  %v3878_v9 = vmul.f32 %v10082_v0, %v18621_v40  ;;  %10101 = vrcp.f32 %v3207_v48  ;;  %v7370_v21 = vmul.f32 -1.442695, %v15038_v28  ;;  %v18638_v40 = vld [vmem:[#allocation67_spill] sm:$0xff] }
 0x356   :  { %v10086_v7 = vpop.eup %10085  ;;  %vm4376_vm4 = vcmp.gt.f32.partialorder %v18622_v33, 0.0  ;;  %v4437_v49 = vmax.f32 %v15275_v4, %v4421_v53  ;;  %v4406_v3 = vsel %vm4374_vm2, %v18600_v5, %v18623_v19  ;;  %v4295_v2 = vadd.f32 1.0, %v10084_v30  ;;  %v18631_v5 = vld [vmem:[#allocation179_spill] sm:$0xff]  ;;  %v18641_v19 = vld [vmem:[#allocation65_spill] sm:$0xff] }
 0x357   :  { %10103 = vrcp.f32 %v3752_v26  ;;  %v10088_v12 = vpop.eup %10087  ;;  %v3349_v16 = vmax.f32 %v2804_v47, %v3333_v52  ;;  %v2244_v23 = vmul.f32 %v10086_v7, %v18624_v45  ;;  %v627_v28 = vmul.f32 %v18626_v46, %v18625_v58  ;;  %v18637_v52 = vld [vmem:[#allocation164_spill] sm:$0xff] }
 0x358   :  { %10105 = vpow2.f32 %v7370_v21  ;;  %v10090_v18 = vpop.eup %10089  ;;  %8428 = vmatprep.mubr.f32.mxu0 %v4437_v49  ;;  %v2789_v4 = vmul.f32 %v10088_v12, %v18627_v39  ;;  %v1156_v50 = vmul.f32 %v18629_v20, %v18628_v59  ;;  %v1701_v36 = vmul.f32 %v18631_v5, %v18630_v32  ;;  %v18648_v32 = vld [vmem:[#allocation163_spill] sm:$0xff]  ;;  %v18649_v5 = vld [vmem:[#allocation173_spill] sm:$0xff] }
 0x359   :  { %10107 = vrcp.f32 %v4295_v2  ;;  %v10092_v22 = vpop.eup %10091  ;;  %v15330_v14 = vmax.f32 %v3349_v16, %v3878_v9  ;;  %v2260_v62 = vmax.f32 %v15286_v29, %v2244_v23  ;;  %v3334_v63 = vmul.f32 %v10090_v18, %v18632_v51  ;;  %v18639_v9 = vld [vmem:[#allocation116_spill] sm:$0xff]  ;;  %v18642_v2 = vld [vmem:[#allocation115_spill] sm:$0xff]  ;;  %v18644_v16 = vld [vmem:[#allocation197_spill] sm:$0xff] }
 0x35a   :  { %v2118_v15 = vadd.f32 1.0, %v18633_v24  ;;  %v10094_v43 = vpop.eup %10093  ;;  %v3879_v42 = vmul.f32 %v10092_v22, %v18634_v10  ;;  %v1172_v31 = vmax.f32 %v627_v28, %v1156_v50  ;;  %v2663_v17 = vadd.f32 1.0, %v18635_v37  ;;  %v18646_v18 = vld [vmem:[#allocation175_spill] sm:$0xff]  ;;  %v18652_v10 = vld [vmem:[#allocation217_spill] sm:$0xff] }
 0x35b   :  { %v3208_v54 = vadd.f32 1.0, %v18636_v56  ;;  %v2805_v48 = vmax.f32 %v2260_v62, %v2789_v4  ;;  %v4296_v60 = vadd.f32 1.0, %v10094_v43  ;;  %v3753_v11 = vadd.f32 1.0, %v14945_v44  ;;  %v18640_v44 = vld [vmem:[#allocation90_spill] sm:$0xff]  ;;  %v18647_v4 = vld [vmem:[#allocation108_spill] sm:$0xff]  ;;  %v18650_v22 = vld [vmem:[#allocation195_spill] sm:$0xff] }
 0x35c   :  { %10109 = vrcp.f32 %v2118_v15  ;;  %v10096_v25 = vpop.eup %10095  ;;  %v4407_v29 = vsel %vm4375_vm3, %v18614_v35, %v18637_v52  ;;  %v15343_v0 = vmax.f32 %v1172_v31, %v1701_v36  ;;  %v7371_v53 = vmul.f32 -1.442695, %v14894_v61  ;;  %v18643_v35 = vld [vmem:[#allocation55_spill] sm:$0xff]  ;;  %v18653_v56 = vld [vmem:[#allocation66_spill] sm:$0xff] }
 0x35d   :  { %10111 = vrcp.f32 %v2663_v17  ;;  %v10098_v26 = vpop.eup %10097  ;;  %v4422_v30 = vmul.f32 %v10096_v25, %v4406_v3  ;;  %v3350_v47 = vmax.f32 %v2805_v48, %v3334_v63  ;;  %v628_v21 = vmul.f32 %v18639_v9, %v18638_v40  ;;  %v18645_v3 = vld [vmem:[#allocation77_spill] sm:$0xff]  ;;  %v18651_v51 = vld [vmem:[#allocation215_spill] sm:$0xff] }
 0x35e   :  { %10113 = vrcp.f32 %v4296_v60  ;;  %v10100_v7 = vpop.eup %10099  ;;  %v2245_v49 = vmul.f32 %v10098_v26, %v18640_v44  ;;  %v1157_v12 = vmul.f32 %v18642_v2, %v18641_v19  ;;  %v1702_v45 = vmul.f32 %v18644_v16, %v18643_v35  ;;  %v18655_v60 = vld [vmem:[#allocation59_spill] sm:$0xff]  ;;  %v18657_v26 = vld [vmem:[#allocation17_spill] sm:$0xff]  ;;  %v18662_v19 = vld [vmem:[#allocation76_spill] sm:$0xff] }
 0x35f   :  { %10115 = vrcp.f32 %v3208_v54  ;;  %v10102_v23 = vpop.eup %10101  ;;  %v4438_v61 = vmax.f32 %v15307_v6, %v4422_v30  ;;  %v15354_v58 = vmax.f32 %v3350_v47, %v3879_v42  ;;  %v2790_v46 = vmul.f32 %v10100_v7, %v18645_v3  ;;  %v18654_v54 = vld [vmem:[#allocation150_spill] sm:$0xff]  ;;  %v18658_v30 = vld [vmem:[#allocation181_spill] sm:$0xff]  ;;  %v18660_v9 = vld [vmem:[#allocation167_spill] sm:$0xff] }
 0x360   :  { %10117 = vrcp.f32 %v3753_v11  ;;  %vm4377_vm5 = vcmp.gt.f32.partialorder %v18646_v18, 0.0  ;;  %v2261_v39 = vmax.f32 %v15311_v13, %v2245_v49  ;;  %v3335_v59 = vmul.f32 %v10102_v23, %v18647_v4  ;;  %v18656_v11 = vld [vmem:[#allocation107_spill] sm:$0xff]  ;;  %v18659_v47 = vld [vmem:[#allocation182_spill] sm:$0xff] }
 0x361   :  { %v10104_v28 = vpop.eup %10103  ;;  %10119 = vpow2.f32 %v7371_v53  ;;  %v1173_v20 = vmax.f32 %v628_v21, %v1157_v12  ;;  %8429 = vmatmul.mubr.f32.gmra.mrb[70].mxu0 %v4438_v61  ;;  %v4408_v6 = vsel %vm4376_vm4, %v18622_v33, %v18648_v32  ;;  %v2119_v62 = vadd.f32 1.0, %v18650_v22  ;;  %v18661_v21 = vld [vmem:[#allocation89_spill] sm:$0xff]  ;;  %v18664_v35 = vld [vmem:[#allocation218_spill] sm:$0xff] }
 0x362   :  { %v10106_v50 = vpop.eup %10105  ;;  %v3880_v36 = vmul.f32 %v10104_v28, %v18649_v5  ;;  %v2664_v63 = vadd.f32 1.0, %v18651_v51  ;;  %v2806_v15 = vmax.f32 %v2261_v39, %v2790_v46  ;;  %v3209_v42 = vadd.f32 1.0, %v18652_v10  ;;  %v18665_v28 = vld [vmem:[#allocation80_spill] sm:$0xff] }
 0x363   :  { %v10108_v24 = vpop.eup %10107  ;;  %v4297_v13 = vadd.f32 1.0, %v10106_v50  ;;  %v15367_v43 = vmax.f32 %v1173_v20, %v1702_v45  ;;  %10121 = vrcp.f32 %v2119_v62  ;;  %v3754_v37 = vadd.f32 1.0, %v15060_v55  ;;  %v18666_v5 = vld [vmem:[#allocation172_spill] sm:$0xff]  ;;  %v18668_v62 = vld [vmem:[#allocation71_spill] sm:$0xff] }
 0x364   :  { %v4423_v31 = vmul.f32 %v10108_v24, %v4407_v29  ;;  %v7372_v17 = vmul.f32 -1.442695, %v15027_v57  ;;  %v3351_v33 = vmax.f32 %v2806_v15, %v3335_v59  ;;  %v629_v48 = vmul.f32 %v18654_v54, %v18653_v56  ;;  %v18669_v51 = vld [vmem:[#allocation160_spill] sm:$0xff]  ;;  %v18671_v24 = vld [vmem:[#allocation159_spill] sm:$0xff]  ;;  %v18672_v15 = vld [vmem:[#allocation46_spill] sm:$0xff] }
 0x365   :  { %10123 = vrcp.f32 %v4297_v13  ;;  %v1158_v25 = vmul.f32 %v18656_v11, %v18655_v60  ;;  %v1703_v29 = vmul.f32 %v18658_v30, %v18657_v26  ;;  %v2120_v40 = vadd.f32 1.0, %v18659_v47  ;;  %v18673_v13 = vld [vmem:[#allocation199_spill] sm:$0xff]  ;;  %v18677_v60 = vld [vmem:[#allocation60_spill] sm:$0xff] }
 0x366   :  { %v10110_v52 = vpop.eup %10109  ;;  %v4439_v53 = vmax.f32 %v15330_v14, %v4423_v31  ;;  %10125 = vrcp.f32 %v2664_v63  ;;  %vm4378_vm6 = vcmp.gt.f32.partialorder %v18660_v9, 0.0  ;;  %v15381_v57 = vmax.f32 %v3351_v33, %v3880_v36  ;;  %v18663_v14 = vld [vmem:[#allocation216_spill] sm:$0xff]  ;;  %v18674_v31 = vld [vmem:[#allocation198_spill] sm:$0xff]  ;;  %v18676_v33 = vld [vmem:[#allocation223_spill] sm:$0xff] }
 0x367   :  { %v10112_v55 = vpop.eup %10111  ;;  %v2246_v7 = vmul.f32 %v10110_v52, %v18661_v21  ;;  %10127 = vrcp.f32 %v3209_v42  ;;  %v1174_v44 = vmax.f32 %v629_v48, %v1158_v25  ;;  %v2665_v12 = vadd.f32 1.0, %v18663_v14 }
 0x368   :  { %v10114_v49 = vpop.eup %10113  ;;  %8431 = vmatprep.mubr.f32.mxu0 %v4439_v53  ;;  %v2791_v2 = vmul.f32 %v10112_v55, %v18662_v19  ;;  %10129 = vrcp.f32 %v3754_v37  ;;  %v3210_v16 = vadd.f32 1.0, %v18664_v35  ;;  %v3755_v4 = vadd.f32 1.0, %v15004_v8  ;;  %v18682_v35 = vld [vmem:[#allocation70_spill] sm:$0xff] }
 0x369   :  { %v10116_v45 = vpop.eup %10115  ;;  %v4424_v23 = vmul.f32 %v10114_v49, %v4408_v6  ;;  %v2262_v61 = vmax.f32 %v15343_v0, %v2246_v7  ;;  %10131 = vpow2.f32 %v7372_v17  ;;  %v15388_v3 = vmax.f32 %v1174_v44, %v1703_v29  ;;  %v18667_v6 = vld [vmem:[#allocation183_spill] sm:$0xff]  ;;  %v18675_v17 = vld [vmem:[#allocation221_spill] sm:$0xff]  ;;  %v18679_v49 = vld [vmem:[#allocation174_spill] sm:$0xff] }
 0x36a   :  { %v10118_v46 = vpop.eup %10117  ;;  %v3336_v39 = vmul.f32 %v10116_v45, %v18665_v28  ;;  %10133 = vrcp.f32 %v2120_v40  ;;  %v7373_v59 = vmul.f32 -1.442695, %v14970_v1  ;;  %v4409_v0 = vsel %vm4377_vm5, %v18646_v18, %v18667_v6  ;;  %v18670_v1 = vld [vmem:[#allocation69_spill] sm:$0xff]  ;;  %v18678_v40 = vld [vmem:[#allocation110_spill] sm:$0xff] }
 0x36b   :  { %v10120_v20 = vpop.eup %10119  ;;  %v4440_v50 = vmax.f32 %v15354_v58, %v4424_v23  ;;  %v2807_v32 = vmax.f32 %v2262_v61, %v2791_v2  ;;  %v3881_v36 = vmul.f32 %v10118_v46, %v18666_v5  ;;  %10135 = vrcp.f32 %v2665_v12  ;;  %v18680_v2 = vld [vmem:[#allocation114_spill] sm:$0xff]  ;;  %v18681_v12 = vld [vmem:[#allocation187_spill] sm:$0xff] }
 0x36c   :  { %v4298_v22 = vadd.f32 1.0, %v10120_v20  ;;  %10137 = vrcp.f32 %v3210_v16  ;;  %v630_v63 = vmul.f32 %v18669_v51, %v18668_v62  ;;  %v1159_v58 = vmul.f32 %v18671_v24, %v18670_v1  ;;  %v18683_v16 = vld [vmem:[#allocation156_spill] sm:$0xff]  ;;  %v18685_v46 = vld [vmem:[#allocation158_spill] sm:$0xff]  ;;  %v18693_v62 = vld [vmem:[#allocation219_spill] sm:$0xff] }
 0x36d   :  { %8432 = vmatmul.mubr.f32.gmra.mrb[72].mxu0 %v4440_v50  ;;  %v3352_v8 = vmax.f32 %v2807_v32, %v3336_v39  ;;  %10139 = vrcp.f32 %v3755_v4  ;;  %v1704_v10 = vmul.f32 %v18673_v13, %v18672_v15  ;;  %v10122_v42 = vpop.eup %10121  ;;  %v2121_v37 = vadd.f32 1.0, %v18674_v31  ;;  %v18686_v39 = vld [vmem:[#allocation57_spill] sm:$0xff]  ;;  %v18688_v20 = vld [vmem:[#allocation62_spill] sm:$0xff]  ;;  %v18696_v31 = vld [vmem:[#allocation112_spill] sm:$0xff] }
 0x36e   :  { %10141 = vrcp.f32 %v4298_v22  ;;  %v2666_v18 = vadd.f32 1.0, %v18675_v17  ;;  %v3211_v56 = vadd.f32 1.0, %v18676_v33  ;;  %v2247_v11 = vmul.f32 %v10122_v42, %v18677_v60  ;;  %v18689_v50 = vld [vmem:[#allocation109_spill] sm:$0xff] }
 0x36f   :  { %v10124_v54 = vpop.eup %10123  ;;  %v15408_v48 = vmax.f32 %v3352_v8, %v3881_v36  ;;  %10143 = vpow2.f32 %v7373_v59  ;;  %v1175_v25 = vmax.f32 %v630_v63, %v1159_v58  ;;  %v3756_v26 = vadd.f32 1.0, %v15118_v27  ;;  %v18690_v32 = vld [vmem:[#allocation113_spill] sm:$0xff]  ;;  %v18691_v36 = vld [vmem:[#allocation58_spill] sm:$0xff]  ;;  %v18695_v58 = vld [vmem:[#allocation220_spill] sm:$0xff] }
 0x370   :  { %v10126_v52 = vpop.eup %10125  ;;  %v4425_v53 = vmul.f32 %v10124_v54, %v4409_v0  ;;  %10145 = vrcp.f32 %v2121_v37  ;;  %v7374_v30 = vmul.f32 -1.442695, %v15182_v41  ;;  %v2263_v47 = vmax.f32 %v15367_v43, %v2247_v11  ;;  %v18692_v0 = vld [vmem:[#allocation192_spill] sm:$0xff]  ;;  %v18694_v8 = vld [vmem:[#allocation81_spill] sm:$0xff] }
 0x371   :  { %v10128_v29 = vpop.eup %10127  ;;  %v2792_v55 = vmul.f32 %v10126_v52, %v18678_v40  ;;  %v15415_v21 = vmax.f32 %v1175_v25, %v1704_v10  ;;  %10147 = vrcp.f32 %v2666_v18  ;;  %v4410_v19 = vsel %vm4378_vm6, %v18660_v9, %v18679_v49  ;;  %v18687_v9 = vld [vmem:[#allocation194_spill] sm:$0xff]  ;;  %v18697_v18 = vld [vmem:[#allocation185_spill] sm:$0xff] }
 0x372   :  { %v10130_v7 = vpop.eup %10129  ;;  %v4441_v44 = vmax.f32 %v15381_v57, %v4425_v53  ;;  %v3337_v27 = vmul.f32 %v10128_v29, %v18680_v2  ;;  %10149 = vrcp.f32 %v3211_v56  ;;  %v631_v45 = vmul.f32 %v18683_v16, %v18682_v35  ;;  %v18684_v57 = vld [vmem:[#allocation68_spill] sm:$0xff] }
 0x373   :  { %v10132_v41 = vpop.eup %10131  ;;  %v2808_v14 = vmax.f32 %v2263_v47, %v2792_v55  ;;  %v3882_v43 = vmul.f32 %v10130_v7, %v18681_v12  ;;  %10151 = vrcp.f32 %v3756_v26  ;;  %v1160_v28 = vmul.f32 %v18685_v46, %v18684_v57  ;;  %v18698_v26 = vld [vmem:[#allocation191_spill] sm:$0xff]  ;;  %v18699_v55 = vld [vmem:[#allocation61_spill] sm:$0xff] }
 0x374   :  { %v10134_v23 = vpop.eup %10133  ;;  %8434 = vmatprep.mubr.f32.mxu0 %v4441_v44  ;;  %v4299_v61 = vadd.f32 1.0, %v10132_v41  ;;  %10153 = vpow2.f32 %v7374_v30  ;;  %v1705_v4 = vmul.f32 %v18687_v9, %v18686_v39  ;;  %vm2202_vm7 = vcmp.gt.f32.partialorder %v18688_v20, 0.0  ;;  %v18700_v44 = vld [vmem:[#allocation189_spill] sm:$0xff]  ;;  %v18702_v41 = vld [vmem:[#allocation190_spill] sm:$0xff]  ;;  %v10621_v46 = vld [vmem:[%s18009_s4] ss:$0 sm:$0xff] }
 0x375   :  { %v10136_v59 = vpop.eup %10135  ;;  %vm2747_vm8 = vcmp.gt.f32.partialorder %v18689_v50, 0.0  ;;  %vm3292_vm9 = vcmp.gt.f32.partialorder %v18690_v32, 0.0  ;;  %v3353_v5 = vmax.f32 %v2808_v14, %v3337_v27  ;;  %v2248_v6 = vmul.f32 %v10134_v23, %v18691_v36  ;;  %v10619_v27 = vld [vmem:[%s18008_s3 + $0x78] sm:$0xff]  ;;  %v18704_v23 = vld [vmem:[#allocation188_spill] sm:$0xff] }
 0x376   :  { %v2122_v22 = vadd.f32 1.0, %v18692_v0  ;;  %v2667_v51 = vadd.f32 1.0, %v18693_v62  ;;  %v10138_v63 = vpop.eup %10137  ;;  %10155 = vrcp.f32 %v4299_v61  ;;  %v2793_v1 = vmul.f32 %v10136_v59, %v18694_v8 }
 0x377   :  { %v1176_v24 = vmax.f32 %v631_v45, %v1160_v28  ;;  %v3212_v15 = vadd.f32 1.0, %v18695_v58  ;;  %v10140_v13 = vpop.eup %10139  ;;  %v15438_v10 = vmax.f32 %v3353_v5, %v3882_v43  ;;  %v2264_v42 = vmax.f32 %v15388_v3, %v2248_v6  ;;  %v18703_v43 = vld [vmem:[#allocation119_spill] sm:$0xff]  ;;  %v10620_v45 = vld [vmem:[%s18008_s3 + $0x68] sm:$0xff]  ;;  %v18706_v5 = vld [vmem:[#allocation30_spill] sm:$0xff] }
 0x378   :  { %v3338_v37 = vmul.f32 %v10138_v63, %v18696_v31  ;;  %10157 = vrcp.f32 %v2122_v22  ;;  %v10142_v17 = vpop.eup %10141  ;;  %v3883_v33 = vmul.f32 %v10140_v13, %v18697_v18  ;;  %v3757_v54 = vadd.f32 1.0, %v15111_v38  ;;  %v18705_v28 = vld [vmem:[#allocation123_spill] sm:$0xff]  ;;  %v18708_v22 = vld [vmem:[#allocation117_spill] sm:$0xff] }
 0x379   :  { %v15443_v56 = vmax.f32 %v1176_v24, %v1705_v4  ;;  %10159 = vrcp.f32 %v2667_v51  ;;  %v10144_v60 = vpop.eup %10143  ;;  %v4426_v11 = vmul.f32 %v10142_v17, %v4410_v19  ;;  %v2809_v25 = vmax.f32 %v2264_v42, %v2793_v1  ;;  %v18707_v6 = vld [vmem:[#allocation111_spill] sm:$0xff]  ;;  %v10622_v13 = vld [vmem:[%s18008_s3 + $0x70] sm:$0xff] }
 0x37a   :  { %10161 = vrcp.f32 %v3212_v15  ;;  %v7375_v52 = vmul.f32 -1.442695, %v15124_v34  ;;  %v10146_v53 = vpop.eup %10145  ;;  %vm3836_vm10 = vcmp.gt.f32.partialorder %v18698_v26, 0.0  ;;  %v3852_v3 = vmul.f32 0.2, %v18698_v26  ;;  %v18701_v34 = vld [vmem:[#allocation83_spill] sm:$0xff] }
 0x37b   :  { %v4300_v30 = vadd.f32 1.0, %v10144_v60  ;;  %10163 = vrcp.f32 %v3757_v54  ;;  %v10148_v29 = vpop.eup %10147  ;;  %v4442_v47 = vmax.f32 %v15408_v48, %v4426_v11  ;;  %v3354_v40 = vmax.f32 %v2809_v25, %v3338_v37  ;;  %v18709_v11 = vld [vmem:[#allocation122_spill] sm:$0xff] }
 0x37c   :  { %v2249_v7 = vmul.f32 %v10146_v53, %v18699_v55  ;;  %10165 = vpow2.f32 %v7375_v52  ;;  %v10150_v38 = vpop.eup %10149  ;;  %vm4379_vm11 = vcmp.gt.f32.partialorder %v18700_v44, 0.0  ;;  %v4395_v49 = vmul.f32 0.2, %v18700_v44 }
 0x37d   :  { %10167 = vrcp.f32 %v4300_v30  ;;  %v2794_v19 = vmul.f32 %v10148_v29, %v18701_v34  ;;  %v10152_v2 = vpop.eup %10151  ;;  %v3821_v14 = vadd.f32 %v10619_v27, %v18702_v41  ;;  %8435 = vmatmul.mubr.f32.gmra.mrb[74].mxu0 %v4442_v47  ;;  %v3899_v48 = vmax.f32 %v3354_v40, %v3883_v33 }
 0x37e   :  { %v2265_v12 = vmax.f32 %v15415_v21, %v2249_v7  ;;  %v3339_v35 = vmul.f32 %v10150_v38, %v18703_v43  ;;  %v10154_v16 = vpop.eup %10153  ;;  %v4364_v61 = vadd.f32 %v10620_v45, %v18704_v23  ;;  %v3868_v57 = vsel %vm3836_vm10, %v18698_v26, %v3852_v3  ;;  %v4447_v43 = vld [vmem:[%s18011_s6] sm:$0xff] }
 0x37f   :  { %v4349_v39 = vmul.f32 %v10621_v46, %v18705_v28  ;;  %v3884_v9 = vmul.f32 %v10152_v2, %v3868_v57  ;;  %v4301_v4 = vadd.f32 1.0, %v10154_v16  ;;  %v2234_v36 = vsel %vm2202_vm7, %v18688_v20, %v18706_v5  ;;  %v4450_v57 = vld [vmem:[%s18011_s6 + $0x18] sm:$0xff]  ;;  %v4451_v5 = vld [vmem:[%s18011_s6 + $0x20] sm:$0xff] }
 0x380   :  { %v2810_v21 = vmax.f32 %v2265_v12, %v2794_v19  ;;  %v10156_v59 = vpop.eup %10155  ;;  %v2779_v0 = vsel %vm2747_vm8, %v18689_v50, %v18707_v6  ;;  %v3324_v62 = vsel %vm3292_vm9, %v18690_v32, %v18708_v22  ;;  %v4411_v51 = vsel %vm4379_vm11, %v18700_v44, %v4395_v49  ;;  %v4663_v12 = vld [vmem:[%s18010_s5] sm:$0xff] }
 0x381   :  { %v3853_v8 = vmul.f32 0.2, %v3821_v14  ;;  %v4427_v1 = vmul.f32 %v10156_v59, %v4411_v51  ;;  %10169 = vrcp.f32 %v4301_v4  ;;  %vm4380_vm12 = vcmp.gt.f32.partialorder %v4364_v61, 0.0  ;;  %8475 = vmatprep.mubr.f32.mxu1 %v4663_v12  ;;  %v4452_v59 = vld [vmem:[%s18011_s6 + $0x28] sm:$0xff]  ;;  %v4454_v51 = vld [vmem:[%s18011_s6 + $0x38] sm:$0xff]  ;;  %v4667_v12 = vld [vmem:[%s18010_s5 + $0x20] sm:$0xff] }
 0x382   :  { %v10158_v63 = vpop.eup %10157  ;;  %v3355_v24 = vmax.f32 %v2810_v21, %v3339_v35  ;;  %v4396_v58 = vmul.f32 0.2, %v4364_v61  ;;  %vm3837_vm13 = vcmp.gt.f32.partialorder %v3821_v14, 0.0  ;;  %v4365_v32 = vadd.f32 %v10622_v13, %v4349_v39 }
 0x383   :  { %v10160_v20 = vpop.eup %10159  ;;  %v2250_v15 = vmul.f32 %v10158_v63, %v2234_v36  ;;  %v4443_v42 = vmax.f32 %v15438_v10, %v4427_v1  ;;  %v3869_v60 = vsel %vm3837_vm13, %v3821_v14, %v3853_v8  ;;  %v4350_v25 = vmul.f32 %v10621_v46, %v18709_v11  ;;  %v4449_v46 = vld [vmem:[%s18011_s6 + $0x10] sm:$0xff] }
 0x384   :  { %v10162_v50 = vpop.eup %10161  ;;  %v3900_v31 = vmax.f32 %v3355_v24, %v3884_v9  ;;  %v2795_v37 = vmul.f32 %v10160_v20, %v2779_v0  ;;  %v4412_v53 = vsel %vm4380_vm12, %v4364_v61, %v4396_v58  ;;  %v4397_v29 = vmul.f32 0.2, %v4365_v32  ;;  %v4453_v63 = vld [vmem:[%s18011_s6 + $0x30] sm:$0xff] }
 0x385   :  { %v10164_v17 = vpop.eup %10163  ;;  %v2266_v18 = vmax.f32 %v15443_v56, %v2250_v15  ;;  %v3340_v33 = vmul.f32 %v10162_v50, %v3324_v62  ;;  %8437 = vmatprep.mubr.f32.mxu0 %v4443_v42  ;;  %vm4381_vm14 = vcmp.gt.f32.partialorder %v4365_v32, 0.0  ;;  %v4366_v55 = vadd.f32 %v10619_v27, %v4350_v25  ;;  %v4960_v27 = vld [vmem:[%s18010_s5 + $0x40] sm:$0xff]  ;;  %v4456_v15 = vld [vmem:[%s18011_s6 + $0x48] sm:$0xff] }
 0x386   :  { %v10166_v54 = vpop.eup %10165  ;;  %v3885_v3 = vmul.f32 %v10164_v17, %v3869_v60  ;;  %v4413_v38 = vsel %vm4381_vm14, %v4365_v32, %v4397_v29  ;;  %v4455_v50 = vld [vmem:[%s18011_s6 + $0x40] sm:$0xff]  ;;  %v4458_v17 = vld [vmem:[%s18011_s6 + $0x58] sm:$0xff] }
 0x387   :  { %v10168_v52 = vpop.eup %10167  ;;  %v2811_v26 = vmax.f32 %v2266_v18, %v2795_v37  ;;  %v4302_v30 = vadd.f32 1.0, %v10166_v54  ;;  %v4398_v49 = vmul.f32 0.2, %v4366_v55  ;;  %vm4382_vm15 = vcmp.gt.f32.partialorder %v4366_v55, 0.0  ;;  %v4457_v18 = vld [vmem:[%s18011_s6 + $0x50] sm:$0xff] }
 0x388   :  { %v4428_v47 = vmul.f32 %v10168_v52, %v4412_v53  ;;  %v4460_v52 = vld [vmem:[%s18011_s6 + $0x68] sm:$0xff]  ;;  %v4459_v53 = vld [vmem:[%s18011_s6 + $0x60] sm:$0xff] }
 0x389   :  { %v3356_v10 = vmax.f32 %v2811_v26, %v3340_v33  ;;  %10171 = vrcp.f32 %v4302_v30  ;;  %v4414_v2 = vsel %vm4382_vm15, %v4366_v55, %v4398_v49  ;;  %v4664_v49 = vld [vmem:[%s18010_s5 + $0x8] sm:$0xff] }
 0x38a   :  { %v4444_v40 = vmax.f32 %v3899_v48, %v4428_v47  ;;  %v4448_v48 = vld [vmem:[%s18011_s6 + $0x8] sm:$0xff] }
 0x38b   :  { %v3901_v56 = vmax.f32 %v3356_v10, %v3885_v3  ;;  %v10170_v7 = vpop.eup %10169  ;;  %v4462_v10 = vld [vmem:[%s18011_s6 + $0x78] sm:$0xff] }
 0x38c   :  { %8438 = vmatmul.mubr.f32.gmra.mrb[76].mxu0 %v4444_v40  ;;  %v4429_v44 = vmul.f32 %v10170_v7, %v4413_v38  ;;  %v4461_v40 = vld [vmem:[%s18011_s6 + $0x70] sm:$0xff] }
 0x38e   :  { %v4445_v34 = vmax.f32 %v3900_v31, %v4429_v44 }
 0x390   :  { %8440 = vmatprep.mubr.f32.mxu0 %v4445_v34  ;;  %v4961_v34 = vld [vmem:[%s18010_s5 + $0x48] sm:$0xff] }
 0x393   :  { %v10172_v19 = vpop.eup %10171 }
 0x394   :  { %v4430_v41 = vmul.f32 %v10172_v19, %v4414_v2  ;;  %v4665_v19 = vld [vmem:[%s18010_s5 + $0x10] sm:$0xff] }
 0x395   :  { %v4962_v2 = vld [vmem:[%s18010_s5 + $0x50] sm:$0xff] }
 0x396   :  { %v4446_v14 = vmax.f32 %v3901_v56, %v4430_v41  ;;  %v4666_v41 = vld [vmem:[%s18010_s5 + $0x18] sm:$0xff] }
 0x398   :  { %8441 = vmatmul.mubr.f32.gmra.mrb[78].mxu0 %v4446_v14  ;;  %v4963_v14 = vld [vmem:[%s18010_s5 + $0x58] sm:$0xff] }
 0x399   :  { %8519 = vmatprep.mubr.f32.mxu0 %v4960_v27  ;;  %v4964_v27 = vld [vmem:[%s18010_s5 + $0x60] sm:$0xff] }
 0x405   :  { %v8421_v35 = vpop.f32.mrb[64].mxu0 }
 0x406   :  { %v4625_v16 = vadd.f32 %v8421_v35, %v4448_v48  ;;  %v4545_v45 = vpop.f32.mrb[65].mxu0  ;;  %v4668_v48 = vld [vmem:[%s18010_s5 + $0x28] sm:$0xff]  ;;  %v4669_v35 = vld [vmem:[%s18010_s5 + $0x30] sm:$0xff] }
 0x407   :  { %v4624_v23 = vadd.f32 %v4545_v45, %v4447_v43  ;;  %v4965_v43 = vld [vmem:[%s18010_s5 + $0x68] sm:$0xff]  ;;  %v4670_v45 = vld [vmem:[%s18010_s5 + $0x38] sm:$0xff] }
 0x409   :  { %v15505_v61 = vpack.c.bf16 %v4625_v16, %v4624_v23  ;;  %v4966_v16 = vld [vmem:[%s18010_s5 + $0x70] sm:$0xff]  ;;  %v4967_v23 = vld [vmem:[%s18010_s5 + $0x78] sm:$0xff] }
 0x40b   :  { %9119 = vmatprep.subr.bf16.mxu1 %v15505_v61  ;;  %9151 = vmatprep.subr.bf16.mxu0 %v15505_v61 }
 0x40c   :  { %9121 = vmatpush3.bf16.msra.mxu1 %v15505_v61  ;;  %9153 = vmatpush3.bf16.msra.mxu0 %v15505_v61 }
 0x417   :  { %v8424_v28 = vpop.f32.mrb[66].mxu0 }
 0x418   :  { %v4627_v39 = vadd.f32 %v8424_v28, %v4450_v57  ;;  %v4555_v21 = vpop.f32.mrb[67].mxu0  ;;  %v5265_v57 = vld [vmem:[%s18010_s5 + $0x80] sm:$0xff]  ;;  %v5266_v28 = vld [vmem:[%s18010_s5 + $0x88] sm:$0xff] }
 0x419   :  { %v4626_v9 = vadd.f32 %v4555_v21, %v4449_v46  ;;  %v5570_v46 = vld [vmem:[%s18010_s5 + $0xc0] sm:$0xff]  ;;  %v5267_v21 = vld [vmem:[%s18010_s5 + $0x90] sm:$0xff] }
 0x41b   :  { %v15517_v4 = vpack.c.bf16 %v4627_v39, %v4626_v9  ;;  %v5571_v39 = vld [vmem:[%s18010_s5 + $0xc8] sm:$0xff]  ;;  %v5572_v9 = vld [vmem:[%s18010_s5 + $0xd0] sm:$0xff] }
 0x41d   :  { %9123 = vmatprep.subr.bf16.mxu1 %v15517_v4  ;;  %9155 = vmatprep.subr.bf16.mxu0 %v15517_v4 }
 0x41e   :  { %9125 = vmatpush3.bf16.msra.mxu1 %v15517_v4  ;;  %9157 = vmatpush3.bf16.msra.mxu0 %v15517_v4 }
 0x422   :  { %v8427_v36 = vpop.f32.mrb[68].mxu0 }
 0x423   :  { %v4629_v6 = vadd.f32 %v8427_v36, %v4452_v59  ;;  %v4565_v0 = vpop.f32.mrb[69].mxu0  ;;  %v5268_v59 = vld [vmem:[%s18010_s5 + $0x98] sm:$0xff]  ;;  %v5269_v36 = vld [vmem:[%s18010_s5 + $0xa0] sm:$0xff] }
 0x424   :  { %v4628_v22 = vadd.f32 %v4565_v0, %v4451_v5  ;;  %v5573_v5 = vld [vmem:[%s18010_s5 + $0xd8] sm:$0xff]  ;;  %v5270_v0 = vld [vmem:[%s18010_s5 + $0xa8] sm:$0xff] }
 0x426   :  { %v15529_v62 = vpack.c.bf16 %v4629_v6, %v4628_v22  ;;  %v5574_v6 = vld [vmem:[%s18010_s5 + $0xe0] sm:$0xff]  ;;  %v5575_v22 = vld [vmem:[%s18010_s5 + $0xe8] sm:$0xff] }
 0x428   :  { %9127 = vmatprep.subr.bf16.mxu1 %v15529_v62  ;;  %9159 = vmatprep.subr.bf16.mxu0 %v15529_v62 }
 0x429   :  { %9129 = vmatpush3.bf16.msra.mxu1 %v15529_v62  ;;  %9161 = vmatpush3.bf16.msra.mxu0 %v15529_v62 }
 0x434   :  { %v8430_v8 = vpop.f32.mrb[70].mxu0 }
 0x435   :  { %v4631_v1 = vadd.f32 %v8430_v8, %v4454_v51  ;;  %v4575_v24 = vpop.f32.mrb[71].mxu0  ;;  %v5271_v51 = vld [vmem:[%s18010_s5 + $0xb0] sm:$0xff]  ;;  %v5272_v8 = vld [vmem:[%s18010_s5 + $0xb8] sm:$0xff] }
 0x436   :  { %v4630_v20 = vadd.f32 %v4575_v24, %v4453_v63  ;;  %v5576_v63 = vld [vmem:[%s18010_s5 + $0xf0] sm:$0xff]  ;;  %v5875_v24 = vld [vmem:[%s18010_s5 + $0x100] sm:$0xff] }
 0x438   :  { %v15541_v58 = vpack.c.bf16 %v4631_v1, %v4630_v20  ;;  %v5577_v1 = vld [vmem:[%s18010_s5 + $0xf8] sm:$0xff]  ;;  %v6180_v20 = vld [vmem:[%s18010_s5 + $0x140] sm:$0xff] }
 0x43a   :  { %9131 = vmatprep.subr.bf16.mxu1 %v15541_v58  ;;  %9163 = vmatprep.subr.bf16.mxu0 %v15541_v58 }
 0x43b   :  { %9133 = vmatpush3.bf16.msra.mxu1 %v15541_v58  ;;  %9165 = vmatpush3.bf16.msra.mxu0 %v15541_v58 }
 0x440   :  { %v8433_v13 = vpop.f32.mrb[72].mxu0 }
 0x441   :  { %v4633_v32 = vadd.f32 %v8433_v13, %v4456_v15  ;;  %v4585_v42 = vpop.f32.mrb[73].mxu0  ;;  %v5876_v15 = vld [vmem:[%s18010_s5 + $0x108] sm:$0xff]  ;;  %v5877_v13 = vld [vmem:[%s18010_s5 + $0x110] sm:$0xff] }
 0x442   :  { %v4632_v31 = vadd.f32 %v4585_v42, %v4455_v50  ;;  %v6181_v50 = vld [vmem:[%s18010_s5 + $0x148] sm:$0xff]  ;;  %v5878_v42 = vld [vmem:[%s18010_s5 + $0x118] sm:$0xff] }
 0x444   :  { %v15553_v37 = vpack.c.bf16 %v4633_v32, %v4632_v31  ;;  %v6182_v32 = vld [vmem:[%s18010_s5 + $0x150] sm:$0xff]  ;;  %v6183_v31 = vld [vmem:[%s18010_s5 + $0x158] sm:$0xff] }
 0x446   :  { %9135 = vmatprep.subr.bf16.mxu1 %v15553_v37  ;;  %9167 = vmatprep.subr.bf16.mxu0 %v15553_v37 }
 0x447   :  { %9137 = vmatpush3.bf16.msra.mxu1 %v15553_v37  ;;  %9169 = vmatpush3.bf16.msra.mxu0 %v15553_v37 }
 0x450   :  { %v8436_v33 = vpop.f32.mrb[74].mxu0 }
 0x451   :  { %v4635_v54 = vadd.f32 %v8436_v33, %v4458_v17  ;;  %v4595_v60 = vpop.f32.mrb[75].mxu0  ;;  %v6184_v17 = vld [vmem:[%s18010_s5 + $0x160] sm:$0xff]  ;;  %v6185_v33 = vld [vmem:[%s18010_s5 + $0x168] sm:$0xff] }
 0x452   :  { %v4634_v11 = vadd.f32 %v4595_v60, %v4457_v18  ;;  %v5880_v18 = vld [vmem:[%s18010_s5 + $0x128] sm:$0xff]  ;;  %v5882_v60 = vld [vmem:[%s18010_s5 + $0x138] sm:$0xff] }
 0x454   :  { %v15565_v25 = vpack.c.bf16 %v4635_v54, %v4634_v11  ;;  %v6186_v54 = vld [vmem:[%s18010_s5 + $0x170] sm:$0xff]  ;;  %v6187_v11 = vld [vmem:[%s18010_s5 + $0x178] sm:$0xff] }
 0x456   :  { %9139 = vmatprep.subr.bf16.mxu1 %v15565_v25  ;;  %9171 = vmatprep.subr.bf16.mxu0 %v15565_v25 }
 0x457   :  { %9141 = vmatpush3.bf16.msra.mxu1 %v15565_v25  ;;  %9173 = vmatpush3.bf16.msra.mxu0 %v15565_v25 }
 0x45f   :  { %v8439_v26 = vpop.f32.mrb[76].mxu0 }
 0x460   :  { %v4637_v3 = vadd.f32 %v8439_v26, %v4460_v52  ;;  %v4605_v30 = vpop.f32.mrb[77].mxu0  ;;  %v6790_v52 = vld [vmem:[%s18010_s5 + $0x1c0] sm:$0xff]  ;;  %v6488_v26 = vld [vmem:[%s18010_s5 + $0x198] sm:$0xff] }
 0x461   :  { %v4636_v29 = vadd.f32 %v4605_v30, %v4459_v53  ;;  %v6792_v53 = vld [vmem:[%s18010_s5 + $0x1d0] sm:$0xff]  ;;  %v6489_v30 = vld [vmem:[%s18010_s5 + $0x1a0] sm:$0xff] }
 0x463   :  { %v15577_v47 = vpack.c.bf16 %v4637_v3, %v4636_v29  ;;  %v6793_v3 = vld [vmem:[%s18010_s5 + $0x1d8] sm:$0xff]  ;;  %v6794_v29 = vld [vmem:[%s18010_s5 + $0x1e0] sm:$0xff] }
 0x465   :  { %9143 = vmatprep.subr.bf16.mxu1 %v15577_v47  ;;  %9175 = vmatprep.subr.bf16.mxu0 %v15577_v47 }
 0x466   :  { %9145 = vmatpush3.bf16.msra.mxu1 %v15577_v47  ;;  %9177 = vmatpush3.bf16.msra.mxu0 %v15577_v47 }
 0x46b   :  { %v8442_v55 = vpop.f32.mrb[78].mxu0 }
 0x46c   :  { %v4639_v56 = vadd.f32 %v8442_v55, %v4462_v10  ;;  %v4615_v7 = vpop.f32.mrb[79].mxu0  ;;  %v6795_v10 = vld [vmem:[%s18010_s5 + $0x1e8] sm:$0xff]  ;;  %v6796_v55 = vld [vmem:[%s18010_s5 + $0x1f0] sm:$0xff] }
 0x46d   :  { %v4638_v38 = vadd.f32 %v4615_v7, %v4461_v40  ;;  %v6491_v40 = vld [vmem:[%s18010_s5 + $0x1b0] sm:$0xff]  ;;  %v6797_v7 = vld [vmem:[%s18010_s5 + $0x1f8] sm:$0xff] }
 0x46f   :  { %v15589_v44 = vpack.c.bf16 %v4639_v56, %v4638_v38  ;;  %v6492_v56 = vld [vmem:[%s18010_s5 + $0x1b8] sm:$0xff]  ;;  %v15880_v38 = vld [vmem:[%s18013_s8 + $0x8] sm:$0xff] }
 0x471   :  { %9147 = vmatprep.subr.bf16.mxu1 %v15589_v44  ;;  %9179 = vmatprep.subr.bf16.mxu0 %v15589_v44 }
 0x472   :  { %9149 = vmatpush3.bf16.msra.mxu1 %v15589_v44  ;;  %9181 = vmatpush3.bf16.msra.mxu0 %v15589_v44 }
 0x473   :  { %9183 = vmatprep.subr.bf16.mxu1 %v15505_v61  ;;  %9215 = vmatprep.subr.bf16.mxu0 %v15505_v61 }
 0x475   :  { %8476 = vmatmul.mubr.f32.vlgmr.msra.gmra.mrb[64].mxu1 %v4664_v49  ;;  %8520 = vmatmul.mubr.f32.vlgmr.msra.gmra.mrb[80].mxu0 %v4961_v34 }
 0x476   :  { %9185 = vmatpush3.bf16.msra.mxu1 %v15505_v61  ;;  %9217 = vmatpush3.bf16.msra.mxu0 %v15505_v61 }
 0x477   :  { %9187 = vmatprep.subr.bf16.mxu1 %v15517_v4  ;;  %9219 = vmatprep.subr.bf16.mxu0 %v15517_v4 }
 0x478   :  { %8478 = vmatprep.mubr.f32.mxu1 %v4665_v19  ;;  %8522 = vmatprep.mubr.f32.mxu0 %v4962_v2 }
 0x479   :  { %8479 = vmatmul.mubr.f32.gmra.mrb[66].mxu1 %v4666_v41  ;;  %8523 = vmatmul.mubr.f32.gmra.mrb[82].mxu0 %v4963_v14 }
 0x47a   :  { %9189 = vmatpush3.bf16.msra.mxu1 %v15517_v4  ;;  %9221 = vmatpush3.bf16.msra.mxu0 %v15517_v4 }
 0x47b   :  { %9191 = vmatprep.subr.bf16.mxu1 %v15529_v62  ;;  %9223 = vmatprep.subr.bf16.mxu0 %v15529_v62 }
 0x47c   :  { %8481 = vmatprep.mubr.f32.mxu1 %v4667_v12  ;;  %8525 = vmatprep.mubr.f32.mxu0 %v4964_v27 }
 0x47d   :  { %8482 = vmatmul.mubr.f32.gmra.mrb[68].mxu1 %v4668_v48  ;;  %8526 = vmatmul.mubr.f32.gmra.mrb[84].mxu0 %v4965_v43  ;;  %v15906_v48 = vld [vmem:[%s18013_s8 + $0x18] sm:$0xff] }
 0x47e   :  { %9193 = vmatpush3.bf16.msra.mxu1 %v15529_v62  ;;  %9225 = vmatpush3.bf16.msra.mxu0 %v15529_v62 }
 0x47f   :  { %9195 = vmatprep.subr.bf16.mxu1 %v15541_v58  ;;  %9227 = vmatprep.subr.bf16.mxu0 %v15541_v58 }
 0x480   :  { %8484 = vmatprep.mubr.f32.mxu1 %v4669_v35  ;;  %8528 = vmatprep.mubr.f32.mxu0 %v4966_v16  ;;  %v15915_v16 = vld [vmem:[%s18013_s8 + $0x10] sm:$0xff] }
 0x481   :  { %8485 = vmatmul.mubr.f32.gmra.mrb[70].mxu1 %v4670_v45  ;;  %8529 = vmatmul.mubr.f32.gmra.mrb[86].mxu0 %v4967_v23 }
 0x482   :  { %9197 = vmatpush3.bf16.msra.mxu1 %v15541_v58  ;;  %9229 = vmatpush3.bf16.msra.mxu0 %v15541_v58 }
 0x483   :  { %9199 = vmatprep.subr.bf16.mxu1 %v15553_v37  ;;  %9231 = vmatprep.subr.bf16.mxu0 %v15553_v37 }
 0x484   :  { %8563 = vmatprep.mubr.f32.mxu1 %v5265_v57  ;;  %8607 = vmatprep.mubr.f32.mxu0 %v5570_v46 }
 0x486   :  { %9201 = vmatpush3.bf16.msra.mxu1 %v15553_v37  ;;  %9233 = vmatpush3.bf16.msra.mxu0 %v15553_v37 }
 0x487   :  { %9203 = vmatprep.subr.bf16.mxu1 %v15565_v25  ;;  %9235 = vmatprep.subr.bf16.mxu0 %v15565_v25 }
 0x48a   :  { %9205 = vmatpush3.bf16.msra.mxu1 %v15565_v25  ;;  %9237 = vmatpush3.bf16.msra.mxu0 %v15565_v25 }
 0x48b   :  { %9207 = vmatprep.subr.bf16.mxu1 %v15577_v47  ;;  %9239 = vmatprep.subr.bf16.mxu0 %v15577_v47 }
 0x48e   :  { %9209 = vmatpush3.bf16.msra.mxu1 %v15577_v47  ;;  %9241 = vmatpush3.bf16.msra.mxu0 %v15577_v47 }
 0x48f   :  { %9211 = vmatprep.subr.bf16.mxu1 %v15589_v44  ;;  %9243 = vmatprep.subr.bf16.mxu0 %v15589_v44 }
 0x492   :  { %9213 = vmatpush3.bf16.msra.mxu1 %v15589_v44  ;;  %9245 = vmatpush3.bf16.msra.mxu0 %v15589_v44 }
 0x493   :  { %9247 = vmatprep.subr.bf16.mxu1 %v15505_v61  ;;  %9279 = vmatprep.subr.bf16.mxu0 %v15505_v61 }
 0x495   :  { %8564 = vmatmul.mubr.f32.vlgmr.msra.gmra.mrb[72].mxu1 %v5266_v28  ;;  %8608 = vmatmul.mubr.f32.vlgmr.msra.gmra.mrb[88].mxu0 %v5571_v39 }
 0x496   :  { %9249 = vmatpush3.bf16.msra.mxu1 %v15505_v61  ;;  %9281 = vmatpush3.bf16.msra.mxu0 %v15505_v61 }
 0x497   :  { %9251 = vmatprep.subr.bf16.mxu1 %v15517_v4  ;;  %9283 = vmatprep.subr.bf16.mxu0 %v15517_v4 }
 0x498   :  { %8566 = vmatprep.mubr.f32.mxu1 %v5267_v21  ;;  %8610 = vmatprep.mubr.f32.mxu0 %v5572_v9 }
 0x499   :  { %8567 = vmatmul.mubr.f32.gmra.mrb[74].mxu1 %v5268_v59  ;;  %8611 = vmatmul.mubr.f32.gmra.mrb[90].mxu0 %v5573_v5 }
 0x49a   :  { %9253 = vmatpush3.bf16.msra.mxu1 %v15517_v4  ;;  %9285 = vmatpush3.bf16.msra.mxu0 %v15517_v4 }
 0x49b   :  { %9255 = vmatprep.subr.bf16.mxu1 %v15529_v62  ;;  %9287 = vmatprep.subr.bf16.mxu0 %v15529_v62 }
 0x49c   :  { %8569 = vmatprep.mubr.f32.mxu1 %v5269_v36  ;;  %8613 = vmatprep.mubr.f32.mxu0 %v5574_v6  ;;  %v15940_v36 = vld [vmem:[%s18013_s8 + $0x28] sm:$0xff] }
 0x49d   :  { %8570 = vmatmul.mubr.f32.gmra.mrb[76].mxu1 %v5270_v0  ;;  %8614 = vmatmul.mubr.f32.gmra.mrb[92].mxu0 %v5575_v22  ;;  %v15949_v22 = vld [vmem:[%s18013_s8 + $0x20] sm:$0xff] }
 0x49e   :  { %9257 = vmatpush3.bf16.msra.mxu1 %v15529_v62  ;;  %9289 = vmatpush3.bf16.msra.mxu0 %v15529_v62 }
 0x49f   :  { %9259 = vmatprep.subr.bf16.mxu1 %v15541_v58  ;;  %9291 = vmatprep.subr.bf16.mxu0 %v15541_v58 }
 0x4a0   :  { %8572 = vmatprep.mubr.f32.mxu1 %v5271_v51  ;;  %8616 = vmatprep.mubr.f32.mxu0 %v5576_v63 }
 0x4a1   :  { %8573 = vmatmul.mubr.f32.gmra.mrb[78].mxu1 %v5272_v8  ;;  %8617 = vmatmul.mubr.f32.gmra.mrb[94].mxu0 %v5577_v1 }
 0x4a2   :  { %9261 = vmatpush3.bf16.msra.mxu1 %v15541_v58  ;;  %9293 = vmatpush3.bf16.msra.mxu0 %v15541_v58 }
 0x4a3   :  { %9263 = vmatprep.subr.bf16.mxu1 %v15553_v37  ;;  %9295 = vmatprep.subr.bf16.mxu0 %v15553_v37 }
 0x4a4   :  { %8651 = vmatprep.mubr.f32.mxu1 %v5875_v24  ;;  %8695 = vmatprep.mubr.f32.mxu0 %v6180_v20 }
 0x4a6   :  { %9265 = vmatpush3.bf16.msra.mxu1 %v15553_v37  ;;  %9297 = vmatpush3.bf16.msra.mxu0 %v15553_v37 }
 0x4a7   :  { %9267 = vmatprep.subr.bf16.mxu1 %v15565_v25  ;;  %9299 = vmatprep.subr.bf16.mxu0 %v15565_v25 }
 0x4aa   :  { %9269 = vmatpush3.bf16.msra.mxu1 %v15565_v25  ;;  %9301 = vmatpush3.bf16.msra.mxu0 %v15565_v25 }
 0x4ab   :  { %9271 = vmatprep.subr.bf16.mxu1 %v15577_v47  ;;  %9303 = vmatprep.subr.bf16.mxu0 %v15577_v47 }
 0x4ae   :  { %9273 = vmatpush3.bf16.msra.mxu1 %v15577_v47  ;;  %9305 = vmatpush3.bf16.msra.mxu0 %v15577_v47 }
 0x4af   :  { %9275 = vmatprep.subr.bf16.mxu1 %v15589_v44  ;;  %9307 = vmatprep.subr.bf16.mxu0 %v15589_v44 }
 0x4b2   :  { %9277 = vmatpush3.bf16.msra.mxu1 %v15589_v44  ;;  %9309 = vmatpush3.bf16.msra.mxu0 %v15589_v44 }
 0x4b3   :  { %9311 = vmatprep.subr.bf16.mxu1 %v15505_v61  ;;  %9343 = vmatprep.subr.bf16.mxu0 %v15505_v61 }
 0x4b5   :  { %8652 = vmatmul.mubr.f32.vlgmr.msra.gmra.mrb[80].mxu1 %v5876_v15  ;;  %8696 = vmatmul.mubr.f32.vlgmr.msra.gmra.mrb[96].mxu0 %v6181_v50  ;;  %v15966_v15 = vld [vmem:[%s18013_s8 + $0x38] sm:$0xff]  ;;  %v15971_v50 = vld [vmem:[%s18013_s8 + $0x30] sm:$0xff] }
 0x4b6   :  { %9313 = vmatpush3.bf16.msra.mxu1 %v15505_v61  ;;  %9345 = vmatpush3.bf16.msra.mxu0 %v15505_v61  ;;  %v5879_v61 = vld [vmem:[%s18010_s5 + $0x120] sm:$0xff] }
 0x4b7   :  { %9315 = vmatprep.subr.bf16.mxu1 %v15517_v4  ;;  %9347 = vmatprep.subr.bf16.mxu0 %v15517_v4 }
 0x4b8   :  { %8654 = vmatprep.mubr.f32.mxu1 %v5877_v13  ;;  %8698 = vmatprep.mubr.f32.mxu0 %v6182_v32 }
 0x4b9   :  { %8655 = vmatmul.mubr.f32.gmra.mrb[82].mxu1 %v5878_v42  ;;  %8699 = vmatmul.mubr.f32.gmra.mrb[98].mxu0 %v6183_v31 }
 0x4ba   :  { %9317 = vmatpush3.bf16.msra.mxu1 %v15517_v4  ;;  %9349 = vmatpush3.bf16.msra.mxu0 %v15517_v4  ;;  %v5881_v4 = vld [vmem:[%s18010_s5 + $0x130] sm:$0xff] }
 0x4bb   :  { %9319 = vmatprep.subr.bf16.mxu1 %v15529_v62  ;;  %9351 = vmatprep.subr.bf16.mxu0 %v15529_v62 }
 0x4bc   :  { %8657 = vmatprep.mubr.f32.mxu1 %v5879_v61  ;;  %8701 = vmatprep.mubr.f32.mxu0 %v6184_v17 }
 0x4bd   :  { %8658 = vmatmul.mubr.f32.gmra.mrb[84].mxu1 %v5880_v18  ;;  %8702 = vmatmul.mubr.f32.gmra.mrb[100].mxu0 %v6185_v33 }
 0x4be   :  { %9321 = vmatpush3.bf16.msra.mxu1 %v15529_v62  ;;  %9353 = vmatpush3.bf16.msra.mxu0 %v15529_v62  ;;  %v6485_v62 = vld [vmem:[%s18010_s5 + $0x180] sm:$0xff] }
 0x4bf   :  { %9323 = vmatprep.subr.bf16.mxu1 %v15541_v58  ;;  %9355 = vmatprep.subr.bf16.mxu0 %v15541_v58 }
 0x4c0   :  { %8660 = vmatprep.mubr.f32.mxu1 %v5881_v4  ;;  %8704 = vmatprep.mubr.f32.mxu0 %v6186_v54 }
 0x4c1   :  { %8661 = vmatmul.mubr.f32.gmra.mrb[86].mxu1 %v5882_v60  ;;  %8705 = vmatmul.mubr.f32.gmra.mrb[102].mxu0 %v6187_v11 }
 0x4c2   :  { %9325 = vmatpush3.bf16.msra.mxu1 %v15541_v58  ;;  %9357 = vmatpush3.bf16.msra.mxu0 %v15541_v58  ;;  %v6486_v58 = vld [vmem:[%s18010_s5 + $0x188] sm:$0xff] }
 0x4c3   :  { %9327 = vmatprep.subr.bf16.mxu1 %v15553_v37  ;;  %9359 = vmatprep.subr.bf16.mxu0 %v15553_v37 }
 0x4c4   :  { %8739 = vmatprep.mubr.f32.mxu1 %v6485_v62  ;;  %8783 = vmatprep.mubr.f32.mxu0 %v6790_v52 }
 0x4c6   :  { %9329 = vmatpush3.bf16.msra.mxu1 %v15553_v37  ;;  %9361 = vmatpush3.bf16.msra.mxu0 %v15553_v37  ;;  %v6791_v37 = vld [vmem:[%s18010_s5 + $0x1c8] sm:$0xff] }
 0x4c7   :  { %9331 = vmatprep.subr.bf16.mxu1 %v15565_v25  ;;  %9363 = vmatprep.subr.bf16.mxu0 %v15565_v25 }
 0x4ca   :  { %9333 = vmatpush3.bf16.msra.mxu1 %v15565_v25  ;;  %9365 = vmatpush3.bf16.msra.mxu0 %v15565_v25  ;;  %v6487_v25 = vld [vmem:[%s18010_s5 + $0x190] sm:$0xff] }
 0x4cb   :  { %9335 = vmatprep.subr.bf16.mxu1 %v15577_v47  ;;  %9367 = vmatprep.subr.bf16.mxu0 %v15577_v47 }
 0x4ce   :  { %9337 = vmatpush3.bf16.msra.mxu1 %v15577_v47  ;;  %9369 = vmatpush3.bf16.msra.mxu0 %v15577_v47  ;;  %v6490_v47 = vld [vmem:[%s18010_s5 + $0x1a8] sm:$0xff] }
 0x4cf   :  { %9339 = vmatprep.subr.bf16.mxu1 %v15589_v44  ;;  %9371 = vmatprep.subr.bf16.mxu0 %v15589_v44 }
 0x4d2   :  { %9341 = vmatpush3.bf16.msra.mxu1 %v15589_v44  ;;  %9373 = vmatpush3.bf16.msra.mxu0 %v15589_v44  ;;  %v15885_v44 = vld [vmem:[%s18013_s8] sm:$0xff] }
 0x4d5   :  { %8740 = vmatmul.mubr.f32.vlgmr.msra.gmra.mrb[88].mxu1 %v6486_v58  ;;  %8784 = vmatmul.mubr.f32.vlgmr.msra.gmra.mrb[104].mxu0 %v6791_v37 }
 0x4d6   :  { %8742 = vmatprep.mubr.f32.mxu1 %v6487_v25  ;;  %8786 = vmatprep.mubr.f32.mxu0 %v6792_v53 }
 0x4d9   :  { %8743 = vmatmul.mubr.f32.gmra.mrb[90].mxu1 %v6488_v26  ;;  %8787 = vmatmul.mubr.f32.gmra.mrb[106].mxu0 %v6793_v3 }
 0x4da   :  { %8745 = vmatprep.mubr.f32.mxu1 %v6489_v30  ;;  %8789 = vmatprep.mubr.f32.mxu0 %v6794_v29 }
 0x4dd   :  { %8746 = vmatmul.mubr.f32.gmra.mrb[92].mxu1 %v6490_v47  ;;  %8790 = vmatmul.mubr.f32.gmra.mrb[108].mxu0 %v6795_v10 }
 0x4de   :  { %8748 = vmatprep.mubr.f32.mxu1 %v6491_v40  ;;  %8792 = vmatprep.mubr.f32.mxu0 %v6796_v55 }
 0x4e1   :  { %8749 = vmatmul.mubr.f32.gmra.mrb[94].mxu1 %v6492_v56  ;;  %8793 = vmatmul.mubr.f32.gmra.mrb[110].mxu0 %v6797_v7 }
 0x548   :  { %v15887_v49 = vpop.f32.mrb[64].mxu1  ;;  %v15889_v34 = vpop.f32.mrb[80].mxu0 }
 0x549   :  { %v4777_v19 = vmul.f32 %v15887_v49, %v15880_v38  ;;  %v15893_v2 = vpop.f32.mrb[65].mxu1  ;;  %v15895_v41 = vpop.f32.mrb[81].mxu0  ;;  %v5074_v12 = vmul.f32 %v15889_v34, %v15880_v38 }
 0x54a   :  { %v4776_v14 = vmul.f32 %v15893_v2, %v15885_v44  ;;  %v5073_v27 = vmul.f32 %v15895_v41, %v15885_v44 }
 0x54b   :  { %4786 = vadd.xlane.f32.xlu1 %v4777_v19 }
 0x54c   :  { %4784 = vadd.xlane.f32.xlu0 %v4776_v14  ;;  %v15908_v43 = vpop.f32.mrb[66].mxu1  ;;  %v15910_v35 = vpop.f32.mrb[82].mxu0 }
 0x54d   :  { %v4779_v45 = vmul.f32 %v15908_v43, %v15906_v48  ;;  %v15919_v23 = vpop.f32.mrb[67].mxu1  ;;  %v15921_v57 = vpop.f32.mrb[83].mxu0  ;;  %v5076_v59 = vmul.f32 %v15910_v35, %v15906_v48 }
 0x54e   :  { %v4778_v46 = vmul.f32 %v15919_v23, %v15915_v16  ;;  %v5075_v5 = vmul.f32 %v15921_v57, %v15915_v16 }
 0x54f   :  { %5083 = vadd.xlane.f32.xlu1 %v5074_v12 }
 0x550   :  { %5081 = vadd.xlane.f32.xlu0 %v5073_v27  ;;  %v15925_v28 = vpop.f32.mrb[68].mxu1  ;;  %v15927_v39 = vpop.f32.mrb[84].mxu0 }
 0x551   :  { %v15929_v21 = vpop.f32.mrb[69].mxu1  ;;  %v15931_v9 = vpop.f32.mrb[85].mxu0  ;;  %v4781_v8 = vmul.f32 %v15925_v28, %v15940_v36  ;;  %v5078_v24 = vmul.f32 %v15927_v39, %v15940_v36 }
 0x552   :  { %v4780_v1 = vmul.f32 %v15929_v21, %v15949_v22  ;;  %v5077_v20 = vmul.f32 %v15931_v9, %v15949_v22 }
 0x553   :  { %4790 = vadd.xlane.f32.xlu1 %v4779_v45 }
 0x554   :  { %4788 = vadd.xlane.f32.xlu0 %v4778_v46  ;;  %v15942_v6 = vpop.f32.mrb[70].mxu1  ;;  %v15944_v0 = vpop.f32.mrb[86].mxu0 }
 0x555   :  { %v15951_v51 = vpop.f32.mrb[71].mxu1  ;;  %v15953_v63 = vpop.f32.mrb[87].mxu0  ;;  %v4783_v13 = vmul.f32 %v15942_v6, %v15966_v15  ;;  %v5080_v42 = vmul.f32 %v15944_v0, %v15966_v15 }
 0x556   :  { %v4782_v32 = vmul.f32 %v15951_v51, %v15971_v50  ;;  %v5079_v31 = vmul.f32 %v15953_v63, %v15971_v50 }
 0x557   :  { %5087 = vadd.xlane.f32.xlu1 %v5076_v59 }
 0x558   :  { %5085 = vadd.xlane.f32.xlu0 %v5075_v5 }
 0x55b   :  { %4794 = vadd.xlane.f32.xlu1 %v4781_v8 }
 0x55c   :  { %4792 = vadd.xlane.f32.xlu0 %v4780_v1 }
 0x55f   :  { %5091 = vadd.xlane.f32.xlu1 %v5078_v24 }
 0x560   :  { %5089 = vadd.xlane.f32.xlu0 %v5077_v20 }
 0x563   :  { %4798 = vadd.xlane.f32.xlu1 %v4783_v13 }
 0x564   :  { %4796 = vadd.xlane.f32.xlu0 %v4782_v32 }
 0x567   :  { %5095 = vadd.xlane.f32.xlu1 %v5080_v42 }
 0x568   :  { %v15981_v61 = vpop.f32.mrb[72].mxu1  ;;  %5093 = vadd.xlane.f32.xlu0 %v5079_v31  ;;  %v15983_v17 = vpop.f32.mrb[88].mxu0 }
 0x569   :  { %v5379_v18 = vmul.f32 %v15981_v61, %v15880_v38  ;;  %v15987_v33 = vpop.f32.mrb[73].mxu1  ;;  %v15989_v4 = vpop.f32.mrb[89].mxu0  ;;  %v5684_v60 = vmul.f32 %v15983_v17, %v15880_v38 }
 0x56a   :  { %v5378_v54 = vmul.f32 %v15987_v33, %v15885_v44  ;;  %v5683_v11 = vmul.f32 %v15989_v4, %v15885_v44 }
 0x56b   :  { %5388 = vadd.xlane.f32.xlu1 %v5379_v18 }
 0x56c   :  { %5386 = vadd.xlane.f32.xlu0 %v5378_v54  ;;  %v15997_v62 = vpop.f32.mrb[74].mxu1  ;;  %v15999_v52 = vpop.f32.mrb[90].mxu0 }
 0x56d   :  { %v5381_v58 = vmul.f32 %v15997_v62, %v15906_v48  ;;  %v16003_v37 = vpop.f32.mrb[75].mxu1  ;;  %v16005_v25 = vpop.f32.mrb[91].mxu0  ;;  %v5686_v47 = vmul.f32 %v15999_v52, %v15906_v48 }
 0x56e   :  { %v5380_v53 = vmul.f32 %v16003_v37, %v15915_v16  ;;  %v5685_v10 = vmul.f32 %v16005_v25, %v15915_v16 }
 0x56f   :  { %5693 = vadd.xlane.f32.xlu1 %v5684_v60 }
 0x570   :  { %5691 = vadd.xlane.f32.xlu0 %v5683_v11  ;;  %v16009_v26 = vpop.f32.mrb[76].mxu1  ;;  %v16011_v3 = vpop.f32.mrb[92].mxu0 }
 0x571   :  { %v16013_v30 = vpop.f32.mrb[77].mxu1  ;;  %v16015_v29 = vpop.f32.mrb[93].mxu0  ;;  %v5383_v19 = vmul.f32 %v16009_v26, %v15940_v36  ;;  %v5688_v12 = vmul.f32 %v16011_v3, %v15940_v36 }
 0x572   :  { %v5382_v14 = vmul.f32 %v16013_v30, %v15949_v22  ;;  %v5687_v27 = vmul.f32 %v16015_v29, %v15949_v22 }
 0x573   :  { %5392 = vadd.xlane.f32.xlu1 %v5381_v58 }
 0x574   :  { %5390 = vadd.xlane.f32.xlu0 %v5380_v53  ;;  %v16021_v40 = vpop.f32.mrb[78].mxu1  ;;  %v16023_v55 = vpop.f32.mrb[94].mxu0 }
 0x575   :  { %18710 = vst [vmem:[#allocation15_spill] sm:$0xff] %v16023_v55  ;;  %v16025_v56 = vpop.f32.mrb[79].mxu1  ;;  %v16027_v7 = vpop.f32.mrb[95].mxu0  ;;  %v5385_v45 = vmul.f32 %v16021_v40, %v15966_v15  ;;  %v5690_v59 = vmul.f32 %v16023_v55, %v15966_v15 }
 0x576   :  { %18711 = vst [vmem:[#allocation16_spill] sm:$0xff] %v16025_v56  ;;  %18712 = vst [vmem:[#allocation73_spill] sm:$0xff] %v16027_v7  ;;  %v5384_v46 = vmul.f32 %v16025_v56, %v15971_v50  ;;  %v5689_v5 = vmul.f32 %v16027_v7, %v15971_v50 }
 0x577   :  { %5697 = vadd.xlane.f32.xlu1 %v5686_v47 }
 0x578   :  { %5695 = vadd.xlane.f32.xlu0 %v5685_v10 }
 0x57b   :  { %5396 = vadd.xlane.f32.xlu1 %v5383_v19 }
 0x57c   :  { %5394 = vadd.xlane.f32.xlu0 %v5382_v14 }
 0x57f   :  { %5701 = vadd.xlane.f32.xlu1 %v5688_v12 }
 0x580   :  { %5699 = vadd.xlane.f32.xlu0 %v5687_v27 }
 0x583   :  { %5400 = vadd.xlane.f32.xlu1 %v5385_v45 }
 0x584   :  { %5398 = vadd.xlane.f32.xlu0 %v5384_v46 }
 0x587   :  { %5705 = vadd.xlane.f32.xlu1 %v5690_v59 }
 0x588   :  { %v16045_v8 = vpop.f32.mrb[80].mxu1  ;;  %5703 = vadd.xlane.f32.xlu0 %v5689_v5  ;;  %v16047_v1 = vpop.f32.mrb[96].mxu0 }
 0x589   :  { %18713 = vst [vmem:[#allocation14_spill] sm:$0xff] %v16045_v8  ;;  %18714 = vst [vmem:[#allocation13_spill] sm:$0xff] %v16047_v1  ;;  %v5989_v24 = vmul.f32 %v16045_v8, %v15880_v38  ;;  %v16051_v20 = vpop.f32.mrb[81].mxu1  ;;  %v16053_v13 = vpop.f32.mrb[97].mxu0  ;;  %v6294_v42 = vmul.f32 %v16047_v1, %v15880_v38 }
 0x58a   :  { %18715 = vst [vmem:[#allocation72_spill] sm:$0xff] %v16051_v20  ;;  %18716 = vst [vmem:[#allocation74_spill] sm:$0xff] %v16053_v13  ;;  %v5988_v32 = vmul.f32 %v16051_v20, %v15885_v44  ;;  %v6293_v31 = vmul.f32 %v16053_v13, %v15885_v44 }
 0x58b   :  { %5998 = vadd.xlane.f32.xlu1 %v5989_v24  ;;  %v16096_v24 = vld [vmem:[%s18015_s10] ss:$0 sm:$0xff] }
 0x58c   :  { %5996 = vadd.xlane.f32.xlu0 %v5988_v32  ;;  %v16061_v18 = vpop.f32.mrb[82].mxu1  ;;  %v16063_v54 = vpop.f32.mrb[98].mxu0  ;;  %v5216_v1 = vmul.f32 %v15944_v0, %v16096_v24  ;;  %v5215_v8 = vmul.f32 %v16096_v24, %v15953_v63 }
 0x58d   :  { %18717 = vst [vmem:[#allocation130_spill] sm:$0xff] %v16061_v18  ;;  %18718 = vst [vmem:[#allocation63_spill] sm:$0xff] %v16063_v54  ;;  %v5991_v60 = vmul.f32 %v16061_v18, %v15906_v48  ;;  %v16067_v11 = vpop.f32.mrb[83].mxu1  ;;  %v16069_v58 = vpop.f32.mrb[99].mxu0  ;;  %v6296_v12 = vmul.f32 %v16063_v54, %v15906_v48  ;;  %v16156_v54 = vld [vmem:[%s18014_s9 + $0x28] sm:$0xff] }
 0x58e   :  { %18719 = vst [vmem:[#allocation51_spill] sm:$0xff] %v16067_v11  ;;  %18720 = vst [vmem:[#allocation118_spill] sm:$0xff] %v16069_v58  ;;  %v5990_v53 = vmul.f32 %v16067_v11, %v15915_v16  ;;  %v6295_v27 = vmul.f32 %v16069_v58, %v15915_v16 }
 0x58f   :  { %6303 = vadd.xlane.f32.xlu1 %v6294_v42 }
 0x590   :  { %6301 = vadd.xlane.f32.xlu0 %v6293_v31  ;;  %v16073_v47 = vpop.f32.mrb[84].mxu1  ;;  %v16075_v10 = vpop.f32.mrb[100].mxu0  ;;  %v4913_v31 = vmul.f32 %v15887_v49, %v16096_v24 }
 0x591   :  { %18721 = vst [vmem:[#allocation25_spill] sm:$0xff] %v16073_v47  ;;  %18722 = vst [vmem:[#allocation127_spill] sm:$0xff] %v16075_v10  ;;  %v16077_v19 = vpop.f32.mrb[85].mxu1  ;;  %v16079_v14 = vpop.f32.mrb[101].mxu0  ;;  %v5993_v32 = vmul.f32 %v16073_v47, %v15940_v36  ;;  %v6298_v58 = vmul.f32 %v16075_v10, %v15940_v36 }
 0x592   :  { %18723 = vst [vmem:[#allocation138_spill] sm:$0xff] %v16077_v19  ;;  %18724 = vst [vmem:[#allocation10_spill] sm:$0xff] %v16079_v14  ;;  %v5992_v42 = vmul.f32 %v16077_v19, %v15949_v22  ;;  %v16121_v19 = vld [vmem:[%s18014_s9] sm:$0xff] }
 0x593   :  { %6002 = vadd.xlane.f32.xlu1 %v5991_v60  ;;  %v16107_v60 = vld [vmem:[%s18014_s9 + $0x8] sm:$0xff] }
 0x594   :  { %6000 = vadd.xlane.f32.xlu0 %v5990_v53  ;;  %v16085_v45 = vpop.f32.mrb[86].mxu1  ;;  %v16087_v46 = vpop.f32.mrb[102].mxu0  ;;  %v5210_v53 = vmul.f32 %v15889_v34, %v16096_v24  ;;  %v4921_v49 = vadd.f32 %v4913_v31, %v16107_v60  ;;  %v5209_v34 = vmul.f32 %v16096_v24, %v15895_v41  ;;  %v5212_v31 = vmul.f32 %v15910_v35, %v16096_v24 }
 0x595   :  { %18725 = vst [vmem:[#allocation22_spill] sm:$0xff] %v16085_v45  ;;  %18726 = vst [vmem:[#allocation126_spill] sm:$0xff] %v16087_v46  ;;  %v16089_v59 = vpop.f32.mrb[87].mxu1  ;;  %v16091_v5 = vpop.f32.mrb[103].mxu0 }
 0x596   :  { %18727 = vst [vmem:[#allocation27_spill] sm:$0xff] %v16089_v59  ;;  %18728 = vst [vmem:[#allocation64_spill] sm:$0xff] %v16091_v5  ;;  %v5218_v10 = vadd.f32 %v5210_v53, %v16107_v60  ;;  %v5211_v53 = vmul.f32 %v16096_v24, %v15921_v57  ;;  %v4937_v47 = vmul.f32 0.2, %v4921_v49  ;;  %v5217_v35 = vadd.f32 %v5209_v34, %v16121_v19 }
 0x597   :  { %6307 = vadd.xlane.f32.xlu1 %v6296_v12  ;;  %v4912_v12 = vmul.f32 %v16096_v24, %v15893_v2  ;;  %v16131_v2 = vld [vmem:[%s18014_s9 + $0x18] sm:$0xff]  ;;  %vm4929_vm0 = vcmp.gt.f32.partialorder %v4921_v49, 0.0  ;;  %v4916_v57 = vmul.f32 %v16096_v24, %v15929_v21  ;;  %v6299_v21 = vmul.f32 %v16091_v5, %v15971_v50 }
 0x598   :  { %6305 = vadd.xlane.f32.xlu0 %v6295_v27  ;;  %v6297_v27 = vmul.f32 %v16079_v14, %v15949_v22  ;;  %v5995_v14 = vmul.f32 %v16085_v45, %v15966_v15  ;;  %vm5226_vm1 = vcmp.gt.f32.partialorder %v5218_v10, 0.0  ;;  %v5220_v34 = vadd.f32 %v5212_v31, %v16131_v2 }
 0x599   :  { %v4920_v41 = vadd.f32 %v4912_v12, %v16121_v19  ;;  %v5234_v12 = vmul.f32 0.2, %v5218_v10  ;;  %vm5225_vm3 = vcmp.gt.f32.partialorder %v5217_v35, 0.0  ;;  %v5233_v31 = vmul.f32 0.2, %v5217_v35 }
 0x59a   :  { %v5214_v5 = vmul.f32 %v15927_v39, %v16096_v24  ;;  %vm5228_vm6 = vcmp.gt.f32.partialorder %v5220_v34, 0.0 }
 0x59b   :  { %6006 = vadd.xlane.f32.xlu1 %v5993_v32  ;;  %v4915_v32 = vmul.f32 %v15908_v43, %v16096_v24  ;;  %v16143_v43 = vld [vmem:[%s18014_s9 + $0x10] sm:$0xff]  ;;  %vm4928_vm2 = vcmp.gt.f32.partialorder %v4920_v41, 0.0  ;;  %v16176_v13 = vsel %vm5226_vm1, %v5218_v10, %v5234_v12  ;;  %v4919_v12 = vmul.f32 %v15942_v6, %v16096_v24 }
 0x59c   :  { %6004 = vadd.xlane.f32.xlu0 %v5992_v42  ;;  %v4914_v42 = vmul.f32 %v16096_v24, %v15919_v23  ;;  %v5994_v23 = vmul.f32 %v16089_v59, %v15971_v50  ;;  %v4936_v59 = vmul.f32 0.2, %v4920_v41  ;;  %v5219_v11 = vadd.f32 %v5211_v53, %v16143_v43  ;;  %18730 = vst [vmem:[#allocation91_spill] sm:$0xff] %v16176_v13 }
 0x59d   :  { %v4923_v45 = vadd.f32 %v4915_v32, %v16131_v2  ;;  %v6300_v32 = vmul.f32 %v16087_v46, %v15966_v15  ;;  %v5236_v53 = vmul.f32 0.2, %v5220_v34 }
 0x59e   :  { %vm5227_vm7 = vcmp.gt.f32.partialorder %v5219_v11, 0.0 }
 0x59f   :  { %6311 = vadd.xlane.f32.xlu1 %v6298_v58  ;;  %v4917_v58 = vmul.f32 %v15925_v28, %v16096_v24  ;;  %v16165_v28 = vld [vmem:[%s18014_s9 + $0x20] sm:$0xff]  ;;  %vm4931_vm4 = vcmp.gt.f32.partialorder %v4923_v45, 0.0  ;;  %v4939_v46 = vmul.f32 0.2, %v4923_v45 }
 0x5a0   :  { %6309 = vadd.xlane.f32.xlu0 %v6297_v27  ;;  %v4922_v27 = vadd.f32 %v4914_v42, %v16143_v43  ;;  %v16173_v42 = vsel %vm4929_vm0, %v4921_v49, %v4937_v47  ;;  %v5235_v47 = vmul.f32 0.2, %v5219_v11  ;;  %v5213_v49 = vmul.f32 %v16096_v24, %v15931_v9  ;;  %v16198_v9 = vld [vmem:[%s18014_s9 + $0x38] sm:$0xff] }
 0x5a1   :  { %18729 = vst [vmem:[#allocation121_spill] sm:$0xff] %v16173_v42  ;;  %v4925_v18 = vadd.f32 %v4917_v58, %v16156_v54  ;;  %v5222_v42 = vadd.f32 %v5214_v5, %v16156_v54  ;;  %v16220_v5 = vsel %vm5225_vm3, %v5217_v35, %v5233_v31  ;;  %v16230_v63 = vsel %vm4931_vm4, %v4923_v45, %v4939_v46 }
 0x5a2   :  { %vm4930_vm5 = vcmp.gt.f32.partialorder %v4922_v27, 0.0  ;;  %v4938_v20 = vmul.f32 0.2, %v4922_v27  ;;  %18733 = vst [vmem:[#allocation124_spill] sm:$0xff] %v16220_v5  ;;  %v16240_v35 = vsel %vm5227_vm7, %v5219_v11, %v5235_v47  ;;  %v5820_v47 = vmul.f32 %v15983_v17, %v16096_v24 }
 0x5a3   :  { %6010 = vadd.xlane.f32.xlu1 %v5995_v14  ;;  %v4924_v14 = vadd.f32 %v4916_v57, %v16165_v28  ;;  %vm4933_vm8 = vcmp.gt.f32.partialorder %v4925_v18, 0.0  ;;  %v4941_v58 = vmul.f32 0.2, %v4925_v18  ;;  %18735 = vst [vmem:[#allocation125_spill] sm:$0xff] %v16240_v35  ;;  %vm5230_vm10 = vcmp.gt.f32.partialorder %v5222_v42, 0.0 }
 0x5a4   :  { %6008 = vadd.xlane.f32.xlu0 %v5994_v23 }
 0x5a5   :  { %vm4932_vm9 = vcmp.gt.f32.partialorder %v4924_v14, 0.0  ;;  %v4940_v13 = vmul.f32 0.2, %v4924_v14 }
 0x5a7   :  { %6315 = vadd.xlane.f32.xlu1 %v6300_v32  ;;  %v16246_v31 = vsel %vm4932_vm9, %v4924_v14, %v4940_v13  ;;  %v5515_v13 = vmul.f32 %v15981_v61, %v16096_v24 }
 0x5a8   :  { %v16183_v23 = vpop.f32.mrb[88].mxu1  ;;  %6313 = vadd.xlane.f32.xlu0 %v6299_v21  ;;  %v16185_v10 = vpop.f32.mrb[104].mxu0  ;;  %v4918_v21 = vmul.f32 %v16096_v24, %v15951_v51  ;;  %v16217_v51 = vsel %vm4928_vm2, %v4920_v41, %v4936_v59  ;;  %v16236_v59 = vsel %vm5228_vm6, %v5220_v34, %v5236_v53  ;;  %v4927_v41 = vadd.f32 %v4919_v12, %v16198_v9 }
 0x5a9   :  { %18731 = vst [vmem:[#allocation120_spill] sm:$0xff] %v16183_v23  ;;  %v6599_v39 = vmul.f32 %v16183_v23, %v15880_v38  ;;  %v16191_v57 = vpop.f32.mrb[89].mxu1  ;;  %v16193_v32 = vpop.f32.mrb[105].mxu0  ;;  %v16208_v23 = vld [vmem:[%s18014_s9 + $0x30] sm:$0xff]  ;;  %v6904_v7 = vmul.f32 %v16185_v10, %v15880_v38  ;;  %v16233_v38 = vsel %vm4930_vm5, %v4922_v27, %v4938_v20  ;;  %18734 = vst [vmem:[#allocation19_spill] sm:$0xff] %v16236_v59 }
 0x5aa   :  { %18732 = vst [vmem:[#allocation23_spill] sm:$0xff] %v16191_v57  ;;  %v6598_v6 = vmul.f32 %v16191_v57, %v15885_v44  ;;  %v5221_v57 = vadd.f32 %v5213_v49, %v16165_v28  ;;  %v6903_v55 = vmul.f32 %v16193_v32, %v15885_v44  ;;  %v16243_v44 = vsel %vm4933_vm8, %v4925_v18, %v4941_v58 }
 0x5ab   :  { %6608 = vadd.xlane.f32.xlu1 %v6599_v39  ;;  %18736 = vst [vmem:[#allocation32_spill] sm:$0xff] %v16243_v44  ;;  %v4926_v45 = vadd.f32 %v4918_v21, %v16208_v23  ;;  %v5224_v20 = vadd.f32 %v5216_v1, %v16198_v9  ;;  %v5223_v46 = vadd.f32 %v5215_v8, %v16208_v23  ;;  %v5238_v18 = vmul.f32 0.2, %v5222_v42 }
 0x5ac   :  { %6606 = vadd.xlane.f32.xlu0 %v6598_v6  ;;  %v16225_v0 = vpop.f32.mrb[90].mxu1  ;;  %v16227_v56 = vpop.f32.mrb[106].mxu0  ;;  %v5237_v53 = vmul.f32 0.2, %v5221_v57  ;;  %vm5229_vm11 = vcmp.gt.f32.partialorder %v5221_v57, 0.0  ;;  %vm4935_vm12 = vcmp.gt.f32.partialorder %v4927_v41, 0.0  ;;  %v5514_v12 = vmul.f32 %v16096_v24, %v15987_v33 }
 0x5ad   :  { %v6601_v27 = vmul.f32 %v16225_v0, %v15906_v48  ;;  %v16253_v34 = vpop.f32.mrb[91].mxu1  ;;  %v16255_v11 = vpop.f32.mrb[107].mxu0  ;;  %vm4934_vm13 = vcmp.gt.f32.partialorder %v4926_v45, 0.0  ;;  %v4942_v61 = vmul.f32 0.2, %v4926_v45  ;;  %v5517_v6 = vmul.f32 %v15997_v62, %v16096_v24 }
 0x5ae   :  { %v6600_v14 = vmul.f32 %v16253_v34, %v15915_v16  ;;  %v5240_v39 = vmul.f32 0.2, %v5224_v20  ;;  %v5239_v21 = vmul.f32 0.2, %v5223_v46  ;;  %v6906_v17 = vmul.f32 %v16227_v56, %v15906_v48 }
 0x5af   :  { %6913 = vadd.xlane.f32.xlu1 %v6904_v7  ;;  %v4943_v7 = vmul.f32 0.2, %v4927_v41  ;;  %vm5232_vm14 = vcmp.gt.f32.partialorder %v5224_v20, 0.0  ;;  %vm5231_vm15 = vcmp.gt.f32.partialorder %v5223_v46, 0.0  ;;  %v5523_v59 = vadd.f32 %v5515_v13, %v16107_v60 }
 0x5b0   :  { %6911 = vadd.xlane.f32.xlu0 %v6903_v55  ;;  %v16261_v1 = vpop.f32.mrb[92].mxu1  ;;  %v16263_v8 = vpop.f32.mrb[108].mxu0  ;;  %v5819_v55 = vmul.f32 %v16096_v24, %v15989_v4  ;;  %v6905_v35 = vmul.f32 %v16255_v11, %v15915_v16  ;;  %v16287_v5 = vsel %vm5230_vm10, %v5222_v42, %v5238_v18  ;;  %v16290_v62 = vsel %vm5229_vm11, %v5221_v57, %v5237_v53 }
 0x5b1   :  { %v16267_v49 = vpop.f32.mrb[93].mxu1  ;;  %v16269_v58 = vpop.f32.mrb[109].mxu0  ;;  %v5828_v48 = vadd.f32 %v5820_v47, %v16107_v60  ;;  %v16300_v16 = vsel %vm4935_vm12, %v4927_v41, %v4943_v7  ;;  %v5522_v42 = vadd.f32 %v5514_v12, %v16121_v19  ;;  %v16308_v18 = vsel %vm5232_vm14, %v5224_v20, %v5240_v39 }
 0x5b2   :  { %v5827_v57 = vadd.f32 %v5819_v55, %v16121_v19  ;;  %18737 = vst [vmem:[#allocation168_spill] sm:$0xff] %v16308_v18  ;;  %v16311_v53 = vsel %vm5231_vm15, %v5223_v46, %v5239_v21  ;;  %v6603_v47 = vmul.f32 %v16261_v1, %v15940_v36  ;;  %vm5531_vm0 = vcmp.gt.f32.partialorder %v5523_v59, 0.0 }
 0x5b3   :  { %6612 = vadd.xlane.f32.xlu1 %v6601_v27  ;;  %v5516_v27 = vmul.f32 %v16096_v24, %v16003_v37  ;;  %v5525_v37 = vadd.f32 %v5517_v6, %v16131_v2  ;;  %v5539_v41 = vmul.f32 0.2, %v5523_v59  ;;  %v6602_v7 = vmul.f32 %v16267_v49, %v15949_v22 }
 0x5b4   :  { %6610 = vadd.xlane.f32.xlu0 %v6600_v14  ;;  %v16282_v33 = vpop.f32.mrb[94].mxu1  ;;  %v16284_v4 = vpop.f32.mrb[110].mxu0  ;;  %v16303_v14 = vsel %vm4934_vm13, %v4926_v45, %v4942_v61  ;;  %v5822_v45 = vmul.f32 %v15999_v52, %v16096_v24  ;;  %vm5836_vm1 = vcmp.gt.f32.partialorder %v5828_v48, 0.0  ;;  %v5844_v20 = vmul.f32 0.2, %v5828_v48 }
 0x5b5   :  { %v16295_v13 = vpop.f32.mrb[95].mxu1  ;;  %v16297_v44 = vpop.f32.mrb[111].mxu0  ;;  %v5524_v46 = vadd.f32 %v5516_v27, %v16143_v43  ;;  %v5821_v61 = vmul.f32 %v16096_v24, %v16005_v25  ;;  %vm5530_vm2 = vcmp.gt.f32.partialorder %v5522_v42, 0.0  ;;  %v5538_v12 = vmul.f32 0.2, %v5522_v42 }
 0x5b6   :  { %vm5835_vm3 = vcmp.gt.f32.partialorder %v5827_v57, 0.0  ;;  %v5519_v55 = vmul.f32 %v16009_v26, %v16096_v24  ;;  %v5843_v39 = vmul.f32 0.2, %v5827_v57  ;;  %v5541_v21 = vmul.f32 0.2, %v5525_v37 }
 0x5b7   :  { %6917 = vadd.xlane.f32.xlu1 %v6906_v17  ;;  %v5518_v52 = vmul.f32 %v16096_v24, %v16013_v30  ;;  %vm5533_vm4 = vcmp.gt.f32.partialorder %v5525_v37, 0.0  ;;  %v5830_v6 = vadd.f32 %v5822_v45, %v16131_v2  ;;  %v5824_v25 = vmul.f32 %v16011_v3, %v16096_v24 }
 0x5b8   :  { %6915 = vadd.xlane.f32.xlu0 %v6905_v35  ;;  %v6908_v35 = vmul.f32 %v16263_v8, %v15940_v36  ;;  %v6907_v17 = vmul.f32 %v16269_v58, %v15949_v22  ;;  %v16335_v26 = vsel %vm5531_vm0, %v5523_v59, %v5539_v41  ;;  %v16338_v27 = vsel %vm5836_vm1, %v5828_v48, %v5844_v20  ;;  %v18744_v20 = vld [vmem:[#allocation16_spill] sm:$0xff] }
 0x5b9   :  { %18738 = vst [vmem:[#allocation140_spill] sm:$0xff] %v16335_v26  ;;  %18739 = vst [vmem:[#allocation29_spill] sm:$0xff] %v16338_v27  ;;  %v5540_v30 = vmul.f32 0.2, %v5524_v46  ;;  %v5829_v36 = vadd.f32 %v5821_v61, %v16143_v43  ;;  %vm5532_vm5 = vcmp.gt.f32.partialorder %v5524_v46, 0.0  ;;  %v5527_v45 = vadd.f32 %v5519_v55, %v16156_v54 }
 0x5ba   :  { %v5823_v3 = vmul.f32 %v16096_v24, %v16015_v29  ;;  %v16348_v22 = vsel %vm5835_vm3, %v5827_v57, %v5843_v39  ;;  %v16350_v59 = vsel %vm5533_vm4, %v5525_v37, %v5541_v21  ;;  %v5526_v48 = vadd.f32 %v5518_v52, %v16165_v28  ;;  %v18745_v52 = vld [vmem:[#allocation15_spill] sm:$0xff] }
 0x5bb   :  { %6616 = vadd.xlane.f32.xlu1 %v6603_v47  ;;  %v16342_v47 = vsel %vm5530_vm2, %v5522_v42, %v5538_v12  ;;  %18741 = vst [vmem:[#allocation38_spill] sm:$0xff] %v16348_v22  ;;  %18742 = vst [vmem:[#allocation129_spill] sm:$0xff] %v16350_v59  ;;  %v6605_v41 = vmul.f32 %v16282_v33, %v15966_v15  ;;  %vm5838_vm6 = vcmp.gt.f32.partialorder %v5830_v6, 0.0  ;;  %v5846_v37 = vmul.f32 0.2, %v5830_v6 }
 0x5bc   :  { %6614 = vadd.xlane.f32.xlu0 %v6602_v7  ;;  %18740 = vst [vmem:[#allocation131_spill] sm:$0xff] %v16342_v47  ;;  %v5832_v42 = vadd.f32 %v5824_v25, %v16156_v54  ;;  %v5521_v7 = vmul.f32 %v16021_v40, %v16096_v24  ;;  %v6604_v29 = vmul.f32 %v16295_v13, %v15971_v50  ;;  %vm5837_vm7 = vcmp.gt.f32.partialorder %v5829_v36, 0.0 }
 0x5bd   :  { %v16360_v57 = vsel %vm5532_vm5, %v5524_v46, %v5540_v30  ;;  %v5520_v61 = vmul.f32 %v16096_v24, %v18744_v20  ;;  %v5845_v12 = vmul.f32 0.2, %v5829_v36  ;;  %vm5535_vm8 = vcmp.gt.f32.partialorder %v5527_v45, 0.0 }
 0x5be   :  { %18743 = vst [vmem:[#allocation21_spill] sm:$0xff] %v16360_v57  ;;  %v5543_v55 = vmul.f32 0.2, %v5527_v45  ;;  %v5831_v39 = vadd.f32 %v5823_v3, %v16165_v28  ;;  %v5542_v21 = vmul.f32 0.2, %v5526_v48  ;;  %v5826_v40 = vmul.f32 %v18745_v52, %v16096_v24  ;;  %v18747_v52 = vld [vmem:[#allocation14_spill] sm:$0xff] }
 0x5bf   :  { %6921 = vadd.xlane.f32.xlu1 %v6908_v35  ;;  %v18746_v35 = vld [vmem:[#allocation73_spill] sm:$0xff]  ;;  %v6910_v46 = vmul.f32 %v16284_v4, %v15966_v15  ;;  %vm5534_vm9 = vcmp.gt.f32.partialorder %v5526_v48, 0.0  ;;  %v5529_v30 = vadd.f32 %v5521_v7, %v16198_v9  ;;  %v6909_v20 = vmul.f32 %v16297_v44, %v15971_v50 }
 0x5c0   :  { %6919 = vadd.xlane.f32.xlu0 %v6907_v17  ;;  %v5825_v25 = vmul.f32 %v16096_v24, %v18746_v35  ;;  %v5848_v17 = vmul.f32 0.2, %v5832_v42  ;;  %vm5840_vm10 = vcmp.gt.f32.partialorder %v5832_v42, 0.0  ;;  %v5528_v3 = vadd.f32 %v5520_v61, %v16208_v23  ;;  %v18748_v35 = vld [vmem:[#allocation13_spill] sm:$0xff] }
 0x5c1   :  { %v6125_v27 = vmul.f32 %v18747_v52, %v16096_v24  ;;  %v6430_v22 = vmul.f32 %v18748_v35, %v16096_v24  ;;  %v16380_v15 = vsel %vm5838_vm6, %v5830_v6, %v5846_v37  ;;  %v16386_v7 = vsel %vm5535_vm8, %v5527_v45, %v5543_v55  ;;  %v18754_v37 = vld [vmem:[#allocation72_spill] sm:$0xff]  ;;  %v18755_v55 = vld [vmem:[#allocation74_spill] sm:$0xff] }
 0x5c2   :  { %18749 = vst [vmem:[#allocation201_spill] sm:$0xff] %v16380_v15  ;;  %18751 = vst [vmem:[#allocation93_spill] sm:$0xff] %v16386_v7  ;;  %v5847_v50 = vmul.f32 0.2, %v5831_v39  ;;  %vm5839_vm11 = vcmp.gt.f32.partialorder %v5831_v39, 0.0  ;;  %v5834_v61 = vadd.f32 %v5826_v40, %v16198_v9  ;;  %v5833_v52 = vadd.f32 %v5825_v25, %v16208_v23 }
 0x5c3   :  { %6620 = vadd.xlane.f32.xlu1 %v6605_v41  ;;  %v16383_v41 = vsel %vm5837_vm7, %v5829_v36, %v5845_v12  ;;  %v16392_v59 = vsel %vm5840_vm10, %v5832_v42, %v5848_v17  ;;  %vm5537_vm12 = vcmp.gt.f32.partialorder %v5529_v30, 0.0  ;;  %v5545_v6 = vmul.f32 0.2, %v5529_v30  ;;  %v18757_v42 = vld [vmem:[#allocation130_spill] sm:$0xff] }
 0x5c4   :  { %6618 = vadd.xlane.f32.xlu0 %v6604_v29  ;;  %18750 = vst [vmem:[#allocation12_spill] sm:$0xff] %v16383_v41  ;;  %v16388_v29 = vsel %vm5534_vm9, %v5526_v48, %v5542_v21  ;;  %18753 = vst [vmem:[#allocation26_spill] sm:$0xff] %v16392_v59  ;;  %v6124_v36 = vmul.f32 %v16096_v24, %v18754_v37  ;;  %v5544_v12 = vmul.f32 0.2, %v5528_v3  ;;  %vm5536_vm13 = vcmp.gt.f32.partialorder %v5528_v3, 0.0  ;;  %v18759_v37 = vld [vmem:[#allocation63_spill] sm:$0xff] }
 0x5c5   :  { %18752 = vst [vmem:[#allocation228_spill] sm:$0xff] %v16388_v29  ;;  %v6133_v45 = vadd.f32 %v6125_v27, %v16107_v60  ;;  %v6438_v48 = vadd.f32 %v6430_v22, %v16107_v60  ;;  %v6429_v21 = vmul.f32 %v16096_v24, %v18755_v55  ;;  %v16400_v40 = vsel %vm5839_vm11, %v5831_v39, %v5847_v50  ;;  %v18761_v50 = vld [vmem:[#allocation118_spill] sm:$0xff] }
 0x5c6   :  { %18756 = vst [vmem:[#allocation47_spill] sm:$0xff] %v16400_v40  ;;  %v6127_v25 = vmul.f32 %v18757_v42, %v16096_v24  ;;  %vm5842_vm14 = vcmp.gt.f32.partialorder %v5834_v61, 0.0  ;;  %v5850_v35 = vmul.f32 0.2, %v5834_v61  ;;  %v6432_v27 = vmul.f32 %v18759_v37, %v16096_v24  ;;  %v18766_v41 = vld [vmem:[#allocation138_spill] sm:$0xff] }
 0x5c7   :  { %6925 = vadd.xlane.f32.xlu1 %v6910_v46  ;;  %v18758_v46 = vld [vmem:[#allocation51_spill] sm:$0xff]  ;;  %v16409_v22 = vsel %vm5537_vm12, %v5529_v30, %v5545_v6  ;;  %vm5841_vm15 = vcmp.gt.f32.partialorder %v5833_v52, 0.0  ;;  %v6132_v39 = vadd.f32 %v6124_v36, %v16121_v19  ;;  %v6431_v55 = vmul.f32 %v16096_v24, %v18761_v50 }
 0x5c8   :  { %6923 = vadd.xlane.f32.xlu0 %v6909_v20  ;;  %v6126_v17 = vmul.f32 %v16096_v24, %v18758_v46  ;;  %v5849_v20 = vmul.f32 0.2, %v5833_v52  ;;  %18760 = vst [vmem:[#allocation95_spill] sm:$0xff] %v16409_v22  ;;  %v16414_v59 = vsel %vm5536_vm13, %v5528_v3, %v5544_v12  ;;  %v6149_v42 = vmul.f32 0.2, %v6133_v45  ;;  %v18765_v3 = vld [vmem:[#allocation25_spill] sm:$0xff] }
 0x5c9   :  { %18762 = vst [vmem:[#allocation135_spill] sm:$0xff] %v16414_v59  ;;  %v6454_v40 = vmul.f32 0.2, %v6438_v48  ;;  %v6437_v46 = vadd.f32 %v6429_v21, %v16121_v19  ;;  %vm6141_vm0 = vcmp.gt.f32.partialorder %v6133_v45, 0.0  ;;  %vm6446_vm1 = vcmp.gt.f32.partialorder %v6438_v48, 0.0  ;;  %v18777_v59 = vld [vmem:[#allocation64_spill] sm:$0xff] }
 0x5ca   :  { %v6135_v15 = vadd.f32 %v6127_v25, %v16131_v2  ;;  %v6134_v37 = vadd.f32 %v6126_v17, %v16143_v43  ;;  %v16420_v30 = vsel %vm5842_vm14, %v5834_v61, %v5850_v35  ;;  %v16422_v6 = vsel %vm5841_vm15, %v5833_v52, %v5849_v20  ;;  %v18769_v35 = vld [vmem:[#allocation127_spill] sm:$0xff] }
 0x5cb   :  { %18763 = vst [vmem:[#allocation28_spill] sm:$0xff] %v16420_v30  ;;  %18764 = vst [vmem:[#allocation128_spill] sm:$0xff] %v16422_v6  ;;  %v6440_v36 = vadd.f32 %v6432_v27, %v16131_v2  ;;  %v6129_v12 = vmul.f32 %v18765_v3, %v16096_v24  ;;  %vm6140_vm2 = vcmp.gt.f32.partialorder %v6132_v39, 0.0  ;;  %v6148_v50 = vmul.f32 0.2, %v6132_v39 }
 0x5cc   :  { %v6439_v21 = vadd.f32 %v6431_v55, %v16143_v43  ;;  %v6128_v22 = vmul.f32 %v16096_v24, %v18766_v41  ;;  %v16430_v25 = vsel %vm6141_vm0, %v6133_v45, %v6149_v42  ;;  %v16432_v17 = vsel %vm6446_vm1, %v6438_v48, %v6454_v40  ;;  %v18770_v43 = vld [vmem:[#allocation10_spill] sm:$0xff] }
 0x5cd   :  { %18767 = vst [vmem:[#allocation18_spill] sm:$0xff] %v16430_v25  ;;  %18768 = vst [vmem:[#allocation166_spill] sm:$0xff] %v16432_v17  ;;  %vm6445_vm3 = vcmp.gt.f32.partialorder %v6437_v46, 0.0  ;;  %v6453_v61 = vmul.f32 0.2, %v6437_v46  ;;  %vm6143_vm4 = vcmp.gt.f32.partialorder %v6135_v15, 0.0  ;;  %v6434_v20 = vmul.f32 %v18769_v35, %v16096_v24 }
 0x5ce   :  { %v6151_v52 = vmul.f32 0.2, %v6135_v15  ;;  %vm6142_vm5 = vcmp.gt.f32.partialorder %v6134_v37, 0.0  ;;  %v6150_v27 = vmul.f32 0.2, %v6134_v37  ;;  %v6137_v30 = vadd.f32 %v6129_v12, %v16156_v54  ;;  %v18771_v48 = vld [vmem:[#allocation22_spill] sm:$0xff] }
 0x5cf   :  { %v6456_v3 = vmul.f32 0.2, %v6440_v36  ;;  %v6433_v55 = vmul.f32 %v16096_v24, %v18770_v43  ;;  %vm6448_vm6 = vcmp.gt.f32.partialorder %v6440_v36, 0.0  ;;  %v6455_v41 = vmul.f32 0.2, %v6439_v21  ;;  %v18773_v17 = vld [vmem:[#allocation27_spill] sm:$0xff] }
 0x5d0   :  { %v6136_v45 = vadd.f32 %v6128_v22, %v16165_v28  ;;  %v6131_v40 = vmul.f32 %v18771_v48, %v16096_v24  ;;  %v16443_v42 = vsel %vm6140_vm2, %v6132_v39, %v6148_v50  ;;  %vm6447_vm7 = vcmp.gt.f32.partialorder %v6439_v21, 0.0  ;;  %v18774_v25 = vld [vmem:[#allocation126_spill] sm:$0xff] }
 0x5d1   :  { %18772 = vst [vmem:[#allocation165_spill] sm:$0xff] %v16443_v42  ;;  %v6130_v35 = vmul.f32 %v16096_v24, %v18773_v17  ;;  %v6436_v12 = vmul.f32 %v18774_v25, %v16096_v24  ;;  %v16450_v6 = vsel %vm6445_vm3, %v6437_v46, %v6453_v61  ;;  %v16453_v43 = vsel %vm6143_vm4, %v6135_v15, %v6151_v52 }
 0x5d2   :  { %18775 = vst [vmem:[#allocation200_spill] sm:$0xff] %v16450_v6  ;;  %18776 = vst [vmem:[#allocation132_spill] sm:$0xff] %v16453_v43  ;;  %v6442_v22 = vadd.f32 %v6434_v20, %v16156_v54  ;;  %v6435_v48 = vmul.f32 %v16096_v24, %v18777_v59  ;;  %v16459_v39 = vsel %vm6142_vm5, %v6134_v37, %v6150_v27  ;;  %vm6145_vm8 = vcmp.gt.f32.partialorder %v6137_v30, 0.0 }
 0x5d3   :  { %18778 = vst [vmem:[#allocation202_spill] sm:$0xff] %v16459_v39  ;;  %v16461_v50 = vsel %vm6448_vm6, %v6440_v36, %v6456_v3  ;;  %v6441_v17 = vadd.f32 %v6433_v55, %v16165_v28  ;;  %v16464_v25 = vsel %vm6447_vm7, %v6439_v21, %v6455_v41  ;;  %v6153_v46 = vmul.f32 0.2, %v6137_v30  ;;  %v18781_v3 = vld [vmem:[#allocation120_spill] sm:$0xff] }
 0x5d4   :  { %18779 = vst [vmem:[#allocation224_spill] sm:$0xff] %v16461_v50  ;;  %18780 = vst [vmem:[#allocation75_spill] sm:$0xff] %v16464_v25  ;;  %vm6144_vm9 = vcmp.gt.f32.partialorder %v6136_v45, 0.0  ;;  %v6139_v15 = vadd.f32 %v6131_v40, %v16198_v9  ;;  %v6152_v52 = vmul.f32 0.2, %v6136_v45  ;;  %v6138_v54 = vadd.f32 %v6130_v35, %v16208_v23  ;;  %v18782_v50 = vld [vmem:[#allocation23_spill] sm:$0xff] }
 0x5d5   :  { %v6444_v59 = vadd.f32 %v6436_v12, %v16198_v9  ;;  %vm6450_vm10 = vcmp.gt.f32.partialorder %v6442_v22, 0.0  ;;  %v6458_v36 = vmul.f32 0.2, %v6442_v22  ;;  %v6443_v27 = vadd.f32 %v6435_v48, %v16208_v23 }
 0x5d6   :  { %vm6449_vm11 = vcmp.gt.f32.partialorder %v6441_v17, 0.0  ;;  %v6457_v21 = vmul.f32 0.2, %v6441_v17  ;;  %v6735_v55 = vmul.f32 %v18781_v3, %v16096_v24  ;;  %vm6147_vm12 = vcmp.gt.f32.partialorder %v6139_v15, 0.0 }
 0x5d7   :  { %v6155_v41 = vmul.f32 0.2, %v6139_v15  ;;  %v7040_v9 = vmul.f32 %v16185_v10, %v16096_v24  ;;  %vm6146_vm13 = vcmp.gt.f32.partialorder %v6138_v54, 0.0  ;;  %v6154_v35 = vmul.f32 0.2, %v6138_v54 }
 0x5d8   :  { %v4787_v61 = vpop.xlane.xlu1 %4786  ;;  %vm6452_vm14 = vcmp.gt.f32.partialorder %v6444_v59, 0.0  ;;  %v6460_v48 = vmul.f32 0.2, %v6444_v59  ;;  %vm6451_vm15 = vcmp.gt.f32.partialorder %v6443_v27, 0.0  ;;  %v16485_v3 = vadd.f32 %v6735_v55, %v16107_v60 }
 0x5d9   :  { %v16469_v20 = vmax.f32 %v4787_v61, 0.0  ;;  %v4785_v37 = vpop.xlane.xlu0 %4784  ;;  %v6459_v61 = vmul.f32 0.2, %v6443_v27  ;;  %v6734_v10 = vmul.f32 %v16096_v24, %v18782_v50  ;;  %v7039_v25 = vmul.f32 %v16096_v24, %v16193_v32 }
 0x5da   :  { %v16472_v28 = vmax.f32 %v4785_v37, 0.0  ;;  %v16496_v6 = vsel %vm6144_vm9, %v6136_v45, %v6152_v52  ;;  %v16503_v43 = vsel %vm6450_vm10, %v6442_v22, %v6458_v36  ;;  %v16506_v50 = vsel %vm6449_vm11, %v6441_v17, %v6457_v21 }
 0x5db   :  { %10173 = vrsqrt.f32 %v16469_v20  ;;  %18784 = vst [vmem:[#allocation222_spill] sm:$0xff] %v16496_v6  ;;  %18785 = vst [vmem:[#allocation94_spill] sm:$0xff] %v16503_v43  ;;  %v16509_v32 = vsel %vm6147_vm12, %v6139_v15, %v6155_v41  ;;  %v16514_v45 = vsel %vm6146_vm13, %v6138_v54, %v6154_v35  ;;  %v16520_v52 = vsel %vm6451_vm15, %v6443_v27, %v6459_v61 }
 0x5dc   :  { %10175 = vrsqrt.f32 %v16472_v28  ;;  %v5084_v40 = vpop.xlane.xlu1 %5083  ;;  %18786 = vst [vmem:[#allocation148_spill] sm:$0xff] %v16506_v50  ;;  %18787 = vst [vmem:[#allocation134_spill] sm:$0xff] %v16509_v32  ;;  %v16525_v17 = vmul.f32 0.2, %v16485_v3  ;;  %v16528_v15 = vadd.f32 %v6734_v10, %v16121_v19  ;;  %v16531_v36 = vadd.f32 %v7039_v25, %v16121_v19 }
 0x5dd   :  { %v16480_v23 = vmax.f32 %v5084_v40, 0.0  ;;  %v5082_v12 = vpop.xlane.xlu0 %5081  ;;  %v16493_v40 = vsel %vm6145_vm8, %v6137_v30, %v6153_v46  ;;  %18788 = vst [vmem:[#allocation43_spill] sm:$0xff] %v16514_v45  ;;  %18790 = vst [vmem:[#allocation40_spill] sm:$0xff] %v16520_v52  ;;  %vm4817_vm0 = vcmp.eq.f32.partialorder %v16469_v20, inf  ;;  %vm4819_vm1 = vcmp.eq.f32.partialorder %v16469_v20, 0.0 }
 0x5de   :  { %v16482_v37 = vmax.f32 %v5082_v12, 0.0  ;;  %18783 = vst [vmem:[#allocation92_spill] sm:$0xff] %v16493_v40  ;;  %v16499_v12 = vadd.f32 %v7040_v9, %v16107_v60  ;;  %v16517_v60 = vsel %vm6452_vm14, %v6444_v59, %v6460_v48  ;;  %v4820_v21 = vand.u32 2147483648, %v16469_v20 }
 0x5df   :  { %10177 = vrsqrt.f32 %v16480_v23  ;;  %18789 = vst [vmem:[#allocation139_spill] sm:$0xff] %v16517_v60  ;;  %vm4810_vm2 = vcmp.eq.f32.partialorder %v16472_v28, inf  ;;  %vm4812_vm3 = vcmp.eq.f32.partialorder %v16472_v28, 0.0  ;;  %v4813_v35 = vand.u32 2147483648, %v16472_v28 }
 0x5e0   :  { %10179 = vrsqrt.f32 %v16482_v37  ;;  %v4791_v55 = vpop.xlane.xlu1 %4790  ;;  %v16535_v54 = vmul.f32 0.2, %v16499_v12  ;;  %vm5114_vm4 = vcmp.eq.f32.partialorder %v16480_v23, inf  ;;  %vm5116_vm5 = vcmp.eq.f32.partialorder %v16480_v23, 0.0 }
 0x5e1   :  { %v16511_v30 = vmax.f32 %v4791_v55, 0.0  ;;  %v4789_v46 = vpop.xlane.xlu0 %4788  ;;  %v5117_v10 = vand.u32 2147483648, %v16480_v23  ;;  %vm5107_vm6 = vcmp.eq.f32.partialorder %v16482_v37, inf  ;;  %vm5109_vm7 = vcmp.eq.f32.partialorder %v16482_v37, 0.0 }
 0x5e2   :  { %v16522_v22 = vmax.f32 %v4789_v46, 0.0  ;;  %vm6751_vm10 = vcmp.gt.f32.partialorder %v16485_v3, 0.0 }
 0x5e3   :  { %10181 = vrsqrt.f32 %v16511_v30  ;;  %vm4831_vm8 = vcmp.eq.f32.partialorder %v16511_v30, inf  ;;  %vm4833_vm9 = vcmp.eq.f32.partialorder %v16511_v30, 0.0 }
 0x5e4   :  { %10183 = vrsqrt.f32 %v16522_v22  ;;  %v5088_v59 = vpop.xlane.xlu1 %5087  ;;  %vm4824_vm11 = vcmp.eq.f32.partialorder %v16522_v22, inf  ;;  %vm4826_vm12 = vcmp.eq.f32.partialorder %v16522_v22, 0.0 }
 0x5e5   :  { %v10174_v27 = vpop.eup %10173  ;;  %v16543_v19 = vmax.f32 %v5088_v59, 0.0  ;;  %v5086_v25 = vpop.xlane.xlu0 %5085 }
 0x5e6   :  { %v10176_v41 = vpop.eup %10175  ;;  %v4816_v9 = vmul.f32 %v10174_v27, %v16469_v20  ;;  %v16548_v48 = vmax.f32 %v5086_v25, 0.0 }
 0x5e7   :  { %v4809_v61 = vmul.f32 %v10176_v41, %v16472_v28  ;;  %10185 = vrsqrt.f32 %v16543_v19  ;;  %v5110_v41 = vand.u32 2147483648, %v16482_v37  ;;  %vm5128_vm13 = vcmp.eq.f32.partialorder %v16543_v19, inf }
 0x5e8   :  { %v4818_v55 = vsel %vm4817_vm0, %v16469_v20, %v4816_v9  ;;  %10187 = vrsqrt.f32 %v16548_v48  ;;  %v4795_v46 = vpop.xlane.xlu1 %4794  ;;  %vm5130_vm14 = vcmp.eq.f32.partialorder %v16543_v19, 0.0  ;;  %vm5121_vm15 = vcmp.eq.f32.partialorder %v16548_v48, inf }
 0x5e9   :  { %v10178_v59 = vpop.eup %10177  ;;  %v4821_v27 = vsel %vm4819_vm1, %v4820_v21, %v4818_v55  ;;  %v4811_v25 = vsel %vm4810_vm2, %v16472_v28, %v4809_v61  ;;  %v4793_v9 = vpop.xlane.xlu0 %4792  ;;  %v16570_v32 = vmax.f32 %v4795_v46, 0.0  ;;  %v4834_v28 = vand.u32 2147483648, %v16511_v30 }
 0x5ea   :  { %v10180_v60 = vpop.eup %10179  ;;  %v7378_v52 = vmul.f32 -1.442695, %v4821_v27  ;;  %v4814_v43 = vsel %vm4812_vm3, %v4813_v35, %v4811_v25  ;;  %v5113_v50 = vmul.f32 %v10178_v59, %v16480_v23  ;;  %v16574_v61 = vmax.f32 %v4793_v9, 0.0 }
 0x5eb   :  { %v7377_v20 = vmul.f32 -1.442695, %v4814_v43  ;;  %v5106_v21 = vmul.f32 %v10180_v60, %v16482_v37  ;;  %vm5123_vm0 = vcmp.eq.f32.partialorder %v16548_v48, 0.0  ;;  %vm4845_vm1 = vcmp.eq.f32.partialorder %v16570_v32, inf }
 0x5ec   :  { %10189 = vpow2.f32 %v7378_v52  ;;  %v5115_v55 = vsel %vm5114_vm4, %v16480_v23, %v5113_v50  ;;  %v5092_v35 = vpop.xlane.xlu1 %5091  ;;  %vm6750_vm2 = vcmp.gt.f32.partialorder %v16528_v15, 0.0  ;;  %vm7056_vm3 = vcmp.gt.f32.partialorder %v16499_v12, 0.0 }
 0x5ed   :  { %v10182_v46 = vpop.eup %10181  ;;  %10191 = vpow2.f32 %v7377_v20  ;;  %v5118_v43 = vsel %vm5116_vm5, %v5117_v10, %v5115_v55  ;;  %v5108_v60 = vsel %vm5107_vm6, %v16482_v37, %v5106_v21  ;;  %v5090_v52 = vpop.xlane.xlu0 %5089  ;;  %v4827_v10 = vand.u32 2147483648, %v16522_v22 }
 0x5ee   :  { %v10184_v59 = vpop.eup %10183  ;;  %v7386_v27 = vmul.f32 -1.442695, %v5118_v43  ;;  %v5111_v50 = vsel %vm5109_vm7, %v5110_v41, %v5108_v60  ;;  %v4830_v25 = vmul.f32 %v10182_v46, %v16511_v30  ;;  %10193 = vrsqrt.f32 %v16570_v32 }
 0x5ef   :  { %v7385_v9 = vmul.f32 -1.442695, %v5111_v50  ;;  %v4823_v23 = vmul.f32 %v10184_v59, %v16522_v22  ;;  %10195 = vrsqrt.f32 %v16574_v61  ;;  %v16605_v46 = vmax.f32 %v5092_v35, 0.0 }
 0x5f0   :  { %10197 = vpow2.f32 %v7386_v27  ;;  %v4832_v20 = vsel %vm4831_vm8, %v16511_v30, %v4830_v25  ;;  %v4799_v37 = vpop.xlane.xlu1 %4798  ;;  %v16612_v25 = vmax.f32 %v5090_v52, 0.0  ;;  %v5131_v30 = vand.u32 2147483648, %v16543_v19 }
 0x5f1   :  { %v10186_v41 = vpop.eup %10185  ;;  %10199 = vpow2.f32 %v7385_v9  ;;  %v4835_v21 = vsel %vm4833_vm9, %v4834_v28, %v4832_v20  ;;  %v4825_v55 = vsel %vm4824_vm11, %v16522_v22, %v4823_v23  ;;  %v16607_v43 = vpop.xlane.xlu0 %4796  ;;  %v5124_v22 = vand.u32 2147483648, %v16548_v48 }
 0x5f2   :  { %v10188_v60 = vpop.eup %10187  ;;  %v7380_v59 = vmul.f32 -1.442695, %v4835_v21  ;;  %v4828_v27 = vsel %vm4826_vm12, %v4827_v10, %v4825_v55  ;;  %v5127_v50 = vmul.f32 %v10186_v41, %v16543_v19  ;;  %10201 = vrsqrt.f32 %v16605_v46 }
 0x5f3   :  { %v7379_v9 = vmul.f32 -1.442695, %v4828_v27  ;;  %v5120_v28 = vmul.f32 %v10188_v60, %v16548_v48  ;;  %v16631_v21 = vmul.f32 0.2, %v16528_v15  ;;  %v16641_v27 = vmul.f32 0.2, %v16531_v36 }
 0x5f4   :  { %10203 = vpow2.f32 %v7380_v59  ;;  %v5129_v35 = vsel %vm5128_vm13, %v16543_v19, %v5127_v50  ;;  %v16622_v23 = vpop.xlane.xlu1 %5095  ;;  %v16638_v19 = vsel %vm6751_vm10, %v16485_v3, %v16525_v17  ;;  %vm4847_vm4 = vcmp.eq.f32.partialorder %v16570_v32, 0.0 }
 0x5f5   :  { %10205 = vpow2.f32 %v7379_v9  ;;  %v5132_v52 = vsel %vm5130_vm14, %v5131_v30, %v5129_v35  ;;  %v5122_v10 = vsel %vm5121_vm15, %v16548_v48, %v5120_v28  ;;  %v16628_v20 = vpop.xlane.xlu0 %5093  ;;  %18791 = vst [vmem:[#allocation136_spill] sm:$0xff] %v16638_v19  ;;  %v16644_v28 = vmax.f32 %v4799_v37, 0.0 }
 0x5f6   :  { %v10190_v41 = vpop.eup %10189  ;;  %v7388_v55 = vmul.f32 -1.442695, %v5132_v52  ;;  %v5125_v60 = vsel %vm5123_vm0, %v5124_v22, %v5122_v10  ;;  %10207 = vrsqrt.f32 %v16612_v25  ;;  %v4848_v17 = vand.u32 2147483648, %v16570_v32 }
 0x5f7   :  { %v10192_v59 = vpop.eup %10191  ;;  %v4889_v48 = vadd.f32 1.0, %v10190_v41  ;;  %v7387_v50 = vmul.f32 -1.442695, %v5125_v60  ;;  %vm7055_vm5 = vcmp.gt.f32.partialorder %v16531_v36, 0.0  ;;  %vm4838_vm6 = vcmp.eq.f32.partialorder %v16574_v61, inf }
 0x5f8   :  { %v10194_v9 = vpop.eup %10193  ;;  %v4888_v30 = vadd.f32 1.0, %v10192_v59  ;;  %10209 = vpow2.f32 %v7388_v55  ;;  %v16646_v35 = vpop.xlane.xlu1 %5388  ;;  %vm4840_vm7 = vcmp.eq.f32.partialorder %v16574_v61, 0.0  ;;  %v4841_v59 = vand.u32 2147483648, %v16574_v61 }
 0x5f9   :  { %v10196_v22 = vpop.eup %10195  ;;  %10211 = vrcp.f32 %v4889_v48  ;;  %v4844_v3 = vmul.f32 %v10194_v9, %v16570_v32  ;;  %v16657_v10 = vpop.xlane.xlu0 %5386  ;;  %v6737_v19 = vmul.f32 %v16225_v0, %v16096_v24  ;;  %vm5142_vm8 = vcmp.eq.f32.partialorder %v16605_v46, inf }
 0x5fa   :  { %v10198_v52 = vpop.eup %10197  ;;  %10213 = vrcp.f32 %v4888_v30  ;;  %v4837_v37 = vmul.f32 %v10196_v22, %v16574_v61  ;;  %vm5144_vm9 = vcmp.eq.f32.partialorder %v16605_v46, 0.0  ;;  %vm5135_vm10 = vcmp.eq.f32.partialorder %v16612_v25, inf }
 0x5fb   :  { %v10200_v41 = vpop.eup %10199  ;;  %v5186_v55 = vadd.f32 1.0, %v10198_v52  ;;  %10215 = vpow2.f32 %v7387_v50  ;;  %v4846_v60 = vsel %vm4845_vm1, %v16570_v32, %v4844_v3  ;;  %vm5137_vm11 = vcmp.eq.f32.partialorder %v16612_v25, 0.0 }
 0x5fc   :  { %v5185_v48 = vadd.f32 1.0, %v10200_v41  ;;  %v4849_v9 = vsel %vm4847_vm4, %v4848_v17, %v4846_v60  ;;  %v4839_v30 = vsel %vm4838_vm6, %v16574_v61, %v4837_v37  ;;  %10217 = vrsqrt.f32 %v16644_v28  ;;  %v10202_v22 = vpop.eup %10201  ;;  %v16669_v3 = vpop.xlane.xlu1 %5693 }
 0x5fd   :  { %10219 = vrcp.f32 %v5186_v55  ;;  %v7382_v45 = vmul.f32 -1.442695, %v4849_v9  ;;  %v4842_v52 = vsel %vm4840_vm7, %v4841_v59, %v4839_v30  ;;  %v5141_v32 = vmul.f32 %v10202_v22, %v16605_v46  ;;  %v5692_v60 = vpop.xlane.xlu0 %5691 }
 0x5fe   :  { %v10204_v50 = vpop.eup %10203  ;;  %10221 = vrcp.f32 %v5185_v48  ;;  %v7381_v40 = vmul.f32 -1.442695, %v4842_v52  ;;  %v5145_v37 = vand.u32 2147483648, %v16605_v46  ;;  %v16673_v41 = vmax.f32 %v16607_v43, 0.0 }
 0x5ff   :  { %v10206_v17 = vpop.eup %10205  ;;  %v4891_v61 = vadd.f32 1.0, %v10204_v50  ;;  %10223 = vpow2.f32 %v7382_v45  ;;  %v5143_v55 = vsel %vm5142_vm8, %v16605_v46, %v5141_v32  ;;  %v5138_v43 = vand.u32 2147483648, %v16612_v25 }
 0x600   :  { %v10208_v24 = vpop.eup %10207  ;;  %v4890_v0 = vadd.f32 1.0, %v10206_v17  ;;  %10225 = vpow2.f32 %v7381_v40  ;;  %v5146_v59 = vsel %vm5144_vm9, %v5145_v37, %v5143_v55  ;;  %v16681_v30 = vmax.f32 %v16622_v23, 0.0  ;;  %v5393_v17 = vpop.xlane.xlu1 %5392 }
 0x601   :  { %10227 = vrcp.f32 %v4891_v61  ;;  %v5134_v48 = vmul.f32 %v10208_v24, %v16612_v25  ;;  %v7390_v9 = vmul.f32 -1.442695, %v5146_v59  ;;  %v16694_v50 = vsel %vm6750_vm2, %v16528_v15, %v16631_v21 }
 0x602   :  { %v10210_v45 = vpop.eup %10209  ;;  %10229 = vrcp.f32 %v4890_v0  ;;  %18792 = vst [vmem:[#allocation20_spill] sm:$0xff] %v16694_v50  ;;  %v16700_v23 = vsel %vm7056_vm3, %v16499_v12, %v16535_v54  ;;  %v16706_v61 = vsel %vm7055_vm5, %v16531_v36, %v16641_v27  ;;  %v16709_v15 = vmax.f32 %v16628_v20, 0.0  ;;  %v16714_v12 = vld [vmem:[%s18015_s10] ss:$0 sm:$0xff]  ;;  %v5391_v27 = vpop.xlane.xlu0 %5390 }
 0x603   :  { %v16683_v40 = vpop.eup %10211  ;;  %v5188_v22 = vadd.f32 1.0, %v10210_v45  ;;  %v5136_v46 = vsel %vm5135_vm10, %v16612_v25, %v5134_v48  ;;  %10231 = vrsqrt.f32 %v16673_v41  ;;  %18793 = vst [vmem:[#allocation180_spill] sm:$0xff] %v16700_v23  ;;  %18794 = vst [vmem:[#allocation79_spill] sm:$0xff] %v16706_v61  ;;  %v16718_v54 = vmul.f32 %v16714_v12, %v16253_v34 }
 0x604   :  { %v16688_v52 = vpop.eup %10213  ;;  %10233 = vpow2.f32 %v7390_v9  ;;  %v5139_v32 = vsel %vm5137_vm11, %v5138_v43, %v5136_v46  ;;  %v16722_v36 = vmax.f32 %v16646_v35, 0.0  ;;  %v16727_v20 = vadd.f32 %v6737_v19, %v16131_v2  ;;  %v5698_v43 = vpop.xlane.xlu1 %5697 }
 0x605   :  { %v10216_v25 = vpop.eup %10215  ;;  %10235 = vrcp.f32 %v5188_v22  ;;  %v7389_v37 = vmul.f32 -1.442695, %v5139_v32  ;;  %v16731_v59 = vmax.f32 %v16657_v10, 0.0  ;;  %vm4859_vm12 = vcmp.eq.f32.partialorder %v16644_v28, inf }
 0x606   :  { %v10218_v21 = vpop.eup %10217  ;;  %v5187_v24 = vadd.f32 1.0, %v10216_v25  ;;  %10237 = vrsqrt.f32 %v16681_v30  ;;  %vm4861_vm13 = vcmp.eq.f32.partialorder %v16644_v28, 0.0  ;;  %v4862_v35 = vand.u32 2147483648, %v16644_v28 }
 0x607   :  { %v16724_v0 = vpop.eup %10219  ;;  %10239 = vpow2.f32 %v7389_v37  ;;  %v4858_v55 = vmul.f32 %v10218_v21, %v16644_v28  ;;  %vm4852_vm14 = vcmp.eq.f32.partialorder %v16673_v41, inf  ;;  %vm4854_vm15 = vcmp.eq.f32.partialorder %v16673_v41, 0.0  ;;  %v5696_v21 = vpop.xlane.xlu0 %5695 }
 0x608   :  { %v16733_v34 = vpop.eup %10221  ;;  %10241 = vrcp.f32 %v5187_v24  ;;  %v4855_v9 = vand.u32 2147483648, %v16673_v41  ;;  %vm5156_vm0 = vcmp.eq.f32.partialorder %v16681_v30, inf  ;;  %vm5158_vm1 = vcmp.eq.f32.partialorder %v16681_v30, 0.0 }
 0x609   :  { %v10224_v48 = vpop.eup %10223  ;;  %v4860_v45 = vsel %vm4859_vm12, %v16644_v28, %v4858_v55  ;;  %10243 = vrsqrt.f32 %v16709_v15  ;;  %v16748_v28 = vmax.f32 %v16669_v3, 0.0  ;;  %v16754_v37 = vmax.f32 %v5692_v60, 0.0 }
 0x60a   :  { %v10226_v2 = vpop.eup %10225  ;;  %v4893_v19 = vadd.f32 1.0, %v10224_v48  ;;  %v4863_v10 = vsel %vm4861_vm13, %v4862_v35, %v4860_v45  ;;  %10245 = vrsqrt.f32 %v16722_v36  ;;  %v5159_v55 = vand.u32 2147483648, %v16681_v30 }
 0x60b   :  { %v16744_v22 = vpop.eup %10227  ;;  %v4892_v46 = vadd.f32 1.0, %v10226_v2  ;;  %v7384_v32 = vmul.f32 -1.442695, %v4863_v10  ;;  %10247 = vrsqrt.f32 %v16731_v59  ;;  %vm5149_vm2 = vcmp.eq.f32.partialorder %v16709_v15, inf  ;;  %v5395_v42 = vpop.xlane.xlu0 %5394 }
 0x60c   :  { %v16750_v25 = vpop.eup %10229  ;;  %10249 = vrcp.f32 %v4893_v19  ;;  %v5152_v35 = vand.u32 2147483648, %v16709_v15  ;;  %vm5151_vm3 = vcmp.eq.f32.partialorder %v16709_v15, 0.0  ;;  %vm5419_vm4 = vcmp.eq.f32.partialorder %v16722_v36, inf }
 0x60d   :  { %v10232_v24 = vpop.eup %10231  ;;  %10251 = vrcp.f32 %v4892_v46  ;;  %v5422_v60 = vand.u32 2147483648, %v16722_v36  ;;  %v16763_v45 = vmax.f32 %v5393_v17, 0.0  ;;  %vm5421_vm5 = vcmp.eq.f32.partialorder %v16722_v36, 0.0 }
 0x60e   :  { %v10234_v3 = vpop.eup %10233  ;;  %10253 = vpow2.f32 %v7384_v32  ;;  %v4851_v48 = vmul.f32 %v10232_v24, %v16673_v41  ;;  %vm5412_vm6 = vcmp.eq.f32.partialorder %v16731_v59, inf  ;;  %v16770_v10 = vmax.f32 %v5391_v27, 0.0  ;;  %v5397_v24 = vpop.xlane.xlu1 %5396 }
 0x60f   :  { %v16765_v2 = vpop.eup %10235  ;;  %v5190_v19 = vadd.f32 1.0, %v10234_v3  ;;  %10255 = vrsqrt.f32 %v16748_v28  ;;  %vm5414_vm7 = vcmp.eq.f32.partialorder %v16731_v59, 0.0  ;;  %v5415_v17 = vand.u32 2147483648, %v16731_v59 }
 0x610   :  { %v10238_v46 = vpop.eup %10237  ;;  %v4853_v32 = vsel %vm4852_vm14, %v16673_v41, %v4851_v48  ;;  %10257 = vrsqrt.f32 %v16754_v37  ;;  %v16785_v39 = vmax.f32 %v5698_v43, 0.0  ;;  %vm5724_vm8 = vcmp.eq.f32.partialorder %v16748_v28, inf }
 0x611   :  { %v10240_v3 = vpop.eup %10239  ;;  %10259 = vrcp.f32 %v5190_v19  ;;  %v4856_v23 = vsel %vm4854_vm15, %v4855_v9, %v4853_v32  ;;  %v5155_v27 = vmul.f32 %v10238_v46, %v16681_v30  ;;  %v16793_v9 = vmax.f32 %v5696_v21, 0.0 }
 0x612   :  { %v16782_v50 = vpop.eup %10241  ;;  %v5189_v6 = vadd.f32 1.0, %v10240_v3  ;;  %v7383_v48 = vmul.f32 -1.442695, %v4856_v23  ;;  %10261 = vrsqrt.f32 %v16763_v45  ;;  %vm5726_vm9 = vcmp.eq.f32.partialorder %v16748_v28, 0.0 }
 0x613   :  { %v10244_v7 = vpop.eup %10243  ;;  %v5157_v19 = vsel %vm5156_vm0, %v16681_v30, %v5155_v27  ;;  %10263 = vrsqrt.f32 %v16770_v10  ;;  %vm5717_vm10 = vcmp.eq.f32.partialorder %v16754_v37, inf  ;;  %v16800_v32 = vmax.f32 %v5397_v24, 0.0  ;;  %v5702_v24 = vpop.xlane.xlu1 %5701 }
 0x614   :  { %v10246_v46 = vpop.eup %10245  ;;  %10265 = vrcp.f32 %v5189_v6  ;;  %v5160_v23 = vsel %vm5158_vm1, %v5159_v55, %v5157_v19  ;;  %v5148_v43 = vmul.f32 %v10244_v7, %v16709_v15  ;;  %vm5719_vm11 = vcmp.eq.f32.partialorder %v16754_v37, 0.0 }
 0x615   :  { %v10248_v3 = vpop.eup %10247  ;;  %10267 = vpow2.f32 %v7383_v48  ;;  %v7392_v27 = vmul.f32 -1.442695, %v5160_v23  ;;  %v5418_v41 = vmul.f32 %v10246_v46, %v16722_v36  ;;  %v16804_v21 = vmax.f32 %v5395_v42, 0.0 }
 0x616   :  { %v16806_v6 = vpop.eup %10249  ;;  %v5150_v7 = vsel %vm5149_vm2, %v16709_v15, %v5148_v43  ;;  %v5411_v30 = vmul.f32 %v10248_v3, %v16731_v59  ;;  %vm5433_vm12 = vcmp.eq.f32.partialorder %v16763_v45, inf  ;;  %v5436_v55 = vand.u32 2147483648, %v16763_v45 }
 0x617   :  { %10269 = vrsqrt.f32 %v16785_v39  ;;  %v16815_v48 = vpop.eup %10251  ;;  %v5153_v42 = vsel %vm5151_vm3, %v5152_v35, %v5150_v7  ;;  %v5420_v19 = vsel %vm5419_vm4, %v16722_v36, %v5418_v41  ;;  %vm5435_vm13 = vcmp.eq.f32.partialorder %v16763_v45, 0.0 }
 0x618   :  { %10271 = vpow2.f32 %v7392_v27  ;;  %vm5426_vm14 = vcmp.eq.f32.partialorder %v16770_v10, inf  ;;  %v5429_v46 = vand.u32 2147483648, %v16770_v10  ;;  %v10254_v23 = vpop.eup %10253  ;;  %v7391_v43 = vmul.f32 -1.442695, %v5153_v42  ;;  %v5700_v42 = vpop.xlane.xlu0 %5699 }
 0x619   :  { %v5423_v3 = vsel %vm5421_vm5, %v5422_v60, %v5420_v19  ;;  %v5413_v15 = vsel %vm5412_vm6, %v16731_v59, %v5411_v30  ;;  %vm5428_vm15 = vcmp.eq.f32.partialorder %v16770_v10, 0.0  ;;  %10273 = vrsqrt.f32 %v16793_v9  ;;  %v10256_v35 = vpop.eup %10255 }
 0x61a   :  { %v4895_v41 = vadd.f32 1.0, %v10254_v23  ;;  %v7394_v27 = vmul.f32 -1.442695, %v5423_v3  ;;  %v5416_v7 = vsel %vm5414_vm7, %v5415_v17, %v5413_v15  ;;  %10275 = vrsqrt.f32 %v16800_v32  ;;  %v10258_v61 = vpop.eup %10257  ;;  %v16848_v3 = vpop.xlane.xlu1 %5400 }
 0x61b   :  { %10277 = vpow2.f32 %v7391_v43  ;;  %v7393_v36 = vmul.f32 -1.442695, %v5416_v7  ;;  %v5723_v60 = vmul.f32 %v10256_v35, %v16748_v28  ;;  %vm5738_vm0 = vcmp.eq.f32.partialorder %v16785_v39, inf  ;;  %v16837_v30 = vpop.eup %10259 }
 0x61c   :  { %10279 = vrcp.f32 %v4895_v41  ;;  %v5716_v19 = vmul.f32 %v10258_v61, %v16754_v37  ;;  %vm5740_vm1 = vcmp.eq.f32.partialorder %v16785_v39, 0.0  ;;  %v5741_v59 = vand.u32 2147483648, %v16785_v39  ;;  %v10262_v17 = vpop.eup %10261 }
 0x61d   :  { %10281 = vpow2.f32 %v7394_v27  ;;  %v5725_v23 = vsel %vm5724_vm8, %v16748_v28, %v5723_v60  ;;  %vm5731_vm2 = vcmp.eq.f32.partialorder %v16793_v9, inf  ;;  %v16846_v43 = vmax.f32 %v5702_v24, 0.0  ;;  %v10264_v15 = vpop.eup %10263 }
 0x61e   :  { %10283 = vpow2.f32 %v7393_v36  ;;  %v18795_v61 = vand.u32 2147483648, %v16748_v28  ;;  %v5718_v41 = vsel %vm5717_vm10, %v16754_v37, %v5716_v19  ;;  %v5432_v27 = vmul.f32 %v10262_v17, %v16763_v45  ;;  %v16859_v7 = vpop.eup %10265 }
 0x61f   :  { %vm5733_vm3 = vcmp.eq.f32.partialorder %v16793_v9, 0.0  ;;  %v18796_v60 = vand.u32 2147483648, %v16754_v37  ;;  %v5425_v29 = vmul.f32 %v10264_v15, %v16770_v10  ;;  %10285 = vrsqrt.f32 %v16804_v21  ;;  %v10268_v28 = vpop.eup %10267 }
 0x620   :  { %v5728_v35 = vsel %vm5726_vm9, %v18795_v61, %v5725_v23  ;;  %v5434_v19 = vsel %vm5433_vm12, %v16763_v45, %v5432_v27  ;;  %v5734_v17 = vand.u32 2147483648, %v16793_v9  ;;  %10287 = vrsqrt.f32 %v16846_v43  ;;  %v16872_v61 = vpop.xlane.xlu0 %5398  ;;  %v16883_v45 = vpop.xlane.xlu1 %5705 }
 0x621   :  { %v7402_v24 = vmul.f32 -1.442695, %v5728_v35  ;;  %v5721_v36 = vsel %vm5719_vm11, %v18796_v60, %v5718_v41  ;;  %v10270_v35 = vpop.eup %10269  ;;  %v4894_v57 = vadd.f32 1.0, %v10268_v28  ;;  %v5437_v37 = vsel %vm5435_vm13, %v5436_v55, %v5434_v19 }
 0x622   :  { %v7401_v23 = vmul.f32 -1.442695, %v5721_v36  ;;  %v5427_v15 = vsel %vm5426_vm14, %v16770_v10, %v5425_v29  ;;  %v10272_v41 = vpop.eup %10271  ;;  %v7396_v60 = vmul.f32 -1.442695, %v5437_v37  ;;  %v5737_v36 = vmul.f32 %v10270_v35, %v16785_v39 }
 0x623   :  { %10289 = vpow2.f32 %v7402_v24  ;;  %v5430_v27 = vsel %vm5428_vm15, %v5429_v46, %v5427_v15  ;;  %v10274_v26 = vpop.eup %10273  ;;  %v5192_v47 = vadd.f32 1.0, %v10272_v41  ;;  %vm5447_vm4 = vcmp.eq.f32.partialorder %v16800_v32, inf }
 0x624   :  { %10291 = vpow2.f32 %v7401_v23  ;;  %v7395_v28 = vmul.f32 -1.442695, %v5430_v27  ;;  %v10276_v55 = vpop.eup %10275  ;;  %v5739_v29 = vsel %vm5738_vm0, %v16785_v39, %v5737_v36  ;;  %v5730_v24 = vmul.f32 %v10274_v26, %v16793_v9  ;;  %v16900_v41 = vpop.xlane.xlu0 %5703 }
 0x625   :  { %10293 = vrcp.f32 %v4894_v57  ;;  %v5450_v10 = vand.u32 2147483648, %v16800_v32  ;;  %v10278_v46 = vpop.eup %10277  ;;  %v5742_v57 = vsel %vm5740_vm1, %v5741_v59, %v5739_v29  ;;  %v5446_v23 = vmul.f32 %v10276_v55, %v16800_v32 }
 0x626   :  { %10295 = vpow2.f32 %v7396_v60  ;;  %v16893_v19 = vmax.f32 %v5700_v42, 0.0  ;;  %v16895_v35 = vpop.eup %10279  ;;  %v5191_v37 = vadd.f32 1.0, %v10278_v46  ;;  %v7404_v15 = vmul.f32 -1.442695, %v5742_v57 }
 0x627   :  { %10297 = vrcp.f32 %v5192_v47  ;;  %v5732_v26 = vsel %vm5731_vm2, %v16793_v9, %v5730_v24  ;;  %v10282_v60 = vpop.eup %10281  ;;  %v5448_v39 = vsel %vm5447_vm4, %v16800_v32, %v5446_v23  ;;  %vm5449_vm5 = vcmp.eq.f32.partialorder %v16800_v32, 0.0  ;;  %v16910_v9 = vpop.xlane.xlu1 %5998 }
 0x628   :  { %10299 = vpow2.f32 %v7395_v28  ;;  %v5735_v47 = vsel %vm5733_vm3, %v5734_v17, %v5732_v26  ;;  %v10284_v42 = vpop.eup %10283  ;;  %v5491_v59 = vadd.f32 1.0, %v10282_v60  ;;  %v5451_v36 = vsel %vm5449_vm5, %v5450_v10, %v5448_v39  ;;  %v16920_v26 = vpop.xlane.xlu0 %5996 }
 0x629   :  { %10301 = vrsqrt.f32 %v16893_v19  ;;  %v7403_v27 = vmul.f32 -1.442695, %v5735_v47  ;;  %v10286_v28 = vpop.eup %10285  ;;  %v5490_v55 = vadd.f32 1.0, %v10284_v42  ;;  %v7398_v29 = vmul.f32 -1.442695, %v5451_v36 }
 0x62a   :  { %10303 = vrcp.f32 %v5191_v37  ;;  %vm5440_vm6 = vcmp.eq.f32.partialorder %v16804_v21, inf  ;;  %v10288_v17 = vpop.eup %10287  ;;  %v5439_v24 = vmul.f32 %v10286_v28, %v16804_v21  ;;  %vm5442_vm7 = vcmp.eq.f32.partialorder %v16804_v21, 0.0 }
 0x62b   :  { %10305 = vpow2.f32 %v7404_v15  ;;  %v5443_v32 = vand.u32 2147483648, %v16804_v21  ;;  %v5751_v10 = vmul.f32 %v10288_v17, %v16846_v43  ;;  %vm5752_vm8 = vcmp.eq.f32.partialorder %v16846_v43, inf }
 0x62c   :  { %10307 = vrcp.f32 %v5491_v59  ;;  %vm5754_vm9 = vcmp.eq.f32.partialorder %v16846_v43, 0.0  ;;  %v5441_v37 = vsel %vm5440_vm6, %v16804_v21, %v5439_v24  ;;  %v5755_v15 = vand.u32 2147483648, %v16846_v43 }
 0x62d   :  { %v10290_v46 = vpop.eup %10289  ;;  %10309 = vrcp.f32 %v5490_v55  ;;  %v5444_v39 = vsel %vm5442_vm7, %v5443_v32, %v5441_v37  ;;  %v5753_v42 = vsel %vm5752_vm8, %v16846_v43, %v5751_v10  ;;  %v7042_v36 = vmul.f32 %v16714_v12, %v16227_v56  ;;  %v16937_v32 = vpop.xlane.xlu1 %6303 }
 0x62e   :  { %v10292_v57 = vpop.eup %10291  ;;  %v5796_v23 = vadd.f32 1.0, %v10290_v46  ;;  %10311 = vpow2.f32 %v7403_v27  ;;  %v7397_v27 = vmul.f32 -1.442695, %v5444_v39  ;;  %v5756_v28 = vsel %vm5754_vm9, %v5755_v15, %v5753_v42 }
 0x62f   :  { %v16922_v60 = vpop.eup %10293  ;;  %v5795_v47 = vadd.f32 1.0, %v10292_v57  ;;  %10313 = vpow2.f32 %v7398_v29  ;;  %v10624_v29 = vld [vmem:[%s18014_s9 + $0x10] sm:$0xff]  ;;  %v7406_v24 = vmul.f32 -1.442695, %v5756_v28  ;;  %v7041_v56 = vmul.f32 %v16714_v12, %v16255_v11  ;;  %v10625_v11 = vld [vmem:[%s18014_s9 + $0x18] sm:$0xff] }
 0x630   :  { %v10296_v59 = vpop.eup %10295  ;;  %10315 = vrcp.f32 %v5796_v23  ;;  %v6744_v21 = vadd.f32 %v10624_v29, %v16718_v54  ;;  %v6739_v43 = vmul.f32 %v16714_v12, %v16261_v1  ;;  %v16944_v10 = vmax.f32 %v16848_v3, 0.0 }
 0x631   :  { %v16931_v55 = vpop.eup %10297  ;;  %10317 = vrcp.f32 %v5795_v47  ;;  %v5493_v17 = vadd.f32 1.0, %v10296_v59  ;;  %vm6753_vm10 = vcmp.gt.f32.partialorder %v16727_v20, 0.0  ;;  %v16948_v23 = vmax.f32 %v16872_v61, 0.0  ;;  %v6302_v47 = vpop.xlane.xlu0 %6301 }
 0x632   :  { %18797 = vst [vmem:[#allocation178_spill] sm:$0xff] %v16931_v55  ;;  %v10300_v46 = vpop.eup %10299  ;;  %10319 = vpow2.f32 %v7397_v27  ;;  %v6761_v15 = vmul.f32 0.2, %v16727_v20  ;;  %v16956_v1 = vadd.f32 %v10625_v11, %v7042_v36  ;;  %vm5745_vm11 = vcmp.eq.f32.partialorder %v16893_v19, inf }
 0x633   :  { %v10302_v57 = vpop.eup %10301  ;;  %10321 = vrcp.f32 %v5493_v17  ;;  %v5492_v54 = vadd.f32 1.0, %v10300_v46  ;;  %v5748_v61 = vand.u32 2147483648, %v16893_v19  ;;  %v16962_v42 = vmax.f32 %v16883_v45, 0.0  ;;  %v6003_v45 = vpop.xlane.xlu1 %6002 }
 0x634   :  { %v16950_v37 = vpop.eup %10303  ;;  %10323 = vpow2.f32 %v7406_v24  ;;  %v5744_v3 = vmul.f32 %v10302_v57, %v16893_v19  ;;  %vm5747_vm12 = vcmp.eq.f32.partialorder %v16893_v19, 0.0  ;;  %v6760_v17 = vmul.f32 0.2, %v6744_v21 }
 0x635   :  { %18798 = vst [vmem:[#allocation203_spill] sm:$0xff] %v16950_v37  ;;  %v10306_v39 = vpop.eup %10305  ;;  %10325 = vrcp.f32 %v5492_v54  ;;  %v6738_v24 = vmul.f32 %v16714_v12, %v16267_v49  ;;  %vm6752_vm13 = vcmp.gt.f32.partialorder %v6744_v21, 0.0  ;;  %v16974_v54 = vadd.f32 %v10624_v29, %v7041_v56 }
 0x636   :  { %v16964_v59 = vpop.eup %10307  ;;  %v5798_v27 = vadd.f32 1.0, %v10306_v39  ;;  %v5746_v28 = vsel %vm5745_vm11, %v16893_v19, %v5744_v3  ;;  %10327 = vrsqrt.f32 %v16944_v10  ;;  %v16979_v19 = vld [vmem:[%s18014_s9 + $0x28] sm:$0xff]  ;;  %v16993_v29 = vsel %vm6753_vm10, %v16727_v20, %v6761_v15 }
 0x637   :  { %18799 = vst [vmem:[#allocation98_spill] sm:$0xff] %v16964_v59  ;;  %v16969_v36 = vpop.eup %10309  ;;  %v5749_v46 = vsel %vm5747_vm12, %v5748_v61, %v5746_v28  ;;  %10329 = vrsqrt.f32 %v16948_v23  ;;  %v16982_v39 = vadd.f32 %v16979_v19, %v6739_v43  ;;  %v16986_v61 = vmax.f32 %v16900_v41, 0.0  ;;  %18802 = vst [vmem:[#allocation96_spill] sm:$0xff] %v16993_v29  ;;  %v6001_v43 = vpop.xlane.xlu0 %6000 }
 0x638   :  { %18800 = vst [vmem:[#allocation205_spill] sm:$0xff] %v16969_v36  ;;  %v10312_v57 = vpop.eup %10311  ;;  %10331 = vrcp.f32 %v5798_v27  ;;  %v7405_v11 = vmul.f32 -1.442695, %v5749_v46  ;;  %v16996_v27 = vmax.f32 %v16910_v9, 0.0  ;;  %v17004_v41 = vmul.f32 0.2, %v16956_v1 }
 0x639   :  { %v10314_v3 = vpop.eup %10313  ;;  %v5797_v49 = vadd.f32 1.0, %v10312_v57  ;;  %10333 = vrsqrt.f32 %v16962_v42  ;;  %v17001_v57 = vsel %vm6752_vm13, %v6744_v21, %v6760_v17  ;;  %vm5461_vm14 = vcmp.eq.f32.partialorder %v16944_v10, inf }
 0x63a   :  { %v16988_v28 = vpop.eup %10315  ;;  %v5495_v56 = vadd.f32 1.0, %v10314_v3  ;;  %10335 = vpow2.f32 %v7405_v11  ;;  %18804 = vst [vmem:[#allocation42_spill] sm:$0xff] %v17001_v57  ;;  %vm5463_vm15 = vcmp.eq.f32.partialorder %v16944_v10, 0.0  ;;  %v17017_v21 = vmax.f32 %v16920_v26, 0.0 }
 0x63b   :  { %18801 = vst [vmem:[#allocation100_spill] sm:$0xff] %v16988_v28  ;;  %v16998_v46 = vpop.eup %10317  ;;  %v17009_v28 = vld [vmem:[%s18014_s9 + $0x20] sm:$0xff]  ;;  %10337 = vrcp.f32 %v5797_v49  ;;  %v5464_v11 = vand.u32 2147483648, %v16944_v10  ;;  %vm5454_vm0 = vcmp.eq.f32.partialorder %v16948_v23, inf  ;;  %vm5456_vm1 = vcmp.eq.f32.partialorder %v16948_v23, 0.0  ;;  %v6306_v59 = vpop.xlane.xlu0 %6305 }
 0x63c   :  { %18803 = vst [vmem:[#allocation137_spill] sm:$0xff] %v16998_v46  ;;  %v17012_v20 = vadd.f32 %v17009_v28, %v6738_v24  ;;  %v10320_v9 = vpop.eup %10319  ;;  %10339 = vrcp.f32 %v5495_v56  ;;  %v6308_v24 = vpop.xlane.xlu1 %6307  ;;  %v5457_v49 = vand.u32 2147483648, %v16948_v23  ;;  %v17028_v26 = vmax.f32 %v16937_v32, 0.0 }
 0x63d   :  { %v17019_v15 = vpop.eup %10321  ;;  %v5494_v17 = vadd.f32 1.0, %v10320_v9  ;;  %10341 = vrsqrt.f32 %v16986_v61  ;;  %vm5766_vm2 = vcmp.eq.f32.partialorder %v16962_v42, inf  ;;  %v17033_v29 = vmax.f32 %v6302_v47, 0.0 }
 0x63e   :  { %18805 = vst [vmem:[#allocation133_spill] sm:$0xff] %v17019_v15  ;;  %v10324_v3 = vpop.eup %10323  ;;  %10343 = vrsqrt.f32 %v16996_v27  ;;  %vm5768_vm3 = vcmp.eq.f32.partialorder %v16962_v42, 0.0  ;;  %v5769_v46 = vand.u32 2147483648, %v16962_v42  ;;  %v17038_v15 = vmax.f32 %v6003_v45, 0.0 }
 0x63f   :  { %v17030_v56 = vpop.eup %10325  ;;  %10345 = vrcp.f32 %v5494_v17  ;;  %v5800_v9 = vadd.f32 1.0, %v10324_v3  ;;  %vm5759_vm4 = vcmp.eq.f32.partialorder %v16986_v61, inf  ;;  %v17043_v47 = vmax.f32 %v6001_v43, 0.0 }
 0x640   :  { %18806 = vst [vmem:[#allocation78_spill] sm:$0xff] %v17030_v56  ;;  %v10328_v57 = vpop.eup %10327  ;;  %10347 = vrsqrt.f32 %v17017_v21  ;;  %vm5761_vm5 = vcmp.eq.f32.partialorder %v16986_v61, 0.0  ;;  %vm6029_vm6 = vcmp.eq.f32.partialorder %v16996_v27, inf  ;;  %vm6031_vm7 = vcmp.eq.f32.partialorder %v16996_v27, 0.0 }
 0x641   :  { %v10330_v32 = vpop.eup %10329  ;;  %10349 = vrcp.f32 %v5800_v9  ;;  %v5460_v56 = vmul.f32 %v10328_v57, %v16944_v10  ;;  %v17052_v9 = vmax.f32 %v6308_v24, 0.0  ;;  %vm6022_vm8 = vcmp.eq.f32.partialorder %v17017_v21, inf }
 0x642   :  { %v17045_v3 = vpop.eup %10331  ;;  %v5453_v36 = vmul.f32 %v10330_v32, %v16948_v23  ;;  %10351 = vrsqrt.f32 %v17028_v26  ;;  %vm6024_vm9 = vcmp.eq.f32.partialorder %v17017_v21, 0.0  ;;  %vm6334_vm10 = vcmp.eq.f32.partialorder %v17028_v26, inf }
 0x643   :  { %18807 = vst [vmem:[#allocation39_spill] sm:$0xff] %v17045_v3  ;;  %v10334_v57 = vpop.eup %10333  ;;  %v5462_v43 = vsel %vm5461_vm14, %v16944_v10, %v5460_v56  ;;  %10353 = vrsqrt.f32 %v17033_v29  ;;  %v6007_v3 = vpop.xlane.xlu1 %6006  ;;  %vm6336_vm11 = vcmp.eq.f32.partialorder %v17028_v26, 0.0  ;;  %vm6327_vm12 = vcmp.eq.f32.partialorder %v17033_v29, inf }
 0x644   :  { %v10336_v55 = vpop.eup %10335  ;;  %v5465_v45 = vsel %vm5463_vm15, %v5464_v11, %v5462_v43  ;;  %v5455_v24 = vsel %vm5454_vm0, %v16948_v23, %v5453_v36  ;;  %v5765_v18 = vmul.f32 %v10334_v57, %v16962_v42  ;;  %10355 = vrsqrt.f32 %v17038_v15 }
 0x645   :  { %v17069_v56 = vpop.eup %10337  ;;  %v5799_v32 = vadd.f32 1.0, %v10336_v55  ;;  %v7400_v17 = vmul.f32 -1.442695, %v5465_v45  ;;  %v5458_v37 = vsel %vm5456_vm1, %v5457_v49, %v5455_v24  ;;  %10357 = vrsqrt.f32 %v17043_v47  ;;  %v6005_v45 = vpop.xlane.xlu0 %6004 }
 0x646   :  { %18808 = vst [vmem:[#allocation11_spill] sm:$0xff] %v17069_v56  ;;  %v17075_v10 = vpop.eup %10339  ;;  %v7399_v36 = vmul.f32 -1.442695, %v5458_v37  ;;  %v5767_v11 = vsel %vm5766_vm2, %v16962_v42, %v5765_v18  ;;  %10359 = vrsqrt.f32 %v17052_v9  ;;  %v17082_v55 = vmax.f32 %v6306_v59, 0.0 }
 0x647   :  { %18809 = vst [vmem:[#allocation97_spill] sm:$0xff] %v17075_v10  ;;  %v10342_v23 = vpop.eup %10341  ;;  %10361 = vrcp.f32 %v5799_v32  ;;  %v5770_v49 = vsel %vm5768_vm3, %v5769_v46, %v5767_v11  ;;  %vm6329_vm13 = vcmp.eq.f32.partialorder %v17033_v29, 0.0  ;;  %vm6043_vm14 = vcmp.eq.f32.partialorder %v17038_v15, inf }
 0x648   :  { %v10344_v57 = vpop.eup %10343  ;;  %10363 = vpow2.f32 %v7400_v17  ;;  %v7408_v43 = vmul.f32 -1.442695, %v5770_v49  ;;  %v5758_v59 = vmul.f32 %v10342_v23, %v16986_v61  ;;  %v17093_v32 = vmax.f32 %v6007_v3, 0.0  ;;  %v6312_v17 = vpop.xlane.xlu1 %6311 }
 0x649   :  { %v17095_v42 = vpop.eup %10345  ;;  %10365 = vpow2.f32 %v7399_v36  ;;  %v6028_v46 = vmul.f32 %v10344_v57, %v16996_v27  ;;  %vm6045_vm15 = vcmp.eq.f32.partialorder %v17038_v15, 0.0  ;;  %vm6036_vm0 = vcmp.eq.f32.partialorder %v17043_v47, inf }
 0x64a   :  { %18810 = vst [vmem:[#allocation84_spill] sm:$0xff] %v17095_v42  ;;  %v17100_v24 = vmax.f32 %v6005_v45, 0.0  ;;  %v10348_v11 = vpop.eup %10347  ;;  %10367 = vpow2.f32 %v7408_v43  ;;  %v5760_v23 = vsel %vm5759_vm4, %v16986_v61, %v5758_v59  ;;  %vm6038_vm1 = vcmp.eq.f32.partialorder %v17043_v47, 0.0 }
 0x64b   :  { %v6039_v3 = vand.u32 2147483648, %v17043_v47  ;;  %v17108_v49 = vpop.eup %10349  ;;  %v18812_v57 = vand.u32 2147483648, %v16986_v61  ;;  %v6030_v43 = vsel %vm6029_vm6, %v16996_v27, %v6028_v46  ;;  %v6021_v18 = vmul.f32 %v10348_v11, %v17017_v21  ;;  %v17128_v46 = vpop.xlane.xlu0 %6309 }
 0x64c   :  { %18811 = vst [vmem:[#allocation170_spill] sm:$0xff] %v17108_v49  ;;  %vm6348_vm2 = vcmp.eq.f32.partialorder %v17052_v9, inf  ;;  %10369 = vrsqrt.f32 %v17082_v55  ;;  %v10352_v59 = vpop.eup %10351  ;;  %v18813_v36 = vand.u32 2147483648, %v16996_v27  ;;  %vm6350_vm3 = vcmp.eq.f32.partialorder %v17052_v9, 0.0 }
 0x64d   :  { %v5763_v45 = vsel %vm5761_vm5, %v18812_v57, %v5760_v23  ;;  %10371 = vrsqrt.f32 %v17093_v32  ;;  %v17126_v61 = vmax.f32 %v6312_v17, 0.0  ;;  %v10354_v11 = vpop.eup %10353  ;;  %v6023_v57 = vsel %vm6022_vm8, %v17017_v21, %v6021_v18 }
 0x64e   :  { %v7407_v37 = vmul.f32 -1.442695, %v5763_v45  ;;  %v6033_v49 = vsel %vm6031_vm7, %v18813_v36, %v6030_v43  ;;  %v6333_v45 = vmul.f32 %v10352_v59, %v17028_v26  ;;  %10373 = vrsqrt.f32 %v17100_v24  ;;  %v10356_v27 = vpop.eup %10355 }
 0x64f   :  { %v7410_v23 = vmul.f32 -1.442695, %v6033_v49  ;;  %v18814_v36 = vand.u32 2147483648, %v17017_v21  ;;  %v6326_v43 = vmul.f32 %v10354_v11, %v17033_v29  ;;  %v10358_v49 = vpop.eup %10357  ;;  %v6042_v59 = vmul.f32 %v10356_v27, %v17038_v15 }
 0x650   :  { %10375 = vpow2.f32 %v7407_v37  ;;  %v6335_v18 = vsel %vm6334_vm10, %v17028_v26, %v6333_v45  ;;  %vm6341_vm4 = vcmp.eq.f32.partialorder %v17082_v55, inf  ;;  %v10360_v37 = vpop.eup %10359  ;;  %v18815_v42 = vand.u32 2147483648, %v17028_v26 }
 0x651   :  { %v6026_v17 = vsel %vm6024_vm9, %v18814_v36, %v6023_v57  ;;  %10377 = vpow2.f32 %v7410_v23  ;;  %v6328_v11 = vsel %vm6327_vm12, %v17033_v29, %v6326_v43  ;;  %v6035_v23 = vmul.f32 %v10358_v49, %v17043_v47  ;;  %v17157_v57 = vpop.xlane.xlu1 %6010  ;;  %v17159_v45 = vpop.eup %10361 }
 0x652   :  { %v7409_v10 = vmul.f32 -1.442695, %v6026_v17  ;;  %v6338_v21 = vsel %vm6336_vm11, %v18815_v42, %v6335_v18  ;;  %vm6343_vm5 = vcmp.eq.f32.partialorder %v17082_v55, 0.0  ;;  %vm6057_vm6 = vcmp.eq.f32.partialorder %v17093_v32, inf  ;;  %18816 = vst [vmem:[#allocation33_spill] sm:$0xff] %v17159_v45  ;;  %v10364_v17 = vpop.eup %10363 }
 0x653   :  { %10379 = vrsqrt.f32 %v17126_v61  ;;  %v7418_v27 = vmul.f32 -1.442695, %v6338_v21  ;;  %v18817_v26 = vand.u32 2147483648, %v17033_v29  ;;  %v6044_v36 = vsel %vm6043_vm14, %v17038_v15, %v6042_v59  ;;  %v17177_v21 = vpop.xlane.xlu0 %6008 }
 0x654   :  { %10381 = vpow2.f32 %v7409_v10  ;;  %vm6059_vm7 = vcmp.eq.f32.partialorder %v17093_v32, 0.0  ;;  %v18818_v49 = vand.u32 2147483648, %v17038_v15  ;;  %v6037_v10 = vsel %vm6036_vm0, %v17043_v47, %v6035_v23 }
 0x655   :  { %v6331_v42 = vsel %vm6329_vm13, %v18817_v26, %v6328_v11  ;;  %v6347_v29 = vmul.f32 %v10360_v37, %v17052_v9  ;;  %v10366_v11 = vpop.eup %10365  ;;  %v5497_v26 = vadd.f32 1.0, %v10364_v17  ;;  %10383 = vpow2.f32 %v7418_v27 }
 0x656   :  { %v7417_v43 = vmul.f32 -1.442695, %v6331_v42  ;;  %v6047_v18 = vsel %vm6045_vm15, %v18818_v49, %v6044_v36  ;;  %v6040_v59 = vsel %vm6038_vm1, %v6039_v3, %v6037_v10  ;;  %v6060_v42 = vand.u32 2147483648, %v17093_v32  ;;  %v10368_v56 = vpop.eup %10367 }
 0x657   :  { %v5496_v45 = vadd.f32 1.0, %v10366_v11  ;;  %v7412_v15 = vmul.f32 -1.442695, %v6047_v18  ;;  %v6349_v23 = vsel %vm6348_vm2, %v17052_v9, %v6347_v29  ;;  %v10370_v36 = vpop.eup %10369  ;;  %v5802_v37 = vadd.f32 1.0, %v10368_v56  ;;  %v17192_v18 = vpop.xlane.xlu1 %6315 }
 0x658   :  { %10385 = vpow2.f32 %v7417_v43  ;;  %v7411_v49 = vmul.f32 -1.442695, %v6040_v59  ;;  %v18819_v17 = vand.u32 2147483648, %v17052_v9  ;;  %v10372_v3 = vpop.eup %10371  ;;  %vm7058_vm8 = vcmp.gt.f32.partialorder %v16956_v1, 0.0 }
 0x659   :  { %10387 = vrcp.f32 %v5497_v26  ;;  %v6340_v43 = vmul.f32 %v10370_v36, %v17082_v55  ;;  %vm6050_vm9 = vcmp.eq.f32.partialorder %v17100_v24, inf  ;;  %v10374_v10 = vpop.eup %10373  ;;  %v6056_v56 = vmul.f32 %v10372_v3, %v17093_v32  ;;  %v17202_v26 = vpop.xlane.xlu0 %6313 }
 0x65a   :  { %v6352_v47 = vsel %vm6350_vm3, %v18819_v17, %v6349_v23  ;;  %10389 = vrcp.f32 %v5496_v45  ;;  %vm6052_vm10 = vcmp.eq.f32.partialorder %v17100_v24, 0.0  ;;  %v6053_v9 = vand.u32 2147483648, %v17100_v24  ;;  %v10376_v29 = vpop.eup %10375 }
 0x65b   :  { %v7420_v27 = vmul.f32 -1.442695, %v6352_v47  ;;  %10391 = vrcp.f32 %v5802_v37  ;;  %v6342_v45 = vsel %vm6341_vm4, %v17082_v55, %v6340_v43  ;;  %v6049_v11 = vmul.f32 %v10374_v10, %v17100_v24  ;;  %v10378_v59 = vpop.eup %10377 }
 0x65c   :  { %10393 = vpow2.f32 %v7412_v15  ;;  %vm6362_vm11 = vcmp.eq.f32.partialorder %v17126_v61, inf  ;;  %v5801_v23 = vadd.f32 1.0, %v10376_v29  ;;  %v18820_v36 = vand.u32 2147483648, %v17082_v55 }
 0x65d   :  { %10395 = vpow2.f32 %v7411_v49  ;;  %v6058_v15 = vsel %vm6057_vm6, %v17093_v32, %v6056_v56  ;;  %v10380_v17 = vpop.eup %10379  ;;  %v6101_v47 = vadd.f32 1.0, %v10378_v59  ;;  %v6051_v49 = vsel %vm6050_vm9, %v17100_v24, %v6049_v11  ;;  %v17220_v59 = vpop.xlane.xlu1 %6608 }
 0x65e   :  { %v6345_v37 = vsel %vm6343_vm5, %v18820_v36, %v6342_v45  ;;  %10397 = vpow2.f32 %v7420_v27  ;;  %v6061_v43 = vsel %vm6059_vm7, %v6060_v42, %v6058_v15  ;;  %v10382_v10 = vpop.eup %10381  ;;  %v6361_v55 = vmul.f32 %v10380_v17, %v17126_v61 }
 0x65f   :  { %v7419_v3 = vmul.f32 -1.442695, %v6345_v37  ;;  %10399 = vrcp.f32 %v5801_v23  ;;  %v7414_v29 = vmul.f32 -1.442695, %v6061_v43  ;;  %v6100_v45 = vadd.f32 1.0, %v10382_v10  ;;  %v10384_v32 = vpop.eup %10383  ;;  %v17228_v37 = vpop.xlane.xlu0 %6606 }
 0x660   :  { %10401 = vrcp.f32 %v6101_v47  ;;  %v6054_v56 = vsel %vm6052_vm10, %v6053_v9, %v6051_v49  ;;  %v6365_v27 = vand.u32 2147483648, %v17126_v61  ;;  %v7044_v42 = vmul.f32 %v16714_v12, %v16263_v8 }
 0x661   :  { %10403 = vpow2.f32 %v7419_v3  ;;  %v6363_v11 = vsel %vm6362_vm11, %v17126_v61, %v6361_v55  ;;  %vm6364_vm12 = vcmp.eq.f32.partialorder %v17126_v61, 0.0  ;;  %v6406_v36 = vadd.f32 1.0, %v10384_v32  ;;  %v17254_v55 = vpop.xlane.xlu1 %6913 }
 0x662   :  { %v10386_v23 = vpop.eup %10385  ;;  %10405 = vrcp.f32 %v6100_v45  ;;  %v7413_v24 = vmul.f32 -1.442695, %v6054_v56  ;;  %v6366_v9 = vsel %vm6364_vm12, %v6365_v27, %v6363_v11  ;;  %v7043_v17 = vmul.f32 %v16714_v12, %v16269_v58 }
 0x663   :  { %v17230_v15 = vpop.eup %10387  ;;  %v6405_v8 = vadd.f32 1.0, %v10386_v23  ;;  %10407 = vpow2.f32 %v7414_v29  ;;  %v7422_v47 = vmul.f32 -1.442695, %v6366_v9  ;;  %vm7057_vm13 = vcmp.gt.f32.partialorder %v16974_v54, 0.0 }
 0x664   :  { %v17234_v3 = vpop.eup %10389  ;;  %v7065_v61 = vmul.f32 0.2, %v16974_v54  ;;  %10409 = vrcp.f32 %v6406_v36  ;;  %v17239_v43 = vmax.f32 %v17128_v46, 0.0  ;;  %v17247_v58 = vsel %vm7058_vm8, %v16956_v1, %v17004_v41  ;;  %v10628_v1 = vld [vmem:[%s18015_s10] ss:$0 sm:$0xff] }
 0x665   :  { %v17241_v10 = vpop.eup %10391  ;;  %18821 = vst [vmem:[#allocation99_spill] sm:$0xff] %v17247_v58  ;;  %vm6755_vm14 = vcmp.gt.f32.partialorder %v16982_v39, 0.0  ;;  %v6763_v12 = vmul.f32 0.2, %v16982_v39  ;;  %10411 = vrcp.f32 %v6405_v8  ;;  %vm6754_vm15 = vcmp.gt.f32.partialorder %v17012_v20, 0.0 }
 0x666   :  { %v10394_v29 = vpop.eup %10393  ;;  %v6762_v49 = vmul.f32 0.2, %v17012_v20  ;;  %v7052_v46 = vadd.f32 %v16979_v19, %v7044_v42  ;;  %10413 = vpow2.f32 %v7413_v24  ;;  %v17257_v56 = vadd.f32 %v17009_v28, %v7043_v17  ;;  %v6912_v42 = vpop.xlane.xlu0 %6911 }
 0x667   :  { %v10396_v45 = vpop.eup %10395  ;;  %v6741_v41 = vmul.f32 %v10628_v1, %v16282_v33  ;;  %v6103_v27 = vadd.f32 1.0, %v10394_v29  ;;  %10415 = vpow2.f32 %v7422_v47  ;;  %v6740_v11 = vmul.f32 %v10628_v1, %v16295_v13 }
 0x668   :  { %v10398_v32 = vpop.eup %10397  ;;  %v6102_v23 = vadd.f32 1.0, %v10396_v45  ;;  %10417 = vrsqrt.f32 %v17239_v43  ;;  %v17266_v19 = vmax.f32 %v17157_v57, 0.0  ;;  %v7046_v36 = vmul.f32 %v10628_v1, %v16284_v4 }
 0x669   :  { %v17268_v28 = vpop.eup %10399  ;;  %10419 = vrcp.f32 %v6103_v27  ;;  %v6408_v24 = vadd.f32 1.0, %v10398_v32  ;;  %v17272_v33 = vmax.f32 %v17177_v21, 0.0  ;;  %v17279_v13 = vsel %vm7057_vm13, %v16974_v54, %v7065_v61 }
 0x66a   :  { %v17274_v9 = vpop.eup %10401  ;;  %18822 = vst [vmem:[#allocation105_spill] sm:$0xff] %v17279_v13  ;;  %v17284_v57 = vsel %vm6755_vm14, %v16982_v39, %v6763_v12  ;;  %v7068_v17 = vmul.f32 0.2, %v7052_v46  ;;  %10421 = vrcp.f32 %v6102_v23  ;;  %v17289_v21 = vsel %vm6754_vm15, %v17012_v20, %v6762_v49  ;;  %v10629_v39 = vld [vmem:[%s18014_s9 + $0x38] sm:$0xff]  ;;  %v6613_v20 = vpop.xlane.xlu1 %6612 }
 0x66b   :  { %18823 = vst [vmem:[#allocation145_spill] sm:$0xff] %v17284_v57  ;;  %v10404_v4 = vpop.eup %10403  ;;  %18824 = vst [vmem:[#allocation169_spill] sm:$0xff] %v17289_v21  ;;  %vm7060_vm0 = vcmp.gt.f32.partialorder %v7052_v46, 0.0  ;;  %10423 = vrcp.f32 %v6408_v24  ;;  %v17292_v8 = vmax.f32 %v17192_v18, 0.0  ;;  %v17297_v47 = vmul.f32 0.2, %v17257_v56 }
 0x66c   :  { %v17294_v54 = vpop.eup %10405  ;;  %v17302_v61 = vadd.f32 %v10629_v39, %v6741_v41  ;;  %v6407_v12 = vadd.f32 1.0, %v10404_v4  ;;  %10425 = vrsqrt.f32 %v17266_v19  ;;  %v17308_v18 = vld [vmem:[%s18014_s9 + $0x30] sm:$0xff]  ;;  %v17313_v45 = vadd.f32 %v10629_v39, %v7046_v36  ;;  %v6611_v4 = vpop.xlane.xlu0 %6610 }
 0x66d   :  { %v10408_v29 = vpop.eup %10407  ;;  %v17311_v49 = vadd.f32 %v17308_v18, %v6740_v11  ;;  %10427 = vrsqrt.f32 %v17272_v33  ;;  %v17317_v41 = vmax.f32 %v17202_v26, 0.0  ;;  %v17322_v32 = vsel %vm7060_vm0, %v7052_v46, %v7068_v17 }
 0x66e   :  { %18825 = vst [vmem:[#allocation204_spill] sm:$0xff] %v17313_v45  ;;  %v17319_v27 = vpop.eup %10409  ;;  %18827 = vst [vmem:[#allocation226_spill] sm:$0xff] %v17322_v32  ;;  %10429 = vrcp.f32 %v6407_v12  ;;  %v6105_v23 = vadd.f32 1.0, %v10408_v29  ;;  %v17325_v24 = vmax.f32 %v17220_v59, 0.0  ;;  %v17330_v36 = vmul.f32 %v10628_v1, %v16297_v44 }
 0x66f   :  { %18826 = vst [vmem:[#allocation206_spill] sm:$0xff] %v17319_v27  ;;  %v17327_v11 = vpop.eup %10411  ;;  %vm6355_vm1 = vcmp.eq.f32.partialorder %v17239_v43, inf  ;;  %vm6357_vm2 = vcmp.eq.f32.partialorder %v17239_v43, 0.0  ;;  %10431 = vrsqrt.f32 %v17292_v8  ;;  %v6358_v46 = vand.u32 2147483648, %v17239_v43 }
 0x670   :  { %18828 = vst [vmem:[#allocation225_spill] sm:$0xff] %v17327_v11  ;;  %v10414_v26 = vpop.eup %10413  ;;  %10433 = vrcp.f32 %v6105_v23  ;;  %vm6071_vm3 = vcmp.eq.f32.partialorder %v17266_v19, inf  ;;  %v6074_v59 = vand.u32 2147483648, %v17266_v19  ;;  %vm6073_vm4 = vcmp.eq.f32.partialorder %v17266_v19, 0.0 }
 0x671   :  { %v10416_v17 = vpop.eup %10415  ;;  %v6104_v39 = vadd.f32 1.0, %v10414_v26  ;;  %vm6064_vm5 = vcmp.eq.f32.partialorder %v17272_v33, inf  ;;  %10435 = vrsqrt.f32 %v17317_v41  ;;  %v17342_v44 = vmax.f32 %v17228_v37, 0.0  ;;  %v6918_v26 = vpop.xlane.xlu1 %6917 }
 0x672   :  { %v10418_v1 = vpop.eup %10417  ;;  %v6410_v12 = vadd.f32 1.0, %v10416_v17  ;;  %vm6066_vm6 = vcmp.eq.f32.partialorder %v17272_v33, 0.0  ;;  %v6067_v29 = vand.u32 2147483648, %v17272_v33  ;;  %10437 = vrsqrt.f32 %v17325_v24 }
 0x673   :  { %v17348_v23 = vmax.f32 %v17254_v55, 0.0  ;;  %v17350_v45 = vpop.eup %10419  ;;  %10439 = vrcp.f32 %v6104_v39  ;;  %v6354_v32 = vmul.f32 %v10418_v1, %v17239_v43  ;;  %vm6376_vm7 = vcmp.eq.f32.partialorder %v17292_v8, inf  ;;  %v6916_v55 = vpop.xlane.xlu0 %6915 }
 0x674   :  { %18829 = vst [vmem:[#allocation50_spill] sm:$0xff] %v17350_v45  ;;  %v17354_v37 = vmax.f32 %v6912_v42, 0.0  ;;  %v17356_v17 = vpop.eup %10421  ;;  %10441 = vrcp.f32 %v6410_v12  ;;  %vm6378_vm8 = vcmp.eq.f32.partialorder %v17292_v8, 0.0  ;;  %v6379_v58 = vand.u32 2147483648, %v17292_v8 }
 0x675   :  { %v17360_v13 = vmax.f32 %v6613_v20, 0.0  ;;  %v17362_v57 = vpop.eup %10423  ;;  %v6356_v39 = vsel %vm6355_vm1, %v17239_v43, %v6354_v32  ;;  %vm6369_vm9 = vcmp.eq.f32.partialorder %v17317_v41, inf  ;;  %10443 = vrsqrt.f32 %v17342_v44  ;;  %v6617_v27 = vpop.xlane.xlu1 %6616 }
 0x676   :  { %18830 = vst [vmem:[#allocation144_spill] sm:$0xff] %v17362_v57  ;;  %v10426_v12 = vpop.eup %10425  ;;  %v6359_v20 = vsel %vm6357_vm2, %v6358_v46, %v6356_v39  ;;  %vm6371_vm10 = vcmp.eq.f32.partialorder %v17317_v41, 0.0  ;;  %vm6639_vm11 = vcmp.eq.f32.partialorder %v17325_v24, inf  ;;  %10445 = vrsqrt.f32 %v17348_v23 }
 0x677   :  { %v17377_v32 = vmax.f32 %v6611_v4, 0.0  ;;  %v10428_v57 = vpop.eup %10427  ;;  %v7421_v42 = vmul.f32 -1.442695, %v6359_v20  ;;  %v6070_v1 = vmul.f32 %v10426_v12, %v17266_v19  ;;  %vm6641_vm12 = vcmp.eq.f32.partialorder %v17325_v24, 0.0 }
 0x678   :  { %10447 = vrsqrt.f32 %v17354_v37  ;;  %v17382_v43 = vmax.f32 %v6918_v26, 0.0  ;;  %v17384_v46 = vpop.eup %10429  ;;  %v6063_v39 = vmul.f32 %v10428_v57, %v17272_v33  ;;  %v17389_v4 = vmax.f32 %v6916_v55, 0.0 }
 0x679   :  { %18831 = vst [vmem:[#allocation45_spill] sm:$0xff] %v17384_v46  ;;  %10449 = vrsqrt.f32 %v17360_v13  ;;  %v10432_v20 = vpop.eup %10431  ;;  %v6072_v12 = vsel %vm6071_vm3, %v17266_v19, %v6070_v1  ;;  %vm6632_vm13 = vcmp.eq.f32.partialorder %v17342_v44, inf  ;;  %vm6634_vm14 = vcmp.eq.f32.partialorder %v17342_v44, 0.0  ;;  %v6615_v1 = vpop.xlane.xlu0 %6614 }
 0x67a   :  { %10451 = vpow2.f32 %v7421_v42  ;;  %v17397_v57 = vpop.eup %10433  ;;  %v6075_v21 = vsel %vm6073_vm4, %v6074_v59, %v6072_v12  ;;  %v6065_v55 = vsel %vm6064_vm5, %v17272_v33, %v6063_v39  ;;  %v6375_v42 = vmul.f32 %v10432_v20, %v17292_v8 }
 0x67b   :  { %18832 = vst [vmem:[#allocation143_spill] sm:$0xff] %v17397_v57  ;;  %vm6944_vm15 = vcmp.eq.f32.partialorder %v17348_v23, inf  ;;  %10453 = vrsqrt.f32 %v17377_v32  ;;  %v10436_v26 = vpop.eup %10435  ;;  %v7416_v46 = vmul.f32 -1.442695, %v6075_v21  ;;  %v6068_v11 = vsel %vm6066_vm6, %v6067_v29, %v6065_v55 }
 0x67c   :  { %vm6946_vm0 = vcmp.eq.f32.partialorder %v17348_v23, 0.0  ;;  %vm6937_vm1 = vcmp.eq.f32.partialorder %v17354_v37, inf  ;;  %10455 = vrsqrt.f32 %v17382_v43  ;;  %v17413_v19 = vmax.f32 %v6617_v27, 0.0  ;;  %v10438_v59 = vpop.eup %10437 }
 0x67d   :  { %v7415_v39 = vmul.f32 -1.442695, %v6068_v11  ;;  %v6377_v20 = vsel %vm6376_vm7, %v17292_v8, %v6375_v42  ;;  %v6368_v12 = vmul.f32 %v10436_v26, %v17317_v41  ;;  %vm6939_vm2 = vcmp.eq.f32.partialorder %v17354_v37, 0.0  ;;  %v17422_v33 = vpop.eup %10439 }
 0x67e   :  { %vm6653_vm3 = vcmp.eq.f32.partialorder %v17360_v13, inf  ;;  %10457 = vrsqrt.f32 %v17389_v4  ;;  %18833 = vst [vmem:[#allocation36_spill] sm:$0xff] %v17422_v33  ;;  %v6380_v21 = vsel %vm6378_vm8, %v6379_v58, %v6377_v20  ;;  %v6638_v27 = vmul.f32 %v10438_v59, %v17325_v24  ;;  %v17430_v29 = vpop.eup %10441 }
 0x67f   :  { %10459 = vpow2.f32 %v7416_v46  ;;  %vm6655_vm4 = vcmp.eq.f32.partialorder %v17360_v13, 0.0  ;;  %v17428_v11 = vmax.f32 %v6615_v1, 0.0  ;;  %18834 = vst [vmem:[#allocation86_spill] sm:$0xff] %v17430_v29  ;;  %v7424_v26 = vmul.f32 -1.442695, %v6380_v21  ;;  %v10444_v8 = vpop.eup %10443 }
 0x680   :  { %10461 = vpow2.f32 %v7415_v39  ;;  %v6370_v55 = vsel %vm6369_vm9, %v17317_v41, %v6368_v12  ;;  %vm6646_vm5 = vcmp.eq.f32.partialorder %v17377_v32, inf  ;;  %v6649_v46 = vand.u32 2147483648, %v17377_v32  ;;  %v10446_v39 = vpop.eup %10445 }
 0x681   :  { %v18835_v58 = vand.u32 2147483648, %v17317_v41  ;;  %v6640_v1 = vsel %vm6639_vm11, %v17325_v24, %v6638_v27  ;;  %vm6648_vm6 = vcmp.eq.f32.partialorder %v17377_v32, 0.0  ;;  %vm6958_vm7 = vcmp.eq.f32.partialorder %v17382_v43, inf }
 0x682   :  { %10463 = vrsqrt.f32 %v17413_v19  ;;  %v18836_v12 = vand.u32 2147483648, %v17325_v24  ;;  %v6631_v21 = vmul.f32 %v10444_v8, %v17342_v44  ;;  %vm6960_vm8 = vcmp.eq.f32.partialorder %v17382_v43, 0.0 }
 0x683   :  { %v6373_v42 = vsel %vm6371_vm10, %v18835_v58, %v6370_v55  ;;  %10465 = vpow2.f32 %v7424_v26  ;;  %v10448_v55 = vpop.eup %10447  ;;  %v6943_v58 = vmul.f32 %v10446_v39, %v17348_v23  ;;  %vm6951_vm9 = vcmp.eq.f32.partialorder %v17389_v4, inf }
 0x684   :  { %v7423_v20 = vmul.f32 -1.442695, %v6373_v42  ;;  %v6643_v41 = vsel %vm6641_vm12, %v18836_v12, %v6640_v1  ;;  %10467 = vrsqrt.f32 %v17428_v11  ;;  %v10450_v59 = vpop.eup %10449  ;;  %v6633_v26 = vsel %vm6632_vm13, %v17342_v44, %v6631_v21  ;;  %v17474_v21 = vpop.xlane.xlu0 %6919 }
 0x685   :  { %v7426_v27 = vmul.f32 -1.442695, %v6643_v41  ;;  %v6936_v24 = vmul.f32 %v10448_v55, %v17354_v37  ;;  %vm6953_vm10 = vcmp.eq.f32.partialorder %v17389_v4, 0.0  ;;  %v6954_v8 = vand.u32 2147483648, %v17389_v4  ;;  %v10452_v42 = vpop.eup %10451  ;;  %v17472_v41 = vpop.xlane.xlu1 %6921 }
 0x686   :  { %10469 = vpow2.f32 %v7423_v20  ;;  %v18837_v1 = vand.u32 2147483648, %v17342_v44  ;;  %v6945_v20 = vsel %vm6944_vm15, %v17348_v23, %v6943_v58  ;;  %v6652_v12 = vmul.f32 %v10450_v59, %v17360_v13  ;;  %v10454_v55 = vpop.eup %10453 }
 0x687   :  { %10471 = vpow2.f32 %v7426_v27  ;;  %vm6667_vm11 = vcmp.eq.f32.partialorder %v17413_v19, inf  ;;  %v6409_v29 = vadd.f32 1.0, %v10452_v42  ;;  %v18838_v57 = vand.u32 2147483648, %v17348_v23  ;;  %v10456_v59 = vpop.eup %10455 }
 0x688   :  { %v6636_v39 = vsel %vm6634_vm14, %v18837_v1, %v6633_v26  ;;  %v6938_v58 = vsel %vm6937_vm1, %v17354_v37, %v6936_v24  ;;  %vm6669_vm12 = vcmp.eq.f32.partialorder %v17413_v19, 0.0  ;;  %v18839_v1 = vand.u32 2147483648, %v17354_v37 }
 0x689   :  { %v7425_v27 = vmul.f32 -1.442695, %v6636_v39  ;;  %v6948_v44 = vsel %vm6946_vm0, %v18838_v57, %v6945_v20  ;;  %v6654_v42 = vsel %vm6653_vm3, %v17360_v13, %v6652_v12  ;;  %v6645_v23 = vmul.f32 %v10454_v55, %v17377_v32  ;;  %v10458_v57 = vpop.eup %10457 }
 0x68a   :  { %v7434_v26 = vmul.f32 -1.442695, %v6948_v44  ;;  %v6941_v33 = vsel %vm6939_vm2, %v18839_v1, %v6938_v58  ;;  %10473 = vrcp.f32 %v6409_v29  ;;  %v18840_v24 = vand.u32 2147483648, %v17360_v13  ;;  %v10460_v45 = vpop.eup %10459 }
 0x68b   :  { %v7433_v39 = vmul.f32 -1.442695, %v6941_v33  ;;  %v6957_v44 = vmul.f32 %v10456_v59, %v17382_v43  ;;  %10475 = vpow2.f32 %v7425_v27  ;;  %v6647_v58 = vsel %vm6646_vm5, %v17377_v32, %v6645_v23  ;;  %v10462_v55 = vpop.eup %10461  ;;  %v6621_v23 = vpop.xlane.xlu1 %6620 }
 0x68c   :  { %v6657_v20 = vsel %vm6655_vm4, %v18840_v24, %v6654_v42  ;;  %v6950_v12 = vmul.f32 %v10458_v57, %v17389_v4  ;;  %vm7059_vm13 = vcmp.gt.f32.partialorder %v17257_v56, 0.0  ;;  %v6107_v33 = vadd.f32 1.0, %v10460_v45  ;;  %v10464_v27 = vpop.eup %10463  ;;  %v6619_v57 = vpop.xlane.xlu0 %6618 }
 0x68d   :  { %v7428_v37 = vmul.f32 -1.442695, %v6657_v20  ;;  %10477 = vpow2.f32 %v7434_v26  ;;  %v6650_v13 = vsel %vm6648_vm6, %v6649_v46, %v6647_v58  ;;  %v6959_v29 = vsel %vm6958_vm7, %v17382_v43, %v6957_v44  ;;  %v10466_v24 = vpop.eup %10465 }
 0x68e   :  { %v6106_v59 = vadd.f32 1.0, %v10462_v55  ;;  %10479 = vpow2.f32 %v7433_v39  ;;  %v7427_v1 = vmul.f32 -1.442695, %v6650_v13  ;;  %v6670_v42 = vand.u32 2147483648, %v17413_v19  ;;  %v10468_v20 = vpop.eup %10467 }
 0x68f   :  { %10481 = vrcp.f32 %v6107_v33  ;;  %v18841_v45 = vand.u32 2147483648, %v17382_v43  ;;  %v6952_v46 = vsel %vm6951_vm9, %v17389_v4, %v6950_v12  ;;  %v6666_v26 = vmul.f32 %v10464_v27, %v17413_v19 }
 0x690   :  { %10483 = vrcp.f32 %v6106_v59  ;;  %v6412_v39 = vadd.f32 1.0, %v10466_v24  ;;  %v6955_v44 = vsel %vm6953_vm10, %v6954_v8, %v6952_v46  ;;  %vm6660_vm14 = vcmp.eq.f32.partialorder %v17428_v11, inf  ;;  %v10470_v58 = vpop.eup %10469  ;;  %v6924_v46 = vpop.xlane.xlu0 %6923 }
 0x691   :  { %v6962_v32 = vsel %vm6960_vm8, %v18841_v45, %v6959_v29  ;;  %10485 = vpow2.f32 %v7428_v37  ;;  %v6668_v43 = vsel %vm6667_vm11, %v17413_v19, %v6666_v26  ;;  %v6659_v55 = vmul.f32 %v10468_v20, %v17428_v11  ;;  %v10472_v33 = vpop.eup %10471  ;;  %v6926_v45 = vpop.xlane.xlu1 %6925 }
 0x692   :  { %v6663_v12 = vand.u32 2147483648, %v17428_v11  ;;  %10487 = vrcp.f32 %v6412_v39  ;;  %v6411_v13 = vadd.f32 1.0, %v10470_v58  ;;  %v7436_v29 = vmul.f32 -1.442695, %v6962_v32 }
 0x693   :  { %v6671_v4 = vsel %vm6669_vm12, %v6670_v42, %v6668_v43  ;;  %v6711_v8 = vadd.f32 1.0, %v10472_v33  ;;  %10489 = vpow2.f32 %v7427_v1  ;;  %v7435_v27 = vmul.f32 -1.442695, %v6955_v44 }
 0x694   :  { %v6661_v37 = vsel %vm6660_vm14, %v17428_v11, %v6659_v55  ;;  %v17528_v59 = vmul.f32 0.2, %v17302_v61  ;;  %10491 = vrcp.f32 %v6411_v13  ;;  %v7430_v24 = vmul.f32 -1.442695, %v6671_v4  ;;  %v17531_v26 = vpop.eup %10473  ;;  %v17563_v13 = vld [vmem:[%s18016_s11 + $0x10] sm:$0xff]  ;;  %v17573_v4 = vld [vmem:[%s18016_s11 + $0x20] sm:$0xff] }
 0x695   :  { %vm6662_vm15 = vcmp.eq.f32.partialorder %v17428_v11, 0.0  ;;  %18843 = vst [vmem:[#allocation184_spill] sm:$0xff] %v17531_v26  ;;  %10493 = vrcp.f32 %v6711_v8  ;;  %v17534_v19 = vmax.f32 %v17472_v41, 0.0  ;;  %v17537_v1 = vmax.f32 %v17474_v21, 0.0  ;;  %v10476_v42 = vpop.eup %10475  ;;  %v7123_v41 = vld [vmem:[%s18016_s11] sm:$0xff]  ;;  %v7124_v21 = vld [vmem:[%s18016_s11 + $0x8] sm:$0xff] }
 0x696   :  { %18842 = vst [vmem:[#allocation186_spill] sm:$0xff] %v17528_v59  ;;  %v6664_v32 = vsel %vm6662_vm15, %v6663_v12, %v6661_v37  ;;  %10495 = vpow2.f32 %v7436_v29  ;;  %v17539_v20 = vmax.f32 %v6621_v23, 0.0  ;;  %v17541_v39 = vmax.f32 %v6619_v57, 0.0  ;;  %v17568_v29 = vld [vmem:[%s18016_s11 + $0x18] sm:$0xff]  ;;  %v17587_v37 = vld [vmem:[%s18016_s11 + $0x28] sm:$0xff] }
 0x697   :  { %v10478_v44 = vpop.eup %10477  ;;  %v6710_v11 = vadd.f32 1.0, %v10476_v42  ;;  %10497 = vpow2.f32 %v7435_v27  ;;  %v17543_v58 = vmax.f32 %v6926_v45, 0.0  ;;  %v17545_v43 = vmax.f32 %v6924_v46, 0.0  ;;  %v17597_v45 = vld [vmem:[%s18016_s11 + $0x38] sm:$0xff]  ;;  %v17607_v42 = vld [vmem:[%s18016_s11 + $0x40] sm:$0xff] }
 0x698   :  { %v18146_v55 = vmov 0.0|0.0   ;;  %v10480_v23 = vpop.eup %10479  ;;  %v17558_v57 = vsel %vm7059_vm13, %v17257_v56, %v17297_v47  ;;  %v7016_v12 = vadd.f32 1.0, %v10478_v44  ;;  %10499 = vpow2.f32 %v7430_v24  ;;  %v17592_v24 = vld [vmem:[%s18016_s11 + $0x30] sm:$0xff]  ;;  %v17612_v44 = vld [vmem:[%s18016_s11 + $0x48] sm:$0xff] }
 0x699   :  { %9374 = vmatprep.subr.bf16.mxu1 %v18146_v55  ;;  %18844 = vst [vmem:[#allocation82_spill] sm:$0xff] %v17558_v57  ;;  %v7429_v33 = vmul.f32 -1.442695, %v6664_v32  ;;  %v17575_v56 = vpop.eup %10481  ;;  %v17578_v47 = vmul.f32 0.2, %v17311_v49  ;;  %v17582_v8 = vadd.f32 %v17308_v18, %v17330_v36  ;;  %10501 = vrcp.f32 %v6710_v11  ;;  %v17617_v11 = vld [vmem:[%s18016_s11 + $0x50] sm:$0xff] }
 0x69a   :  { %v7015_v27 = vadd.f32 1.0, %v10480_v23  ;;  %v17599_v46 = vpop.eup %10483  ;;  %10503 = vrcp.f32 %v7016_v12  ;;  %v17625_v18 = vld [vmem:[%s18016_s11 + $0x58] sm:$0xff]  ;;  %v17630_v55 = vld [vmem:[%s18016_s11 + $0x60] sm:$0xff]  ;;  %v9375_v36 = vpack.c.bf16 %v7124_v21, %v7123_v41  ;;  %vm10680_vm0 = vmmov 0  }
 0x69b   :  { %18845 = vst [vmem:[#allocation35_spill] sm:$0xff] %v17578_v47  ;;  %18846 = vst [vmem:[#allocation103_spill] sm:$0xff] %v17582_v8  ;;  %v10486_v23 = vpop.eup %10485  ;;  %v9378_v8 = vpack.c.bf16 %v17568_v29, %v17563_v13  ;;  %v17644_v47 = vld [vmem:[%s18016_s11 + $0x70] sm:$0xff]  ;;  %v17649_v57 = vld [vmem:[%s18016_s11 + $0x78] sm:$0xff]  ;;  %vm6972_vm1 = vcmp.eq.f32.partialorder %v17534_v19, inf  ;;  %vm6974_vm2 = vcmp.eq.f32.partialorder %v17534_v19, 0.0 }
 0x69c   :  { %10505 = vrcp.f32 %v7015_v27  ;;  %v17635_v27 = vld [vmem:[%s18016_s11 + $0x68] sm:$0xff]  ;;  %v17637_v12 = vpop.eup %10487  ;;  %v6713_v32 = vadd.f32 1.0, %v10486_v23  ;;  %9376 = vmatpush3.bf16.msra.mxu1 %v9375_v36  ;;  %v17672_v36 = vmul.f32 %v16688_v52, %v16217_v51  ;;  %v17680_v23 = vmul.f32 %v16750_v25, %v16233_v38  ;;  %s10682_s11 = smov [#allocation2]  }
 0x69d   :  { %18847 = vst [vmem:[#allocation151_spill] sm:$0xff] %v17637_v12  ;;  %10507 = vpow2.f32 %v7429_v33  ;;  %v10490_v59 = vpop.eup %10489  ;;  %v9381_v33 = vpack.c.bf16 %v17587_v37, %v17573_v4  ;;  %v18849_v4 = vmov 0.0|0.0   ;;  %v9396_v37 = vpack.c.bf16 %v17649_v57, %v17644_v47  ;;  %v18851_v38 = vld [vmem:[#allocation32_spill] sm:$0xff]  ;;  %s7222_s23 = sshll.u32 %s10682_s11, 4  ;;  %s7223_s23 = int_to_ptr.vmem [resolvable:$true] %s7222_s23 }
 0x69e   :  { %10509 = vrsqrt.f32 %v17534_v19  ;;  %v17658_v13 = vpop.eup %10491  ;;  %v6712_v29 = vadd.f32 1.0, %v10490_v59  ;;  %9377 = vmatprep.subr.bf16.mxu1 %v18849_v4  ;;  %v10681_v59 = vmov 0.0   ;;  %v17690_v51 = vmul.f32 %v16815_v48, %v16246_v31  ;;  %v18852_v48 = vld [vmem:[#allocation124_spill] sm:$0xff]  ;;  %s10631_s5 = scalar_lea.vmem %s7223_s23, 1024  ;;  %p10636_p1 = scmp.lt.s32.totalorder %s7223_s23, %s7223_s23 }
 0x69f   :  { %10511 = vrcp.f32 %v6713_v32  ;;  %v17664_v26 = vpop.eup %10493  ;;  %8827 = vmatprep.mubr.msk.f32.mxu1 %vm10680_vm0, %v10681_v59  ;;  %v18850_v32 = vld [vmem:[#allocation121_spill] sm:$0xff]  ;;  %v17696_v25 = vmul.f32 %v16806_v6, %v18851_v38  ;;  %vm6965_vm3 = vcmp.eq.f32.partialorder %v17537_v1, inf  ;;  %v17712_v6 = vmul.f32 %v16733_v34, %v18852_v48  ;;  %v18855_v59 = vld [vmem:[#allocation19_spill] sm:$0xff]  ;;  %p10632_p0 = scmp.ne.s32.totalorder %s7223_s23, %s10631_s5  ;;  %p10637_p2 = scmp.lt.s32.totalorder %s10631_s5, %s10631_s5 }
 0x6a0   :  { %18848 = vst [vmem:[#allocation207_spill] sm:$0xff] %v17664_v26  ;;  %10513 = vrsqrt.f32 %v17537_v1  ;;  %v10496_v21 = vpop.eup %10495  ;;  %v17676_v12 = vmul.f32 %v16683_v40, %v18850_v32  ;;  %9379 = vmatpush3.bf16.msra.mxu1 %v9378_v8  ;;  %vm6967_vm4 = vcmp.eq.f32.partialorder %v17537_v1, 0.0  ;;  %vm6681_vm5 = vcmp.eq.f32.partialorder %v17539_v20, inf }
 0x6a1   :  { %10515 = vrcp.f32 %v6712_v29  ;;  %v10498_v41 = vpop.eup %10497  ;;  %v7018_v26 = vadd.f32 1.0, %v10496_v21  ;;  %v17686_v29 = vmul.f32 %v16744_v22, %v16230_v63  ;;  %v17700_v21 = vmul.f32 %v16922_v60, %v16303_v14  ;;  %9380 = vmatprep.subr.bf16.mxu1 %v18849_v4  ;;  %v18853_v14 = vld [vmem:[#allocation91_spill] sm:$0xff]  ;;  %p10638_p3 = por %p10637_p2, %p10636_p1 }
 0x6a2   :  { %10517 = vrsqrt.f32 %v17539_v20  ;;  %v10500_v40 = vpop.eup %10499  ;;  %v7017_v52 = vadd.f32 1.0, %v10498_v41  ;;  %v17708_v22 = vmul.f32 %v16895_v35, %v16300_v16  ;;  %v5250_v60 = vmul.f32 %v16724_v0, %v18853_v14 }
 0x6a3   :  { %10519 = vrsqrt.f32 %v17541_v39  ;;  %v17702_v63 = vpop.eup %10501  ;;  %v6715_v31 = vadd.f32 1.0, %v10500_v40  ;;  %v17725_v16 = vmul.f32 %v16765_v2, %v18855_v59  ;;  %v17732_v34 = vmul.f32 %v16859_v7, %v16290_v62  ;;  %v18857_v2 = vld [vmem:[#allocation168_spill] sm:$0xff]  ;;  %v18862_v59 = vld [vmem:[#allocation98_spill] sm:$0xff]  ;;  %p10639_p4 = pnand %p10638_p3, %p10632_p0 }
 0x6a4   :  { %10521 = vrcp.f32 %v7018_v26  ;;  %v17714_v8 = vpop.eup %10503  ;;  %v18854_v26 = vld [vmem:[#allocation125_spill] sm:$0xff]  ;;  %v17736_v0 = vmul.f32 %v16837_v30, %v16287_v5  ;;  %vm6683_vm6 = vcmp.eq.f32.partialorder %v17539_v20, 0.0  ;;  %vm6674_vm7 = vcmp.eq.f32.partialorder %v17541_v39, inf  ;;  %9382 = vmatpush3.bf16.msra.mxu1 %v9381_v33 }
 0x6a5   :  { %10523 = vrcp.f32 %v7017_v52  ;;  %v17721_v41 = vmul.f32 %v16782_v50, %v18854_v26  ;;  %v18856_v50 = vld [vmem:[#allocation203_spill] sm:$0xff]  ;;  %v18858_v52 = vld [vmem:[#allocation178_spill] sm:$0xff]  ;;  %v5257_v5 = vmax.f32 %v17672_v36, %v17712_v6  ;;  %v5258_v30 = vmax.f32 %v17676_v12, %v5250_v60  ;;  %9383 = vmatprep.subr.bf16.mxu1 %v18849_v4 }
 0x6a6   :  { %v17727_v35 = vpop.eup %10505  ;;  %10525 = vrcp.f32 %v6715_v31  ;;  %v17740_v32 = vmul.f32 %v18856_v50, %v16311_v53  ;;  %v17747_v62 = vmul.f32 %v18858_v52, %v18857_v2  ;;  %vm6676_vm8 = vcmp.eq.f32.partialorder %v17541_v39, 0.0  ;;  %v18859_v60 = vld [vmem:[#allocation131_spill] sm:$0xff] }
 0x6a7   :  { %v10508_v40 = vpop.eup %10507  ;;  %10527 = vrsqrt.f32 %v17543_v58  ;;  %v5259_v33 = vmax.f32 %v17680_v23, %v17721_v41  ;;  %v5260_v38 = vmax.f32 %v17686_v29, %v17725_v16  ;;  %v5261_v12 = vmax.f32 %v17690_v51, %v17732_v34  ;;  %v18860_v29 = vld [vmem:[#allocation205_spill] sm:$0xff]  ;;  %v18861_v41 = vld [vmem:[#allocation140_spill] sm:$0xff]  ;;  %v18865_v34 = vld [vmem:[#allocation78_spill] sm:$0xff] }
 0x6a8   :  { %v10510_v7 = vpop.eup %10509  ;;  %v6714_v53 = vadd.f32 1.0, %v10508_v40  ;;  %10529 = vrsqrt.f32 %v17545_v43  ;;  %v5262_v48 = vmax.f32 %v17696_v25, %v17736_v0  ;;  %v5263_v6 = vmax.f32 %v17700_v21, %v17740_v32  ;;  %v18866_v32 = vld [vmem:[#allocation129_spill] sm:$0xff] }
 0x6a9   :  { %v17759_v31 = vpop.eup %10511  ;;  %v6971_v36 = vmul.f32 %v10510_v7, %v17534_v19  ;;  %v5264_v23 = vmax.f32 %v17708_v22, %v17747_v62  ;;  %v5554_v26 = vmul.f32 %v18860_v29, %v18859_v60  ;;  %v5555_v16 = vmul.f32 %v18862_v59, %v18861_v41  ;;  %v18864_v22 = vld [vmem:[#allocation21_spill] sm:$0xff]  ;;  %v18873_v29 = vld [vmem:[#allocation135_spill] sm:$0xff] }
 0x6aa   :  { %v10514_v14 = vpop.eup %10513  ;;  %10531 = vrcp.f32 %v6714_v53  ;;  %vm6986_vm9 = vcmp.eq.f32.partialorder %v17543_v58, inf  ;;  %v18863_v21 = vpack.c.bf16 %v17597_v45, %v17592_v24  ;;  %v5556_v0 = vmul.f32 %v18865_v34, %v18864_v22  ;;  %v18867_v40 = vld [vmem:[#allocation133_spill] sm:$0xff]  ;;  %v18869_v24 = vld [vmem:[#allocation228_spill] sm:$0xff]  ;;  %v18874_v22 = vld [vmem:[#allocation95_spill] sm:$0xff] }
 0x6ab   :  { %v17774_v50 = vpop.eup %10515  ;;  %v6973_v51 = vsel %vm6972_vm1, %v17534_v19, %v6971_v36  ;;  %v6964_v25 = vmul.f32 %v10514_v14, %v17537_v1  ;;  %v5557_v2 = vmul.f32 %v18867_v40, %v18866_v32  ;;  %v18868_v62 = vand.u32 2147483648, %v17534_v19  ;;  %v18870_v45 = vld [vmem:[#allocation84_spill] sm:$0xff]  ;;  %v18871_v36 = vld [vmem:[#allocation93_spill] sm:$0xff] }
 0x6ac   :  { %9385 = vmatpush3.bf16.msra.mxu1 %v18863_v21  ;;  %v10518_v52 = vpop.eup %10517  ;;  %vm6988_vm10 = vcmp.eq.f32.partialorder %v17543_v58, 0.0  ;;  %vm6979_vm11 = vcmp.eq.f32.partialorder %v17545_v43, inf  ;;  %v5558_v53 = vmul.f32 %v18870_v45, %v18869_v24  ;;  %v18872_v14 = vld [vmem:[#allocation97_spill] sm:$0xff]  ;;  %v5560_v41 = vmul.f32 %v17234_v3, %v18873_v29 }
 0x6ad   :  { %v6976_v7 = vsel %vm6974_vm2, %v18868_v62, %v6973_v51  ;;  %9386 = vmatprep.subr.bf16.mxu1 %v18849_v4  ;;  %v5559_v60 = vmul.f32 %v18872_v14, %v18871_v36  ;;  %v10520_v59 = vpop.eup %10519  ;;  %v6966_v19 = vsel %vm6965_vm3, %v17537_v1, %v6964_v25  ;;  %v6680_v51 = vmul.f32 %v10518_v52, %v17539_v20 }
 0x6ae   :  { %v7438_v21 = vmul.f32 -1.442695, %v6976_v7  ;;  %vm6981_vm12 = vcmp.eq.f32.partialorder %v17545_v43, 0.0  ;;  %v5561_v34 = vmul.f32 %v17230_v15, %v18874_v22  ;;  %v17808_v32 = vpop.eup %10521  ;;  %v18875_v40 = vand.u32 2147483648, %v17537_v1 }
 0x6af   :  { %v6673_v62 = vmul.f32 %v10520_v59, %v17541_v39  ;;  %v17815_v7 = vmax.f32 %v5257_v5, %v5554_v26  ;;  %v17817_v24 = vmax.f32 %v5258_v30, %v5555_v16  ;;  %v17819_v25 = vpop.eup %10523  ;;  %v6682_v15 = vsel %vm6681_vm5, %v17539_v20, %v6680_v51 }
 0x6b0   :  { %v6969_v3 = vsel %vm6967_vm4, %v18875_v40, %v6966_v19  ;;  %10533 = vpow2.f32 %v7438_v21  ;;  %v18876_v45 = vpack.c.bf16 %v17612_v44, %v17607_v42  ;;  %v17827_v1 = vmax.f32 %v5259_v33, %v5556_v0  ;;  %v17829_v36 = vpop.eup %10525  ;;  %v18882_v40 = vld [vmem:[#allocation29_spill] sm:$0xff] }
 0x6b1   :  { %v7437_v52 = vmul.f32 -1.442695, %v6969_v3  ;;  %v18877_v5 = vand.u32 2147483648, %v17539_v20  ;;  %v6675_v26 = vsel %vm6674_vm7, %v17541_v39, %v6673_v62  ;;  %v17839_v16 = vmax.f32 %v5260_v38, %v5557_v2  ;;  %v10528_v42 = vpop.eup %10527  ;;  %v18880_v2 = vld [vmem:[#allocation38_spill] sm:$0xff] }
 0x6b2   :  { %9388 = vmatpush3.bf16.msra.mxu1 %v18876_v45  ;;  %v17841_v14 = vmax.f32 %v5261_v12, %v5558_v53  ;;  %v18878_v33 = vand.u32 2147483648, %v17541_v39  ;;  %v5567_v20 = vmax.f32 %v5262_v48, %v5559_v60  ;;  %v10530_v29 = vpop.eup %10529  ;;  %v6985_v21 = vmul.f32 %v10528_v42, %v17543_v58  ;;  %v18881_v53 = vld [vmem:[#allocation137_spill] sm:$0xff]  ;;  %v18883_v39 = vld [vmem:[#allocation100_spill] sm:$0xff]  ;;  %v18885_v60 = vld [vmem:[#allocation11_spill] sm:$0xff] }
 0x6b3   :  { %v6685_v30 = vsel %vm6683_vm6, %v18877_v5, %v6682_v15  ;;  %9389 = vmatprep.subr.bf16.mxu1 %v18849_v4  ;;  %10535 = vpow2.f32 %v7437_v52  ;;  %v5568_v19 = vmax.f32 %v5263_v6, %v5560_v41  ;;  %v5569_v51 = vmax.f32 %v5264_v23, %v5561_v34  ;;  %v18884_v23 = vld [vmem:[#allocation12_spill] sm:$0xff]  ;;  %v18889_v45 = vld [vmem:[#allocation47_spill] sm:$0xff]  ;;  %v18890_v5 = vld [vmem:[#allocation33_spill] sm:$0xff] }
 0x6b4   :  { %v7432_v44 = vmul.f32 -1.442695, %v6685_v30  ;;  %v6678_v0 = vsel %vm6676_vm8, %v18878_v33, %v6675_v26  ;;  %v6978_v38 = vmul.f32 %v10530_v29, %v17545_v43  ;;  %v18879_v12 = vpack.c.bf16 %v17625_v18, %v17617_v11  ;;  %v17856_v48 = vpop.eup %10531  ;;  %v18886_v18 = vld [vmem:[#allocation201_spill] sm:$0xff]  ;;  %v18887_v11 = vld [vmem:[#allocation39_spill] sm:$0xff]  ;;  %v18891_v26 = vld [vmem:[#allocation26_spill] sm:$0xff] }
 0x6b5   :  { %v7431_v59 = vmul.f32 -1.442695, %v6678_v0  ;;  %v5859_v22 = vmul.f32 %v18881_v53, %v18880_v2  ;;  %v5860_v3 = vmul.f32 %v18883_v39, %v18882_v40  ;;  %v6987_v6 = vsel %vm6986_vm9, %v17543_v58, %v6985_v21  ;;  %v18892_v42 = vld [vmem:[#allocation170_spill] sm:$0xff]  ;;  %v18895_v21 = vld [vmem:[#allocation28_spill] sm:$0xff] }
 0x6b6   :  { %10537 = vpow2.f32 %v7432_v44  ;;  %9391 = vmatpush3.bf16.msra.mxu1 %v18879_v12  ;;  %v5861_v41 = vmul.f32 %v18885_v60, %v18884_v23  ;;  %v5862_v34 = vmul.f32 %v18887_v11, %v18886_v18  ;;  %v18888_v62 = vand.u32 2147483648, %v17543_v58 }
 0x6b7   :  { %10539 = vpow2.f32 %v7431_v59  ;;  %9392 = vmatprep.subr.bf16.mxu1 %v18849_v4  ;;  %v6980_v15 = vsel %vm6979_vm11, %v17545_v43, %v6978_v38  ;;  %v5863_v30 = vmul.f32 %v18890_v5, %v18889_v45  ;;  %v5864_v44 = vmul.f32 %v18892_v42, %v18891_v26  ;;  %v18894_v59 = vld [vmem:[#allocation128_spill] sm:$0xff] }
 0x6b8   :  { %v6990_v52 = vsel %vm6988_vm10, %v18888_v62, %v6987_v6  ;;  %v18893_v0 = vand.u32 2147483648, %v17545_v43  ;;  %v5865_v58 = vmul.f32 %v17268_v28, %v18894_v59  ;;  %v5866_v12 = vmul.f32 %v17241_v10, %v18895_v21  ;;  %v18907_v62 = vld [vmem:[#allocation134_spill] sm:$0xff] }
 0x6b9   :  { %v7440_v33 = vmul.f32 -1.442695, %v6990_v52  ;;  %v18896_v38 = vpack.c.bf16 %v17635_v27, %v17630_v55  ;;  %v5867_v53 = vmax.f32 %v17815_v7, %v5859_v22  ;;  %v5868_v40 = vmax.f32 %v17817_v24, %v5860_v3  ;;  %v18897_v55 = vld [vmem:[#allocation165_spill] sm:$0xff]  ;;  %v18898_v22 = vld [vmem:[#allocation18_spill] sm:$0xff] }
 0x6ba   :  { %v6983_v29 = vsel %vm6981_vm12, %v18893_v0, %v6980_v15  ;;  %v5869_v39 = vmax.f32 %v17827_v1, %v5861_v41  ;;  %v5870_v43 = vmax.f32 %v17839_v16, %v5862_v34  ;;  %v5871_v28 = vmax.f32 %v17841_v14, %v5863_v30  ;;  %v10534_v10 = vpop.eup %10533  ;;  %v18899_v1 = vld [vmem:[#allocation202_spill] sm:$0xff]  ;;  %v18906_v34 = vld [vmem:[#allocation43_spill] sm:$0xff]  ;;  %v18909_v0 = vld [vmem:[#allocation225_spill] sm:$0xff] }
 0x6bb   :  { %v7439_v2 = vmul.f32 -1.442695, %v6983_v29  ;;  %9394 = vmatpush3.bf16.msra.mxu1 %v18896_v38  ;;  %10541 = vpow2.f32 %v7440_v33  ;;  %v5872_v6 = vmax.f32 %v5567_v20, %v5864_v44  ;;  %v5873_v23 = vmax.f32 %v5568_v19, %v5865_v58  ;;  %v18901_v41 = vld [vmem:[#allocation50_spill] sm:$0xff]  ;;  %v18903_v20 = vld [vmem:[#allocation36_spill] sm:$0xff] }
 0x6bc   :  { %9395 = vmatprep.subr.bf16.mxu1 %v18849_v4  ;;  %v5874_v60 = vmax.f32 %v5569_v51, %v5866_v12  ;;  %v6164_v27 = vmul.f32 %v17294_v54, %v18897_v55  ;;  %v7020_v7 = vadd.f32 1.0, %v10534_v10  ;;  %v6165_v24 = vmul.f32 %v17274_v9, %v18898_v22  ;;  %v18900_v4 = vld [vmem:[#allocation132_spill] sm:$0xff]  ;;  %v18902_v14 = vld [vmem:[#allocation222_spill] sm:$0xff]  ;;  %v18905_v54 = vld [vmem:[#allocation143_spill] sm:$0xff] }
 0x6bd   :  { %10543 = vpow2.f32 %v7439_v2  ;;  %v6166_v3 = vmul.f32 %v17356_v17, %v18899_v1  ;;  %v6167_v16 = vmul.f32 %v18901_v41, %v18900_v4  ;;  %v10536_v18 = vpop.eup %10535  ;;  %v6168_v19 = vmul.f32 %v18903_v20, %v18902_v14  ;;  %v18904_v51 = vld [vmem:[#allocation92_spill] sm:$0xff]  ;;  %v18910_v59 = vld [vmem:[#allocation166_spill] sm:$0xff]  ;;  %v18912_v12 = vld [vmem:[#allocation75_spill] sm:$0xff] }
 0x6be   :  { %v6169_v11 = vmul.f32 %v18905_v54, %v18904_v51  ;;  %v6170_v9 = vmul.f32 %v17599_v46, %v18906_v34  ;;  %v6171_v17 = vmul.f32 %v17575_v56, %v18907_v62  ;;  %10545 = vrcp.f32 %v7020_v7  ;;  %v18908_v56 = vld [vmem:[#allocation200_spill] sm:$0xff]  ;;  %v18911_v58 = vld [vmem:[#allocation206_spill] sm:$0xff]  ;;  %v18913_v2 = vld [vmem:[#allocation45_spill] sm:$0xff] }
 0x6bf   :  { %9397 = vmatpush3.bf16.msra.mxu1 %v9396_v37  ;;  %v7019_v52 = vadd.f32 1.0, %v10536_v18  ;;  %v6172_v15 = vmax.f32 %v5867_v53, %v6164_v27  ;;  %v6173_v45 = vmax.f32 %v5868_v40, %v6165_v24  ;;  %v6174_v30 = vmax.f32 %v5869_v39, %v6166_v3  ;;  %v18914_v53 = vld [vmem:[#allocation224_spill] sm:$0xff]  ;;  %v18918_v10 = vld [vmem:[#allocation94_spill] sm:$0xff]  ;;  %v18921_v7 = vld [vmem:[#allocation139_spill] sm:$0xff] }
 0x6c0   :  { %v10538_v5 = vpop.eup %10537  ;;  %v6175_v57 = vmax.f32 %v5870_v43, %v6167_v16  ;;  %v6176_v47 = vmax.f32 %v5871_v28, %v6168_v19  ;;  %v6177_v37 = vmax.f32 %v5872_v6, %v6169_v11  ;;  %vm6757_vm13 = vcmp.gt.f32.partialorder %v17302_v61, 0.0  ;;  %v18915_v40 = vld [vmem:[#allocation144_spill] sm:$0xff]  ;;  %v18922_v22 = vld [vmem:[#allocation151_spill] sm:$0xff] }
 0x6c1   :  { %v10540_v26 = vpop.eup %10539  ;;  %10547 = vrcp.f32 %v7019_v52  ;;  %v6717_v42 = vadd.f32 1.0, %v10538_v5  ;;  %v17914_v44 = vmax.f32 %v5873_v23, %v6170_v9  ;;  %v17916_v46 = vmax.f32 %v5874_v60, %v6171_v17  ;;  %v18916_v43 = vld [vmem:[#allocation148_spill] sm:$0xff]  ;;  %v18919_v23 = vld [vmem:[#allocation86_spill] sm:$0xff]  ;;  %v18925_v62 = vld [vmem:[#allocation207_spill] sm:$0xff] }
 0x6c2   :  { %v6716_v33 = vadd.f32 1.0, %v10540_v26  ;;  %v6469_v29 = vmul.f32 %v18909_v0, %v18908_v56  ;;  %v6470_v21 = vmul.f32 %v18911_v58, %v18910_v59  ;;  %v6471_v38 = vmul.f32 %v18913_v2, %v18912_v12  ;;  %v18917_v28 = vld [vmem:[#allocation184_spill] sm:$0xff]  ;;  %v18926_v52 = vld [vmem:[#allocation42_spill] sm:$0xff]  ;;  %v18930_v0 = vld [vmem:[#allocation79_spill] sm:$0xff] }
 0x6c3   :  { %vm6756_vm14 = vcmp.gt.f32.partialorder %v17311_v49, 0.0  ;;  %10549 = vrcp.f32 %v6717_v42  ;;  %v6472_v39 = vmul.f32 %v18915_v40, %v18914_v53  ;;  %v6473_v6 = vmul.f32 %v18917_v28, %v18916_v43  ;;  %v18920_v55 = vld [vmem:[#allocation40_spill] sm:$0xff]  ;;  %v18932_v58 = vld [vmem:[#allocation105_spill] sm:$0xff]  ;;  %v18934_v12 = vld [vmem:[#allocation226_spill] sm:$0xff] }
 0x6c4   :  { %v6474_v60 = vmul.f32 %v18919_v23, %v18918_v10  ;;  %10551 = vrcp.f32 %v6716_v33  ;;  %v17933_v27 = vmul.f32 %v17658_v13, %v18920_v55  ;;  %v6476_v24 = vmul.f32 %v18922_v22, %v18921_v7  ;;  %v18923_v13 = vld [vmem:[#allocation20_spill] sm:$0xff]  ;;  %v18939_v7 = vld [vmem:[#allocation103_spill] sm:$0xff] }
 0x6c5   :  { %v6477_v1 = vmax.f32 %v6172_v15, %v6469_v29  ;;  %v10542_v3 = vpop.eup %10541  ;;  %v6478_v4 = vmax.f32 %v6173_v45, %v6470_v21  ;;  %v6479_v41 = vmax.f32 %v6174_v30, %v6471_v38  ;;  %v6480_v16 = vmax.f32 %v6175_v57, %v6472_v39  ;;  %v18924_v9 = vld [vmem:[#allocation136_spill] sm:$0xff]  ;;  %v18928_v30 = vld [vmem:[#allocation169_spill] sm:$0xff]  ;;  %v18933_v21 = vld [vmem:[#allocation99_spill] sm:$0xff] }
 0x6c6   :  { %v6481_v18 = vmax.f32 %v6176_v47, %v6473_v6  ;;  %v7022_v20 = vadd.f32 1.0, %v10542_v3  ;;  %v6482_v19 = vmax.f32 %v6177_v37, %v6474_v60  ;;  %v6483_v51 = vmax.f32 %v17914_v44, %v17933_v27  ;;  %v18927_v45 = vld [vmem:[#allocation96_spill] sm:$0xff]  ;;  %v18929_v47 = vld [vmem:[#allocation145_spill] sm:$0xff]  ;;  %v18935_v38 = vld [vmem:[#allocation186_spill] sm:$0xff] }
 0x6c7   :  { %v10544_v14 = vpop.eup %10543  ;;  %v6484_v54 = vmax.f32 %v17916_v46, %v6476_v24  ;;  %v6774_v34 = vmul.f32 %v17702_v63, %v18923_v13  ;;  %v6775_v17 = vmul.f32 %v18925_v62, %v18924_v9  ;;  %v6776_v15 = vmul.f32 %v17774_v50, %v18926_v52  ;;  %v18931_v59 = vld [vmem:[#allocation180_spill] sm:$0xff]  ;;  %v18938_v60 = vld [vmem:[#allocation35_spill] sm:$0xff] }
 0x6c8   :  { %v7021_v11 = vadd.f32 1.0, %v10544_v14  ;;  %10553 = vrcp.f32 %v7022_v20  ;;  %v6777_v5 = vmul.f32 %v17759_v31, %v18927_v45  ;;  %v6778_v57 = vmul.f32 %v17856_v48, %v18928_v30  ;;  %v10546_v26 = vpop.eup %10545  ;;  %v18936_v40 = vld [vmem:[#allocation204_spill] sm:$0xff] }
 0x6c9   :  { %v6779_v37 = vmul.f32 %v17829_v36, %v18929_v47  ;;  %v6782_v42 = vmax.f32 %v6477_v1, %v6774_v34  ;;  %v6783_v63 = vmax.f32 %v6478_v4, %v6775_v17  ;;  %v6784_v44 = vmax.f32 %v6479_v41, %v6776_v15 }
 0x6ca   :  { %10555 = vrcp.f32 %v7021_v11  ;;  %v6785_v46 = vmax.f32 %v6480_v16, %v6777_v5  ;;  %v6786_v33 = vmax.f32 %v6481_v18, %v6778_v57  ;;  %v7079_v50 = vmul.f32 %v17727_v35, %v18930_v0  ;;  %v18937_v35 = vld [vmem:[#allocation82_spill] sm:$0xff] }
 0x6cb   :  { %v6787_v56 = vmax.f32 %v6482_v19, %v6779_v37  ;;  %v10548_v29 = vpop.eup %10547  ;;  %v7080_v31 = vmul.f32 %v17714_v8, %v18931_v59  ;;  %v7081_v48 = vmul.f32 %v17819_v25, %v18932_v58  ;;  %v7082_v36 = vmul.f32 %v17808_v32, %v18933_v21 }
 0x6cc   :  { %v7084_v2 = vmul.f32 %v10546_v26, %v18934_v12  ;;  %v6773_v53 = vsel %vm6757_vm13, %v17302_v61, %v18935_v38  ;;  %vm7062_vm15 = vcmp.gt.f32.partialorder %v18936_v40, 0.0  ;;  %v7083_v39 = vmul.f32 %v10548_v29, %v18937_v35 }
 0x6cd   :  { %v7087_v43 = vmax.f32 %v6782_v42, %v7079_v50  ;;  %v10550_v28 = vpop.eup %10549  ;;  %v7088_v8 = vmax.f32 %v6783_v63, %v7080_v31  ;;  %v7089_v6 = vmax.f32 %v6784_v44, %v7081_v48  ;;  %v7090_v10 = vmax.f32 %v6785_v46, %v7082_v36 }
 0x6ce   :  { %v7092_v25 = vmax.f32 %v6787_v56, %v7084_v2  ;;  %v10552_v23 = vpop.eup %10551  ;;  %v6772_v32 = vsel %vm6756_vm14, %v17311_v49, %v18938_v60  ;;  %v7070_v55 = vmul.f32 0.2, %v18936_v40  ;;  %v6781_v27 = vmul.f32 %v10550_v28, %v6773_v53 }
 0x6cf   :  { %v7091_v61 = vmax.f32 %v6786_v33, %v7083_v39  ;;  %7095 = vst [vmem:[#allocation2] sm:$0xff] %v7087_v43  ;;  %v7069_v22 = vmul.f32 0.2, %v18939_v7  ;;  %v6780_v24 = vmul.f32 %v10552_v23, %v6772_v32  ;;  %7096 = vst [vmem:[#allocation2 + $0x8] sm:$0xff] %v7088_v8  ;;  %v7103_v1 = vmax.f32 %v7087_v43, %v7088_v8 }
 0x6d0   :  { %7097 = vst [vmem:[#allocation2 + $0x10] sm:$0xff] %v7089_v6  ;;  %7098 = vst [vmem:[#allocation2 + $0x18] sm:$0xff] %v7090_v10  ;;  %v7104_v3 = vmax.f32 %v7089_v6, %v7090_v10  ;;  %vm7061_vm0 = vcmp.gt.f32.partialorder %v18939_v7, 0.0  ;;  %v6789_v4 = vmax.f32 %v6484_v54, %v6781_v27  ;;  %v7078_v14 = vsel %vm7062_vm15, %v18936_v40, %v7070_v55 }
 0x6d1   :  { %7100 = vst [vmem:[#allocation2 + $0x28] sm:$0xff] %v7092_v25  ;;  %7099 = vst [vmem:[#allocation2 + $0x20] sm:$0xff] %v7091_v61  ;;  %v7112_v41 = vmax.f32 %v7091_v61, %v7092_v25  ;;  %v6788_v49 = vmax.f32 %v6483_v51, %v6780_v24  ;;  %v7077_v19 = vsel %vm7061_vm0, %v18939_v7, %v7069_v22  ;;  %vm7121_vm1 = vcmask 1040384  }
 0x6d2   :  { %v7105_v16 = vmax.f32 %v7103_v1, %v7104_v3  ;;  %v10554_v18 = vpop.eup %10553 }
 0x6d3   :  { %v7086_v11 = vmul.f32 %v10554_v18, %v7078_v14 }
 0x6d4   :  { %v10556_v20 = vpop.eup %10555  ;;  %v7106_v13 = vrot.slane %v7105_v16, 4 }
 0x6d5   :  { %v7085_v34 = vmul.f32 %v10556_v20, %v7077_v19  ;;  %v7094_v9 = vmax.f32 %v6789_v4, %v7086_v11 }
 0x6d6   :  { %v7107_v17 = vmax.f32 %v7105_v16, %v7106_v13 }
 0x6d7   :  { %v7093_v62 = vmax.f32 %v6788_v49, %v7085_v34  ;;  %7102 = vst [vmem:[#allocation2 + $0x38] sm:$0xff] %v7094_v9 }
 0x6d8   :  { %v7108_v52 = vrot.slane %v7107_v17, 2 }
 0x6d9   :  { %7101 = vst [vmem:[#allocation2 + $0x30] sm:$0xff] %v7093_v62  ;;  %v7113_v54 = vmax.f32 %v7093_v62, %v7094_v9 }
 0x6da   :  { %v7109_v45 = vmax.f32 %v7107_v17, %v7108_v52 }
 0x6db   :  { %v7114_v51 = vmax.f32 %v7112_v41, %v7113_v54 }
 0x6dc   :  { %v7110_v57 = vrot.slane %v7109_v45, 1 }
 0x6dd   :  { %v7115_v15 = vrot.slane %v7114_v51, 4 }
 0x6de   :  { %v7111_v26 = vmax.f32 %v7109_v45, %v7110_v57 }
 0x6df   :  { %v7116_v5 = vmax.f32 %v7114_v51, %v7115_v15 }
 0x6e1   :  { %v7117_v30 = vrot.slane %v7116_v5, 2 }
 0x6e3   :  { %v7118_v47 = vmax.f32 %v7116_v5, %v7117_v30 }
 0x6e5   :  { %v7119_v37 = vrot.slane %v7118_v47, 1 }
 0x6e7   :  { %v7120_v42 = vmax.f32 %v7118_v47, %v7119_v37 }
 0x6e9   :  { %v7122_v63 = vsel %vm7121_vm1, %v7111_v26, %v7120_v42 }
 0x6ea   :  { %8828 = vmatmul.mubr.f32.vlgmr.msra.gmra.mrb[96].mxu1 %v7122_v63 }
 0x6eb   :  { %10642 = shalt.err (!%p10639_p4)
}
 0x6ec   :  { %s10643_s26 = scalar_lea.hbm %s18018_s13, 1024 }
 0x6ed   :  { %p10644_p5 = scmp.ne.s32.totalorder %s18018_s13, %s10643_s26  ;;  %p10647_p6 = scmp.lt.u32.totalorder %s10643_s26, %s18018_s13 }
 0x6ef   :  { %p10649_p7 = pnand %p10647_p6, %p10644_p5 }
 0x6f1   :  { %10652 = shalt.err (!%p10649_p7)
}
 0x6f2   :  { %s10683_s15 = smov 128   ;;  %s10684_s2 = smov 8   ;;  %v7441_v44 = vld [vmem:[%s18017_s12] ss:$0 sm:$0xff] }
 0x6f3   :  { %7228 = dma.vmem_to_hbm [thread:$0]  %s7223_s23, 1024, %s18018_s13, [#allocation3], %s10683_s15, %s10683_s15, %s10684_s2  }
 0x6f4   :  { %s10685_s0 = smov [#allocation4]  }
 0x6f5   :  { %s7235_s6 = sshll.u32 %s10685_s0, 4  ;;  %s7236_s6 = int_to_ptr.vmem [resolvable:$true] %s7235_s6 }
 0x6f6   :  { %s10653_s17 = scalar_lea.vmem %s7236_s6, 32  ;;  %p10658_p9 = scmp.lt.s32.totalorder %s7236_s6, %s7236_s6 }
 0x6f7   :  { %p10654_p8 = scmp.ne.s32.totalorder %s7236_s6, %s10653_s17  ;;  %p10659_p10 = scmp.lt.s32.totalorder %s10653_s17, %s10653_s17 }
 0x6f9   :  { %p10660_p11 = por %p10659_p10, %p10658_p9 }
 0x6fb   :  { %p10661_p12 = pnand %p10660_p11, %p10654_p8 }
 0x7bd   :  { %v7212_v46 = vpop.f32.mrb[96].mxu1 }
 0x7be   :  { %v7213_v33 = vadd.f32 %v7441_v44, %v7212_v46  ;;  %v8829_v56 = vpop.f32.mrb[97].mxu1 }
 0x7c0   :  { %7216 = vst [vmem:[#allocation4] sm:$0x3] %v7213_v33 }
 0x7c1   :  { %10664 = shalt.err (!%p10661_p12)
}
 0x7c2   :  { %s10665_s18 = scalar_lea.hbm %s18019_s14, 32 }
 0x7c3   :  { %p10666_p13 = scmp.ne.s32.totalorder %s18019_s14, %s10665_s18  ;;  %p10669_p0 = scmp.lt.u32.totalorder %s10665_s18, %s18019_s14 }
 0x7c5   :  { %p10671_p1 = pnand %p10669_p0, %p10666_p13 }
 0x7c7   :  { %10674 = shalt.err (!%p10671_p1)
}
 0x7c8   :  { %7238 = dma.vmem_to_hbm [thread:$0]  %s7236_s6, 32, %s18019_s14, [#allocation5]  }
 0x7c9   :  { %10675 = dma.done.wait [#allocation3], 1024  }
 0x7ca   :  { %10676 = vsyncadd [#allocation3], 4294966272 }
 0x7cb   :  { %10677 = dma.done.wait [#allocation5], 32  }
 0x7cc   :  { %10678 = vsyncadd [#allocation5], 4294967264 }
 0x7cd   :  { %7245 = vsyncpa [#allocation3], 1 }
 0x7ce   :  { %7246 = vsyncpa [#allocation5], 1 }

</bundles_post_ra>
